<compile_context>
chip_gen: v7x
topology: tpu7x:2x2x1
jax: 0.10.0
libtpu: 0.0.40
codegen_flags: <defaults>
</compile_context>

<pallas_src>
import functools
import math

import jax
import jax.numpy as jnp
from jax.experimental import pallas as pl
from jax.experimental.pallas import tpu as pltpu


# --------------------------------------------------------------------------
# Variance schedule (plain JAX glue, mirrors the PyTorch buffers)
# --------------------------------------------------------------------------
def _cosine_variance_schedule(timesteps, epsilon=0.008):
    steps = jnp.linspace(0.0, float(timesteps), timesteps + 1, dtype=jnp.float32)
    f_t = jnp.cos((steps / timesteps + epsilon) / (1.0 + epsilon) * math.pi * 0.5) ** 2
    betas = jnp.clip(1.0 - f_t[1:] / f_t[:timesteps], 0.0, 0.999)
    return betas


# --------------------------------------------------------------------------
# Fused Pallas kernel: forward diffusion + time MLP + surrogate UNet
# --------------------------------------------------------------------------
def _make_fused_kernel(H, W, Cin, Cb):
    HW = H * W
    bf16 = jnp.bfloat16

    def pad_hw(x):
        # x: (H, W, C) f32 -> (H+2, W+2, C) with a zero halo (value-level pad).
        C = x.shape[-1]
        zrow = jnp.zeros((1, W, C), x.dtype)
        xp = jnp.concatenate([zrow, x, zrow], axis=0)          # (H+2, W, C)
        zcol = jnp.zeros((H + 2, 1, C), x.dtype)
        return jnp.concatenate([zcol, xp, zcol], axis=1)       # (H+2, W+2, C)

    def conv3x3(x, w_ref, b_ref, silu):
        # x: (H, W, C) f32 unpadded activation (channels-last)
        # w_ref: (9*C, Cout) bf16 tap-major im2col weight; b_ref: (1, Cout) f32
        C = x.shape[-1]
        xp = pad_hw(x)
        taps = [xp[kh:kh + H, kw:kw + W, :] for kh in range(3) for kw in range(3)]
        patches = jnp.concatenate(taps, axis=-1).reshape(HW, 9 * C)   # (HW, 9C)
        y = jnp.dot(patches.astype(bf16), w_ref[...],
                    preferred_element_type=jnp.float32) + b_ref[...]  # (HW, Cout)
        if silu:
            y = y * jax.nn.sigmoid(y)                                 # SiLU (EUP)
        return y

    def kernel(coefs_ref, emb_ref, x0_ref, nz_ref,
               time_w_ref, time_b_ref,
               init_w_ref, init_b_ref,
               enc_w_ref, enc_b_ref,
               dec_w_ref, dec_b_ref,
               fin_w_ref, fin_b_ref,
               o_ref):
        n = pl.program_id(0)

        # ---- forward diffusion fused with the UNet input load.
        # x0/noise arrive channels-first (Cin, HW) -> 256-lane-dense HBM loads.
        a = coefs_ref[n, 0]
        b = coefs_ref[n, 1]
        x_t_cf = a * x0_ref[0] + b * nz_ref[0]                  # (Cin, HW) f32

        # ---- time-embedding MLP: SiLU(emb @ W + b)
        e_row = emb_ref[pl.ds(n, 1), :]                          # (1, Tdim)
        tp = jnp.dot(e_row.astype(bf16), time_w_ref[...],
                     preferred_element_type=jnp.float32) + time_b_ref[...]
        t_proj = tp * jax.nn.sigmoid(tp)                         # (1, Cb)

        # ---- init conv: 3x3, Cin -> Cb
        x_t = x_t_cf.T.reshape(H, W, Cin)                        # channels-last
        h0 = conv3x3(x_t, init_w_ref, init_b_ref, True)          # (HW, Cb)

        # ---- enc conv: 3x3, Cb -> 2*Cb, time-conditioned.
        # Time bias added to the UNPADDED activation so the halo stays zero.
        h1 = conv3x3((h0 + t_proj).reshape(H, W, Cb),
                     enc_w_ref, enc_b_ref, True)                 # (HW, 2Cb)

        # ---- dec conv: 3x3, 2*Cb -> Cb
        h2 = conv3x3(h1.reshape(H, W, 2 * Cb),
                     dec_w_ref, dec_b_ref, True)                 # (HW, Cb)

        # ---- final 1x1 conv on (h2 + h0) with skip, no activation
        out = jnp.dot((h2 + h0).astype(bf16), fin_w_ref[...],
                      preferred_element_type=jnp.float32) + fin_b_ref[...]  # (HW, Cin)

        # lane-dense (Cin, HW) store; the wrapper just reshapes back to NCHW.
        o_ref[0] = out.T.astype(o_ref.dtype)

    return kernel


def fused_diffusion_unet(coefs, emb, x_cf, noise_cf, params, H, W):
    """coefs: (N,2) f32; emb: (N,Tdim) f32; x_cf/noise_cf: (N, Cin, H*W) f32."""
    N, Cin, HW = x_cf.shape
    Tdim = emb.shape[1]
    Cb = params["time_b"].shape[0]
    bf16 = jnp.bfloat16

    # im2col weights: (KH,KW,Cin,Cout) -> (KH*KW*Cin, Cout), bf16 for the MXU.
    weights = [
        params["time_w"].astype(bf16),
        params["time_b"].reshape(1, Cb),
        params["init_w"].reshape(9 * Cin, Cb).astype(bf16),
        params["init_b"].reshape(1, Cb),
        params["enc_w"].reshape(9 * Cb, 2 * Cb).astype(bf16),
        params["enc_b"].reshape(1, 2 * Cb),
        params["dec_w"].reshape(9 * 2 * Cb, Cb).astype(bf16),
        params["dec_b"].reshape(1, Cb),
        params["final_w"].reshape(Cb, Cin).astype(bf16),
        params["final_b"].reshape(1, Cin),
    ]
    # All weight arrays are rank-2 and passed as full (un-tiled) blocks;
    # constant block index => no per-step re-DMA.
    weight_specs = [pl.BlockSpec(w.shape, lambda n: (0, 0)) for w in weights]

    kernel = _make_fused_kernel(H, W, Cin, Cb)

    # VMEM footprint per step is ~1 MB at these sizes; if image_size/base_dim
    # scale up, tile rows of H and set vmem_limit_bytes explicitly.
    out_cf = pl.pallas_call(
        kernel,
        out_shape=jax.ShapeDtypeStruct((N, Cin, HW), jnp.float32),
        grid=(N,),
        in_specs=[
            pl.BlockSpec(memory_space=pltpu.MemorySpace.SMEM),   # coefs (N,2)
            pl.BlockSpec((N, Tdim), lambda n: (0, 0)),           # emb (whole)
            pl.BlockSpec((1, Cin, HW), lambda n: (n, 0, 0)),     # x0
            pl.BlockSpec((1, Cin, HW), lambda n: (n, 0, 0)),     # noise
        ] + weight_specs,
        out_specs=pl.BlockSpec((1, Cin, HW), lambda n: (n, 0, 0)),
        compiler_params=pltpu.CompilerParams(
            dimension_semantics=("parallel",)),                  # v7x: 1 sample / core
    )(coefs, emb, x_cf, noise_cf, *weights)
    return out_cf


# --------------------------------------------------------------------------
# Model (parameters + forward)
# --------------------------------------------------------------------------
def init_params(key, in_channels, base_dim, time_embedding_dim, timesteps):
    ks = jax.random.split(key, 6)

    def conv_w(k, kh, kw, cin, cout):
        fan_in = kh * kw * cin
        return (jax.random.normal(k, (kh, kw, cin, cout), jnp.float32)
                * (2.0 / fan_in) ** 0.5)

    return {
        "emb_table": jax.random.normal(
            ks[0], (timesteps, time_embedding_dim), jnp.float32) * 0.02,
        "time_w": jax.random.normal(
            ks[1], (time_embedding_dim, base_dim), jnp.float32)
            * (1.0 / time_embedding_dim) ** 0.5,
        "time_b": jnp.zeros((base_dim,), jnp.float32),
        "init_w": conv_w(ks[2], 3, 3, in_channels, base_dim),
        "init_b": jnp.zeros((base_dim,), jnp.float32),
        "enc_w": conv_w(ks[3], 3, 3, base_dim, base_dim * 2),
        "enc_b": jnp.zeros((base_dim * 2,), jnp.float32),
        "dec_w": conv_w(ks[4], 3, 3, base_dim * 2, base_dim),
        "dec_b": jnp.zeros((base_dim,), jnp.float32),
        "final_w": conv_w(ks[5], 1, 1, base_dim, in_channels),
        "final_b": jnp.zeros((in_channels,), jnp.float32),
    }


def diffusion_model_forward(params, buffers, x, noise, t_key, timesteps):
    # t = torch.randint(0, timesteps, (x.shape[0],))
    N, C, H, W = x.shape
    t = jax.random.randint(t_key, (N,), 0, timesteps)
    coefs = jnp.stack([buffers["sqrt_alphas_cumprod"][t],
                       buffers["sqrt_one_minus_alphas_cumprod"][t]],
                      axis=-1).astype(jnp.float32)               # (N, 2) glue gather
    emb = params["emb_table"][t]                                  # (N, Tdim) glue gather
    x_cf = x.reshape(N, C, H * W)                                 # NCHW -> (N,C,HW), no transpose
    n_cf = noise.reshape(N, C, H * W)
    out_cf = fused_diffusion_unet(coefs, emb, x_cf, n_cf, params, H, W)
    return out_cf.reshape(N, C, H, W)                             # back to NCHW


# --------------------------------------------------------------------------
# Pure-JAX reference (same surrogate, same bf16-at-matmul precision)
# --------------------------------------------------------------------------
def reference_forward(params, coefs, emb, x, noise):
    bf = jnp.bfloat16
    N, C, H, W = x.shape
    a = coefs[:, 0].reshape(N, 1, 1, 1)
    b = coefs[:, 1].reshape(N, 1, 1, 1)
    x_t = a * x + b * noise
    xh = jnp.transpose(x_t, (0, 2, 3, 1))                         # NHWC

    def conv3x3(h, w, bias):
        y = jax.lax.conv_general_dilated(
            h.astype(bf), w.astype(bf), (1, 1), "SAME",
            dimension_numbers=("NHWC", "HWIO", "NHWC"),
            preferred_element_type=jnp.float32) + bias
        return y * jax.nn.sigmoid(y)

    tp = jnp.dot(emb.astype(bf), params["time_w"].astype(bf),
                 preferred_element_type=jnp.float32) + params["time_b"]
    t_proj = tp * jax.nn.sigmoid(tp)                              # (N, Cb)

    h0 = conv3x3(xh, params["init_w"], params["init_b"])
    h1 = conv3x3(h0 + t_proj[:, None, None, :], params["enc_w"], params["enc_b"])
    h2 = conv3x3(h1, params["dec_w"], params["dec_b"])
    Cb = params["time_b"].shape[0]
    fin_w = params["final_w"].reshape(Cb, C)
    out = (jnp.dot((h2 + h0).astype(bf).reshape(N * H * W, Cb), fin_w.astype(bf),
                   preferred_element_type=jnp.float32).reshape(N, H, W, C)
           + params["final_b"])
    return jnp.transpose(out, (0, 3, 1, 2))                       # NCHW


# --------------------------------------------------------------------------
if __name__ == "__main__":
    batch = 2
    in_channels = 4
    image_size = 16
    timesteps = 1000
    time_embedding_dim = 64
    base_dim = 32

    key = jax.random.PRNGKey(0)
    k_param, k_x, k_noise, k_t = jax.random.split(key, 4)

    betas = _cosine_variance_schedule(timesteps)
    alphas = 1.0 - betas
    alphas_cumprod = jnp.cumprod(alphas, axis=-1)
    buffers = {
        "betas": betas,
        "alphas": alphas,
        "alphas_cumprod": alphas_cumprod,
        "sqrt_alphas_cumprod": jnp.sqrt(alphas_cumprod),
        "sqrt_one_minus_alphas_cumprod": jnp.sqrt(1.0 - alphas_cumprod),
    }

    params = init_params(k_param, in_channels, base_dim,
                         time_embedding_dim, timesteps)

    x = jax.random.normal(k_x, (batch, in_channels, image_size, image_size),
                          jnp.float32)
    noise = jax.random.normal(k_noise, x.shape, jnp.float32)

    forward = jax.jit(functools.partial(diffusion_model_forward,
                                        timesteps=timesteps))
    pred_noise = forward(params, buffers, x, noise, k_t)
    pred_noise = jax.block_until_ready(pred_noise)

    assert pred_noise.shape == x.shape, pred_noise.shape
    assert pred_noise.dtype == jnp.float32
    assert bool(jnp.all(jnp.isfinite(pred_noise)))

    # Numerical check against a pure-JAX reference using the same t (k_t is
    # deterministic, so recomputing t / coefs / emb gives identical values).
    t = jax.random.randint(k_t, (batch,), 0, timesteps)
    coefs = jnp.stack([buffers["sqrt_alphas_cumprod"][t],
                       buffers["sqrt_one_minus_alphas_cumprod"][t]], axis=-1)
    emb = params["emb_table"][t]
    ref = reference_forward(params, coefs, emb, x, noise)
    err = float(jnp.max(jnp.abs(pred_noise - ref)))
    assert err < 5e-2, f"max abs err vs reference: {err}"

    print("KERNEL_OK")
</pallas_src>

<mosaic_0001>
module attributes {stable_mosaic.version = 11 : i64} {
  func.func @kernel(%arg0: i32, %arg1: memref<2x2xf32, #tpu.memory_space<smem>>, %arg2: memref<2x64xf32, #tpu.memory_space<vmem>>, %arg3: memref<1x4x256xf32, #tpu.memory_space<vmem>>, %arg4: memref<1x4x256xf32, #tpu.memory_space<vmem>>, %arg5: memref<64x32xbf16, #tpu.memory_space<vmem>>, %arg6: memref<1x32xf32, #tpu.memory_space<vmem>>, %arg7: memref<36x32xbf16, #tpu.memory_space<vmem>>, %arg8: memref<1x32xf32, #tpu.memory_space<vmem>>, %arg9: memref<288x64xbf16, #tpu.memory_space<vmem>>, %arg10: memref<1x64xf32, #tpu.memory_space<vmem>>, %arg11: memref<576x32xbf16, #tpu.memory_space<vmem>>, %arg12: memref<1x32xf32, #tpu.memory_space<vmem>>, %arg13: memref<32x4xbf16, #tpu.memory_space<vmem>>, %arg14: memref<1x4xf32, #tpu.memory_space<vmem>>, %arg15: memref<1x4x256xf32, #tpu.memory_space<vmem>>) attributes {dimension_semantics = [#tpu.dimension_semantics<parallel>], iteration_bounds = array<i64: 2>, scalar_prefetch = 0 : i64, scratch_operands = 0 : i64, tpu.core_type = #tpu.core_type<tc>, window_params = [{transform_indices = @transform_0, window_bounds = array<i64: 2, 2>}, {pipeline_mode = #tpu.pipeline_mode<synchronous>, transform_indices = @transform_1, window_bounds = array<i64: 2, 64>}, {transform_indices = @transform_2, window_bounds = array<i64: 1, 4, 256>}, {transform_indices = @transform_3, window_bounds = array<i64: 1, 4, 256>}, {pipeline_mode = #tpu.pipeline_mode<synchronous>, transform_indices = @transform_4, window_bounds = array<i64: 64, 32>}, {pipeline_mode = #tpu.pipeline_mode<synchronous>, transform_indices = @transform_5, window_bounds = array<i64: 1, 32>}, {pipeline_mode = #tpu.pipeline_mode<synchronous>, transform_indices = @transform_6, window_bounds = array<i64: 36, 32>}, {pipeline_mode = #tpu.pipeline_mode<synchronous>, transform_indices = @transform_7, window_bounds = array<i64: 1, 32>}, {pipeline_mode = #tpu.pipeline_mode<synchronous>, transform_indices = @transform_8, window_bounds = array<i64: 288, 64>}, {pipeline_mode = #tpu.pipeline_mode<synchronous>, transform_indices = @transform_9, window_bounds = array<i64: 1, 64>}, {pipeline_mode = #tpu.pipeline_mode<synchronous>, transform_indices = @transform_10, window_bounds = array<i64: 576, 32>}, {pipeline_mode = #tpu.pipeline_mode<synchronous>, transform_indices = @transform_11, window_bounds = array<i64: 1, 32>}, {pipeline_mode = #tpu.pipeline_mode<synchronous>, transform_indices = @transform_12, window_bounds = array<i64: 32, 4>}, {pipeline_mode = #tpu.pipeline_mode<synchronous>, transform_indices = @transform_13, window_bounds = array<i64: 1, 4>}, {transform_indices = @transform_14, window_bounds = array<i64: 1, 4, 256>}]} {
    %0 = arith.index_cast %arg0 : i32 to index
    %c0 = arith.constant 0 : index
    %1 = memref.load %arg1[%0, %c0] : memref<2x2xf32, #tpu.memory_space<smem>>
    %2 = arith.index_cast %arg0 : i32 to index
    %c1 = arith.constant 1 : index
    %3 = memref.load %arg1[%2, %c1] : memref<2x2xf32, #tpu.memory_space<smem>>
    %c0_0 = arith.constant 0 : index
    %c0_1 = arith.constant 0 : index
    %c0_2 = arith.constant 0 : index
    %4 = vector.load %arg3[%c0_0, %c0_1, %c0_2] : memref<1x4x256xf32, #tpu.memory_space<vmem>>, vector<1x4x256xf32>
    %5 = vector.shape_cast %4 : vector<1x4x256xf32> to vector<4x256xf32>
    %6 = vector.broadcast %1 : f32 to vector<4x256xf32>
    %7 = arith.mulf %6, %5 : vector<4x256xf32>
    %c0_3 = arith.constant 0 : index
    %c0_4 = arith.constant 0 : index
    %c0_5 = arith.constant 0 : index
    %8 = vector.load %arg4[%c0_3, %c0_4, %c0_5] : memref<1x4x256xf32, #tpu.memory_space<vmem>>, vector<1x4x256xf32>
    %9 = vector.shape_cast %8 : vector<1x4x256xf32> to vector<4x256xf32>
    %10 = vector.broadcast %3 : f32 to vector<4x256xf32>
    %11 = arith.mulf %10, %9 : vector<4x256xf32>
    %12 = arith.addf %7, %11 : vector<4x256xf32>
    %13 = arith.index_cast %arg0 : i32 to index
    %c0_6 = arith.constant 0 : index
    %14 = vector.load %arg2[%13, %c0_6] : memref<2x64xf32, #tpu.memory_space<vmem>>, vector<1x64xf32>
    %15 = arith.truncf %14 : vector<1x64xf32> to vector<1x64xbf16>
    %c0_7 = arith.constant 0 : index
    %c0_8 = arith.constant 0 : index
    %16 = vector.load %arg5[%c0_7, %c0_8] : memref<64x32xbf16, #tpu.memory_space<vmem>>, vector<64x32xbf16>
    %cst = arith.constant dense<0.000000e+00> : vector<1x32xf32>
    %17 = tpu.matmul %15, %16, %cst {dimension_numbers = #tpu.dot_dimension_numbers<[1], [0], [0], [1], [0, 0, 1, 1], [], []>} : vector<1x64xbf16>, vector<64x32xbf16>, vector<1x32xf32> -> vector<1x32xf32>
    %c0_9 = arith.constant 0 : index
    %c0_10 = arith.constant 0 : index
    %18 = vector.load %arg6[%c0_9, %c0_10] : memref<1x32xf32, #tpu.memory_space<vmem>>, vector<1x32xf32>
    %19 = arith.addf %17, %18 : vector<1x32xf32>
    %20 = arith.negf %19 : vector<1x32xf32>
    %21 = math.exp %20 : vector<1x32xf32>
    %cst_11 = arith.constant 1.000000e+00 : f32
    %22 = vector.broadcast %cst_11 : f32 to vector<1x32xf32>
    %23 = arith.addf %22, %21 : vector<1x32xf32>
    %24 = arith.divf %22, %23 : vector<1x32xf32>
    %25 = arith.mulf %19, %24 : vector<1x32xf32>
    %26 = tpu.transpose %12, [1, 0] : vector<4x256xf32> -> vector<256x4xf32>
    %27 = vector.shape_cast %26 : vector<256x4xf32> to vector<16x16x4xf32>
    %cst_12 = arith.constant 0.000000e+00 : f32
    %28 = vector.broadcast %cst_12 : f32 to vector<1x16x4xf32>
    %29 = tpu.concatenate %28, %27, %28 in 0 : vector<1x16x4xf32>, vector<16x16x4xf32>, vector<1x16x4xf32> -> vector<18x16x4xf32>
    %cst_13 = arith.constant 0.000000e+00 : f32
    %30 = vector.broadcast %cst_13 : f32 to vector<18x1x4xf32>
    %31 = tpu.concatenate %30, %29, %30 in 1 : vector<18x1x4xf32>, vector<18x16x4xf32>, vector<18x1x4xf32> -> vector<18x18x4xf32>
    %32 = vector.extract_strided_slice %31 {offsets = [0, 0, 0], sizes = [16, 16, 4], strides = [1, 1, 1]} : vector<18x18x4xf32> to vector<16x16x4xf32>
    %33 = vector.extract_strided_slice %31 {offsets = [0, 1, 0], sizes = [16, 16, 4], strides = [1, 1, 1]} : vector<18x18x4xf32> to vector<16x16x4xf32>
    %34 = vector.extract_strided_slice %31 {offsets = [0, 2, 0], sizes = [16, 16, 4], strides = [1, 1, 1]} : vector<18x18x4xf32> to vector<16x16x4xf32>
    %35 = vector.extract_strided_slice %31 {offsets = [1, 0, 0], sizes = [16, 16, 4], strides = [1, 1, 1]} : vector<18x18x4xf32> to vector<16x16x4xf32>
    %36 = vector.extract_strided_slice %31 {offsets = [1, 1, 0], sizes = [16, 16, 4], strides = [1, 1, 1]} : vector<18x18x4xf32> to vector<16x16x4xf32>
    %37 = vector.extract_strided_slice %31 {offsets = [1, 2, 0], sizes = [16, 16, 4], strides = [1, 1, 1]} : vector<18x18x4xf32> to vector<16x16x4xf32>
    %38 = vector.extract_strided_slice %31 {offsets = [2, 0, 0], sizes = [16, 16, 4], strides = [1, 1, 1]} : vector<18x18x4xf32> to vector<16x16x4xf32>
    %39 = vector.extract_strided_slice %31 {offsets = [2, 1, 0], sizes = [16, 16, 4], strides = [1, 1, 1]} : vector<18x18x4xf32> to vector<16x16x4xf32>
    %40 = vector.extract_strided_slice %31 {offsets = [2, 2, 0], sizes = [16, 16, 4], strides = [1, 1, 1]} : vector<18x18x4xf32> to vector<16x16x4xf32>
    %41 = tpu.concatenate %32, %33, %34, %35, %36, %37, %38, %39, %40 in 2 : vector<16x16x4xf32>, vector<16x16x4xf32>, vector<16x16x4xf32>, vector<16x16x4xf32>, vector<16x16x4xf32>, vector<16x16x4xf32>, vector<16x16x4xf32>, vector<16x16x4xf32>, vector<16x16x4xf32> -> vector<16x16x36xf32>
    %42 = vector.shape_cast %41 : vector<16x16x36xf32> to vector<256x36xf32>
    %43 = arith.truncf %42 : vector<256x36xf32> to vector<256x36xbf16>
    %c0_14 = arith.constant 0 : index
    %c0_15 = arith.constant 0 : index
    %44 = vector.load %arg7[%c0_14, %c0_15] : memref<36x32xbf16, #tpu.memory_space<vmem>>, vector<36x32xbf16>
    %cst_16 = arith.constant dense<0.000000e+00> : vector<256x32xf32>
    %45 = tpu.matmul %43, %44, %cst_16 {dimension_numbers = #tpu.dot_dimension_numbers<[1], [0], [0], [1], [0, 0, 1, 1], [], []>} : vector<256x36xbf16>, vector<36x32xbf16>, vector<256x32xf32> -> vector<256x32xf32>
    %c0_17 = arith.constant 0 : index
    %c0_18 = arith.constant 0 : index
    %46 = vector.load %arg8[%c0_17, %c0_18] : memref<1x32xf32, #tpu.memory_space<vmem>>, vector<1x32xf32>
    %47 = vector.broadcast %46 : vector<1x32xf32> to vector<256x32xf32>
    %48 = arith.addf %45, %47 : vector<256x32xf32>
    %49 = arith.negf %48 : vector<256x32xf32>
    %50 = math.exp %49 : vector<256x32xf32>
    %cst_19 = arith.constant 1.000000e+00 : f32
    %51 = vector.broadcast %cst_19 : f32 to vector<256x32xf32>
    %52 = arith.addf %51, %50 : vector<256x32xf32>
    %53 = arith.divf %51, %52 : vector<256x32xf32>
    %54 = arith.mulf %48, %53 : vector<256x32xf32>
    %55 = vector.broadcast %25 : vector<1x32xf32> to vector<256x32xf32>
    %56 = arith.addf %54, %55 : vector<256x32xf32>
    %57 = vector.shape_cast %56 : vector<256x32xf32> to vector<16x16x32xf32>
    %cst_20 = arith.constant 0.000000e+00 : f32
    %58 = vector.broadcast %cst_20 : f32 to vector<1x16x32xf32>
    %59 = tpu.concatenate %58, %57, %58 in 0 : vector<1x16x32xf32>, vector<16x16x32xf32>, vector<1x16x32xf32> -> vector<18x16x32xf32>
    %cst_21 = arith.constant 0.000000e+00 : f32
    %60 = vector.broadcast %cst_21 : f32 to vector<18x1x32xf32>
    %61 = tpu.concatenate %60, %59, %60 in 1 : vector<18x1x32xf32>, vector<18x16x32xf32>, vector<18x1x32xf32> -> vector<18x18x32xf32>
    %62 = vector.extract_strided_slice %61 {offsets = [0, 0, 0], sizes = [16, 16, 32], strides = [1, 1, 1]} : vector<18x18x32xf32> to vector<16x16x32xf32>
    %63 = vector.extract_strided_slice %61 {offsets = [0, 1, 0], sizes = [16, 16, 32], strides = [1, 1, 1]} : vector<18x18x32xf32> to vector<16x16x32xf32>
    %64 = vector.extract_strided_slice %61 {offsets = [0, 2, 0], sizes = [16, 16, 32], strides = [1, 1, 1]} : vector<18x18x32xf32> to vector<16x16x32xf32>
    %65 = vector.extract_strided_slice %61 {offsets = [1, 0, 0], sizes = [16, 16, 32], strides = [1, 1, 1]} : vector<18x18x32xf32> to vector<16x16x32xf32>
    %66 = vector.extract_strided_slice %61 {offsets = [1, 1, 0], sizes = [16, 16, 32], strides = [1, 1, 1]} : vector<18x18x32xf32> to vector<16x16x32xf32>
    %67 = vector.extract_strided_slice %61 {offsets = [1, 2, 0], sizes = [16, 16, 32], strides = [1, 1, 1]} : vector<18x18x32xf32> to vector<16x16x32xf32>
    %68 = vector.extract_strided_slice %61 {offsets = [2, 0, 0], sizes = [16, 16, 32], strides = [1, 1, 1]} : vector<18x18x32xf32> to vector<16x16x32xf32>
    %69 = vector.extract_strided_slice %61 {offsets = [2, 1, 0], sizes = [16, 16, 32], strides = [1, 1, 1]} : vector<18x18x32xf32> to vector<16x16x32xf32>
    %70 = vector.extract_strided_slice %61 {offsets = [2, 2, 0], sizes = [16, 16, 32], strides = [1, 1, 1]} : vector<18x18x32xf32> to vector<16x16x32xf32>
    %71 = tpu.concatenate %62, %63, %64, %65, %66, %67, %68, %69, %70 in 2 : vector<16x16x32xf32>, vector<16x16x32xf32>, vector<16x16x32xf32>, vector<16x16x32xf32>, vector<16x16x32xf32>, vector<16x16x32xf32>, vector<16x16x32xf32>, vector<16x16x32xf32>, vector<16x16x32xf32> -> vector<16x16x288xf32>
    %72 = vector.shape_cast %71 : vector<16x16x288xf32> to vector<256x288xf32>
    %73 = arith.truncf %72 : vector<256x288xf32> to vector<256x288xbf16>
    %c0_22 = arith.constant 0 : index
    %c0_23 = arith.constant 0 : index
    %74 = vector.load %arg9[%c0_22, %c0_23] : memref<288x64xbf16, #tpu.memory_space<vmem>>, vector<288x64xbf16>
    %cst_24 = arith.constant dense<0.000000e+00> : vector<256x64xf32>
    %75 = tpu.matmul %73, %74, %cst_24 {dimension_numbers = #tpu.dot_dimension_numbers<[1], [0], [0], [1], [0, 0, 1, 1], [], []>} : vector<256x288xbf16>, vector<288x64xbf16>, vector<256x64xf32> -> vector<256x64xf32>
    %c0_25 = arith.constant 0 : index
    %c0_26 = arith.constant 0 : index
    %76 = vector.load %arg10[%c0_25, %c0_26] : memref<1x64xf32, #tpu.memory_space<vmem>>, vector<1x64xf32>
    %77 = vector.broadcast %76 : vector<1x64xf32> to vector<256x64xf32>
    %78 = arith.addf %75, %77 : vector<256x64xf32>
    %79 = arith.negf %78 : vector<256x64xf32>
    %80 = math.exp %79 : vector<256x64xf32>
    %cst_27 = arith.constant 1.000000e+00 : f32
    %81 = vector.broadcast %cst_27 : f32 to vector<256x64xf32>
    %82 = arith.addf %81, %80 : vector<256x64xf32>
    %83 = arith.divf %81, %82 : vector<256x64xf32>
    %84 = arith.mulf %78, %83 : vector<256x64xf32>
    %85 = vector.shape_cast %84 : vector<256x64xf32> to vector<16x16x64xf32>
    %cst_28 = arith.constant 0.000000e+00 : f32
    %86 = vector.broadcast %cst_28 : f32 to vector<1x16x64xf32>
    %87 = tpu.concatenate %86, %85, %86 in 0 : vector<1x16x64xf32>, vector<16x16x64xf32>, vector<1x16x64xf32> -> vector<18x16x64xf32>
    %cst_29 = arith.constant 0.000000e+00 : f32
    %88 = vector.broadcast %cst_29 : f32 to vector<18x1x64xf32>
    %89 = tpu.concatenate %88, %87, %88 in 1 : vector<18x1x64xf32>, vector<18x16x64xf32>, vector<18x1x64xf32> -> vector<18x18x64xf32>
    %90 = vector.extract_strided_slice %89 {offsets = [0, 0, 0], sizes = [16, 16, 64], strides = [1, 1, 1]} : vector<18x18x64xf32> to vector<16x16x64xf32>
    %91 = vector.extract_strided_slice %89 {offsets = [0, 1, 0], sizes = [16, 16, 64], strides = [1, 1, 1]} : vector<18x18x64xf32> to vector<16x16x64xf32>
    %92 = vector.extract_strided_slice %89 {offsets = [0, 2, 0], sizes = [16, 16, 64], strides = [1, 1, 1]} : vector<18x18x64xf32> to vector<16x16x64xf32>
    %93 = vector.extract_strided_slice %89 {offsets = [1, 0, 0], sizes = [16, 16, 64], strides = [1, 1, 1]} : vector<18x18x64xf32> to vector<16x16x64xf32>
    %94 = vector.extract_strided_slice %89 {offsets = [1, 1, 0], sizes = [16, 16, 64], strides = [1, 1, 1]} : vector<18x18x64xf32> to vector<16x16x64xf32>
    %95 = vector.extract_strided_slice %89 {offsets = [1, 2, 0], sizes = [16, 16, 64], strides = [1, 1, 1]} : vector<18x18x64xf32> to vector<16x16x64xf32>
    %96 = vector.extract_strided_slice %89 {offsets = [2, 0, 0], sizes = [16, 16, 64], strides = [1, 1, 1]} : vector<18x18x64xf32> to vector<16x16x64xf32>
    %97 = vector.extract_strided_slice %89 {offsets = [2, 1, 0], sizes = [16, 16, 64], strides = [1, 1, 1]} : vector<18x18x64xf32> to vector<16x16x64xf32>
    %98 = vector.extract_strided_slice %89 {offsets = [2, 2, 0], sizes = [16, 16, 64], strides = [1, 1, 1]} : vector<18x18x64xf32> to vector<16x16x64xf32>
    %99 = tpu.concatenate %90, %91, %92, %93, %94, %95, %96, %97, %98 in 2 : vector<16x16x64xf32>, vector<16x16x64xf32>, vector<16x16x64xf32>, vector<16x16x64xf32>, vector<16x16x64xf32>, vector<16x16x64xf32>, vector<16x16x64xf32>, vector<16x16x64xf32>, vector<16x16x64xf32> -> vector<16x16x576xf32>
    %100 = vector.shape_cast %99 : vector<16x16x576xf32> to vector<256x576xf32>
    %101 = arith.truncf %100 : vector<256x576xf32> to vector<256x576xbf16>
    %c0_30 = arith.constant 0 : index
    %c0_31 = arith.constant 0 : index
    %102 = vector.load %arg11[%c0_30, %c0_31] : memref<576x32xbf16, #tpu.memory_space<vmem>>, vector<576x32xbf16>
    %cst_32 = arith.constant dense<0.000000e+00> : vector<256x32xf32>
    %103 = tpu.matmul %101, %102, %cst_32 {dimension_numbers = #tpu.dot_dimension_numbers<[1], [0], [0], [1], [0, 0, 1, 1], [], []>} : vector<256x576xbf16>, vector<576x32xbf16>, vector<256x32xf32> -> vector<256x32xf32>
    %c0_33 = arith.constant 0 : index
    %c0_34 = arith.constant 0 : index
    %104 = vector.load %arg12[%c0_33, %c0_34] : memref<1x32xf32, #tpu.memory_space<vmem>>, vector<1x32xf32>
    %105 = vector.broadcast %104 : vector<1x32xf32> to vector<256x32xf32>
    %106 = arith.addf %103, %105 : vector<256x32xf32>
    %107 = arith.negf %106 : vector<256x32xf32>
    %108 = math.exp %107 : vector<256x32xf32>
    %cst_35 = arith.constant 1.000000e+00 : f32
    %109 = vector.broadcast %cst_35 : f32 to vector<256x32xf32>
    %110 = arith.addf %109, %108 : vector<256x32xf32>
    %111 = arith.divf %109, %110 : vector<256x32xf32>
    %112 = arith.mulf %106, %111 : vector<256x32xf32>
    %113 = arith.addf %112, %54 : vector<256x32xf32>
    %114 = arith.truncf %113 : vector<256x32xf32> to vector<256x32xbf16>
    %c0_36 = arith.constant 0 : index
    %c0_37 = arith.constant 0 : index
    %115 = vector.load %arg13[%c0_36, %c0_37] : memref<32x4xbf16, #tpu.memory_space<vmem>>, vector<32x4xbf16>
    %cst_38 = arith.constant dense<0.000000e+00> : vector<256x4xf32>
    %116 = tpu.matmul %114, %115, %cst_38 {dimension_numbers = #tpu.dot_dimension_numbers<[1], [0], [0], [1], [0, 0, 1, 1], [], []>} : vector<256x32xbf16>, vector<32x4xbf16>, vector<256x4xf32> -> vector<256x4xf32>
    %c0_39 = arith.constant 0 : index
    %c0_40 = arith.constant 0 : index
    %117 = vector.load %arg14[%c0_39, %c0_40] : memref<1x4xf32, #tpu.memory_space<vmem>>, vector<1x4xf32>
    %118 = vector.broadcast %117 : vector<1x4xf32> to vector<256x4xf32>
    %119 = arith.addf %116, %118 : vector<256x4xf32>
    %120 = tpu.transpose %119, [1, 0] : vector<256x4xf32> -> vector<4x256xf32>
    %c0_41 = arith.constant 0 : index
    %c0_42 = arith.constant 0 : index
    %c0_43 = arith.constant 0 : index
    %121 = vector.load %arg15[%c0_41, %c0_42, %c0_43] : memref<1x4x256xf32, #tpu.memory_space<vmem>>, vector<1x4x256xf32>
    %122 = vector.shape_cast %121 : vector<1x4x256xf32> to vector<4x256xf32>
    %123 = vector.shape_cast %120 : vector<4x256xf32> to vector<1x4x256xf32>
    tpu.vector_store %arg15[%c0_41, %c0_42, %c0_43], %123 {strides = array<i32>} : memref<1x4x256xf32, #tpu.memory_space<vmem>>, vector<1x4x256xf32>,
    return
  }
  func.func @transform_0(%arg0: i32) -> (i32, i32) {
    %c0_i32 = arith.constant 0 : i32
    %c0_i32_0 = arith.constant 0 : i32
    %c0_i32_1 = arith.constant 0 : i32
    return %c0_i32, %c0_i32_0 : i32, i32
  }
  func.func @transform_1(%arg0: i32) -> (i32, i32) {
    %c0_i32 = arith.constant 0 : i32
    %c0_i32_0 = arith.constant 0 : i32
    %c0_i32_1 = arith.constant 0 : i32
    return %c0_i32, %c0_i32_0 : i32, i32
  }
  func.func @transform_2(%arg0: i32) -> (i32, i32, i32) {
    %c0_i32 = arith.constant 0 : i32
    %c0_i32_0 = arith.constant 0 : i32
    %c0_i32_1 = arith.constant 0 : i32
    return %arg0, %c0_i32, %c0_i32_0 : i32, i32, i32
  }
  func.func @transform_3(%arg0: i32) -> (i32, i32, i32) {
    %c0_i32 = arith.constant 0 : i32
    %c0_i32_0 = arith.constant 0 : i32
    %c0_i32_1 = arith.constant 0 : i32
    return %arg0, %c0_i32, %c0_i32_0 : i32, i32, i32
  }
  func.func @transform_4(%arg0: i32) -> (i32, i32) {
    %c0_i32 = arith.constant 0 : i32
    %c0_i32_0 = arith.constant 0 : i32
    %c0_i32_1 = arith.constant 0 : i32
    return %c0_i32, %c0_i32_0 : i32, i32
  }
  func.func @transform_5(%arg0: i32) -> (i32, i32) {
    %c0_i32 = arith.constant 0 : i32
    %c0_i32_0 = arith.constant 0 : i32
    %c0_i32_1 = arith.constant 0 : i32
    return %c0_i32, %c0_i32_0 : i32, i32
  }
  func.func @transform_6(%arg0: i32) -> (i32, i32) {
    %c0_i32 = arith.constant 0 : i32
    %c0_i32_0 = arith.constant 0 : i32
    %c0_i32_1 = arith.constant 0 : i32
    return %c0_i32, %c0_i32_0 : i32, i32
  }
  func.func @transform_7(%arg0: i32) -> (i32, i32) {
    %c0_i32 = arith.constant 0 : i32
    %c0_i32_0 = arith.constant 0 : i32
    %c0_i32_1 = arith.constant 0 : i32
    return %c0_i32, %c0_i32_0 : i32, i32
  }
  func.func @transform_8(%arg0: i32) -> (i32, i32) {
    %c0_i32 = arith.constant 0 : i32
    %c0_i32_0 = arith.constant 0 : i32
    %c0_i32_1 = arith.constant 0 : i32
    return %c0_i32, %c0_i32_0 : i32, i32
  }
  func.func @transform_9(%arg0: i32) -> (i32, i32) {
    %c0_i32 = arith.constant 0 : i32
    %c0_i32_0 = arith.constant 0 : i32
    %c0_i32_1 = arith.constant 0 : i32
    return %c0_i32, %c0_i32_0 : i32, i32
  }
  func.func @transform_10(%arg0: i32) -> (i32, i32) {
    %c0_i32 = arith.constant 0 : i32
    %c0_i32_0 = arith.constant 0 : i32
    %c0_i32_1 = arith.constant 0 : i32
    return %c0_i32, %c0_i32_0 : i32, i32
  }
  func.func @transform_11(%arg0: i32) -> (i32, i32) {
    %c0_i32 = arith.constant 0 : i32
    %c0_i32_0 = arith.constant 0 : i32
    %c0_i32_1 = arith.constant 0 : i32
    return %c0_i32, %c0_i32_0 : i32, i32
  }
  func.func @transform_12(%arg0: i32) -> (i32, i32) {
    %c0_i32 = arith.constant 0 : i32
    %c0_i32_0 = arith.constant 0 : i32
    %c0_i32_1 = arith.constant 0 : i32
    return %c0_i32, %c0_i32_0 : i32, i32
  }
  func.func @transform_13(%arg0: i32) -> (i32, i32) {
    %c0_i32 = arith.constant 0 : i32
    %c0_i32_0 = arith.constant 0 : i32
    %c0_i32_1 = arith.constant 0 : i32
    return %c0_i32, %c0_i32_0 : i32, i32
  }
  func.func @transform_14(%arg0: i32) -> (i32, i32, i32) {
    %c0_i32 = arith.constant 0 : i32
    %c0_i32_0 = arith.constant 0 : i32
    %c0_i32_1 = arith.constant 0 : i32
    return %arg0, %c0_i32, %c0_i32_0 : i32, i32, i32
  }
}

</mosaic_0001>

<bundles_post_ra>
// kernel: diffusion_model_forward.1
= control target key start
LH: loop header
LB: loop body
LE: loop exit
PB: predicated region body
PF: predicated region fallthrough
CT: control target
= control target key end

     0   :  { %19 = vsyncpa [#allocation3], 0  ;;  %s9790_s29 = smov 0   ;;  %s14310_s0 = inlined_call_operand.vmem [shape: f32[2,2], index: 0, kind: input, shape index: {}]   ;;  %s14311_s1 = inlined_call_operand.vmem [shape: f32[2,64], index: 1, kind: input, shape index: {}]   ;;  %s14312_s2 = inlined_call_operand.vmem [shape: f32[2,4,256], index: 2, kind: input, shape index: {}]   ;;  %s14313_s3 = inlined_call_operand.vmem [shape: f32[2,4,256], index: 3, kind: input, shape index: {}]   ;;  %s14314_s4 = inlined_call_operand.vmem [shape: bf16[64,32], index: 4, kind: input, shape index: {}]   ;;  %s14315_s5 = inlined_call_operand.vmem [shape: f32[1,32], index: 5, kind: input, shape index: {}]   ;;  %s14316_s6 = inlined_call_operand.vmem [shape: bf16[36,32], index: 6, kind: input, shape index: {}]   ;;  %s14317_s7 = inlined_call_operand.vmem [shape: f32[1,32], index: 7, kind: input, shape index: {}]   ;;  %s14318_s8 = inlined_call_operand.vmem [shape: bf16[288,64], index: 8, kind: input, shape index: {}]   ;;  %s14319_s9 = inlined_call_operand.vmem [shape: f32[1,64], index: 9, kind: input, shape index: {}]   ;;  %s14320_s10 = inlined_call_operand.vmem [shape: bf16[576,32], index: 10, kind: input, shape index: {}]   ;;  %s14321_s11 = inlined_call_operand.vmem [shape: f32[1,32], index: 11, kind: input, shape index: {}]   ;;  %s14322_s12 = inlined_call_operand.vmem [shape: bf16[32,4], index: 12, kind: input, shape index: {}]   ;;  %s14323_s13 = inlined_call_operand.vmem [shape: f32[1,4], index: 13, kind: input, shape index: {}]   ;;  %s14324_s14 = inlined_call_operand.vmem [shape: f32[2,4,256], index: 14, kind: output, shape index: {}]  }
   0x1 LB: > { %s9796_s30 = sadd.s32 4294967295, %s9700_s29   ;;  %p6919_p0 = scmp.ge.s32.totalorder %s9700_s29, 1  ;;  %s9700_s29 = sphi %s9790_s29, %s25_s29  }
   0x2   : > { %p360_p1 = scmp.lt.s32.totalorder %s9700_s29, 3  ;;  %s373_s17 = sshll.u32 %s14310_s0, 4  ;;  %s374_s17 = int_to_ptr.vmem [resolvable:$true] %s373_s17 }
   0x3   : > { %p7752_p3 = scmp.eq.s32.totalorder %s9796_s30, 0  ;;  %s9675_s19 = scalar_lea.vmem %s374_s17, 32 }
   0x4   : > { %p9803_p2 = pnand %p6919_p0, %p360_p1  ;;  %p9676_p6 = scmp.ne.s32.totalorder %s374_s17, %s9675_s19 }
   0x5   : > { %p9683_p10 = scmp.lt.s32.totalorder %s374_s17, %s374_s17  ;;  %p9684_p11 = scmp.lt.s32.totalorder %s9675_s19, %s9675_s19 }
   0x6   : > { %p7748_p4 = pneg %p9803_p2 }
   0x7   : > { %p9685_p12 = por %p9684_p11, %p9683_p10 }
   0x8   : > { %p7749_p5 = pnand %p7752_p3, %p7748_p4 }
   0xa   : > { %p9677_p7 = pneg %p7749_p5 }
   0xc   : > { %p9678_p8 = pnand %p9677_p7, %p9676_p6 }
   0xe   : > { %p9679_p9 = pneg %p9678_p8 }
  0x10   : > { %p9686_p13 = pnand %p9685_p12, %p9679_p9 }
  0x12   : > { %9689 = shalt.err (!%p9686_p13)
}
  0x13   : > { %s9702_s20 = smov [#allocation2]   ;;  %435 = sbr.rel (%p9803_p2) target bundleno = 2026 (0x7ea), region = 76 }
  0x14   : > { %7751 = dma.vmem_to_smem (!%p7749_p5), %s374_s17, 32, %s9702_s20, [#allocation3]  }
  0x1a   : > { %9695 = dma.done.wait (%p7752_p3), [#allocation3], 32  }
  0x1b   : > { %9697 = vsyncadd (%p7752_p3), [#allocation3], 4294967264 }
  0x1c   : > { %441 = sfence }
  0x1d   : > { %p487_p0 = scmp.lt.s32.totalorder %s9796_s30, 1  ;;  %s6930_s21 = sshll.u32 %s9796_s30, 7  ;;  %v14326_v9 = vmov 0.0   ;;  %vm701_vm0 = vcmask 1040384   ;;  %vm1044_vm1 = vcmask 1045504   ;;  %vm867_vm2 = vcmask 1046528  }
  0x1e   : > { %s504_s22 = sld [smem:[#allocation2 + %s6930_s21]]  ;;  %s505_s23 = sadd.s32 1, %s6930_s21  ;;  %v9832_v10 = vrot.slane %v14326_v9, 7  ;;  %7581 = vmatprep.subr.bf16.mxu1 %v14326_v9  ;;  %vm9712_vm3 = vmmov 0   ;;  %vm550_vm4 = vcmask 523264   ;;  %vm2165_vm5 = vcmask 1041408  }
  0x1f   : > { %s488_s24 = scalar_select %p487_p0, %s9796_s30, 1  ;;  %vm1809_vm6 = vcmask 31744   ;;  %vm1842_vm7 = vcmask 64512   ;;  %vm1875_vm8 = vcmask 97280   ;;  %vm1908_vm9 = vcmask 130048  }
  0x20   : > { %s506_s25 = sld [smem:[#allocation2 + %s505_s23]]  ;;  %14464 = vst [vmem:[#allocation5_spill] sm:$0xff] %v9832_v10  ;;  %v9837_v11 = vsel %vm701_vm0, 0.0, %v9832_v10  ;;  %v818_v12 = vsel %vm701_vm0, %v9832_v10, 0.0  ;;  %v1046_v14 = vrot.slane %v9832_v10, 2  ;;  %s9704_s19 = smov 8  }
  0x21   : > { %s9821_s26 = sshll.u32 %s488_s24, 3  ;;  %14465 = vst [vmem:[#allocation6_spill] sm:$0xff] %v9837_v11  ;;  %v1045_v13 = vrot.slane %v9837_v11, 2  ;;  %v1048_v15 = vrot.slane %v818_v12, 2  ;;  %v868_v19 = vrot.slane %v9837_v11, 1  ;;  %v869_v20 = vrot.slane %v9832_v10, 1 }
  0x22   : > { %s491_s15 = scalar_lea.vmem %s14312_s2, %s9821_s26  ;;  %s496_s18 = scalar_lea.vmem %s14313_s3, %s9821_s26  ;;  %v871_v21 = vrot.slane %v818_v12, 1  ;;  %vm1941_vm10 = vcmask 162816   ;;  %vm1974_vm11 = vcmask 195584   ;;  %vm2007_vm12 = vcmask 228352  }
  0x23   : > { %v507_v0 = vld [vmem:[%s491_s15] sm:$0xff]  ;;  %v9844_v16 = vsel %vm1044_vm1, %v1045_v13, %v1046_v14  ;;  %v9847_v17 = vsel %vm1044_vm1, %v1046_v14, %v1048_v15  ;;  %v870_v22 = vsel %vm867_vm2, %v868_v19, %v869_v20  ;;  %s9705_s20 = smov 4   ;;  %s9706_s21 = smov 12   ;;  %vm2040_vm13 = vcmask 261120  }
  0x24   : > { %v510_v1 = vld [vmem:[%s496_s18] sm:$0xff]  ;;  %v508_v2 = vstv %s504_s22  ;;  %14466 = vst [vmem:[#allocation7_spill] sm:$0xff] %v9844_v16  ;;  %14467 = vst [vmem:[#allocation8_spill] sm:$0xff] %v9847_v17  ;;  %v9851_v18 = vpack.i.bf16 %v9847_v17, %v9844_v16  ;;  %v872_v23 = vsel %vm867_vm2, %v869_v20, %v871_v21  ;;  %s9707_s22 = smov 16   ;;  %s9708_s23 = smov 20   ;;  %vm2116_vm14 = vcmask 293888  }
  0x25   : > { %v509_v3 = vmul.f32 %v508_v2, %v507_v0  ;;  %v9859_v24 = vpack.i.bf16 %v872_v23, %v870_v22  ;;  %s9709_s15 = smov 24   ;;  %s9710_s18 = smov 28   ;;  %vm3645_vm15 = vcmask 785408  }
  0x26   : > { %v511_v4 = vstv %s506_s25  ;;  %14468 = vst [vmem:[#allocation9_spill] sm:$0xff] %v9851_v18  ;;  %7863 = vrot.lane.b32.xlu1 %v9851_v18, %s9704_s19  ;;  %s9711_s27 = smov 32   ;;  %s514_s25 = scalar_lea.vmem %s14311_s1, %s9796_s30 }
  0x27   : > { %v512_v5 = vmul.f32 %v511_v4, %v510_v1  ;;  %14469 = vst [vmem:[#allocation10_spill] sm:$0xff] %v9859_v24  ;;  %v9222_v4 = vld [vmem:[%s14314_s4] sm:$0xff]   ;;  %s9714_s30 = smov 96  }
  0x28   : > { %7582 = vmatpush3.bf16.msra.mxu1 %v9222_v4 }
  0x29   : > { %v513_v6 = vadd.f32 %v512_v5, %v509_v3  ;;  %7583 = vmatprep.subr.bf16.mxu1 %v14326_v9 }
  0x2b   : > { %v602_v7 = vcombine.high %v513_v6, %v513_v6 }
  0x2d   : > { %v7775_v8 = vpack.i.bf16 %v602_v7, %v513_v6 }
  0x2f   : > { %7776 = vxpose.xlu0.b32.start.end [1/1] (short) %v7775_v8, 128 }
  0x94   : > { %7858 = vrot.lane.b32.xlu0 %v9859_v24, %s9705_s20 }
  0xaf   : > { %v7777_v25 = vpop.trf.xlu0 }
  0xb0   : > { %v7778_v26 = vunpack.i.l.bf16 %v7777_v25  ;;  %v7781_v60 = vunpack.i.h.bf16 %v7777_v25 }
  0xb2   : > { %v704_v28 = vrot.slane %v7778_v26, 7  ;;  %v9921_v7 = vrot.slane %v7781_v60, 7  ;;  %v9223_v26 = vld [vmem:[%s14314_s4 + $0x8] sm:$0xff]   ;;  %v9225_v60 = vld [vmem:[%s14314_s4 + $0x18] sm:$0xff]  }
  0xb3   : > { %v9863_v27 = vpop.trf.xlu0  ;;  %7584 = vmatpush3.bf16.msra.mxu1 %v9223_v26 }
  0xb4   : > { %v7783_v29 = vunpack.i.l.bf16 %v9863_v27  ;;  %v9869_v32 = vsel %vm701_vm0, 0.0, %v704_v28  ;;  %7585 = vmatprep.subr.bf16.mxu1 %v14326_v9 }
  0xb5   : > { %14470 = vst [vmem:[#allocation11_spill] sm:$0xff] %v9869_v32  ;;  %v873_v39 = vrot.slane %v9869_v32, 1  ;;  %v1050_v44 = vrot.slane %v9869_v32, 2 }
  0xb6   : > { %v705_v30 = vrot.slane %v7783_v29, 7 }
  0xb7   : > { %v9866_v31 = vpop.trf.xlu0 }
  0xb8   : > { %v9872_v33 = vsel %vm701_vm0, %v704_v28, %v705_v30  ;;  %v819_v34 = vsel %vm701_vm0, %v705_v30, 0.0  ;;  %v7788_v49 = vunpack.i.l.bf16 %v9866_v31 }
  0xb9   : > { %14471 = vst [vmem:[#allocation12_spill] sm:$0xff] %v9872_v33  ;;  %v7867_v35 = vpack.i.bf16 %v9872_v33, %v9869_v32  ;;  %v874_v36 = vrot.slane %v9872_v33, 1  ;;  %v876_v37 = vrot.slane %v819_v34, 1  ;;  %v1051_v40 = vrot.slane %v9872_v33, 2 }
  0xba   : > { %v1053_v41 = vrot.slane %v819_v34, 2  ;;  %v707_v53 = vrot.slane %v7788_v49, 7 }
  0xbb   : > { %v9878_v38 = vpop.trf.xlu0  ;;  %7868 = vrot.lane.b32.xlu1 %v7867_v35, %s9706_s21  ;;  %v875_v42 = vsel %vm867_vm2, %v873_v39, %v874_v36  ;;  %v877_v43 = vsel %vm867_vm2, %v874_v36, %v876_v37  ;;  %v1052_v47 = vsel %vm1044_vm1, %v1050_v44, %v1051_v40  ;;  %v7786_v39 = vunpack.i.h.bf16 %v9863_v27 }
  0xbc   : > { %v7872_v45 = vpack.i.bf16 %v877_v43, %v875_v42  ;;  %v1054_v48 = vsel %vm1044_vm1, %v1051_v40, %v1053_v41  ;;  %v7793_v50 = vunpack.i.l.bf16 %v9878_v38  ;;  %v9900_v56 = vsel %vm701_vm0, 0.0, %v707_v53  ;;  %v9224_v43 = vld [vmem:[%s14314_s4 + $0x10] sm:$0xff]  }
  0xbd   : > { %v7877_v51 = vpack.i.bf16 %v1054_v48, %v1052_v47  ;;  %14472 = vst [vmem:[#allocation13_spill] sm:$0xff] %v9900_v56  ;;  %v878_v63 = vrot.slane %v9900_v56, 1  ;;  %v1055_v13 = vrot.slane %v9900_v56, 2  ;;  %7586 = vmatpush3.bf16.msra.mxu1 %v9224_v43 }
  0xbe   : > { %v708_v54 = vrot.slane %v7793_v50, 7  ;;  %7587 = vmatprep.subr.bf16.mxu1 %v14326_v9 }
  0xbf   : > { %v9886_v46 = vpop.trf.xlu0  ;;  %7873 = vrot.lane.b32.xlu1 %v7872_v45, %s9705_s20 }
  0xc0   : > { %v9904_v58 = vsel %vm701_vm0, %v707_v53, %v708_v54  ;;  %v820_v59 = vsel %vm701_vm0, %v708_v54, 0.0  ;;  %v729_v53 = vrot.slane %v7786_v39, 7  ;;  %v7796_v54 = vunpack.i.h.bf16 %v9878_v38 }
  0xc1   : > { %14473 = vst [vmem:[#allocation14_spill] sm:$0xff] %v9904_v58  ;;  %v879_v1 = vrot.slane %v9904_v58, 1  ;;  %v881_v3 = vrot.slane %v820_v59, 1  ;;  %v7892_v6 = vpack.i.bf16 %v9904_v58, %v9900_v56  ;;  %v1056_v20 = vrot.slane %v9904_v58, 2  ;;  %7588 = vmatpush3.bf16.msra.mxu1 %v9225_v60 }
  0xc2   : > { %v1058_v29 = vrot.slane %v820_v59, 2  ;;  %v7801_v26 = vunpack.i.h.bf16 %v9886_v46 }
  0xc3   : > { %v9893_v52 = vpop.trf.xlu0  ;;  %7878 = vrot.lane.b32.xlu1 %v7877_v51, %s9704_s19  ;;  %v880_v19 = vsel %vm867_vm2, %v878_v63, %v879_v1  ;;  %v882_v23 = vsel %vm867_vm2, %v879_v1, %v881_v3  ;;  %v1057_v48 = vsel %vm1044_vm1, %v1055_v13, %v1056_v20  ;;  %v7791_v63 = vunpack.i.h.bf16 %v9866_v31 }
  0xc4   : > { %v9959_v27 = vpack.i.bf16 %v882_v23, %v880_v19  ;;  %v1059_v49 = vsel %vm1044_vm1, %v1056_v20, %v1058_v29  ;;  %v10001_v31 = vsel %vm701_vm0, %v9921_v7, %v729_v53  ;;  %v7803_v13 = vunpack.i.l.bf16 %v9893_v52 }
  0xc7   : > { %v9896_v55 = vpop.trf.xlu0  ;;  %7883 = vrot.lane.b32.xlu1 %v7872_v45, %s9707_s22 }
  0xc8   : > { %v7808_v57 = vunpack.i.l.bf16 %v9896_v55 }
  0xca   : > { %v713_v61 = vrot.slane %v7808_v57, 7  ;;  %v7798_v57 = vunpack.i.l.bf16 %v9886_v46 }
  0xcb   : > { %v9907_v62 = vpop.trf.xlu0  ;;  %7888 = vrot.lane.b32.xlu1 %v7877_v51, %s9708_s23  ;;  %v9970_v51 = vsel %vm701_vm0, 0.0, %v9921_v7  ;;  %v14325_v7 = vrot.slane %v10001_v31, 1 }
  0xcc   : > { %v7813_v0 = vunpack.i.l.bf16 %v9907_v62  ;;  %v9914_v2 = vsel %vm701_vm0, 0.0, %v713_v61  ;;  %v913_v38 = vrot.slane %v9970_v51, 1 }
  0xcd   : > { %14474 = vst [vmem:[#allocation15_spill] sm:$0xff] %v9914_v2  ;;  %v888_v8 = vrot.slane %v9914_v2, 1  ;;  %v1065_v25 = vrot.slane %v9914_v2, 2 }
  0xce   : > { %v714_v5 = vrot.slane %v7813_v0, 7 }
  0xcf   : > { %v9924_v12 = vpop.trf.xlu0  ;;  %7893 = vrot.lane.b32.xlu1 %v7892_v6, %s9706_s21 }
  0xd0   : > { %v9928_v14 = vsel %vm701_vm0, %v713_v61, %v714_v5  ;;  %v822_v15 = vsel %vm701_vm0, %v714_v5, 0.0  ;;  %v7818_v28 = vunpack.i.l.bf16 %v9924_v12  ;;  %v9982_v61 = vpack.i.bf16 %v1059_v49, %v1057_v48 }
  0xd1   : > { %14475 = vst [vmem:[#allocation16_spill] sm:$0xff] %v9928_v14  ;;  %v889_v21 = vrot.slane %v9928_v14, 1  ;;  %v891_v22 = vrot.slane %v822_v15, 1  ;;  %v1066_v35 = vrot.slane %v9928_v14, 2  ;;  %v1068_v36 = vrot.slane %v822_v15, 2 }
  0xd2   : > { %v716_v47 = vrot.slane %v7818_v28, 7  ;;  %v9995_v5 = vrot.slane %v7796_v54, 7  ;;  %v7816_v54 = vunpack.i.h.bf16 %v9907_v62 }
  0xd3   : > { %v890_v30 = vsel %vm867_vm2, %v888_v8, %v889_v21  ;;  %v892_v34 = vsel %vm867_vm2, %v889_v21, %v891_v22  ;;  %v9945_v37 = vpop.trf.xlu0  ;;  %7898 = vrot.lane.b32.xlu1 %v7892_v6, %s9709_s15  ;;  %v1067_v41 = vsel %vm1044_vm1, %v1065_v25, %v1066_v35  ;;  %v1069_v42 = vsel %vm1044_vm1, %v1066_v35, %v1068_v36 }
  0xd4   : > { %v9949_v40 = vpack.i.bf16 %v892_v34, %v890_v30  ;;  %v9961_v44 = vpack.i.bf16 %v1069_v42, %v1067_v41  ;;  %v7823_v45 = vunpack.i.l.bf16 %v9945_v37  ;;  %v9991_v3 = vsel %vm701_vm0, 0.0, %v716_v47 }
  0xd5   : > { %14477 = vst [vmem:[#allocation18_spill] sm:$0xff] %v9991_v3  ;;  %v710_v6 = vrot.slane %v7798_v57, 7  ;;  %v7806_v8 = vunpack.i.h.bf16 %v9893_v52  ;;  %v893_v15 = vrot.slane %v9991_v3, 1  ;;  %v10010_v21 = vsel %vm701_vm0, %v729_v53, 0.0 }
  0xd6   : > { %7993 = vrot.lane.b32.xlu0 %v9949_v40, %s9710_s18  ;;  %v717_v59 = vrot.slane %v7823_v45, 7  ;;  %v10012_v22 = vrot.slane %v7791_v63, 7  ;;  %v10020_v52 = vsel %vm701_vm0, %v9995_v5, 0.0  ;;  %v711_v34 = vrot.slane %v7803_v13, 7 }
  0xd7   : > { %v9966_v50 = vpop.trf.xlu0  ;;  %7903 = vrot.lane.b32.xlu1 %v9959_v27, %s9707_s22  ;;  %v10027_v30 = vrot.slane %v7806_v8, 7  ;;  %v10030_v35 = vsel %vm701_vm0, 0.0, %v710_v6  ;;  %v1070_v41 = vrot.slane %v9991_v3, 2  ;;  %v7811_v53 = vunpack.i.h.bf16 %v9896_v55 }
  0xd8   : > { %v823_v0 = vsel %vm701_vm0, %v717_v59, 0.0  ;;  %v9988_v1 = vsel %vm701_vm0, %v716_v47, %v717_v59  ;;  %v7828_v28 = vunpack.i.l.bf16 %v9966_v50  ;;  %14478 = vst [vmem:[#allocation19_spill] sm:$0xff] %v10030_v35  ;;  %v10044_v47 = vrot.slane %v7801_v26, 7 }
  0xd9   : > { %14476 = vst [vmem:[#allocation17_spill] sm:$0xff] %v9988_v1  ;;  %v894_v19 = vrot.slane %v9988_v1, 1  ;;  %v896_v20 = vrot.slane %v823_v0, 1  ;;  %v10036_v36 = vpack.i.bf16 %v9988_v1, %v9991_v3  ;;  %v1071_v42 = vrot.slane %v9988_v1, 2 }
  0xda   : > { %7998 = vrot.lane.b32.xlu0 %v9961_v44, %s9711_s27  ;;  %v1073_v43 = vrot.slane %v823_v0, 2  ;;  %v719_v48 = vrot.slane %v7828_v28, 7  ;;  %v10051_v57 = vsel %vm701_vm0, %v710_v6, %v711_v34  ;;  %v10056_v59 = vsel %vm867_vm2, %v913_v38, %v14325_v7 }
  0xdb   : > { %v9993_v4 = vpop.trf.xlu0  ;;  %7908 = vrot.lane.b32.xlu1 %v9982_v61, %s9708_s23  ;;  %v895_v46 = vsel %vm867_vm2, %v893_v15, %v894_v19  ;;  %v897_v39 = vsel %vm867_vm2, %v894_v19, %v896_v20  ;;  %14479 = vst [vmem:[#allocation20_spill] sm:$0xff] %v10051_v57  ;;  %v10060_v60 = vsel %vm701_vm0, %v10027_v30, 0.0  ;;  %v10063_v63 = vsel %vm701_vm0, %v711_v34, 0.0 }
  0xdc   : > { %v7833_v29 = vunpack.i.l.bf16 %v9993_v4  ;;  %v10067_v55 = vpack.i.bf16 %v897_v39, %v895_v46  ;;  %v883_v62 = vrot.slane %v10030_v35, 1  ;;  %v1072_v0 = vsel %vm1044_vm1, %v1070_v41, %v1071_v42 }
  0xdd   : > { %v1074_v6 = vsel %vm1044_vm1, %v1071_v42, %v1073_v43  ;;  %v10081_v15 = vsel %vm701_vm0, 0.0, %v719_v48  ;;  %v884_v19 = vrot.slane %v10051_v57, 1  ;;  %v10084_v20 = vrot.slane %v7811_v53, 7 }
  0xde   : > { %8003 = vrot.lane.b32.xlu0 %v9949_v40, %s9705_s20  ;;  %v720_v49 = vrot.slane %v7833_v29, 7  ;;  %14481 = vst [vmem:[#allocation22_spill] sm:$0xff] %v10081_v15  ;;  %v10086_v26 = vrot.slane %v7816_v54, 7  ;;  %v7826_v28 = vunpack.i.h.bf16 %v9945_v37  ;;  %v10096_v29 = vpack.i.bf16 %v1074_v6, %v1072_v0 }
  0xdf   : > { %v10014_v23 = vpop.trf.xlu0  ;;  %7913 = vrot.lane.b32.xlu1 %v9959_v27, %s9710_s18  ;;  %v7932_v34 = vpack.i.bf16 %v10051_v57, %v10030_v35  ;;  %v898_v46 = vrot.slane %v10081_v15, 1  ;;  %v7821_v37 = vunpack.i.h.bf16 %v9924_v12  ;;  %v885_v42 = vsel %vm867_vm2, %v883_v62, %v884_v19 }
  0xe0   : > { %v824_v8 = vsel %vm701_vm0, %v720_v49, 0.0  ;;  %v10078_v13 = vsel %vm701_vm0, %v719_v48, %v720_v49  ;;  %v886_v43 = vrot.slane %v10063_v63, 1  ;;  %v1060_v48 = vrot.slane %v10030_v35, 2 }
  0xe1   : > { %14480 = vst [vmem:[#allocation21_spill] sm:$0xff] %v10078_v13  ;;  %v899_v39 = vrot.slane %v10078_v13, 1  ;;  %v901_v41 = vrot.slane %v824_v8, 1  ;;  %v10111_v49 = vsel %vm701_vm0, %v10086_v26, 0.0  ;;  %v741_v53 = vrot.slane %v7826_v28, 7 }
  0xe2   : > { %8008 = vrot.lane.b32.xlu0 %v9961_v44, %s9704_s19  ;;  %v7831_v54 = vunpack.i.h.bf16 %v9966_v50  ;;  %v7836_v0 = vunpack.i.h.bf16 %v9993_v4  ;;  %v10119_v12 = vpack.i.bf16 %v10078_v13, %v10081_v15  ;;  %v1076_v28 = vrot.slane %v10078_v13, 2 }
  0xe3   : > { %v10042_v45 = vpop.trf.xlu0  ;;  %7918 = vrot.lane.b32.xlu1 %v9982_v61, %s9711_s27  ;;  %v900_v62 = vsel %vm867_vm2, %v898_v46, %v899_v39  ;;  %v902_v25 = vsel %vm867_vm2, %v899_v39, %v901_v41  ;;  %v1078_v7 = vrot.slane %v824_v8, 2  ;;  %v740_v50 = vrot.slane %v7821_v37, 7 }
  0xe4   : > { %v887_v4 = vsel %vm867_vm2, %v884_v19, %v886_v43  ;;  %v1061_v9 = vrot.slane %v10051_v57, 2  ;;  %v1063_v17 = vrot.slane %v10063_v63, 2  ;;  %v744_v24 = vrot.slane %v7836_v0, 7 }
  0xe5   : > { %v10133_v39 = vsel %vm701_vm0, %v741_v53, 0.0  ;;  %v743_v8 = vrot.slane %v7831_v54, 7  ;;  %v10137_v41 = vpack.i.bf16 %v902_v25, %v900_v62  ;;  %v7841_v19 = vunpack.i.h.bf16 %v10014_v23 }
  0xe6   : > { %8018 = vrot.lane.b32.xlu0 %v10036_v36, %s9706_s21  ;;  %v7838_v63 = vunpack.i.l.bf16 %v10014_v23  ;;  %v1079_v43 = vsel %vm1044_vm1, %v1076_v28, %v1078_v7  ;;  %v7843_v0 = vunpack.i.l.bf16 %v10042_v45  ;;  %v10145_v18 = vsel %vm701_vm0, 0.0, %v740_v50 }
  0xe7   : > { %v10072_v38 = vpop.trf.xlu0  ;;  %7923 = vrot.lane.b32.xlu1 %v9959_v27, %s9705_s20  ;;  %v10092_v27 = vld [vmem:[%s14316_s6] sm:$0xff]   ;;  %14482 = vst [vmem:[#allocation23_spill] sm:$0xff] %v10145_v18  ;;  %v10148_v54 = vpack.i.bf16 %v887_v4, %v885_v42  ;;  %v1062_v25 = vsel %vm1044_vm1, %v1060_v48, %v1061_v9  ;;  %v7846_v62 = vunpack.i.h.bf16 %v10042_v45  ;;  %v10154_v23 = vsel %vm701_vm0, %v740_v50, %v741_v53 }
  0xe8   : > { %7593 = vmatprep.subr.bf16.mxu1 %v10092_v27  ;;  %14483 = vst [vmem:[#allocation24_spill] sm:$0xff] %v10154_v23  ;;  %v10157_v7 = vsel %vm701_vm0, %v744_v24, 0.0  ;;  %v10165_v48 = vsel %vm701_vm0, 0.0, %v743_v8  ;;  %v722_v45 = vrot.slane %v7838_v63, 7  ;;  %v723_v4 = vrot.slane %v7843_v0, 7 }
  0xe9   : > { %14484 = vst [vmem:[#allocation25_spill] sm:$0xff] %v10165_v48  ;;  %v10170_v50 = vsel %vm701_vm0, %v743_v8, %v744_v24  ;;  %v1093_v13 = vrot.slane %v10010_v21, 2  ;;  %v1098_v58 = vrot.slane %v10020_v52, 2 }
  0xea   : > { %8043 = vrot.lane.b32.xlu0 %v10067_v55, %s9707_s22  ;;  %14485 = vst [vmem:[#allocation26_spill] sm:$0xff] %v10170_v50  ;;  %v825_v24 = vsel %vm701_vm0, %v723_v4, 0.0  ;;  %v10186_v8 = vsel %vm701_vm0, %v722_v45, %v723_v4  ;;  %v10189_v0 = vsel %vm701_vm0, 0.0, %v722_v45 }
  0xeb   : > { %7928 = vrot.lane.b32.xlu1 %v9982_v61, %s9704_s19  ;;  %v7852_v6 = vpop.trf.xlu0  ;;  %v1075_v61 = vrot.slane %v10081_v15, 2  ;;  %14487 = vst [vmem:[#allocation28_spill] sm:$0xff] %v10186_v8  ;;  %14488 = vst [vmem:[#allocation29_spill] sm:$0xff] %v10189_v0  ;;  %v903_v4 = vrot.slane %v10189_v0, 1  ;;  %v904_v45 = vrot.slane %v10186_v8, 1  ;;  %v1080_v53 = vrot.slane %v10189_v0, 2 }
  0xec   : > { %v7856_v16 = vunpack.i.h.bf16 %v7852_v6  ;;  %v7853_v63 = vunpack.i.l.bf16 %v7852_v6  ;;  %v1081_v46 = vrot.slane %v10186_v8, 2  ;;  %v1083_v3 = vrot.slane %v825_v24, 2 }
  0xed   : > { %v1077_v37 = vsel %vm1044_vm1, %v1075_v61, %v1076_v28  ;;  %v1064_v28 = vsel %vm1044_vm1, %v1061_v9, %v1063_v17  ;;  %v747_v61 = vrot.slane %v7846_v62, 7 }
  0xee   : > { %8048 = vrot.lane.b32.xlu0 %v10096_v29, %s9708_s23  ;;  %v10162_v42 = vpack.i.bf16 %v1079_v43, %v1077_v37  ;;  %v7851_v37 = vunpack.i.h.bf16 %v10072_v38  ;;  %v7848_v43 = vunpack.i.l.bf16 %v10072_v38  ;;  %v10182_v17 = vpack.i.bf16 %v1064_v28, %v1062_v25 }
  0xef   : > { %7933 = vrot.lane.b32.xlu1 %v7932_v34, %s9709_s15  ;;  %v10194_v38 = vsel %vm701_vm0, %v747_v61, 0.0  ;;  %v10196_v6 = vrot.slane %v7856_v16, 7  ;;  %v726_v28 = vrot.slane %v7853_v63, 7  ;;  %v1082_v35 = vsel %vm1044_vm1, %v1080_v53, %v1081_v46 }
  0xf0   : > { %v10198_v62 = vrot.slane %v7851_v37, 7  ;;  %v725_v25 = vrot.slane %v7848_v43, 7  ;;  %v905_v37 = vsel %vm867_vm2, %v903_v4, %v904_v45  ;;  %v10252_v53 = vpack.i.bf16 %v9928_v14, %v9914_v2 }
  0xf1   : > { %v10215_v63 = vsel %vm701_vm0, %v10196_v6, 0.0 }
  0xf2   : > { %8058 = vrot.lane.b32.xlu0 %v10119_v12, %s9709_s15  ;;  %v10219_v1 = vsel %vm701_vm0, 0.0, %v10198_v62  ;;  %v10223_v16 = vsel %vm701_vm0, %v725_v25, %v726_v28 }
  0xf3   : > { %7938 = vrot.lane.b32.xlu1 %v7932_v34, %s9706_s21  ;;  %v746_v34 = vrot.slane %v7841_v19, 7  ;;  %v906_v19 = vrot.slane %v825_v24, 1  ;;  %v826_v24 = vsel %vm701_vm0, %v726_v28, 0.0  ;;  %14490 = vst [vmem:[#allocation31_spill] sm:$0xff] %v10223_v16  ;;  %v1084_v28 = vsel %vm1044_vm1, %v1081_v46, %v1083_v3 }
  0xf4   : > { %v909_v57 = vrot.slane %v10223_v16, 1  ;;  %v911_v56 = vrot.slane %v826_v24, 1  ;;  %v10254_v3 = vpack.i.bf16 %v1084_v28, %v1082_v35  ;;  %v10265_v46 = vsel %vm701_vm0, 0.0, %v10012_v22  ;;  %v515_v28 = vld [vmem:[%s514_s25] sm:$0x1] }
  0xf5   : > { %v10178_v9 = vsel %vm701_vm0, 0.0, %v746_v34  ;;  %v10209_v43 = vsel %vm701_vm0, %v746_v34, %v747_v61  ;;  %v10226_v61 = vsel %vm701_vm0, 0.0, %v725_v25  ;;  %v10232_v34 = vpack.i.bf16 %v10186_v8, %v10189_v0 }
  0xf6   : > { %8073 = vrot.lane.b32.xlu0 %v10137_v41, %s9710_s18  ;;  %14486 = vst [vmem:[#allocation27_spill] sm:$0xff] %v10178_v9  ;;  %14489 = vst [vmem:[#allocation30_spill] sm:$0xff] %v10209_v43  ;;  %v907_v15 = vsel %vm867_vm2, %v904_v45, %v906_v19  ;;  %v908_v25 = vrot.slane %v10226_v61, 1  ;;  %v10269_v4 = vpack.i.bf16 %v10223_v16, %v10226_v61  ;;  %v1085_v45 = vrot.slane %v10226_v61, 2 }
  0xf7   : > { %7943 = vrot.lane.b32.xlu1 %v10148_v54, %s9710_s18  ;;  %14491 = vst [vmem:[#allocation32_spill] sm:$0xff] %v10226_v61  ;;  %v10243_v0 = vpack.i.bf16 %v907_v15, %v905_v37  ;;  %v10261_v15 = vsel %vm701_vm0, %v10012_v22, %v9995_v5  ;;  %v1086_v35 = vrot.slane %v10223_v16, 2  ;;  %v1088_v37 = vrot.slane %v826_v24, 2 }
  0xf8   : > { %14492 = vst [vmem:[#allocation33_spill] sm:$0xff] %v10269_v4  ;;  %v910_v5 = vsel %vm867_vm2, %v908_v25, %v909_v57  ;;  %v912_v19 = vsel %vm867_vm2, %v909_v57, %v911_v56  ;;  %v1091_v22 = vrot.slane %v10001_v31, 2  ;;  %v918_v8 = vrot.slane %v10265_v46, 1  ;;  %v9227_v57 = vld [vmem:[%s14316_s6 + $0x8] sm:$0xff]  }
  0xf9   : > { %v919_v2 = vrot.slane %v10261_v15, 1  ;;  %v921_v61 = vrot.slane %v10020_v52, 1  ;;  %v10282_v16 = vpack.i.bf16 %v912_v19, %v910_v5  ;;  %v1096_v24 = vrot.slane %v10261_v15, 2 }
  0xfa   : > { %8078 = vrot.lane.b32.xlu0 %v10162_v42, %s9711_s27  ;;  %v516_v56 = vpack.c.bf16 %v515_v28, %v515_v28  ;;  %v1087_v25 = vsel %vm1044_vm1, %v1085_v45, %v1086_v35  ;;  %v1089_v14 = vsel %vm1044_vm1, %v1086_v35, %v1088_v37  ;;  %v14493_v19 = vmov 0.0  }
  0xfb   : > { %7948 = vrot.lane.b32.xlu1 %v10182_v17, %s9711_s27  ;;  %7589 = vmatprep.mubr.msk.bf16.mxu1 %vm9712_vm3, %v14493_v19  ;;  %v14494_v5 = vrot.slane %v10010_v21, 1  ;;  %v14495_v28 = vrot.slane %v10001_v31, 1  ;;  %v10305_v45 = vsel %vm701_vm0, %v10044_v47, %v10027_v30  ;;  %v10309_v52 = vsel %vm701_vm0, 0.0, %v10044_v47 }
  0xfc   : > { %14496 = vst [vmem:[#allocation34_spill] sm:$0xff] %v10305_v45  ;;  %14497 = vst [vmem:[#allocation35_spill] sm:$0xff] %v10309_v52  ;;  %7590 = vmatmul.mubr.msk.bf16.vlgmr.msra.gmra.mrb[0].mxu1 %vm550_vm4, %v516_v56  ;;  %v10312_v35 = vpack.i.bf16 %v1089_v14, %v1087_v25  ;;  %v1094_v37 = vsel %vm1044_vm1, %v1091_v22, %v1093_v13  ;;  %v920_v19 = vsel %vm867_vm2, %v918_v8, %v919_v2  ;;  %v9228_v13 = vld [vmem:[%s14316_s6 + $0x10] ss:$0 sps:$4 sm:$0x33]  }
  0xfd   : > { %v917_v32 = vsel %vm867_vm2, %v14495_v28, %v14494_v5  ;;  %7594 = vmatpush3.bf16.msra.mxu1 %v10092_v27  ;;  %v922_v30 = vsel %vm867_vm2, %v919_v2, %v921_v61  ;;  %v10327_v14 = vsel %vm701_vm0, %v10084_v20, %v10086_v26  ;;  %v10331_v56 = vsel %vm701_vm0, 0.0, %v10084_v20 }
  0xfe   : > { %8098 = vrot.lane.b32.xlu0 %v10137_v41, %s9705_s20  ;;  %14499 = vst [vmem:[#allocation36_spill] sm:$0xff] %v10327_v14  ;;  %14500 = vst [vmem:[#allocation37_spill] sm:$0xff] %v10331_v56  ;;  %7595 = vmatprep.subr.bf16.mxu1 %v9227_v57  ;;  %v1099_v27 = vsel %vm1044_vm1, %v1096_v24, %v1098_v58  ;;  %v923_v2 = vrot.slane %v10309_v52, 1  ;;  %v924_v8 = vrot.slane %v10305_v45, 1  ;;  %v926_v20 = vrot.slane %v10060_v60, 1 }
  0xff   : > { %7953 = vrot.lane.b32.xlu1 %v10148_v54, %s9705_s20  ;;  %v10340_v61 = vpack.i.bf16 %v917_v32, %v10056_v59  ;;  %v1100_v26 = vrot.slane %v10309_v52, 2  ;;  %v1103_v58 = vrot.slane %v10060_v60, 2  ;;  %v929_v25 = vrot.slane %v10327_v14, 1 }
 0x100   : > { %v1105_v32 = vrot.slane %v10331_v56, 2  ;;  %v1106_v59 = vrot.slane %v10327_v14, 2  ;;  %v2167_v5 = vsel %vm2165_vm5, %v9228_v13, 0  ;;  %v10356_v28 = vpack.i.bf16 %v922_v30, %v920_v19 }
 0x101   : > { %7596 = vmatpush3.bf16.msra.mxu1 %v9227_v57  ;;  %v925_v60 = vsel %vm867_vm2, %v923_v2, %v924_v8  ;;  %v934_v57 = vrot.slane %v10154_v23, 1  ;;  %v938_v2 = vrot.slane %v10165_v48, 1 }
 0x102   : > { %8108 = vrot.lane.b32.xlu0 %v10162_v42, %s9704_s19  ;;  %7743 = vmatprep.subr.msk.bf16.mxu1 %vm2165_vm5, %v9228_v13  ;;  %v1107_v13 = vsel %vm1044_vm1, %v1105_v32, %v1106_v59 }
 0x103   : > { %7958 = vrot.lane.b32.xlu1 %v10182_v17, %s9704_s19 }
 0x105   : > { %7598 = vmatpush3.bf16.msra.mxu1 %v2167_v5 }
 0x106   : > { %8118 = vrot.lane.b32.xlu0 %v10232_v34, %s9706_s21 }
 0x107   : > { %7963 = vrot.lane.b32.xlu1 %v10148_v54, %s9707_s22  ;;  %v1095_v54 = vrot.slane %v10265_v46, 2 }
 0x109   : > { %v1097_v47 = vsel %vm1044_vm1, %v1095_v54, %v1096_v24  ;;  %v1101_v54 = vrot.slane %v10305_v45, 2  ;;  %v928_v24 = vrot.slane %v10331_v56, 1 }
 0x10a   : > { %8128 = vrot.lane.b32.xlu0 %v10243_v0, %s9707_s22 }
 0x10b   : > { %7968 = vrot.lane.b32.xlu1 %v10182_v17, %s9708_s23  ;;  %v14498_v17 = vrot.slane %v9970_v51, 2  ;;  %v1102_v33 = vsel %vm1044_vm1, %v1100_v26, %v1101_v54  ;;  %v930_v19 = vsel %vm867_vm2, %v928_v24, %v929_v25  ;;  %v1116_v26 = vrot.slane %v10170_v50, 2 }
 0x10d   : > { %v1092_v21 = vsel %vm1044_vm1, %v14498_v17, %v1091_v22  ;;  %v933_v17 = vrot.slane %v10145_v18, 1 }
 0x10e   : > { %8138 = vrot.lane.b32.xlu0 %v10254_v3, %s9708_s23  ;;  %v10346_v22 = vpack.i.bf16 %v1094_v37, %v1092_v21  ;;  %v10363_v21 = vpack.i.bf16 %v1099_v27, %v1097_v47  ;;  %v927_v37 = vsel %vm867_vm2, %v924_v8, %v926_v20  ;;  %v1110_v47 = vrot.slane %v10145_v18, 2 }
 0x10f   : > { %7973 = vrot.lane.b32.xlu1 %v10252_v53, %s9706_s21  ;;  %v1111_v27 = vrot.slane %v10154_v23, 2  ;;  %v939_v8 = vrot.slane %v10170_v50, 1  ;;  %v1115_v20 = vrot.slane %v10165_v48, 2  ;;  %v935_v24 = vsel %vm867_vm2, %v933_v17, %v934_v57 }
 0x110   : > { %v10390_v5 = vpack.i.bf16 %v927_v37, %v925_v60  ;;  %v944_v48 = vrot.slane %v10209_v43, 1  ;;  %v1120_v17 = vrot.slane %v10178_v9, 2 }
 0x112   : > { %8148 = vrot.lane.b32.xlu0 %v10269_v4, %s9709_s15  ;;  %v1104_v4 = vsel %vm1044_vm1, %v1101_v54, %v1103_v58  ;;  %v14502_v54 = vrot.slane %v10111_v49, 2 }
 0x113   : > { %7978 = vrot.lane.b32.xlu1 %v10252_v53, %s9709_s15  ;;  %v14501_v53 = vrot.slane %v10111_v49, 1  ;;  %v10394_v50 = vpack.i.bf16 %v1104_v4, %v1102_v33  ;;  %v1112_v49 = vsel %vm1044_vm1, %v1110_v47, %v1111_v27  ;;  %v940_v33 = vsel %vm867_vm2, %v938_v2, %v939_v8 }
 0x114   : > { %v1109_v58 = vsel %vm1044_vm1, %v1106_v59, %v14502_v54  ;;  %v14504_v59 = vrot.slane %v10133_v39, 2  ;;  %v14505_v4 = vrot.slane %v10157_v7, 1 }
 0x115   : > { %v932_v30 = vsel %vm867_vm2, %v929_v25, %v14501_v53  ;;  %v14503_v25 = vrot.slane %v10133_v39, 1  ;;  %v943_v53 = vrot.slane %v10178_v9, 1  ;;  %v1319_v39 = vrot.slane %v10219_v1, 1 }
 0x116   : > { %8158 = vrot.lane.b32.xlu0 %v10282_v16, %s9710_s18  ;;  %v1114_v60 = vsel %vm1044_vm1, %v1111_v27, %v14504_v59  ;;  %v942_v37 = vsel %vm867_vm2, %v939_v8, %v14505_v4  ;;  %v10418_v54 = vpack.i.bf16 %v932_v30, %v930_v19  ;;  %v14507_v8 = vrot.slane %v10194_v38, 1 }
 0x117   : > { %7983 = vrot.lane.b32.xlu1 %v9949_v40, %s9707_s22  ;;  %v937_v32 = vsel %vm867_vm2, %v934_v57, %v14503_v25  ;;  %v751_v40 = vsel %vm701_vm0, %v10198_v62, %v10196_v6  ;;  %v1121_v57 = vrot.slane %v10209_v43, 2  ;;  %v1117_v6 = vsel %vm1044_vm1, %v1115_v20, %v1116_v26 }
 0x118   : > { %v14506_v62 = vrot.slane %v10157_v7, 2  ;;  %v1320_v27 = vrot.slane %v751_v40, 1  ;;  %v10420_v25 = vpack.i.bf16 %v1109_v58, %v1107_v13  ;;  %v945_v2 = vsel %vm867_vm2, %v943_v53, %v944_v48 }
 0x119   : > { %v947_v20 = vsel %vm867_vm2, %v944_v48, %v14507_v8  ;;  %v1420_v7 = vrot.slane %v10219_v1, 2  ;;  %v1421_v59 = vrot.slane %v751_v40, 2  ;;  %v10433_v30 = vpack.i.bf16 %v937_v32, %v935_v24 }
 0x11a   : > { %8168 = vrot.lane.b32.xlu0 %v10312_v35, %s9711_s27  ;;  %v1119_v47 = vsel %vm1044_vm1, %v1116_v26, %v14506_v62  ;;  %v14508_v26 = vrot.slane %v10194_v38, 2  ;;  %v10435_v13 = vpack.i.bf16 %v1114_v60, %v1112_v49  ;;  %v10437_v58 = vpack.i.bf16 %v942_v37, %v940_v33 }
 0x11b   : > { %7988 = vrot.lane.b32.xlu1 %v9961_v44, %s9708_s23  ;;  %v1122_v44 = vsel %vm1044_vm1, %v1120_v17, %v1121_v57  ;;  %v1321_v48 = vsel %vm867_vm2, %v1319_v39, %v1320_v27  ;;  %v14509_v53 = vrot.slane %v10215_v63, 1  ;;  %v1422_v17 = vsel %vm1044_vm1, %v1420_v7, %v1421_v59 }
 0x11c   : > { %v1124_v19 = vsel %vm1044_vm1, %v1121_v57, %v14508_v26  ;;  %v10446_v38 = vpack.i.bf16 %v1119_v47, %v1117_v6  ;;  %v14510_v24 = vrot.slane %v10215_v63, 2  ;;  %v10451_v49 = vpack.i.bf16 %v947_v20, %v945_v2 }
 0x11d   : > { %v1323_v4 = vsel %vm867_vm2, %v1320_v27, %v14509_v53  ;;  %v10453_v60 = vpack.i.bf16 %v1124_v19, %v1122_v44  ;;  %v10464_v57 = vpack.i.bf16 %v10001_v31, %v9970_v51  ;;  %v10484_v37 = vpack.i.bf16 %v10261_v15, %v10265_v46 }
 0x11e   : > { %8178 = vrot.lane.b32.xlu0 %v10282_v16, %s9705_s20  ;;  %v1424_v32 = vsel %vm1044_vm1, %v1421_v59, %v14510_v24  ;;  %v10466_v63 = vpack.i.bf16 %v1323_v4, %v1321_v48  ;;  %v10514_v47 = vpack.i.bf16 %v10305_v45, %v10309_v52  ;;  %v10544_v53 = vpack.i.bf16 %v10327_v14, %v10331_v56  ;;  %v14511_v56 = vld [vmem:[#allocation33_spill] sm:$0xff] }
 0x11f   : > { %8013 = vrot.lane.b32.xlu1 %v10036_v36, %s9709_s15  ;;  %v10456_v36 = vpack.i.bf16 %v751_v40, %v10219_v1  ;;  %v10468_v33 = vpack.i.bf16 %v1424_v32, %v1422_v17  ;;  %v7864_v1 = vpop.permute.xlu1 %7863 }
 0x120   : > { %v7865_v20 = vunpack.i.l.bf16 %v7864_v1  ;;  %v7866_v44 = vunpack.i.h.bf16 %v7864_v1 }
 0x122   : > { %8188 = vrot.lane.b32.xlu0 %v10312_v35, %s9704_s19 }
 0x123   : > { %8023 = vrot.lane.b32.xlu1 %v10067_v55, %s9710_s18 }
 0x126   : > { %8198 = vrot.lane.b32.xlu0 %v10464_v57, %s9706_s21 }
 0x127   : > { %8028 = vrot.lane.b32.xlu1 %v10096_v29, %s9711_s27 }
 0x12a   : > { %8208 = vrot.lane.b32.xlu0 %v10340_v61, %s9707_s22 }
 0x12b   : > { %8033 = vrot.lane.b32.xlu1 %v10067_v55, %s9705_s20 }
 0x12d   : > { %v7869_v40 = vpop.permute.xlu1 %7868 }
 0x12e   : > { %8218 = vrot.lane.b32.xlu0 %v10346_v22, %s9708_s23  ;;  %v7871_v19 = vunpack.i.h.bf16 %v7869_v40 }
 0x12f   : > { %8038 = vrot.lane.b32.xlu1 %v10096_v29, %s9704_s19 }
 0x131   : > { %v10486_v6 = vpop.permute.xlu1 %7873 }
 0x132   : > { %8228 = vrot.lane.b32.xlu0 %v10484_v37, %s9709_s15 }
 0x133   : > { %8053 = vrot.lane.b32.xlu1 %v10119_v12, %s9706_s21 }
 0x135   : > { %v10492_v55 = vpop.permute.xlu1 %7878 }
 0x136   : > { %8238 = vrot.lane.b32.xlu0 %v10356_v28, %s9710_s18 }
 0x137   : > { %8063 = vrot.lane.b32.xlu1 %v10137_v41, %s9707_s22  ;;  %v7859_v41 = vpop.permute.xlu0 %7858 }
 0x138   : > { %v7860_v27 = vunpack.i.l.bf16 %v7859_v41  ;;  %v7861_v2 = vunpack.i.h.bf16 %v7859_v41 }
 0x139   : > { %v7884_v29 = vpop.permute.xlu1 %7883 }
 0x13a   : > { %8248 = vrot.lane.b32.xlu0 %v10363_v21, %s9711_s27  ;;  %v1810_v59 = vsel %vm1809_vm6, %v9837_v11, %v7860_v27  ;;  %v1811_v26 = vsel %vm1809_vm6, %v9832_v10, %v7861_v2  ;;  %v7886_v4 = vunpack.i.h.bf16 %v7884_v29  ;;  %v7885_v17 = vunpack.i.l.bf16 %v7884_v29 }
 0x13b   : > { %8068 = vrot.lane.b32.xlu1 %v10162_v42, %s9708_s23  ;;  %v1843_v24 = vsel %vm1842_vm7, %v1810_v59, %v7865_v20 }
 0x13d   : > { %v7889_v62 = vpop.permute.xlu1 %7888 }
 0x13e   : > { %8258 = vrot.lane.b32.xlu0 %v10356_v28, %s9705_s20  ;;  %v7891_v32 = vunpack.i.h.bf16 %v7889_v62  ;;  %v7890_v1 = vunpack.i.l.bf16 %v7889_v62 }
 0x13f   : > { %8083 = vrot.lane.b32.xlu1 %v10232_v34, %s9709_s15 }
 0x141   : > { %v10506_v12 = vpop.permute.xlu1 %7893 }
 0x142   : > { %8268 = vrot.lane.b32.xlu0 %v10363_v21, %s9704_s19 }
 0x143   : > { %8088 = vrot.lane.b32.xlu1 %v10243_v0, %s9710_s18 }
 0x145   : > { %v7899_v42 = vpop.permute.xlu1 %7898 }
 0x146   : > { %8278 = vrot.lane.b32.xlu0 %v10514_v47, %s9706_s21  ;;  %v7900_v27 = vunpack.i.l.bf16 %v7899_v42 }
 0x147   : > { %8093 = vrot.lane.b32.xlu1 %v10254_v3, %s9711_s27 }
 0x148   : > { %v10520_v34 = vpop.permute.xlu0 %7993 }
 0x149   : > { %v10522_v39 = vpop.permute.xlu1 %7903 }
 0x14a   : > { %8288 = vrot.lane.b32.xlu0 %v10390_v5, %s9707_s22 }
 0x14b   : > { %8103 = vrot.lane.b32.xlu1 %v10243_v0, %s9705_s20  ;;  %v7870_v0 = vunpack.i.l.bf16 %v7869_v40  ;;  %v7901_v40 = vunpack.i.h.bf16 %v7899_v42 }
 0x14c   : > { %v10528_v8 = vpop.permute.xlu0 %7998 }
 0x14d   : > { %v10530_v7 = vpop.permute.xlu1 %7908  ;;  %v1876_v52 = vsel %vm1875_vm8, %v1843_v24, %v7870_v0 }
 0x14e   : > { %8298 = vrot.lane.b32.xlu0 %v10394_v50, %s9708_s23  ;;  %v1909_v59 = vsel %vm1908_vm9, %v1876_v52, %v7885_v17 }
 0x14f   : > { %8113 = vrot.lane.b32.xlu1 %v10254_v3, %s9704_s19  ;;  %v1844_v3 = vsel %vm1842_vm7, %v1811_v26, %v7866_v44  ;;  %v1942_v44 = vsel %vm1941_vm10, %v1909_v59, %v7890_v1  ;;  %v7881_v59 = vunpack.i.h.bf16 %v10492_v55 }
 0x150   : > { %v10540_v48 = vpop.permute.xlu0 %8003  ;;  %v1877_v2 = vsel %vm1875_vm8, %v1844_v3, %v7871_v19  ;;  %v1975_v19 = vsel %vm1974_vm11, %v1942_v44, %v7900_v27  ;;  %v7880_v44 = vunpack.i.l.bf16 %v10492_v55  ;;  %v7911_v55 = vunpack.i.h.bf16 %v10530_v7 }
 0x151   : > { %v7914_v41 = vpop.permute.xlu1 %7913  ;;  %v1910_v62 = vsel %vm1908_vm9, %v1877_v2, %v7886_v4  ;;  %v10597_v2 = vpack.i.bf16 %v10154_v23, %v10145_v18 }
 0x152   : > { %8308 = vrot.lane.b32.xlu0 %v10544_v53, %s9709_s15  ;;  %v7916_v45 = vunpack.i.h.bf16 %v7914_v41  ;;  %v7915_v29 = vunpack.i.l.bf16 %v7914_v41  ;;  %v1943_v42 = vsel %vm1941_vm10, %v1910_v62, %v7891_v32  ;;  %v7875_v62 = vunpack.i.l.bf16 %v10486_v6 }
 0x153   : > { %8123 = vrot.lane.b32.xlu1 %v14511_v56, %s9706_s21  ;;  %v1976_v56 = vsel %vm1974_vm11, %v1943_v42, %v7901_v40  ;;  %v7896_v42 = vunpack.i.h.bf16 %v10506_v12 }
 0x154   : > { %v10554_v20 = vpop.permute.xlu0 %8008  ;;  %v2008_v4 = vsel %vm2007_vm12, %v1975_v19, %v7915_v29  ;;  %v2009_v52 = vsel %vm2007_vm12, %v1976_v56, %v7916_v45  ;;  %v7876_v29 = vunpack.i.h.bf16 %v10486_v6  ;;  %v7906_v6 = vunpack.i.h.bf16 %v10522_v39 }
 0x155   : > { %v7919_v26 = vpop.permute.xlu1 %7918  ;;  %v7905_v56 = vunpack.i.l.bf16 %v10522_v39 }
 0x156   : > { %8318 = vrot.lane.b32.xlu0 %v10418_v54, %s9710_s18  ;;  %v7921_v0 = vunpack.i.h.bf16 %v7919_v26  ;;  %v7920_v24 = vunpack.i.l.bf16 %v7919_v26  ;;  %v7895_v26 = vunpack.i.l.bf16 %v10506_v12 }
 0x157   : > { %8133 = vrot.lane.b32.xlu1 %v10282_v16, %s9707_s22 }
 0x158   : > { %v10568_v17 = vpop.permute.xlu0 %8018  ;;  %v2041_v32 = vsel %vm2040_vm13, %v2008_v4, %v7920_v24  ;;  %v2042_v1 = vsel %vm2040_vm13, %v2009_v52, %v7921_v0  ;;  %v14512_v0 = vld [vmem:[#allocation12_spill] sm:$0xff]  ;;  %v14513_v4 = vld [vmem:[#allocation11_spill] sm:$0xff] }
 0x159   : > { %v10572_v41 = vpop.permute.xlu1 %7923  ;;  %v2073_v3 = vpack.c.bf16 %v2042_v1, %v2041_v32  ;;  %v1813_v24 = vsel %vm1809_vm6, %v14512_v0, %v7876_v29  ;;  %v1812_v52 = vsel %vm1809_vm6, %v14513_v4, %v7875_v62  ;;  %v7910_v32 = vunpack.i.l.bf16 %v10530_v7 }
 0x15a   : > { %8328 = vrot.lane.b32.xlu0 %v10420_v25, %s9711_s27  ;;  %v1845_v1 = vsel %vm1842_vm7, %v1812_v52, %v7880_v44 }
 0x15b   : > { %8143 = vrot.lane.b32.xlu1 %v10312_v35, %s9708_s23  ;;  %7599 = vmatprep.mubr.msk.bf16.mxu1 %vm2116_vm14, %v2073_v3  ;;  %v1846_v3 = vsel %vm1842_vm7, %v1813_v24, %v7881_v59  ;;  %v1878_v23 = vsel %vm1875_vm8, %v1845_v1, %v7895_v26 }
 0x15c   : > { %v10579_v45 = vpop.permute.xlu0 %8043  ;;  %v1879_v29 = vsel %vm1875_vm8, %v1846_v3, %v7896_v42  ;;  %v1911_v4 = vsel %vm1908_vm9, %v1878_v23, %v7905_v56  ;;  %v14515_v56 = vld [vmem:[#allocation26_spill] sm:$0xff] }
 0x15d   : > { %v10581_v16 = vpop.permute.xlu1 %7928  ;;  %v1912_v14 = vsel %vm1908_vm9, %v1879_v29, %v7906_v6  ;;  %v1944_v44 = vsel %vm1941_vm10, %v1911_v4, %v7910_v32  ;;  %v7925_v4 = vunpack.i.l.bf16 %v10572_v41 }
 0x15e   : > { %8338 = vrot.lane.b32.xlu0 %v10418_v54, %s9705_s20  ;;  %v1945_v59 = vsel %vm1941_vm10, %v1912_v14, %v7911_v55  ;;  %v14514_v14 = vld [vmem:[#allocation25_spill] sm:$0xff] }
 0x15f   : > { %8153 = vrot.lane.b32.xlu1 %v10464_v57, %s9709_s15  ;;  %v10647_v55 = vpack.i.bf16 %v14515_v56, %v14514_v14 }
 0x160   : > { %v10587_v40 = vpop.permute.xlu0 %8048 }
 0x161   : > { %v7934_v27 = vpop.permute.xlu1 %7933 }
 0x162   : > { %8348 = vrot.lane.b32.xlu0 %v10420_v25, %s9704_s19  ;;  %v7936_v18 = vunpack.i.h.bf16 %v7934_v27  ;;  %v7935_v39 = vunpack.i.l.bf16 %v7934_v27 }
 0x163   : > { %8163 = vrot.lane.b32.xlu1 %v10340_v61, %s9710_s18 }
 0x164   : > { %v10593_v35 = vpop.permute.xlu0 %8058  ;;  %v1977_v42 = vsel %vm1974_vm11, %v1944_v44, %v7935_v39  ;;  %v1978_v26 = vsel %vm1974_vm11, %v1945_v59, %v7936_v18  ;;  %v7931_v44 = vunpack.i.h.bf16 %v10581_v16  ;;  %v7930_v59 = vunpack.i.l.bf16 %v10581_v16 }
 0x165   : > { %v10601_v57 = vpop.permute.xlu1 %7938 }
 0x166   : > { %8358 = vrot.lane.b32.xlu0 %v10597_v2, %s9706_s21 }
 0x167   : > { %8173 = vrot.lane.b32.xlu1 %v10346_v22, %s9711_s27 }
 0x168   : > { %v10611_v19 = vpop.permute.xlu0 %8073 }
 0x169   : > { %v7944_v12 = vpop.permute.xlu1 %7943 }
 0x16a   : > { %8368 = vrot.lane.b32.xlu0 %v10433_v30, %s9707_s22  ;;  %v7946_v0 = vunpack.i.h.bf16 %v7944_v12  ;;  %v7945_v62 = vunpack.i.l.bf16 %v7944_v12 }
 0x16b   : > { %8183 = vrot.lane.b32.xlu1 %v10340_v61, %s9705_s20 }
 0x16c   : > { %v10629_v7 = vpop.permute.xlu0 %8078  ;;  %v2010_v52 = vsel %vm2007_vm12, %v1977_v42, %v7945_v62  ;;  %v2011_v23 = vsel %vm2007_vm12, %v1978_v26, %v7946_v0  ;;  %v7926_v62 = vunpack.i.h.bf16 %v10572_v41 }
 0x16d   : > { %v7949_v27 = vpop.permute.xlu1 %7948 }
 0x16e   : > { %8378 = vrot.lane.b32.xlu0 %v10435_v13, %s9708_s23  ;;  %v7951_v24 = vunpack.i.h.bf16 %v7949_v27  ;;  %v7950_v61 = vunpack.i.l.bf16 %v7949_v27  ;;  %v7940_v27 = vunpack.i.l.bf16 %v10601_v57 }
 0x16f   : > { %8193 = vrot.lane.b32.xlu1 %v10346_v22, %s9704_s19 }
 0x170   : > { %v10643_v6 = vpop.permute.xlu0 %8098  ;;  %v2043_v32 = vsel %vm2040_vm13, %v2010_v52, %v7950_v61  ;;  %v2044_v12 = vsel %vm2040_vm13, %v2011_v23, %v7951_v24  ;;  %v14516_v24 = vld [vmem:[#allocation14_spill] sm:$0xff]  ;;  %v14517_v52 = vld [vmem:[#allocation13_spill] sm:$0xff] }
 0x171   : > { %v2074_v18 = vpack.c.bf16 %v2044_v12, %v2043_v32  ;;  %v10651_v1 = vpop.permute.xlu1 %7953  ;;  %v1815_v61 = vsel %vm1809_vm6, %v14516_v24, %v7926_v62  ;;  %v1814_v16 = vsel %vm1809_vm6, %v14517_v52, %v7925_v4  ;;  %v7996_v52 = vunpack.i.h.bf16 %v10520_v34 }
 0x172   : > { %8388 = vrot.lane.b32.xlu0 %v10647_v55, %s9709_s15  ;;  %v1847_v12 = vsel %vm1842_vm7, %v1814_v16, %v7930_v59  ;;  %v7995_v59 = vunpack.i.l.bf16 %v10520_v34  ;;  %v8005_v34 = vunpack.i.l.bf16 %v10540_v48 }
 0x173   : > { %8203 = vrot.lane.b32.xlu1 %v10484_v37, %s9706_s21  ;;  %7600 = vmatmul.mubr.msk.bf16.vlgmr.msra.gmra.mrb[4].mxu1 %vm2116_vm14, %v2074_v18  ;;  %v1848_v18 = vsel %vm1842_vm7, %v1815_v61, %v7931_v44  ;;  %v8001_v61 = vunpack.i.h.bf16 %v10528_v8 }
 0x174   : > { %v10658_v22 = vpop.permute.xlu0 %8108 }
 0x175   : > { %v10660_v3 = vpop.permute.xlu1 %7958 }
 0x176   : > { %8398 = vrot.lane.b32.xlu0 %v10437_v58, %s9710_s18 }
 0x177   : > { %8213 = vrot.lane.b32.xlu1 %v10356_v28, %s9707_s22 }
 0x178   : > { %v10666_v39 = vpop.permute.xlu0 %8118 }
 0x179   : > { %v7964_v29 = vpop.permute.xlu1 %7963 }
 0x17a   : > { %8408 = vrot.lane.b32.xlu0 %v10446_v38, %s9711_s27  ;;  %v7966_v26 = vunpack.i.h.bf16 %v7964_v29  ;;  %v7965_v41 = vunpack.i.l.bf16 %v7964_v29  ;;  %v1880_v29 = vsel %vm1875_vm8, %v1847_v12, %v7940_v27  ;;  %v8011_v12 = vunpack.i.h.bf16 %v10554_v20 }
 0x17b   : > { %8223 = vrot.lane.b32.xlu1 %v10363_v21, %s9708_s23  ;;  %v7941_v21 = vunpack.i.h.bf16 %v10601_v57 }
 0x17c   : > { %v10672_v37 = vpop.permute.xlu0 %8128  ;;  %v1913_v62 = vsel %vm1908_vm9, %v1880_v29, %v7965_v41  ;;  %v8006_v41 = vunpack.i.h.bf16 %v10540_v48  ;;  %v8021_v29 = vunpack.i.h.bf16 %v10568_v17 }
 0x17d   : > { %v7969_v0 = vpop.permute.xlu1 %7968 }
 0x17e   : > { %8418 = vrot.lane.b32.xlu0 %v10437_v58, %s9705_s20  ;;  %v7971_v23 = vunpack.i.h.bf16 %v7969_v0  ;;  %v7970_v32 = vunpack.i.l.bf16 %v7969_v0 }
 0x17f   : > { %8233 = vrot.lane.b32.xlu1 %v10514_v47, %s9709_s15  ;;  %v10692_v47 = vpack.i.bf16 %v10209_v43, %v10178_v9  ;;  %v1881_v9 = vsel %vm1875_vm8, %v1848_v18, %v7941_v21  ;;  %v8010_v18 = vunpack.i.l.bf16 %v10554_v20  ;;  %v8045_v20 = vunpack.i.l.bf16 %v10579_v45 }
 0x180   : > { %v10680_v28 = vpop.permute.xlu0 %8138  ;;  %v1914_v0 = vsel %vm1908_vm9, %v1881_v9, %v7966_v26  ;;  %v1946_v44 = vsel %vm1941_vm10, %v1913_v62, %v7970_v32  ;;  %v8000_v26 = vunpack.i.l.bf16 %v10528_v8  ;;  %v8020_v62 = vunpack.i.l.bf16 %v10568_v17 }
 0x181   : > { %v10686_v42 = vpop.permute.xlu1 %7973  ;;  %v1947_v27 = vsel %vm1941_vm10, %v1914_v0, %v7971_v23  ;;  %v8051_v17 = vunpack.i.h.bf16 %v10587_v40 }
 0x182   : > { %8428 = vrot.lane.b32.xlu0 %v10446_v38, %s9704_s19 }
 0x183   : > { %8243 = vrot.lane.b32.xlu1 %v10390_v5, %s9710_s18 }
 0x184   : > { %v10700_v57 = vpop.permute.xlu0 %8148 }
 0x185   : > { %v7979_v43 = vpop.permute.xlu1 %7978 }
 0x186   : > { %8438 = vrot.lane.b32.xlu0 %v10692_v47, %s9706_s21  ;;  %v7981_v4 = vunpack.i.h.bf16 %v7979_v43  ;;  %v7980_v24 = vunpack.i.l.bf16 %v7979_v43 }
 0x187   : > { %8253 = vrot.lane.b32.xlu1 %v10394_v50, %s9711_s27 }
 0x188   : > { %v10716_v21 = vpop.permute.xlu0 %8158  ;;  %v1979_v9 = vsel %vm1974_vm11, %v1946_v44, %v7980_v24  ;;  %v1980_v43 = vsel %vm1974_vm11, %v1947_v27, %v7981_v4  ;;  %v14518_v4 = vld [vmem:[#allocation16_spill] sm:$0xff] }
 0x189   : > { %v2012_v16 = vsel %vm2007_vm12, %v1979_v9, %v7995_v59  ;;  %v2013_v23 = vsel %vm2007_vm12, %v1980_v43, %v7996_v52  ;;  %v10726_v32 = vpop.permute.xlu1 %7983  ;;  %v1819_v24 = vsel %vm1809_vm6, %v14518_v4, %v8006_v41  ;;  %v8046_v52 = vunpack.i.h.bf16 %v10579_v45  ;;  %v14519_v59 = vld [vmem:[#allocation15_spill] sm:$0xff] }
 0x18a   : > { %8448 = vrot.lane.b32.xlu0 %v10451_v49, %s9707_s22  ;;  %v2045_v48 = vsel %vm2040_vm13, %v2012_v16, %v8000_v26  ;;  %v2046_v0 = vsel %vm2040_vm13, %v2013_v23, %v8001_v61  ;;  %v1818_v44 = vsel %vm1809_vm6, %v14519_v59, %v8005_v34  ;;  %v1852_v41 = vsel %vm1842_vm7, %v1819_v24, %v8011_v12 }
 0x18b   : > { %8263 = vrot.lane.b32.xlu1 %v10390_v5, %s9705_s20  ;;  %v8050_v5 = vunpack.i.l.bf16 %v10587_v40  ;;  %v2075_v9 = vpack.c.bf16 %v2046_v0, %v2045_v48  ;;  %v1851_v61 = vsel %vm1842_vm7, %v1818_v44, %v8010_v18  ;;  %v1885_v45 = vsel %vm1875_vm8, %v1852_v41, %v8021_v29 }
 0x18c   : > { %v10736_v8 = vpop.permute.xlu0 %8168  ;;  %v1884_v43 = vsel %vm1875_vm8, %v1851_v61, %v8020_v62  ;;  %v1918_v34 = vsel %vm1908_vm9, %v1885_v45, %v8046_v52  ;;  %v7956_v12 = vunpack.i.h.bf16 %v10651_v1  ;;  %v7955_v18 = vunpack.i.l.bf16 %v10651_v1 }
 0x18d   : > { %v7989_v27 = vpop.permute.xlu1 %7988  ;;  %7603 = vmatprep.mubr.msk.bf16.mxu1 %vm2116_vm14, %v2075_v9  ;;  %v1917_v40 = vsel %vm1908_vm9, %v1884_v43, %v8045_v20  ;;  %v1951_v23 = vsel %vm1941_vm10, %v1918_v34, %v8051_v17  ;;  %v8060_v62 = vunpack.i.l.bf16 %v10593_v35  ;;  %v7961_v48 = vunpack.i.h.bf16 %v10660_v3  ;;  %v14520_v17 = vld [vmem:[#allocation20_spill] sm:$0xff] }
 0x18e   : > { %8458 = vrot.lane.b32.xlu0 %v10453_v60, %s9708_s23  ;;  %v1950_v16 = vsel %vm1941_vm10, %v1917_v40, %v8050_v5  ;;  %v7960_v0 = vunpack.i.l.bf16 %v10660_v3  ;;  %v8076_v4 = vunpack.i.h.bf16 %v10611_v19  ;;  %v8075_v24 = vunpack.i.l.bf16 %v10611_v19  ;;  %v14521_v5 = vld [vmem:[#allocation19_spill] sm:$0xff] }
 0x18f   : > { %8273 = vrot.lane.b32.xlu1 %v10394_v50, %s9704_s19  ;;  %v8061_v50 = vunpack.i.h.bf16 %v10593_v35  ;;  %v7976_v52 = vunpack.i.h.bf16 %v10686_v42  ;;  %v7975_v1 = vunpack.i.l.bf16 %v10686_v42  ;;  %v8081_v59 = vunpack.i.h.bf16 %v10629_v7 }
 0x190   : > { %v10757_v26 = vpop.permute.xlu0 %8178  ;;  %v8080_v35 = vunpack.i.l.bf16 %v10629_v7  ;;  %v7986_v44 = vunpack.i.h.bf16 %v10726_v32  ;;  %v7985_v3 = vunpack.i.l.bf16 %v10726_v32  ;;  %v1817_v19 = vsel %vm1809_vm6, %v14520_v17, %v7956_v12 }
 0x191   : > { %v8014_v29 = vpop.permute.xlu1 %8013  ;;  %v1816_v9 = vsel %vm1809_vm6, %v14521_v5, %v7955_v18  ;;  %v7991_v42 = vunpack.i.h.bf16 %v7989_v27  ;;  %v7990_v61 = vunpack.i.l.bf16 %v7989_v27  ;;  %v1850_v7 = vsel %vm1842_vm7, %v1817_v19, %v7961_v48 }
 0x192   : > { %8468 = vrot.lane.b32.xlu0 %v10456_v36, %s9709_s15  ;;  %v8016_v43 = vunpack.i.h.bf16 %v8014_v29  ;;  %v8015_v45 = vunpack.i.l.bf16 %v8014_v29  ;;  %v1883_v40 = vsel %vm1875_vm8, %v1850_v7, %v7976_v52  ;;  %v1983_v18 = vsel %vm1974_vm11, %v1950_v16, %v8060_v62 }
 0x193   : > { %8283 = vrot.lane.b32.xlu1 %v10544_v53, %s9706_s21  ;;  %v1849_v53 = vsel %vm1842_vm7, %v1816_v9, %v7960_v0  ;;  %v1984_v17 = vsel %vm1974_vm11, %v1951_v23, %v8061_v50  ;;  %v1916_v48 = vsel %vm1908_vm9, %v1883_v40, %v7986_v44  ;;  %v2016_v29 = vsel %vm2007_vm12, %v1983_v18, %v8075_v24 }
 0x194   : > { %v10777_v20 = vpop.permute.xlu0 %8188  ;;  %v1882_v32 = vsel %vm1875_vm8, %v1849_v53, %v7975_v1  ;;  %v2017_v1 = vsel %vm2007_vm12, %v1984_v17, %v8076_v4  ;;  %v1949_v19 = vsel %vm1941_vm10, %v1916_v48, %v7991_v42  ;;  %v2049_v62 = vsel %vm2040_vm13, %v2016_v29, %v8080_v35  ;;  %v14522_v29 = vld [vmem:[#allocation21_spill] sm:$0xff] }
 0x195   : > { %v8024_v41 = vpop.permute.xlu1 %8023  ;;  %v1915_v0 = vsel %vm1908_vm9, %v1882_v32, %v7985_v3  ;;  %v1982_v16 = vsel %vm1974_vm11, %v1949_v19, %v8016_v43  ;;  %v2050_v24 = vsel %vm2040_vm13, %v2017_v1, %v8081_v59  ;;  %v8111_v40 = vunpack.i.h.bf16 %v10658_v22  ;;  %v14523_v1 = vld [vmem:[#allocation22_spill] sm:$0xff] }
 0x196   : > { %8478 = vrot.lane.b32.xlu0 %v10466_v63, %s9710_s18  ;;  %v8026_v34 = vunpack.i.h.bf16 %v8024_v41  ;;  %v8025_v12 = vunpack.i.l.bf16 %v8024_v41  ;;  %v1948_v52 = vsel %vm1941_vm10, %v1915_v0, %v7990_v61  ;;  %v2077_v53 = vpack.c.bf16 %v2050_v24, %v2049_v62 }
 0x197   : > { %8293 = vrot.lane.b32.xlu1 %v10418_v54, %s9707_s22  ;;  %v1981_v54 = vsel %vm1974_vm11, %v1948_v52, %v8015_v45  ;;  %v8100_v45 = vunpack.i.l.bf16 %v10643_v6  ;;  %v8120_v18 = vunpack.i.l.bf16 %v10666_v39  ;;  %v8131_v0 = vunpack.i.h.bf16 %v10672_v37 }
 0x198   : > { %v10795_v27 = vpop.permute.xlu0 %8198  ;;  %v2014_v4 = vsel %vm2007_vm12, %v1981_v54, %v8025_v12  ;;  %v2015_v44 = vsel %vm2007_vm12, %v1982_v16, %v8026_v34  ;;  %v8110_v34 = vunpack.i.l.bf16 %v10658_v22  ;;  %v8121_v12 = vunpack.i.h.bf16 %v10666_v39 }
 0x199   : > { %v8029_v5 = vpop.permute.xlu1 %8028  ;;  %v8130_v48 = vunpack.i.l.bf16 %v10672_v37  ;;  %v1822_v52 = vsel %vm1809_vm6, %v14523_v1, %v8100_v45  ;;  %v8141_v22 = vunpack.i.h.bf16 %v10680_v28  ;;  %v8140_v19 = vunpack.i.l.bf16 %v10680_v28 }
 0x19a   : > { %8488 = vrot.lane.b32.xlu0 %v10468_v33, %s9711_s27  ;;  %v8031_v23 = vunpack.i.h.bf16 %v8029_v5  ;;  %v8030_v50 = vunpack.i.l.bf16 %v8029_v5  ;;  %v1855_v5 = vsel %vm1842_vm7, %v1822_v52, %v8110_v34 }
 0x19b   : > { %8303 = vrot.lane.b32.xlu1 %v10420_v25, %s9708_s23  ;;  %v1888_v54 = vsel %vm1875_vm8, %v1855_v5, %v8120_v18 }
 0x19c   : > { %v10815_v3 = vpop.permute.xlu0 %8208  ;;  %v2047_v9 = vsel %vm2040_vm13, %v2014_v4, %v8030_v50  ;;  %v2048_v42 = vsel %vm2040_vm13, %v2015_v44, %v8031_v23  ;;  %v1921_v23 = vsel %vm1908_vm9, %v1888_v54, %v8130_v48  ;;  %v14525_v48 = vld [vmem:[#allocation18_spill] sm:$0xff] }
 0x19d   : > { %v8034_v61 = vpop.permute.xlu1 %8033  ;;  %v2076_v41 = vpack.c.bf16 %v2048_v42, %v2047_v9  ;;  %v1954_v28 = vsel %vm1941_vm10, %v1921_v23, %v8140_v19  ;;  %v8151_v9 = vunpack.i.h.bf16 %v10700_v57  ;;  %v8150_v42 = vunpack.i.l.bf16 %v10700_v57  ;;  %v14524_v57 = vld [vmem:[#allocation17_spill] sm:$0xff] }
 0x19e   : > { %v8036_v24 = vunpack.i.h.bf16 %v8034_v61  ;;  %v8035_v4 = vunpack.i.l.bf16 %v8034_v61  ;;  %v8171_v61 = vunpack.i.h.bf16 %v10736_v8 }
 0x19f   : > { %8313 = vrot.lane.b32.xlu1 %v10597_v2, %s9709_s15  ;;  %7604 = vmatmul.mubr.msk.bf16.gmra.mrb[8].mxu1 %vm2116_vm14, %v2076_v41  ;;  %v8101_v2 = vunpack.i.h.bf16 %v10643_v6 }
 0x1a0   : > { %v10822_v59 = vpop.permute.xlu0 %8218  ;;  %7607 = vmatprep.mubr.msk.bf16.mxu1 %vm2116_vm14, %v2077_v53 }
 0x1a1   : > { %v8039_v35 = vpop.permute.xlu1 %8038  ;;  %v1823_v6 = vsel %vm1809_vm6, %v14522_v29, %v8101_v2  ;;  %v8160_v2 = vunpack.i.l.bf16 %v10716_v21  ;;  %v1820_v29 = vsel %vm1809_vm6, %v14525_v48, %v8035_v4 }
 0x1a2   : > { %v8041_v41 = vunpack.i.h.bf16 %v8039_v35  ;;  %v8040_v53 = vunpack.i.l.bf16 %v8039_v35  ;;  %v1821_v35 = vsel %vm1809_vm6, %v14524_v57, %v8036_v24 }
 0x1a3   : > { %8323 = vrot.lane.b32.xlu1 %v10433_v30, %s9710_s18 }
 0x1a4   : > { %v10827_v25 = vpop.permute.xlu0 %8228  ;;  %v1853_v1 = vsel %vm1842_vm7, %v1820_v29, %v8040_v53  ;;  %v8181_v29 = vunpack.i.h.bf16 %v10757_v26 }
 0x1a5   : > { %v8054_v7 = vpop.permute.xlu1 %8053 }
 0x1a6   : > { %v8056_v45 = vunpack.i.h.bf16 %v8054_v7 }
 0x1a7   : > { %8333 = vrot.lane.b32.xlu1 %v10435_v13, %s9711_s27 }
 0x1a8   : > { %v10831_v43 = vpop.permute.xlu0 %8238 }
 0x1a9   : > { %v8064_v32 = vpop.permute.xlu1 %8063 }
 0x1aa   : > { %v8066_v18 = vunpack.i.h.bf16 %v8064_v32 }
 0x1ab   : > { %8343 = vrot.lane.b32.xlu1 %v10433_v30, %s9705_s20  ;;  %v1856_v30 = vsel %vm1842_vm7, %v1823_v6, %v8111_v40  ;;  %v8055_v40 = vunpack.i.l.bf16 %v8054_v7 }
 0x1ac   : > { %v10841_v17 = vpop.permute.xlu0 %8248  ;;  %v1889_v16 = vsel %vm1875_vm8, %v1856_v30, %v8121_v12  ;;  %v8170_v12 = vunpack.i.l.bf16 %v10736_v8 }
 0x1ad   : > { %v8069_v39 = vpop.permute.xlu1 %8068  ;;  %v1922_v50 = vsel %vm1908_vm9, %v1889_v16, %v8131_v0  ;;  %v8065_v0 = vunpack.i.l.bf16 %v8064_v32  ;;  %v1886_v19 = vsel %vm1875_vm8, %v1853_v1, %v8055_v40  ;;  %v8201_v1 = vunpack.i.h.bf16 %v10795_v27 }
 0x1ae   : > { %v1955_v62 = vsel %vm1941_vm10, %v1922_v50, %v8141_v22  ;;  %v8070_v6 = vunpack.i.l.bf16 %v8069_v39 }
 0x1af   : > { %8353 = vrot.lane.b32.xlu1 %v10435_v13, %s9704_s19  ;;  %v8161_v13 = vunpack.i.h.bf16 %v10716_v21  ;;  %v8071_v21 = vunpack.i.h.bf16 %v8069_v39  ;;  %v1987_v39 = vsel %vm1974_vm11, %v1954_v28, %v8150_v42  ;;  %v1988_v54 = vsel %vm1974_vm11, %v1955_v62, %v8151_v9 }
 0x1b0   : > { %v10857_v37 = vpop.permute.xlu0 %8258  ;;  %v1919_v16 = vsel %vm1908_vm9, %v1886_v19, %v8065_v0  ;;  %v2020_v50 = vsel %vm2007_vm12, %v1987_v39, %v8160_v2  ;;  %v8210_v19 = vunpack.i.l.bf16 %v10815_v3  ;;  %v8220_v39 = vunpack.i.l.bf16 %v10822_v59 }
 0x1b1   : > { %v8084_v44 = vpop.permute.xlu1 %8083  ;;  %v2021_v24 = vsel %vm2007_vm12, %v1988_v54, %v8161_v13  ;;  %v1952_v4 = vsel %vm1941_vm10, %v1919_v16, %v8070_v6  ;;  %v2053_v62 = vsel %vm2040_vm13, %v2020_v50, %v8170_v12  ;;  %v8191_v6 = vunpack.i.h.bf16 %v10777_v20 }
 0x1b2   : > { %v8086_v52 = vunpack.i.h.bf16 %v8084_v44  ;;  %v8085_v22 = vunpack.i.l.bf16 %v8084_v44  ;;  %v2054_v9 = vsel %vm2040_vm13, %v2021_v24, %v8171_v61  ;;  %v10945_v24 = vpack.i.bf16 %v9832_v10, %v9837_v11 }
 0x1b3   : > { %8363 = vrot.lane.b32.xlu1 %v10647_v55, %s9706_s21  ;;  %v1854_v55 = vsel %vm1842_vm7, %v1821_v35, %v8041_v41  ;;  %v2079_v35 = vpack.c.bf16 %v2054_v9, %v2053_v62  ;;  %v8241_v9 = vunpack.i.h.bf16 %v10831_v43 }
 0x1b4   : > { %v10869_v34 = vpop.permute.xlu0 %8268  ;;  %v1887_v8 = vsel %vm1875_vm8, %v1854_v55, %v8056_v45  ;;  %v8200_v55 = vunpack.i.l.bf16 %v10795_v27  ;;  %14528 = vst [vmem:[#allocation33_spill] sm:$0xff] %v10945_v24 }
 0x1b5   : > { %v8089_v7 = vpop.permute.xlu1 %8088  ;;  %v1920_v23 = vsel %vm1908_vm9, %v1887_v8, %v8066_v18  ;;  %v14526_v8 = vld [vmem:[#allocation31_spill] sm:$0xff] }
 0x1b6   : > { %v8091_v32 = vunpack.i.h.bf16 %v8089_v7  ;;  %v8090_v5 = vunpack.i.l.bf16 %v8089_v7  ;;  %v1953_v44 = vsel %vm1941_vm10, %v1920_v23, %v8071_v21  ;;  %v8190_v7 = vunpack.i.l.bf16 %v10777_v20 }
 0x1b7   : > { %8373 = vrot.lane.b32.xlu1 %v10437_v58, %s9707_s22  ;;  %v1985_v58 = vsel %vm1974_vm11, %v1952_v4, %v8085_v22  ;;  %v1986_v53 = vsel %vm1974_vm11, %v1953_v44, %v8086_v52  ;;  %v8211_v22 = vunpack.i.h.bf16 %v10815_v3  ;;  %v8221_v20 = vunpack.i.h.bf16 %v10822_v59 }
 0x1b8   : > { %v10883_v30 = vpop.permute.xlu0 %8278  ;;  %v2018_v45 = vsel %vm2007_vm12, %v1985_v58, %v8090_v5  ;;  %v2019_v2 = vsel %vm2007_vm12, %v1986_v53, %v8091_v32  ;;  %v14527_v32 = vld [vmem:[#allocation32_spill] sm:$0xff] }
 0x1b9   : > { %v8094_v41 = vpop.permute.xlu1 %8093 }
 0x1ba   : > { %v8096_v28 = vunpack.i.h.bf16 %v8094_v41  ;;  %v8095_v42 = vunpack.i.l.bf16 %v8094_v41 }
 0x1bb   : > { %8383 = vrot.lane.b32.xlu1 %v10446_v38, %s9708_s23 }
 0x1bc   : > { %v10901_v13 = vpop.permute.xlu0 %8288  ;;  %v2051_v40 = vsel %vm2040_vm13, %v2018_v45, %v8095_v42  ;;  %v2052_v18 = vsel %vm2040_vm13, %v2019_v2, %v8096_v28  ;;  %v8231_v28 = vunpack.i.h.bf16 %v10827_v25  ;;  %v8240_v45 = vunpack.i.l.bf16 %v10831_v43 }
 0x1bd   : > { %v8104_v0 = vpop.permute.xlu1 %8103  ;;  %v2078_v57 = vpack.c.bf16 %v2052_v18, %v2051_v40  ;;  %v8251_v18 = vunpack.i.h.bf16 %v10841_v17 }
 0x1be   : > { %v8106_v44 = vunpack.i.h.bf16 %v8104_v0  ;;  %v8105_v41 = vunpack.i.l.bf16 %v8104_v0  ;;  %v8250_v0 = vunpack.i.l.bf16 %v10841_v17 }
 0x1bf   : > { %8393 = vrot.lane.b32.xlu1 %v10692_v47, %s9709_s15  ;;  %7608 = vmatmul.mubr.msk.bf16.gmra.mrb[12].mxu1 %vm2116_vm14, %v2078_v57  ;;  %v8180_v47 = vunpack.i.l.bf16 %v10757_v26  ;;  %v1827_v26 = vsel %vm1809_vm6, %v14526_v8, %v8181_v29  ;;  %v14529_v29 = vld [vmem:[#allocation28_spill] sm:$0xff] }
 0x1c0   : > { %v10908_v61 = vpop.permute.xlu0 %8298  ;;  %7611 = vmatprep.mubr.msk.bf16.mxu1 %vm2116_vm14, %v2079_v35  ;;  %v1860_v16 = vsel %vm1842_vm7, %v1827_v26, %v8191_v6 }
 0x1c1   : > { %v8114_v12 = vpop.permute.xlu1 %8113  ;;  %v1826_v5 = vsel %vm1809_vm6, %v14527_v32, %v8180_v47  ;;  %v14530_v47 = vld [vmem:[#allocation29_spill] sm:$0xff] }
 0x1c2   : > { %v1859_v54 = vsel %vm1842_vm7, %v1826_v5, %v8190_v7  ;;  %v8116_v42 = vunpack.i.h.bf16 %v8114_v12  ;;  %v8115_v62 = vunpack.i.l.bf16 %v8114_v12  ;;  %v1824_v12 = vsel %vm1809_vm6, %v14530_v47, %v8105_v41 }
 0x1c3   : > { %8403 = vrot.lane.b32.xlu1 %v10451_v49, %s9710_s18  ;;  %v1892_v23 = vsel %vm1875_vm8, %v1859_v54, %v8200_v55  ;;  %v8260_v47 = vunpack.i.l.bf16 %v10857_v37 }
 0x1c4   : > { %v10913_v38 = vpop.permute.xlu0 %8308  ;;  %v1925_v50 = vsel %vm1908_vm9, %v1892_v23, %v8210_v19 }
 0x1c5   : > { %v8124_v48 = vpop.permute.xlu1 %8123  ;;  %v1958_v59 = vsel %vm1941_vm10, %v1925_v50, %v8220_v39 }
 0x1c6   : > { %v8126_v2 = vunpack.i.h.bf16 %v8124_v48  ;;  %v8125_v40 = vunpack.i.l.bf16 %v8124_v48  ;;  %v1857_v48 = vsel %vm1842_vm7, %v1824_v12, %v8115_v62 }
 0x1c7   : > { %8413 = vrot.lane.b32.xlu1 %v10453_v60, %s9711_s27 }
 0x1c8   : > { %v10923_v52 = vpop.permute.xlu0 %8318 }
 0x1c9   : > { %v8134_v21 = vpop.permute.xlu1 %8133 }
 0x1ca   : > { %v8136_v57 = vunpack.i.h.bf16 %v8134_v21  ;;  %v8135_v35 = vunpack.i.l.bf16 %v8134_v21 }
 0x1cb   : > { %8423 = vrot.lane.b32.xlu1 %v10451_v49, %s9705_s20  ;;  %v1893_v49 = vsel %vm1875_vm8, %v1860_v16, %v8201_v1 }
 0x1cc   : > { %v1926_v3 = vsel %vm1908_vm9, %v1893_v49, %v8211_v22  ;;  %v10949_v58 = vpop.permute.xlu0 %8328  ;;  %v1890_v22 = vsel %vm1875_vm8, %v1857_v48, %v8125_v40  ;;  %v8281_v48 = vunpack.i.h.bf16 %v10883_v30 }
 0x1cd   : > { %v8144_v27 = vpop.permute.xlu1 %8143  ;;  %v1959_v4 = vsel %vm1941_vm10, %v1926_v3, %v8221_v20  ;;  %v1923_v5 = vsel %vm1908_vm9, %v1890_v22, %v8135_v35  ;;  %v8290_v22 = vunpack.i.l.bf16 %v10901_v13 }
 0x1ce   : > { %v8146_v6 = vunpack.i.h.bf16 %v8144_v27  ;;  %v8145_v7 = vunpack.i.l.bf16 %v8144_v27  ;;  %v1992_v32 = vsel %vm1974_vm11, %v1959_v4, %v8231_v28 }
 0x1cf   : > { %8433 = vrot.lane.b32.xlu1 %v10453_v60, %s9704_s19  ;;  %v8230_v60 = vunpack.i.l.bf16 %v10827_v25  ;;  %v1825_v25 = vsel %vm1809_vm6, %v14529_v29, %v8106_v44  ;;  %v2025_v27 = vsel %vm2007_vm12, %v1992_v32, %v8241_v9  ;;  %v14532_v29 = vld [vmem:[#allocation9_spill] sm:$0xff]  ;;  %s9713_s19 = smov 64  }
 0x1d0   : > { %v1858_v1 = vsel %vm1842_vm7, %v1825_v25, %v8116_v42  ;;  %v10967_v21 = vpop.permute.xlu0 %8338  ;;  %v1956_v54 = vsel %vm1941_vm10, %v1923_v5, %v8145_v7  ;;  %v2058_v4 = vsel %vm2040_vm13, %v2025_v27, %v8251_v18  ;;  %v8261_v25 = vunpack.i.h.bf16 %v10857_v37 }
 0x1d1   : > { %v8154_v53 = vpop.permute.xlu1 %8153  ;;  %v1891_v17 = vsel %vm1875_vm8, %v1858_v1, %v8126_v2  ;;  %v1991_v26 = vsel %vm1974_vm11, %v1958_v59, %v8230_v60  ;;  %v8271_v7 = vunpack.i.h.bf16 %v10869_v34  ;;  %v8280_v1 = vunpack.i.l.bf16 %v10883_v30 }
 0x1d2   : > { %v8155_v55 = vunpack.i.l.bf16 %v8154_v53  ;;  %v1924_v20 = vsel %vm1908_vm9, %v1891_v17, %v8136_v57  ;;  %v2024_v39 = vsel %vm2007_vm12, %v1991_v26, %v8240_v45  ;;  %v10991_v45 = vpop.f32.mrb[0].mxu1  ;;  %v14531_v57 = vld [vmem:[#allocation10_spill] sm:$0xff]  ;;  %v1830_v37 = vsel %vm1809_vm6, %v10265_v46, %v8260_v47 }
 0x1d3   : > { %8443 = vrot.lane.b32.xlu1 %v10456_v36, %s9706_s21  ;;  %v8156_v36 = vunpack.i.h.bf16 %v8154_v53  ;;  %v1957_v16 = vsel %vm1941_vm10, %v1924_v20, %v8146_v6  ;;  %v2057_v59 = vsel %vm2040_vm13, %v2024_v39, %v8250_v0  ;;  %v7591_v2 = vpop.f32.mrb[1].mxu1  ;;  %v8301_v17 = vunpack.i.h.bf16 %v10908_v61 }
 0x1d4   : > { %v1989_v23 = vsel %vm1974_vm11, %v1956_v54, %v8155_v55  ;;  %v10989_v60 = vpop.permute.xlu0 %8348  ;;  %v2081_v9 = vpack.c.bf16 %v2058_v4, %v2057_v59  ;;  %v8291_v55 = vunpack.i.h.bf16 %v10901_v13  ;;  %v8311_v54 = vunpack.i.h.bf16 %v10913_v38 }
 0x1d5   : > { %v8164_v43 = vpop.permute.xlu1 %8163  ;;  %v8331_v4 = vunpack.i.h.bf16 %v10949_v58 }
 0x1d6   : > { %v8166_v19 = vunpack.i.h.bf16 %v8164_v43  ;;  %v8165_v8 = vunpack.i.l.bf16 %v8164_v43  ;;  %v8270_v43 = vunpack.i.l.bf16 %v10869_v34 }
 0x1d7   : > { %8453 = vrot.lane.b32.xlu1 %v10466_v63, %s9707_s22  ;;  %v1990_v63 = vsel %vm1974_vm11, %v1957_v16, %v8156_v36  ;;  %v1831_v36 = vsel %vm1809_vm6, %v10261_v15, %v8261_v25  ;;  %v8310_v16 = vunpack.i.l.bf16 %v10913_v38 }
 0x1d8   : > { %v2022_v44 = vsel %vm2007_vm12, %v1989_v23, %v8165_v8  ;;  %v2023_v41 = vsel %vm2007_vm12, %v1990_v63, %v8166_v19  ;;  %v10997_v0 = vpop.permute.xlu0 %8358  ;;  %v8300_v19 = vunpack.i.l.bf16 %v10908_v61  ;;  %v1863_v34 = vsel %vm1842_vm7, %v1830_v37, %v8270_v43 }
 0x1d9   : > { %v8174_v49 = vpop.permute.xlu1 %8173  ;;  %v1864_v26 = vsel %vm1842_vm7, %v1831_v36, %v8271_v7  ;;  %v1896_v30 = vsel %vm1875_vm8, %v1863_v34, %v8280_v1  ;;  %v8321_v63 = vunpack.i.h.bf16 %v10923_v52 }
 0x1da   : > { %v8176_v3 = vunpack.i.h.bf16 %v8174_v49  ;;  %v8175_v50 = vunpack.i.l.bf16 %v8174_v49  ;;  %v1897_v15 = vsel %vm1875_vm8, %v1864_v26, %v8281_v48  ;;  %v1929_v46 = vsel %vm1908_vm9, %v1896_v30, %v8290_v22 }
 0x1db   : > { %8463 = vrot.lane.b32.xlu1 %v10468_v33, %s9708_s23  ;;  %v591_v33 = vpop.f32.mrb[2].mxu1  ;;  %v1930_v13 = vsel %vm1908_vm9, %v1897_v15, %v8291_v55  ;;  %v1962_v61 = vsel %vm1941_vm10, %v1929_v46, %v8300_v19  ;;  %s501_s23 = scalar_lea.vmem %s14324_s14, %s9821_s26 }
 0x1dc   : > { %v2055_v53 = vsel %vm2040_vm13, %v2022_v44, %v8175_v50  ;;  %v2056_v28 = vsel %vm2040_vm13, %v2023_v41, %v8176_v3  ;;  %v7592_v18 = vpop.f32.mrb[3].mxu1  ;;  %v11005_v12 = vpop.permute.xlu0 %8368  ;;  %v1963_v5 = vsel %vm1941_vm10, %v1930_v13, %v8301_v17  ;;  %v8320_v3 = vunpack.i.l.bf16 %v10923_v52 }
 0x1dd   : > { %v8184_v42 = vpop.permute.xlu1 %8183  ;;  %v2080_v62 = vpack.c.bf16 %v2056_v28, %v2055_v53  ;;  %v8330_v44 = vunpack.i.l.bf16 %v10949_v58  ;;  %v1995_v25 = vsel %vm1974_vm11, %v1962_v61, %v8310_v16  ;;  %v8341_v16 = vunpack.i.h.bf16 %v10967_v21 }
 0x1de   : > { %v8186_v20 = vunpack.i.h.bf16 %v8184_v42  ;;  %v8185_v39 = vunpack.i.l.bf16 %v8184_v42  ;;  %v2028_v7 = vsel %vm2007_vm12, %v1995_v25, %v8320_v3  ;;  %v8350_v3 = vunpack.i.l.bf16 %v10989_v60 }
 0x1df   : > { %8473 = vrot.lane.b32.xlu1 %v10945_v24, %s9709_s15  ;;  %7612 = vmatmul.mubr.msk.bf16.gmra.mrb[16].mxu1 %vm2116_vm14, %v2080_v62  ;;  %v2061_v19 = vsel %vm2040_vm13, %v2028_v7, %v8330_v44  ;;  %v8370_v44 = vunpack.i.l.bf16 %v11005_v12 }
 0x1e0   : > { %7615 = vmatprep.mubr.msk.bf16.mxu1 %vm2116_vm14, %v2081_v9  ;;  %v11023_v32 = vpop.permute.xlu0 %8378  ;;  %v1829_v38 = vsel %vm1809_vm6, %v10001_v31, %v8186_v20  ;;  %v1828_v28 = vsel %vm1809_vm6, %v9970_v51, %v8185_v39  ;;  %v1996_v51 = vsel %vm1974_vm11, %v1963_v5, %v8311_v54 }
 0x1e1   : > { %v8194_v40 = vpop.permute.xlu1 %8193  ;;  %v2029_v43 = vsel %vm2007_vm12, %v1996_v51, %v8321_v63  ;;  %v8351_v63 = vunpack.i.h.bf16 %v10989_v60 }
 0x1e2   : > { %v8196_v49 = vunpack.i.h.bf16 %v8194_v40  ;;  %v8195_v23 = vunpack.i.l.bf16 %v8194_v40 }
 0x1e3   : > { %8483 = vrot.lane.b32.xlu1 %v14531_v57, %s9710_s18 }
 0x1e4   : > { %v11043_v42 = vpop.permute.xlu0 %8388  ;;  %v1861_v2 = vsel %vm1842_vm7, %v1828_v28, %v8195_v23  ;;  %v1862_v33 = vsel %vm1842_vm7, %v1829_v38, %v8196_v49  ;;  %v8340_v49 = vunpack.i.l.bf16 %v10967_v21  ;;  %v14534_v38 = vld [vmem:[#allocation37_spill] sm:$0xff]  ;;  %v8381_v21 = vunpack.i.h.bf16 %v11023_v32 }
 0x1e5   : > { %v8204_v35 = vpop.permute.xlu1 %8203  ;;  %v8390_v25 = vunpack.i.l.bf16 %v11043_v42 }
 0x1e6   : > { %v8206_v50 = vunpack.i.h.bf16 %v8204_v35  ;;  %v8205_v59 = vunpack.i.l.bf16 %v8204_v35  ;;  %v1834_v28 = vsel %vm1809_vm6, %v14534_v38, %v8340_v49 }
 0x1e7   : > { %8493 = vrot.lane.b32.xlu1 %v14532_v29, %s9711_s27 }
 0x1e8   : > { %v1894_v58 = vsel %vm1875_vm8, %v1861_v2, %v8205_v59  ;;  %v1895_v35 = vsel %vm1875_vm8, %v1862_v33, %v8206_v50  ;;  %v11061_v34 = vpop.permute.xlu0 %8398  ;;  %v8361_v50 = vunpack.i.h.bf16 %v10997_v0  ;;  %v8360_v59 = vunpack.i.l.bf16 %v10997_v0 }
 0x1e9   : > { %v8214_v6 = vpop.permute.xlu1 %8213  ;;  %v8400_v7 = vunpack.i.l.bf16 %v11061_v34 }
 0x1ea   : > { %v8216_v41 = vunpack.i.h.bf16 %v8214_v6  ;;  %v8215_v53 = vunpack.i.l.bf16 %v8214_v6 }
 0x1eb   : > { %8498 = vrot.lane.b32.xlu1 %v14531_v57, %s9711_s27 }
 0x1ec   : > { %v1927_v47 = vsel %vm1908_vm9, %v1894_v58, %v8215_v53  ;;  %v1928_v6 = vsel %vm1908_vm9, %v1895_v35, %v8216_v41  ;;  %v11069_v20 = vpop.permute.xlu0 %8408  ;;  %v14533_v41 = vld [vmem:[#allocation36_spill] sm:$0xff] }
 0x1ed   : > { %v8224_v8 = vpop.permute.xlu1 %8223  ;;  %v1835_v53 = vsel %vm1809_vm6, %v14533_v41, %v8341_v16 }
 0x1ee   : > { %v8226_v52 = vunpack.i.h.bf16 %v8224_v8  ;;  %v8225_v62 = vunpack.i.l.bf16 %v8224_v8  ;;  %v2062_v8 = vsel %vm2040_vm13, %v2029_v43, %v8331_v4  ;;  %v8371_v4 = vunpack.i.h.bf16 %v11005_v12 }
 0x1ef   : > { %8503 = vrot.lane.b32.xlu1 %v14532_v29, %s9713_s19  ;;  %v2083_v5 = vpack.c.bf16 %v2062_v8, %v2061_v19  ;;  %v1868_v0 = vsel %vm1842_vm7, %v1835_v53, %v8351_v63 }
 0x1f0   : > { %v1960_v48 = vsel %vm1941_vm10, %v1927_v47, %v8225_v62  ;;  %v1961_v1 = vsel %vm1941_vm10, %v1928_v6, %v8226_v52  ;;  %v11071_v54 = vpop.permute.xlu0 %8418  ;;  %v8380_v52 = vunpack.i.l.bf16 %v11023_v32  ;;  %v1901_v12 = vsel %vm1875_vm8, %v1868_v0, %v8361_v50 }
 0x1f1   : > { %v8234_v27 = vpop.permute.xlu1 %8233  ;;  %v8401_v6 = vunpack.i.h.bf16 %v11061_v34 }
 0x1f2   : > { %v8236_v40 = vunpack.i.h.bf16 %v8234_v27  ;;  %v8235_v18 = vunpack.i.l.bf16 %v8234_v27 }
 0x1f4   : > { %v1993_v55 = vsel %vm1974_vm11, %v1960_v48, %v8235_v18  ;;  %v1994_v22 = vsel %vm1974_vm11, %v1961_v1, %v8236_v40  ;;  %v11087_v62 = vpop.permute.xlu0 %8428  ;;  %v1934_v40 = vsel %vm1908_vm9, %v1901_v12, %v8371_v4 }
 0x1f5   : > { %v8244_v9 = vpop.permute.xlu1 %8243  ;;  %v1967_v58 = vsel %vm1941_vm10, %v1934_v40, %v8381_v21 }
 0x1f6   : > { %v8246_v29 = vunpack.i.h.bf16 %v8244_v9  ;;  %v8245_v31 = vunpack.i.l.bf16 %v8244_v9  ;;  %v1867_v9 = vsel %vm1842_vm7, %v1834_v28, %v8350_v3 }
 0x1f7   : > { %v1900_v2 = vsel %vm1875_vm8, %v1867_v9, %v8360_v59 }
 0x1f8   : > { %v2026_v26 = vsel %vm2007_vm12, %v1993_v55, %v8245_v31  ;;  %v2027_v30 = vsel %vm2007_vm12, %v1994_v22, %v8246_v29  ;;  %v1933_v33 = vsel %vm1908_vm9, %v1900_v2, %v8370_v44  ;;  %v8391_v31 = vunpack.i.h.bf16 %v11043_v42  ;;  %v11101_v43 = vpop.permute.xlu0 %8438  ;;  %v14536_v42 = vld [vmem:[#allocation35_spill] sm:$0xff] }
 0x1f9   : > { %v8254_v36 = vpop.permute.xlu1 %8253  ;;  %v1966_v18 = vsel %vm1941_vm10, %v1933_v33, %v8380_v52  ;;  %v8410_v55 = vunpack.i.l.bf16 %v11069_v20 }
 0x1fa   : > { %v8256_v37 = vunpack.i.h.bf16 %v8254_v36  ;;  %v8255_v17 = vunpack.i.l.bf16 %v8254_v36  ;;  %v8411_v36 = vunpack.i.h.bf16 %v11069_v20  ;;  %v1999_v16 = vsel %vm1974_vm11, %v1966_v18, %v8390_v25 }
 0x1fb   : > { %v2000_v49 = vsel %vm1974_vm11, %v1967_v58, %v8391_v31  ;;  %v2032_v3 = vsel %vm2007_vm12, %v1999_v16, %v8400_v7  ;;  %v8421_v31 = vunpack.i.h.bf16 %v11071_v54  ;;  %v8420_v25 = vunpack.i.l.bf16 %v11071_v54 }
 0x1fc   : > { %v2059_v15 = vsel %vm2040_vm13, %v2026_v26, %v8255_v17  ;;  %v2060_v46 = vsel %vm2040_vm13, %v2027_v30, %v8256_v37  ;;  %v14535_v17 = vld [vmem:[#allocation34_spill] sm:$0xff]  ;;  %v2033_v50 = vsel %vm2007_vm12, %v2000_v49, %v8401_v6  ;;  %v8449_v59 = vpop.permute.xlu0 %8448  ;;  %v2065_v52 = vsel %vm2040_vm13, %v2032_v3, %v8410_v55 }
 0x1fd   : > { %v8264_v13 = vpop.permute.xlu1 %8263  ;;  %v2082_v61 = vpack.c.bf16 %v2060_v46, %v2059_v15  ;;  %v8431_v6 = vunpack.i.h.bf16 %v11087_v62  ;;  %v8430_v7 = vunpack.i.l.bf16 %v11087_v62  ;;  %v8451_v55 = vunpack.i.h.bf16 %v8449_v59 }
 0x1fe   : > { %v8266_v32 = vunpack.i.h.bf16 %v8264_v13  ;;  %v8265_v35 = vunpack.i.l.bf16 %v8264_v13  ;;  %v1839_v54 = vsel %vm1809_vm6, %v14515_v56, %v8421_v31 }
 0x1ff   : > { %7616 = vmatmul.mubr.msk.bf16.gmra.mrb[20].mxu1 %vm2116_vm14, %v2082_v61 }
 0x200   : > { %7619 = vmatprep.mubr.msk.bf16.mxu1 %vm2116_vm14, %v2083_v5  ;;  %v1833_v19 = vsel %vm1809_vm6, %v14535_v17, %v8266_v32  ;;  %v1832_v8 = vsel %vm1809_vm6, %v14536_v42, %v8265_v35  ;;  %v8459_v58 = vpop.permute.xlu0 %8458  ;;  %v1838_v17 = vsel %vm1809_vm6, %v14514_v14, %v8420_v25 }
 0x201   : > { %v8274_v39 = vpop.permute.xlu1 %8273  ;;  %v8460_v42 = vunpack.i.l.bf16 %v8459_v58  ;;  %v1871_v62 = vsel %vm1842_vm7, %v1838_v17, %v8430_v7 }
 0x202   : > { %v8276_v51 = vunpack.i.h.bf16 %v8274_v39  ;;  %v8275_v47 = vunpack.i.l.bf16 %v8274_v39 }
 0x204   : > { %v1865_v34 = vsel %vm1842_vm7, %v1832_v8, %v8275_v47  ;;  %v1866_v46 = vsel %vm1842_vm7, %v1833_v19, %v8276_v51  ;;  %v8469_v35 = vpop.permute.xlu0 %8468  ;;  %v525_v47 = vld [vmem:[%s14315_s5] sm:$0x1]  ;;  %v8461_v19 = vunpack.i.h.bf16 %v8459_v58 }
 0x205   : > { %v8284_v27 = vpop.permute.xlu1 %8283 }
 0x206   : > { %v8286_v48 = vunpack.i.h.bf16 %v8284_v27  ;;  %v8285_v1 = vunpack.i.l.bf16 %v8284_v27 }
 0x208   : > { %v1898_v5 = vsel %vm1875_vm8, %v1865_v34, %v8285_v1  ;;  %v1899_v20 = vsel %vm1875_vm8, %v1866_v46, %v8286_v48  ;;  %v8441_v48 = vunpack.i.h.bf16 %v11101_v43  ;;  %v8440_v1 = vunpack.i.l.bf16 %v11101_v43 }
 0x209   : > { %v8294_v23 = vpop.permute.xlu1 %8293 }
 0x20a   : > { %v8296_v22 = vunpack.i.h.bf16 %v8294_v23  ;;  %v8295_v37 = vunpack.i.l.bf16 %v8294_v23  ;;  %v1904_v43 = vsel %vm1875_vm8, %v1871_v62, %v8440_v1 }
 0x20c   : > { %v1931_v23 = vsel %vm1908_vm9, %v1898_v5, %v8295_v37  ;;  %v1932_v63 = vsel %vm1908_vm9, %v1899_v20, %v8296_v22  ;;  %v8450_v22 = vunpack.i.l.bf16 %v8449_v59  ;;  %v11141_v37 = vadd.f32 %v10991_v45, %v525_v47 }
 0x20d   : > { %v8304_v60 = vpop.permute.xlu1 %8303  ;;  %v8471_v20 = vunpack.i.h.bf16 %v8469_v35 }
 0x20e   : > { %v8306_v26 = vunpack.i.h.bf16 %v8304_v60  ;;  %v8305_v30 = vunpack.i.l.bf16 %v8304_v60  ;;  %v2066_v60 = vsel %vm2040_vm13, %v2033_v50, %v8411_v36  ;;  %v8479_v36 = vpop.permute.xlu0 %8478  ;;  %v1937_v45 = vsel %vm1908_vm9, %v1904_v43, %v8450_v22  ;;  %v9229_v43 = vld [vmem:[%s14318_s8 + $0x80] sm:$0xff]  }
 0x20f   : > { %v2085_v18 = vpack.c.bf16 %v2066_v60, %v2065_v52  ;;  %v6936_v56 = vmul.f32 -1.442695, %v11141_v37  ;;  %v1970_v34 = vsel %vm1941_vm10, %v1937_v45, %v8460_v42  ;;  %v8481_v49 = vunpack.i.h.bf16 %v8479_v36  ;;  %7631 = vmatprep.subr.bf16.mxu1 %v9229_v43 }
 0x210   : > { %v1964_v4 = vsel %vm1941_vm10, %v1931_v23, %v8305_v30  ;;  %v1965_v44 = vsel %vm1941_vm10, %v1932_v63, %v8306_v26  ;;  %v1872_v26 = vsel %vm1842_vm7, %v1839_v54, %v8431_v6  ;;  %v8480_v23 = vunpack.i.l.bf16 %v8479_v36  ;;  %7632 = vmatpush3.bf16.msra.mxu1 %v9229_v43 }
 0x211   : > { %v8314_v29 = vpop.permute.xlu1 %8313  ;;  %v1905_v30 = vsel %vm1875_vm8, %v1872_v26, %v8441_v48  ;;  %9285 = vpow2.f32 %v6936_v56 }
 0x212   : > { %v8316_v13 = vunpack.i.h.bf16 %v8314_v29  ;;  %v8315_v61 = vunpack.i.l.bf16 %v8314_v29  ;;  %v8489_v46 = vpop.permute.xlu0 %8488 }
 0x213   : > { %v8491_v50 = vunpack.i.h.bf16 %v8489_v46  ;;  %v8490_v59 = vunpack.i.l.bf16 %v8489_v46 }
 0x214   : > { %v1997_v53 = vsel %vm1974_vm11, %v1964_v4, %v8315_v61  ;;  %v1998_v38 = vsel %vm1974_vm11, %v1965_v44, %v8316_v13 }
 0x215   : > { %v8324_v15 = vpop.permute.xlu1 %8323 }
 0x216   : > { %v8326_v39 = vunpack.i.h.bf16 %v8324_v15  ;;  %v8325_v27 = vunpack.i.l.bf16 %v8324_v15  ;;  %v1938_v15 = vsel %vm1908_vm9, %v1905_v30, %v8451_v55  ;;  %v9230_v30 = vld [vmem:[%s14318_s8 + $0x88] sm:$0xff]  }
 0x217   : > { %v1971_v14 = vsel %vm1941_vm10, %v1938_v15, %v8461_v19  ;;  %7633 = vmatprep.subr.bf16.mxu1 %v9230_v30 }
 0x218   : > { %v2030_v9 = vsel %vm2007_vm12, %v1997_v53, %v8325_v27  ;;  %v2031_v0 = vsel %vm2007_vm12, %v1998_v38, %v8326_v39  ;;  %v8470_v39 = vunpack.i.l.bf16 %v8469_v35  ;;  %v14538_v38 = vld [vmem:[#allocation23_spill] sm:$0xff]  ;;  %v2004_v35 = vsel %vm1974_vm11, %v1971_v14, %v8471_v20  ;;  %7634 = vmatpush3.bf16.msra.mxu1 %v9230_v30 }
 0x219   : > { %v8334_v41 = vpop.permute.xlu1 %8333 }
 0x21a   : > { %v8336_v28 = vunpack.i.h.bf16 %v8334_v41  ;;  %v8335_v21 = vunpack.i.l.bf16 %v8334_v41  ;;  %v14537_v41 = vld [vmem:[#allocation24_spill] sm:$0xff] }
 0x21b   : > { %v9286_v20 = vpop.eup %9285 }
 0x21c   : > { %v2063_v2 = vsel %vm2040_vm13, %v2030_v9, %v8335_v21  ;;  %v2064_v12 = vsel %vm2040_vm13, %v2031_v0, %v8336_v28 }
 0x21d   : > { %v8344_v33 = vpop.permute.xlu1 %8343  ;;  %v2084_v40 = vpack.c.bf16 %v2064_v12, %v2063_v2 }
 0x21e   : > { %v8346_v13 = vunpack.i.h.bf16 %v8344_v33  ;;  %v8345_v61 = vunpack.i.l.bf16 %v8344_v33 }
 0x21f   : > { %7620 = vmatmul.mubr.msk.bf16.gmra.mrb[24].mxu1 %vm2116_vm14, %v2084_v40 }
 0x220   : > { %7623 = vmatprep.mubr.msk.bf16.mxu1 %vm2116_vm14, %v2085_v18  ;;  %v1837_v53 = vsel %vm1809_vm6, %v14537_v41, %v8346_v13  ;;  %v1836_v28 = vsel %vm1809_vm6, %v14538_v38, %v8345_v61 }
 0x221   : > { %v8354_v32 = vpop.permute.xlu1 %8353 }
 0x222   : > { %v8356_v27 = vunpack.i.h.bf16 %v8354_v32  ;;  %v8355_v16 = vunpack.i.l.bf16 %v8354_v32  ;;  %v2003_v32 = vsel %vm1974_vm11, %v1970_v34, %v8470_v39  ;;  %v11191_v34 = vld [vmem:[%s14317_s7] ss:$0 sm:$0xff] }
 0x223   : > { %v2036_v25 = vsel %vm2007_vm12, %v2003_v32, %v8480_v23 }
 0x224   : > { %v1869_v9 = vsel %vm1842_vm7, %v1836_v28, %v8355_v16  ;;  %v1870_v0 = vsel %vm1842_vm7, %v1837_v53, %v8356_v27  ;;  %v2069_v22 = vsel %vm2040_vm13, %v2036_v25, %v8490_v59 }
 0x225   : > { %v8364_v29 = vpop.permute.xlu1 %8363 }
 0x226   : > { %v8366_v63 = vunpack.i.h.bf16 %v8364_v29  ;;  %v8365_v3 = vunpack.i.l.bf16 %v8364_v29 }
 0x228   : > { %v1902_v33 = vsel %vm1875_vm8, %v1869_v9, %v8365_v3  ;;  %v1903_v40 = vsel %vm1875_vm8, %v1870_v0, %v8366_v63 }
 0x229   : > { %v8374_v51 = vpop.permute.xlu1 %8373 }
 0x22a   : > { %v8376_v4 = vunpack.i.h.bf16 %v8374_v51  ;;  %v8375_v44 = vunpack.i.l.bf16 %v8374_v51  ;;  %v2037_v51 = vsel %vm2007_vm12, %v2004_v35, %v8481_v49 }
 0x22b   : > { %v2070_v54 = vsel %vm2040_vm13, %v2037_v51, %v8491_v50  ;;  %v597_v50 = vadd.f32 1.0, %v9286_v20 }
 0x22c   : > { %v1935_v29 = vsel %vm1908_vm9, %v1902_v33, %v8375_v44  ;;  %v1936_v31 = vsel %vm1908_vm9, %v1903_v40, %v8376_v4  ;;  %v2087_v45 = vpack.c.bf16 %v2070_v54, %v2069_v22  ;;  %v2554_v44 = vlaneseq  ;;  %v14540_v33 = vld [vmem:[#allocation27_spill] sm:$0xff] }
 0x22d   : > { %v8384_v8 = vpop.permute.xlu1 %8383 }
 0x22e   : > { %v8386_v21 = vunpack.i.h.bf16 %v8384_v8  ;;  %v8385_v52 = vunpack.i.l.bf16 %v8384_v8  ;;  %v2555_v9 = vshrl.u32 %v2554_v44, 7 }
 0x230   : > { %v1968_v47 = vsel %vm1941_vm10, %v1935_v29, %v8385_v52  ;;  %v1969_v6 = vsel %vm1941_vm10, %v1936_v31, %v8386_v21 }
 0x231   : > { %v8394_v5 = vpop.permute.xlu1 %8393 }
 0x232   : > { %v8396_v2 = vunpack.i.h.bf16 %v8394_v5  ;;  %v8395_v12 = vunpack.i.l.bf16 %v8394_v5 }
 0x234   : > { %v2001_v48 = vsel %vm1974_vm11, %v1968_v47, %v8395_v12  ;;  %v2002_v1 = vsel %vm1974_vm11, %v1969_v6, %v8396_v2  ;;  %v14539_v2 = vld [vmem:[#allocation30_spill] sm:$0xff] }
 0x235   : > { %v8404_v60 = vpop.permute.xlu1 %8403 }
 0x236   : > { %v8406_v18 = vunpack.i.h.bf16 %v8404_v60  ;;  %v8405_v58 = vunpack.i.l.bf16 %v8404_v60 }
 0x238   : > { %v2034_v17 = vsel %vm2007_vm12, %v2001_v48, %v8405_v58  ;;  %v2035_v19 = vsel %vm2007_vm12, %v2002_v1, %v8406_v18 }
 0x239   : > { %v8414_v7 = vpop.permute.xlu1 %8413 }
 0x23a   : > { %v8416_v36 = vunpack.i.h.bf16 %v8414_v7  ;;  %v8415_v55 = vunpack.i.l.bf16 %v8414_v7 }
 0x23c   : > { %v2067_v42 = vsel %vm2040_vm13, %v2034_v17, %v8415_v55  ;;  %v2068_v8 = vsel %vm2040_vm13, %v2035_v19, %v8416_v36 }
 0x23d   : > { %v8424_v62 = vpop.permute.xlu1 %8423  ;;  %v2086_v26 = vpack.c.bf16 %v2068_v8, %v2067_v42 }
 0x23e   : > { %v8426_v41 = vunpack.i.h.bf16 %v8424_v62  ;;  %v8425_v53 = vunpack.i.l.bf16 %v8424_v62 }
 0x23f   : > { %7624 = vmatmul.mubr.msk.bf16.gmra.mrb[28].mxu1 %vm2116_vm14, %v2086_v26 }
 0x240   : > { %7627 = vmatprep.mubr.msk.bf16.mxu1 %vm2116_vm14, %v2087_v45  ;;  %v1841_v12 = vsel %vm1809_vm6, %v14539_v2, %v8426_v41  ;;  %v1840_v40 = vsel %vm1809_vm6, %v14540_v33, %v8425_v53 }
 0x241   : > { %v8434_v15 = vpop.permute.xlu1 %8433 }
 0x242   : > { %v8436_v38 = vunpack.i.h.bf16 %v8434_v15  ;;  %v8435_v28 = vunpack.i.l.bf16 %v8434_v15 }
 0x244   : > { %v1873_v35 = vsel %vm1842_vm7, %v1840_v40, %v8435_v28  ;;  %v1874_v29 = vsel %vm1842_vm7, %v1841_v12, %v8436_v38 }
 0x245   : > { %v8444_v14 = vpop.permute.xlu1 %8443 }
 0x246   : > { %v7601_v46 = vpop.f32.mrb[4].mxu1  ;;  %v8446_v52 = vunpack.i.h.bf16 %v8444_v14  ;;  %v8445_v60 = vunpack.i.l.bf16 %v8444_v14 }
 0x247   : > { %v11194_v13 = vadd.f32 %v7601_v46, %v11191_v34  ;;  %v2203_v61 = vpop.f32.mrb[5].mxu1 }
 0x248   : > { %v11197_v56 = vadd.f32 %v11191_v34, %v2203_v61  ;;  %v7602_v5 = vpop.f32.mrb[6].mxu1  ;;  %v1906_v6 = vsel %vm1875_vm8, %v1873_v35, %v8445_v60  ;;  %v1907_v7 = vsel %vm1875_vm8, %v1874_v29, %v8446_v52 }
 0x249   : > { %v6959_v39 = vmul.f32 -1.442695, %v11194_v13  ;;  %v11201_v27 = vadd.f32 %v7602_v5, %v11191_v34  ;;  %v8454_v16 = vpop.permute.xlu1 %8453  ;;  %v2206_v49 = vpop.f32.mrb[7].mxu1 }
 0x24a   : > { %v6957_v23 = vmul.f32 -1.442695, %v11197_v56  ;;  %v11205_v63 = vadd.f32 %v11191_v34, %v2206_v49  ;;  %v8455_v0 = vunpack.i.l.bf16 %v8454_v16  ;;  %v8456_v18 = vunpack.i.h.bf16 %v8454_v16 }
 0x24b   : > { %9287 = vpow2.f32 %v6959_v39  ;;  %v6960_v3 = vmul.f32 -1.442695, %v11201_v27 }
 0x24c   : > { %9289 = vpow2.f32 %v6957_v23  ;;  %v6958_v59 = vmul.f32 -1.442695, %v11205_v63  ;;  %v1939_v22 = vsel %vm1908_vm9, %v1906_v6, %v8455_v0  ;;  %v1940_v8 = vsel %vm1908_vm9, %v1907_v7, %v8456_v18 }
 0x24d   : > { %9291 = vpow2.f32 %v6960_v3  ;;  %v8464_v4 = vpop.permute.xlu1 %8463  ;;  %v2556_v23 = vsub.s32 0, %v2555_v9 }
 0x24e   : > { %9293 = vpow2.f32 %v6958_v59  ;;  %v8465_v58 = vunpack.i.l.bf16 %v8464_v4  ;;  %v8466_v31 = vunpack.i.h.bf16 %v8464_v4 }
 0x24f   : > { %9295 = vrcp.f32 %v597_v50 }
 0x250   : > { %v1972_v62 = vsel %vm1941_vm10, %v1939_v22, %v8465_v58  ;;  %v1973_v43 = vsel %vm1941_vm10, %v1940_v8, %v8466_v31 }
 0x251   : > { %v8474_v21 = vpop.permute.xlu1 %8473 }
 0x252   : > { %v8475_v25 = vunpack.i.l.bf16 %v8474_v21  ;;  %v8476_v1 = vunpack.i.h.bf16 %v8474_v21 }
 0x254   : > { %v2005_v30 = vsel %vm1974_vm11, %v1972_v62, %v8475_v25  ;;  %v2006_v14 = vsel %vm1974_vm11, %v1973_v43, %v8476_v1 }
 0x255   : > { %v9288_v32 = vpop.eup %9287  ;;  %v8484_v51 = vpop.permute.xlu1 %8483 }
 0x256   : > { %v9290_v47 = vpop.eup %9289  ;;  %v2428_v48 = vadd.f32 1.0, %v9288_v32  ;;  %v8486_v54 = vunpack.i.h.bf16 %v8484_v51  ;;  %v8485_v17 = vunpack.i.l.bf16 %v8484_v51 }
 0x257   : > { %v9292_v36 = vpop.eup %9291  ;;  %v2426_v55 = vadd.f32 1.0, %v9290_v47 }
 0x258   : > { %v9294_v19 = vpop.eup %9293  ;;  %9297 = vrcp.f32 %v2428_v48  ;;  %v2429_v42 = vadd.f32 1.0, %v9292_v36  ;;  %v2038_v5 = vsel %vm2007_vm12, %v2005_v30, %v8485_v17  ;;  %v2039_v20 = vsel %vm2007_vm12, %v2006_v14, %v8486_v54 }
 0x259   : > { %9299 = vrcp.f32 %v2426_v55  ;;  %v2427_v26 = vadd.f32 1.0, %v9294_v19  ;;  %v8494_v45 = vpop.permute.xlu1 %8493  ;;  %v9296_v15 = vpop.eup %9295 }
 0x25a   : > { %9301 = vrcp.f32 %v2429_v42  ;;  %v8496_v46 = vunpack.i.h.bf16 %v8494_v45  ;;  %v8495_v61 = vunpack.i.l.bf16 %v8494_v45  ;;  %v600_v49 = vmul.f32 %v9296_v15, %v11141_v37 }
 0x25b   : > { %9303 = vrcp.f32 %v2427_v26 }
 0x25c   : > { %v2071_v39 = vsel %vm2040_vm13, %v2038_v5, %v8495_v61  ;;  %v2072_v16 = vsel %vm2040_vm13, %v2039_v20, %v8496_v46  ;;  %v11229_v50 = vrot.slane %v600_v49, %v2556_v23 }
 0x25d   : > { %v2088_v3 = vpack.c.bf16 %v2072_v16, %v2071_v39 }
 0x25f   : > { %7628 = vmatmul.mubr.msk.bf16.gmra.mrb[32].mxu1 %vm2116_vm14, %v2088_v3 }
 0x262   : > { %v9298_v59 = vpop.eup %9297 }
 0x263   : > { %v9300_v4 = vpop.eup %9299  ;;  %v11232_v44 = vmul.f32 %v9298_v59, %v11194_v13 }
 0x264   : > { %v9302_v41 = vpop.eup %9301  ;;  %v11237_v28 = vmul.f32 %v9300_v4, %v11197_v56 }
 0x265   : > { %14541 = vst [vmem:[#allocation12_spill] sm:$0xff] %v11232_v44  ;;  %v9304_v53 = vpop.eup %9303  ;;  %v2560_v38 = vadd.f32 %v11229_v50, %v11232_v44  ;;  %v11240_v37 = vmul.f32 %v9302_v41, %v11201_v27  ;;  %v9231_v41 = vld [vmem:[%s14318_s8 + $0x40] sm:$0xff]  }
 0x266   : > { %14542 = vst [vmem:[#allocation11_spill] sm:$0xff] %v11237_v28  ;;  %v11243_v21 = vmul.f32 %v9304_v53, %v11205_v63  ;;  %v2558_v9 = vadd.f32 %v11229_v50, %v11237_v28  ;;  %v9232_v53 = vld [vmem:[%s14318_s8] sm:$0xff]   ;;  %7189 = vmatprep.subr.bf16.mxu0 %v9231_v41 }
 0x267   : > { %14543 = vst [vmem:[#allocation25_spill] sm:$0xff] %v11240_v37  ;;  %v2625_v52 = vrot.slane %v2560_v38, 7  ;;  %v2561_v60 = vadd.f32 %v11229_v50, %v11240_v37  ;;  %v9233_v38 = vld [vmem:[%s14318_s8 + $0x48] sm:$0xff]   ;;  %7190 = vmatpush3.bf16.msra.mxu0 %v9232_v53 }
 0x268   : > { %14544 = vst [vmem:[#allocation26_spill] sm:$0xff] %v11243_v21  ;;  %v2559_v13 = vadd.f32 %v11229_v50, %v11243_v21  ;;  %v2622_v40 = vrot.slane %v2558_v9, 7  ;;  %7191 = vmatprep.subr.bf16.mxu0 %v9233_v38  ;;  %v9235_v9 = vld [vmem:[%s14318_s8 + $0x50] sm:$0xff]  }
 0x269   : > { %v2626_v0 = vrot.slane %v2561_v60, 7  ;;  %v11252_v56 = vsel %vm701_vm0, 0.0, %v2625_v52  ;;  %v9234_v60 = vld [vmem:[%s14318_s8 + $0x8] sm:$0xff]  }
 0x26a   : > { %v2623_v2 = vrot.slane %v2559_v13, 7  ;;  %v2784_v58 = vrot.slane %v11252_v56, 1  ;;  %v2955_v32 = vrot.slane %v11252_v56, 2  ;;  %v11279_v48 = vsel %vm701_vm0, 0.0, %v2622_v40 }
 0x26b   : > { %v11255_v27 = vsel %vm701_vm0, %v2625_v52, %v2626_v0  ;;  %v2734_v63 = vsel %vm701_vm0, %v2626_v0, 0.0  ;;  %v2950_v8 = vrot.slane %v11279_v48, 2  ;;  %v2779_v23 = vrot.slane %v11279_v48, 1  ;;  %7192 = vmatpush3.bf16.msra.mxu0 %v9234_v60 }
 0x26c   : > { %v2787_v12 = vrot.slane %v2734_v63, 1  ;;  %v2958_v33 = vrot.slane %v2734_v63, 2  ;;  %v8512_v18 = vpack.i.bf16 %v11255_v27, %v11252_v56  ;;  %v2956_v35 = vrot.slane %v11255_v27, 2  ;;  %7193 = vmatprep.subr.bf16.mxu0 %v9235_v9 }
 0x26d   : > { %v2785_v29 = vrot.slane %v11255_v27, 1  ;;  %v11265_v31 = vsel %vm701_vm0, %v2622_v40, %v2623_v2  ;;  %v2733_v25 = vsel %vm701_vm0, %v2623_v2, 0.0 }
 0x26e   : > { %8513 = vrot.lane.b32.xlu1 %v8512_v18, %s9714_s30  ;;  %8508 = vrot.lane.b32.xlu0 %v8512_v18, %s9713_s19  ;;  %v2957_v51 = vsel %vm1044_vm1, %v2955_v32, %v2956_v35  ;;  %v2959_v47 = vsel %vm1044_vm1, %v2956_v35, %v2958_v33  ;;  %v2953_v55 = vrot.slane %v2733_v25, 2  ;;  %v8517_v54 = vpack.i.bf16 %v11265_v31, %v11279_v48  ;;  %v9236_v18 = vld [vmem:[%s14318_s8 + $0x10] sm:$0xff]   ;;  %v9237_v32 = vld [vmem:[%s14318_s8 + $0x58] sm:$0xff]  }
 0x26f   : > { %v11273_v6 = vsel %vm867_vm2, %v2784_v58, %v2785_v29  ;;  %v11276_v7 = vsel %vm867_vm2, %v2785_v29, %v2787_v12  ;;  %v3776_v1 = vpack.c.bf16 %v2959_v47, %v2957_v51  ;;  %v2951_v17 = vrot.slane %v11265_v31, 2  ;;  %7194 = vmatpush3.bf16.msra.mxu0 %v9236_v18  ;;  %v9238_v35 = vld [vmem:[%s14318_s8 + $0x18] sm:$0xff]   ;;  %v9239_v29 = vld [vmem:[%s14318_s8 + $0x60] sm:$0xff]  }
 0x270   : > { %v8522_v36 = vpack.i.bf16 %v11276_v7, %v11273_v6  ;;  %v8527_v15 = vpack.i.bf16 %v2959_v47, %v2957_v51  ;;  %v2782_v20 = vrot.slane %v2733_v25, 1  ;;  %v2780_v16 = vrot.slane %v11265_v31, 1  ;;  %7195 = vmatprep.subr.bf16.mxu0 %v9237_v32  ;;  %v9240_v25 = vld [vmem:[%s14318_s8 + $0x20] sm:$0xff]   ;;  %v9241_v51 = vld [vmem:[%s14318_s8 + $0x68] sm:$0xff]  }
 0x271   : > { %7635 = vmatprep.mubr.msk.bf16.mxu1 %vm2040_vm13, %v3776_v1  ;;  %v2952_v61 = vsel %vm1044_vm1, %v2950_v8, %v2951_v17  ;;  %v2954_v5 = vsel %vm1044_vm1, %v2951_v17, %v2953_v55 }
 0x272   : > { %v7605_v22 = vpop.f32.mrb[8].mxu1  ;;  %8523 = vrot.lane.b32.xlu0 %v8522_v36, %s9714_s30  ;;  %8518 = vrot.lane.b32.xlu1 %v8517_v54, %s9714_s30  ;;  %v8542_v3 = vpack.i.bf16 %v2954_v5, %v2952_v61  ;;  %v11314_v59 = vsel %vm867_vm2, %v2779_v23, %v2780_v16  ;;  %v11317_v4 = vsel %vm867_vm2, %v2780_v16, %v2782_v20  ;;  %v9242_v54 = vld [vmem:[%s14318_s8 + $0x28] sm:$0xff]   ;;  %v9245_v23 = vld [vmem:[%s14318_s8 + $0x78] sm:$0xff]  }
 0x273   : > { %v11289_v19 = vadd.f32 %v7605_v22, %v11191_v34  ;;  %v2219_v42 = vpop.f32.mrb[9].mxu1  ;;  %v8547_v52 = vpack.i.bf16 %v11317_v4, %v11314_v59  ;;  %7196 = vmatpush3.bf16.msra.mxu0 %v9238_v35 }
 0x274   : > { %v11294_v62 = vadd.f32 %v11191_v34, %v2219_v42  ;;  %v7606_v26 = vpop.f32.mrb[10].mxu1  ;;  %7197 = vmatprep.subr.bf16.mxu0 %v9239_v29 }
 0x275   : > { %v6963_v43 = vmul.f32 -1.442695, %v11289_v19  ;;  %v11298_v30 = vadd.f32 %v7606_v26, %v11191_v34  ;;  %v2222_v45 = vpop.f32.mrb[11].mxu1 }
 0x276   : > { %v6961_v14 = vmul.f32 -1.442695, %v11294_v62  ;;  %v11302_v46 = vadd.f32 %v11191_v34, %v2222_v45  ;;  %8528 = vrot.lane.b32.xlu0 %v8527_v15, %s9711_s27  ;;  %8533 = vrot.lane.b32.xlu1 %v8522_v36, %s9711_s27 }
 0x277   : > { %9305 = vpow2.f32 %v6963_v43  ;;  %v6964_v39 = vmul.f32 -1.442695, %v11298_v30  ;;  %7198 = vmatpush3.bf16.msra.mxu0 %v9240_v25 }
 0x278   : > { %9307 = vpow2.f32 %v6961_v14  ;;  %v6962_v49 = vmul.f32 -1.442695, %v11302_v46  ;;  %7199 = vmatprep.subr.bf16.mxu0 %v9241_v51 }
 0x279   : > { %9309 = vpow2.f32 %v6964_v39 }
 0x27a   : > { %9311 = vpow2.f32 %v6962_v49  ;;  %8543 = vrot.lane.b32.xlu0 %v8542_v3, %s9711_s27  ;;  %8538 = vrot.lane.b32.xlu1 %v8527_v15, %s9713_s19 }
 0x27b   : > { %7200 = vmatpush3.bf16.msra.mxu0 %v9242_v54 }
 0x27e   : > { %8548 = vrot.lane.b32.xlu1 %v8547_v52, %s9711_s27 }
 0x281   : > { %v9306_v13 = vpop.eup %9305 }
 0x282   : > { %v9308_v0 = vpop.eup %9307  ;;  %v2432_v63 = vadd.f32 1.0, %v9306_v13  ;;  %8553 = vrot.lane.b32.xlu1 %v8542_v3, %s9713_s19 }
 0x283   : > { %v9310_v2 = vpop.eup %9309  ;;  %v2430_v12 = vadd.f32 1.0, %v9308_v0 }
 0x284   : > { %v9312_v33 = vpop.eup %9311  ;;  %9313 = vrcp.f32 %v2432_v63  ;;  %v2433_v40 = vadd.f32 1.0, %v9310_v2  ;;  %v9246_v2 = vld [vmem:[%s14318_s8 + $0x38] sm:$0xff]  }
 0x285   : > { %9315 = vrcp.f32 %v2430_v12  ;;  %v2431_v58 = vadd.f32 1.0, %v9312_v33 }
 0x286   : > { %9317 = vrcp.f32 %v2433_v40 }
 0x287   : > { %9319 = vrcp.f32 %v2431_v58 }
 0x28e   : > { %v9314_v47 = vpop.eup %9313 }
 0x28f   : > { %v9316_v1 = vpop.eup %9315  ;;  %v11358_v36 = vmul.f32 %v9314_v47, %v11289_v19  ;;  %v9243_v19 = vld [vmem:[%s14318_s8 + $0x70] sm:$0xff]  }
 0x290   : > { %v9318_v55 = vpop.eup %9317  ;;  %v11361_v22 = vmul.f32 %v9316_v1, %v11294_v62  ;;  %7201 = vmatprep.subr.bf16.mxu0 %v9243_v19 }
 0x291   : > { %14545 = vst [vmem:[#allocation14_spill] sm:$0xff] %v11358_v36  ;;  %v9320_v17 = vpop.eup %9319  ;;  %v2564_v42 = vadd.f32 %v11229_v50, %v11358_v36  ;;  %v11369_v8 = vmul.f32 %v9318_v55, %v11298_v30 }
 0x292   : > { %14546 = vst [vmem:[#allocation13_spill] sm:$0xff] %v11361_v22  ;;  %v2562_v62 = vadd.f32 %v11229_v50, %v11361_v22  ;;  %v11377_v26 = vmul.f32 %v9320_v17, %v11302_v46  ;;  %v7609_v43 = vpop.f32.mrb[12].mxu1  ;;  %v9244_v46 = vld [vmem:[%s14318_s8 + $0x30] sm:$0xff]  }
 0x293   : > { %14547 = vst [vmem:[#allocation16_spill] sm:$0xff] %v11369_v8  ;;  %v2565_v45 = vadd.f32 %v11229_v50, %v11369_v8  ;;  %v11382_v15 = vadd.f32 %v7609_v43, %v11191_v34  ;;  %v2235_v30 = vpop.f32.mrb[13].mxu1  ;;  %v2631_v14 = vrot.slane %v2564_v42, 7  ;;  %7202 = vmatpush3.bf16.msra.mxu0 %v9244_v46 }
 0x294   : > { %14548 = vst [vmem:[#allocation15_spill] sm:$0xff] %v11377_v26  ;;  %v2628_v61 = vrot.slane %v2562_v62, 7  ;;  %v2563_v5 = vadd.f32 %v11229_v50, %v11377_v26  ;;  %v7610_v20 = vpop.f32.mrb[14].mxu1  ;;  %v11397_v53 = vadd.f32 %v11191_v34, %v2235_v30  ;;  %7203 = vmatprep.subr.bf16.mxu0 %v9245_v23 }
 0x295   : > { %v2632_v39 = vrot.slane %v2565_v45, 7  ;;  %v6967_v16 = vmul.f32 -1.442695, %v11382_v15  ;;  %v2238_v49 = vpop.f32.mrb[15].mxu1  ;;  %v11400_v38 = vadd.f32 %v7610_v20, %v11191_v34  ;;  %v11407_v13 = vsel %vm701_vm0, 0.0, %v2631_v14 }
 0x296   : > { %v11394_v3 = vsel %vm701_vm0, 0.0, %v2628_v61  ;;  %v2629_v41 = vrot.slane %v2563_v5, 7  ;;  %v6965_v18 = vmul.f32 -1.442695, %v11397_v53  ;;  %v11421_v32 = vadd.f32 %v11191_v34, %v2238_v49 }
 0x297   : > { %v11403_v52 = vsel %vm701_vm0, %v2631_v14, %v2632_v39  ;;  %v2736_v60 = vsel %vm701_vm0, %v2632_v39, 0.0  ;;  %v2960_v9 = vrot.slane %v11394_v3, 2  ;;  %9321 = vpow2.f32 %v6967_v16  ;;  %7204 = vmatpush3.bf16.msra.mxu0 %v9246_v2 }
 0x298   : > { %v11411_v0 = vsel %vm701_vm0, %v2628_v61, %v2629_v41  ;;  %v2735_v63 = vsel %vm701_vm0, %v2629_v41, 0.0  ;;  %v2797_v12 = vrot.slane %v2736_v60, 1  ;;  %v6968_v58 = vmul.f32 -1.442695, %v11400_v38 }
 0x299   : > { %v2961_v33 = vrot.slane %v11411_v0, 2  ;;  %v2963_v40 = vrot.slane %v2735_v63, 2  ;;  %v8557_v35 = vpack.i.bf16 %v11403_v52, %v11407_v13  ;;  %v2968_v29 = vrot.slane %v2736_v60, 2 }
 0x29a   : > { %v2794_v47 = vrot.slane %v11407_v13, 1  ;;  %9323 = vpow2.f32 %v6965_v18  ;;  %v6966_v55 = vmul.f32 -1.442695, %v11421_v32  ;;  %v2965_v54 = vrot.slane %v11407_v13, 2 }
 0x29b   : > { %v2962_v25 = vsel %vm1044_vm1, %v2960_v9, %v2961_v33  ;;  %v2964_v51 = vsel %vm1044_vm1, %v2961_v33, %v2963_v40  ;;  %8558 = vrot.lane.b32.xlu0 %v8557_v35, %s9713_s19  ;;  %9325 = vpow2.f32 %v6968_v58  ;;  %8563 = vrot.lane.b32.xlu1 %v8557_v35, %s9714_s30  ;;  %v2966_v17 = vrot.slane %v11403_v52, 2 }
 0x29c   : > { %v3779_v1 = vpack.c.bf16 %v2964_v51, %v2962_v25  ;;  %v2795_v42 = vrot.slane %v11403_v52, 1  ;;  %9327 = vpow2.f32 %v6966_v55  ;;  %v8567_v19 = vpack.i.bf16 %v11411_v0, %v11394_v3 }
 0x29d   : > { %v2967_v62 = vsel %vm1044_vm1, %v2965_v54, %v2966_v17  ;;  %v2969_v43 = vsel %vm1044_vm1, %v2966_v17, %v2968_v29  ;;  %v2792_v20 = vrot.slane %v2735_v63, 1  ;;  %v2790_v46 = vrot.slane %v11411_v0, 1 }
 0x29e   : > { %7636 = vmatmul.mubr.msk.bf16.vlgmr.msra.gmra.mrb[36].mxu1 %vm2040_vm13, %v3779_v1  ;;  %v11440_v45 = vsel %vm867_vm2, %v2794_v47, %v2795_v42  ;;  %v11443_v30 = vsel %vm867_vm2, %v2795_v42, %v2797_v12  ;;  %v3782_v14 = vpack.c.bf16 %v2969_v43, %v2967_v62  ;;  %v2789_v16 = vrot.slane %v11394_v3, 1 }
 0x29f   : > { %8568 = vrot.lane.b32.xlu0 %v8567_v19, %s9713_s19  ;;  %8573 = vrot.lane.b32.xlu1 %v8567_v19, %s9714_s30  ;;  %v8577_v61 = vpack.i.bf16 %v11443_v30, %v11440_v45  ;;  %v8582_v23 = vpack.i.bf16 %v2969_v43, %v2967_v62  ;;  %v11458_v2 = vsel %vm867_vm2, %v2790_v46, %v2792_v20 }
 0x2a0   : > { %7639 = vmatprep.mubr.msk.bf16.mxu1 %vm2040_vm13, %v3782_v14  ;;  %v11455_v9 = vsel %vm867_vm2, %v2789_v16, %v2790_v46  ;;  %v8602_v18 = vpack.i.bf16 %v2964_v51, %v2962_v25 }
 0x2a1   : > { %v9322_v5 = vpop.eup %9321  ;;  %v8597_v40 = vpack.i.bf16 %v11458_v2, %v11455_v9 }
 0x2a2   : > { %v2436_v39 = vadd.f32 1.0, %v9322_v5 }
 0x2a3   : > { %8578 = vrot.lane.b32.xlu0 %v8577_v61, %s9714_s30  ;;  %8588 = vrot.lane.b32.xlu1 %v8577_v61, %s9711_s27 }
 0x2a4   : > { %v9324_v49 = vpop.eup %9323  ;;  %9329 = vrcp.f32 %v2436_v39 }
 0x2a5   : > { %v9326_v41 = vpop.eup %9325  ;;  %v2434_v60 = vadd.f32 1.0, %v9324_v49 }
 0x2a6   : > { %v9328_v63 = vpop.eup %9327  ;;  %v2437_v12 = vadd.f32 1.0, %v9326_v41 }
 0x2a7   : > { %8583 = vrot.lane.b32.xlu0 %v8582_v23, %s9711_s27  ;;  %9331 = vrcp.f32 %v2434_v60  ;;  %v2435_v33 = vadd.f32 1.0, %v9328_v63  ;;  %8593 = vrot.lane.b32.xlu1 %v8582_v23, %s9713_s19 }
 0x2a8   : > { %9333 = vrcp.f32 %v2437_v12 }
 0x2a9   : > { %9335 = vrcp.f32 %v2435_v33 }
 0x2ab   : > { %8598 = vrot.lane.b32.xlu0 %v8597_v40, %s9714_s30  ;;  %8608 = vrot.lane.b32.xlu1 %v8597_v40, %s9711_s27 }
 0x2ae   : > { %v9330_v58 = vpop.eup %9329 }
 0x2af   : > { %8603 = vrot.lane.b32.xlu0 %v8602_v18, %s9711_s27  ;;  %v11468_v35 = vmul.f32 %v9330_v58, %v11382_v15  ;;  %8613 = vrot.lane.b32.xlu1 %v8602_v18, %s9713_s19 }
 0x2b1   : > { %14549 = vst [vmem:[#allocation20_spill] sm:$0xff] %v11468_v35  ;;  %v9332_v47 = vpop.eup %9331  ;;  %v2568_v17 = vadd.f32 %v11229_v50, %v11468_v35 }
 0x2b2   : > { %v7613_v29 = vpop.f32.mrb[16].mxu1  ;;  %v9334_v54 = vpop.eup %9333  ;;  %v11477_v25 = vmul.f32 %v9332_v47, %v11397_v53 }
 0x2b3   : > { %v11472_v1 = vadd.f32 %v7613_v29, %v11191_v34  ;;  %v2251_v55 = vpop.f32.mrb[17].mxu1  ;;  %v9336_v42 = vpop.eup %9335  ;;  %v11483_v19 = vmul.f32 %v9334_v54, %v11400_v38  ;;  %v2637_v39 = vrot.slane %v2568_v17, 7 }
 0x2b4   : > { %14550 = vst [vmem:[#allocation19_spill] sm:$0xff] %v11477_v25  ;;  %v11480_v51 = vadd.f32 %v11191_v34, %v2251_v55  ;;  %v7614_v15 = vpop.f32.mrb[18].mxu1  ;;  %v2566_v61 = vadd.f32 %v11229_v50, %v11477_v25  ;;  %v11492_v53 = vmul.f32 %v9336_v42, %v11421_v32 }
 0x2b5   : > { %14551 = vst [vmem:[#allocation21_spill] sm:$0xff] %v11483_v19  ;;  %v6971_v62 = vmul.f32 -1.442695, %v11472_v1  ;;  %v11487_v43 = vadd.f32 %v7614_v15, %v11191_v34  ;;  %v2254_v14 = vpop.f32.mrb[19].mxu1  ;;  %v2569_v38 = vadd.f32 %v11229_v50, %v11483_v19  ;;  %v11512_v33 = vsel %vm701_vm0, 0.0, %v2637_v39 }
 0x2b6   : > { %14552 = vst [vmem:[#allocation22_spill] sm:$0xff] %v11492_v53  ;;  %v6969_v5 = vmul.f32 -1.442695, %v11480_v51  ;;  %v11496_v20 = vadd.f32 %v11191_v34, %v2254_v14  ;;  %v2634_v16 = vrot.slane %v2566_v61, 7  ;;  %v2567_v49 = vadd.f32 %v11229_v50, %v11492_v53  ;;  %14554 = vst [vmem:[#allocation18_spill] sm:$0xff] %v11512_v33 }
 0x2b7   : > { %9337 = vpow2.f32 %v6971_v62  ;;  %v6972_v46 = vmul.f32 -1.442695, %v11487_v43  ;;  %v2638_v23 = vrot.slane %v2569_v38, 7  ;;  %v2975_v15 = vrot.slane %v11512_v33, 2 }
 0x2b8   : > { %9339 = vpow2.f32 %v6969_v5  ;;  %v6970_v32 = vmul.f32 -1.442695, %v11496_v20  ;;  %v2635_v41 = vrot.slane %v2567_v49, 7  ;;  %v11505_v60 = vsel %vm701_vm0, 0.0, %v2634_v16 }
 0x2b9   : > { %9341 = vpow2.f32 %v6972_v46  ;;  %v11508_v63 = vsel %vm701_vm0, %v2637_v39, %v2638_v23  ;;  %v2738_v12 = vsel %vm701_vm0, %v2638_v23, 0.0  ;;  %v2970_v55 = vrot.slane %v11505_v60, 2 }
 0x2ba   : > { %14553 = vst [vmem:[#allocation17_spill] sm:$0xff] %v11508_v63  ;;  %v11515_v40 = vsel %vm701_vm0, %v2634_v16, %v2635_v41  ;;  %v2737_v18 = vsel %vm701_vm0, %v2635_v41, 0.0  ;;  %v2978_v58 = vrot.slane %v2738_v12, 2  ;;  %9343 = vpow2.f32 %v6970_v32 }
 0x2bb   : > { %v2973_v29 = vrot.slane %v2737_v18, 2  ;;  %v8617_v47 = vpack.i.bf16 %v11508_v63, %v11512_v33  ;;  %v2807_v54 = vrot.slane %v2738_v12, 1  ;;  %v2971_v17 = vrot.slane %v11515_v40, 2 }
 0x2bc   : > { %v2976_v42 = vrot.slane %v11508_v63, 2  ;;  %v2805_v62 = vrot.slane %v11508_v63, 1  ;;  %v2804_v14 = vrot.slane %v11512_v33, 1  ;;  %v8627_v38 = vpack.i.bf16 %v11515_v40, %v11505_v60 }
 0x2bd   : > { %8618 = vrot.lane.b32.xlu0 %v8617_v47, %s9713_s19  ;;  %8623 = vrot.lane.b32.xlu1 %v8617_v47, %s9714_s30  ;;  %v2972_v61 = vsel %vm1044_vm1, %v2970_v55, %v2971_v17  ;;  %v2974_v5 = vsel %vm1044_vm1, %v2971_v17, %v2973_v29 }
 0x2be   : > { %v3785_v39 = vpack.c.bf16 %v2974_v5, %v2972_v61  ;;  %v2977_v16 = vsel %vm1044_vm1, %v2975_v15, %v2976_v42  ;;  %v2979_v49 = vsel %vm1044_vm1, %v2976_v42, %v2978_v58  ;;  %v11535_v41 = vsel %vm867_vm2, %v2804_v14, %v2805_v62 }
 0x2bf   : > { %v3788_v32 = vpack.c.bf16 %v2979_v49, %v2977_v16  ;;  %v11538_v12 = vsel %vm867_vm2, %v2805_v62, %v2807_v54  ;;  %v2802_v15 = vrot.slane %v2737_v18, 1  ;;  %v2800_v54 = vrot.slane %v11515_v40, 1 }
 0x2c0   : > { %7640 = vmatmul.mubr.msk.bf16.gmra.mrb[40].mxu1 %vm2040_vm13, %v3785_v39  ;;  %v8637_v17 = vpack.i.bf16 %v11538_v12, %v11535_v41  ;;  %v2799_v62 = vrot.slane %v11505_v60, 1 }
 0x2c1   : > { %v9338_v46 = vpop.eup %9337  ;;  %8628 = vrot.lane.b32.xlu0 %v8627_v38, %s9713_s19  ;;  %8633 = vrot.lane.b32.xlu1 %v8627_v38, %s9714_s30  ;;  %v8642_v38 = vpack.i.bf16 %v2979_v49, %v2977_v16  ;;  %v11554_v39 = vsel %vm867_vm2, %v2800_v54, %v2802_v15 }
 0x2c2   : > { %v2440_v23 = vadd.f32 1.0, %v9338_v46  ;;  %v9340_v47 = vpop.eup %9339  ;;  %7643 = vmatprep.mubr.msk.bf16.mxu1 %vm2040_vm13, %v3788_v32  ;;  %v11551_v46 = vsel %vm867_vm2, %v2799_v62, %v2800_v54 }
 0x2c3   : > { %v9342_v29 = vpop.eup %9341  ;;  %v2438_v55 = vadd.f32 1.0, %v9340_v47  ;;  %v8657_v18 = vpack.i.bf16 %v11554_v39, %v11551_v46 }
 0x2c4   : > { %9345 = vrcp.f32 %v2440_v23  ;;  %v2441_v58 = vadd.f32 1.0, %v9342_v29  ;;  %v9344_v42 = vpop.eup %9343 }
 0x2c5   : > { %9347 = vrcp.f32 %v2438_v55  ;;  %8638 = vrot.lane.b32.xlu0 %v8637_v17, %s9714_s30  ;;  %v2439_v14 = vadd.f32 1.0, %v9344_v42  ;;  %8648 = vrot.lane.b32.xlu1 %v8637_v17, %s9711_s27  ;;  %v8662_v55 = vpack.i.bf16 %v2974_v5, %v2972_v61 }
 0x2c6   : > { %9349 = vrcp.f32 %v2441_v58 }
 0x2c7   : > { %9351 = vrcp.f32 %v2439_v14 }
 0x2c9   : > { %8643 = vrot.lane.b32.xlu0 %v8642_v38, %s9711_s27  ;;  %8653 = vrot.lane.b32.xlu1 %v8642_v38, %s9713_s19 }
 0x2cd   : > { %8658 = vrot.lane.b32.xlu0 %v8657_v18, %s9714_s30  ;;  %8668 = vrot.lane.b32.xlu1 %v8657_v18, %s9711_s27 }
 0x2ce   : > { %v9346_v23 = vpop.eup %9345 }
 0x2cf   : > { %v11561_v32 = vmul.f32 %v9346_v23, %v11472_v1  ;;  %v9348_v16 = vpop.eup %9347 }
 0x2d0   : > { %v9350_v49 = vpop.eup %9349  ;;  %v11568_v29 = vmul.f32 %v9348_v16, %v11480_v51 }
 0x2d1   : > { %14555 = vst [vmem:[#allocation31_spill] sm:$0xff] %v11561_v32  ;;  %v2572_v47 = vadd.f32 %v11229_v50, %v11561_v32  ;;  %v11571_v58 = vmul.f32 %v9350_v49, %v11487_v43  ;;  %8663 = vrot.lane.b32.xlu0 %v8662_v55, %s9711_s27  ;;  %v9352_v42 = vpop.eup %9351  ;;  %8673 = vrot.lane.b32.xlu1 %v8662_v55, %s9713_s19 }
 0x2d2   : > { %14556 = vst [vmem:[#allocation32_spill] sm:$0xff] %v11568_v29  ;;  %v7617_v17 = vpop.f32.mrb[20].mxu1  ;;  %v2570_v1 = vadd.f32 %v11229_v50, %v11568_v29  ;;  %v11586_v14 = vmul.f32 %v9352_v42, %v11496_v20 }
 0x2d3   : > { %14557 = vst [vmem:[#allocation28_spill] sm:$0xff] %v11571_v58  ;;  %v11577_v15 = vadd.f32 %v7617_v17, %v11191_v34  ;;  %v2267_v54 = vpop.f32.mrb[21].mxu1  ;;  %v2643_v62 = vrot.slane %v2572_v47, 7  ;;  %v2573_v51 = vadd.f32 %v11229_v50, %v11571_v58 }
 0x2d4   : > { %v11583_v43 = vadd.f32 %v11191_v34, %v2267_v54  ;;  %v7618_v61 = vpop.f32.mrb[22].mxu1  ;;  %v2640_v5 = vrot.slane %v2570_v1, 7  ;;  %14558 = vst [vmem:[#allocation29_spill] sm:$0xff] %v11586_v14  ;;  %v2571_v49 = vadd.f32 %v11229_v50, %v11586_v14  ;;  %v11605_v14 = vpop.permute.xlu1 %8498 }
 0x2d5   : > { %v6975_v38 = vmul.f32 -1.442695, %v11577_v15  ;;  %v2270_v18 = vpop.f32.mrb[23].mxu1  ;;  %v2644_v23 = vrot.slane %v2573_v51, 7  ;;  %v11593_v47 = vadd.f32 %v7618_v61, %v11191_v34  ;;  %v11596_v55 = vsel %vm701_vm0, 0.0, %v2643_v62 }
 0x2d6   : > { %v6973_v16 = vmul.f32 -1.442695, %v11583_v43  ;;  %14559 = vst [vmem:[#allocation9_spill] sm:$0xff] %v11596_v55  ;;  %v11599_v17 = vsel %vm701_vm0, 0.0, %v2640_v5  ;;  %v2641_v51 = vrot.slane %v2571_v49, 7 }
 0x2d7   : > { %9353 = vpow2.f32 %v6975_v38  ;;  %14560 = vst [vmem:[#allocation36_spill] sm:$0xff] %v11599_v17  ;;  %v11602_v20 = vsel %vm701_vm0, %v2643_v62, %v2644_v23  ;;  %v2740_v1 = vsel %vm701_vm0, %v2644_v23, 0.0  ;;  %v6976_v61 = vmul.f32 -1.442695, %v11593_v47 }
 0x2d8   : > { %14561 = vst [vmem:[#allocation37_spill] sm:$0xff] %v11602_v20  ;;  %v2817_v54 = vrot.slane %v2740_v1, 1  ;;  %v2988_v42 = vrot.slane %v2740_v1, 2  ;;  %9355 = vpow2.f32 %v6973_v16  ;;  %v11609_v38 = vadd.f32 %v11191_v34, %v2270_v18  ;;  %v8504_v19 = vpop.permute.xlu1 %8503 }
 0x2d9   : > { %v8677_v58 = vpack.i.bf16 %v11602_v20, %v11596_v55  ;;  %v11614_v29 = vsel %vm701_vm0, %v2640_v5, %v2641_v51  ;;  %v2739_v62 = vsel %vm701_vm0, %v2641_v51, 0.0  ;;  %v2986_v23 = vrot.slane %v11602_v20, 2 }
 0x2da   : > { %14562 = vst [vmem:[#allocation34_spill] sm:$0xff] %v11614_v29  ;;  %v2815_v49 = vrot.slane %v11602_v20, 1  ;;  %v2985_v16 = vrot.slane %v11596_v55, 2  ;;  %v2983_v1 = vrot.slane %v2739_v62, 2  ;;  %9357 = vpow2.f32 %v6976_v61 }
 0x2db   : > { %v6974_v32 = vmul.f32 -1.442695, %v11609_v38  ;;  %8678 = vrot.lane.b32.xlu0 %v8677_v58, %s9713_s19  ;;  %8683 = vrot.lane.b32.xlu1 %v8677_v58, %s9714_s30  ;;  %v2814_v34 = vrot.slane %v11596_v55, 1  ;;  %v2980_v5 = vrot.slane %v11599_v17, 2  ;;  %v2981_v18 = vrot.slane %v11614_v29, 2 }
 0x2dc   : > { %v8687_v51 = vpack.i.bf16 %v11614_v29, %v11599_v17  ;;  %v2987_v53 = vsel %vm1044_vm1, %v2985_v16, %v2986_v23  ;;  %v2989_v61 = vsel %vm1044_vm1, %v2986_v23, %v2988_v42  ;;  %v11636_v26 = vsel %vm867_vm2, %v2815_v49, %v2817_v54 }
 0x2dd   : > { %9359 = vpow2.f32 %v6974_v32  ;;  %v2982_v25 = vsel %vm1044_vm1, %v2980_v5, %v2981_v18  ;;  %v2984_v35 = vsel %vm1044_vm1, %v2981_v18, %v2983_v1  ;;  %v11633_v58 = vsel %vm867_vm2, %v2814_v34, %v2815_v49  ;;  %14564 = vst [vmem:[#allocation24_spill] sm:$0xff] %v11636_v26 }
 0x2de   : > { %14563 = vst [vmem:[#allocation35_spill] sm:$0xff] %v11633_v58  ;;  %v3791_v8 = vpack.c.bf16 %v2984_v35, %v2982_v25  ;;  %v3794_v16 = vpack.c.bf16 %v2989_v61, %v2987_v53  ;;  %v8697_v23 = vpack.i.bf16 %v11636_v26, %v11633_v58  ;;  %v2812_v34 = vrot.slane %v2739_v62, 1 }
 0x2df   : > { %8688 = vrot.lane.b32.xlu0 %v8687_v51, %s9713_s19  ;;  %8693 = vrot.lane.b32.xlu1 %v8687_v51, %s9714_s30  ;;  %v2810_v54 = vrot.slane %v11614_v29, 1  ;;  %v2809_v5 = vrot.slane %v11599_v17, 1  ;;  %v8702_v62 = vpack.i.bf16 %v2989_v61, %v2987_v53 }
 0x2e0   : > { %v11640_v22 = vpop.permute.xlu0 %8508  ;;  %7644 = vmatmul.mubr.msk.bf16.gmra.mrb[44].mxu1 %vm2040_vm13, %v3791_v8  ;;  %v11650_v18 = vpop.permute.xlu1 %8513 }
 0x2e1   : > { %v9354_v32 = vpop.eup %9353  ;;  %7647 = vmatprep.mubr.msk.bf16.mxu1 %vm2040_vm13, %v3794_v16  ;;  %v11654_v16 = vsel %vm867_vm2, %v2809_v5, %v2810_v54  ;;  %v8722_v5 = vpack.i.bf16 %v2984_v35, %v2982_v25 }
 0x2e2   : > { %v2444_v42 = vadd.f32 1.0, %v9354_v32  ;;  %v9356_v1 = vpop.eup %9355  ;;  %v8500_v32 = vunpack.i.l.bf16 %v11605_v14  ;;  %14565 = vst [vmem:[#allocation23_spill] sm:$0xff] %v11654_v16 }
 0x2e3   : > { %v2442_v49 = vadd.f32 1.0, %v9356_v1  ;;  %8698 = vrot.lane.b32.xlu0 %v8697_v23, %s9714_s30  ;;  %8708 = vrot.lane.b32.xlu1 %v8697_v23, %s9711_s27  ;;  %v8501_v23 = vunpack.i.h.bf16 %v11605_v14 }
 0x2e4   : > { %9361 = vrcp.f32 %v2444_v42  ;;  %v8524_v8 = vpop.permute.xlu0 %8523  ;;  %v9358_v51 = vpop.eup %9357  ;;  %v11657_v42 = vsel %vm867_vm2, %v2810_v54, %v2812_v34  ;;  %v3581_v53 = vsel %vm2040_vm13, %v9837_v11, %v8500_v32  ;;  %v8506_v34 = vunpack.i.h.bf16 %v8504_v19 }
 0x2e5   : > { %9363 = vrcp.f32 %v2442_v49  ;;  %v2445_v36 = vadd.f32 1.0, %v9358_v51  ;;  %14566 = vst [vmem:[#allocation30_spill] sm:$0xff] %v11657_v42  ;;  %v8505_v49 = vunpack.i.l.bf16 %v8504_v19  ;;  %v8717_v61 = vpack.i.bf16 %v11657_v42, %v11654_v16  ;;  %v8519_v54 = vpop.permute.xlu1 %8518 }
 0x2e6   : > { %v3582_v14 = vsel %vm2040_vm13, %v9832_v10, %v8501_v23  ;;  %v8521_v32 = vunpack.i.h.bf16 %v8519_v54  ;;  %v8511_v19 = vunpack.i.h.bf16 %v11640_v22  ;;  %v8510_v23 = vunpack.i.l.bf16 %v11640_v22 }
 0x2e7   : > { %v9360_v1 = vpop.eup %9359  ;;  %8703 = vrot.lane.b32.xlu0 %v8702_v62, %s9711_s27  ;;  %8713 = vrot.lane.b32.xlu1 %v8702_v62, %s9713_s19  ;;  %9365 = vrcp.f32 %v2445_v36  ;;  %v3613_v51 = vsel %vm550_vm4, %v3581_v53, %v8505_v49  ;;  %v3614_v11 = vsel %vm550_vm4, %v3582_v14, %v8506_v34  ;;  %v8526_v10 = vunpack.i.h.bf16 %v8524_v8 }
 0x2e8   : > { %v2443_v21 = vadd.f32 1.0, %v9360_v1  ;;  %v11662_v37 = vpop.permute.xlu0 %8528  ;;  %v8520_v1 = vunpack.i.l.bf16 %v8519_v54  ;;  %v8525_v35 = vunpack.i.l.bf16 %v8524_v8 }
 0x2ea   : > { %9367 = vrcp.f32 %v2443_v21 }
 0x2eb   : > { %8718 = vrot.lane.b32.xlu0 %v8717_v61, %s9714_s30  ;;  %8728 = vrot.lane.b32.xlu1 %v8717_v61, %s9711_s27 }
 0x2ec   : > { %v8544_v36 = vpop.permute.xlu0 %8543 }
 0x2ed   : > { %v8546_v28 = vunpack.i.h.bf16 %v8544_v36  ;;  %v8545_v44 = vunpack.i.l.bf16 %v8544_v36 }
 0x2ee   : > { %v9362_v62 = vpop.eup %9361 }
 0x2ef   : > { %v11674_v21 = vmul.f32 %v9362_v62, %v11577_v15  ;;  %v9364_v61 = vpop.eup %9363  ;;  %8723 = vrot.lane.b32.xlu0 %v8722_v5, %s9711_s27  ;;  %8733 = vrot.lane.b32.xlu1 %v8722_v5, %s9713_s19  ;;  %v3678_v25 = vsel %vm2040_vm13, %v11314_v59, %v8545_v44  ;;  %v3679_v15 = vsel %vm2040_vm13, %v11317_v4, %v8546_v28  ;;  %v11704_v5 = vld [vmem:[%s14317_s7] ss:$0 sm:$0xff] }
 0x2f0   : > { %v11688_v22 = vmul.f32 %v9364_v61, %v11583_v43  ;;  %v3710_v53 = vsel %vm550_vm4, %v3678_v25, %v8510_v23  ;;  %v3711_v8 = vsel %vm550_vm4, %v3679_v15, %v8511_v19  ;;  %v3646_v44 = vsel %vm3645_vm15, %v3613_v51, %v8520_v1 }
 0x2f1   : > { %14567 = vst [vmem:[#allocation27_spill] sm:$0xff] %v11674_v21  ;;  %v2576_v49 = vadd.f32 %v11229_v50, %v11674_v21  ;;  %v3742_v54 = vsel %vm3645_vm15, %v3710_v53, %v8525_v35  ;;  %v3743_v14 = vsel %vm3645_vm15, %v3711_v8, %v8526_v10  ;;  %v3647_v59 = vsel %vm3645_vm15, %v3614_v11, %v8521_v32  ;;  %v9366_v28 = vpop.eup %9365 }
 0x2f2   : > { %14568 = vst [vmem:[#allocation38_spill] sm:$0xff] %v11688_v22  ;;  %v7621_v34 = vpop.f32.mrb[24].mxu1  ;;  %v2574_v4 = vadd.f32 %v11229_v50, %v11688_v22  ;;  %v11699_v43 = vmul.f32 %v9366_v28, %v11593_v47  ;;  %v3775_v51 = vpack.c.bf16 %v3743_v14, %v3742_v54  ;;  %v3774_v61 = vpack.c.bf16 %v3647_v59, %v3646_v44 }
 0x2f3   : > { %v2283_v36 = vpop.f32.mrb[25].mxu1  ;;  %v11707_v62 = vadd.f32 %v11704_v5, %v7621_v34  ;;  %v2649_v1 = vrot.slane %v2576_v49, 7 }
 0x2f4   : > { %14569 = vst [vmem:[#allocation39_spill] sm:$0xff] %v11699_v43  ;;  %v11710_v10 = vadd.f32 %v11704_v5, %v2283_v36  ;;  %v7622_v11 = vpop.f32.mrb[26].mxu1  ;;  %v9368_v32 = vpop.eup %9367  ;;  %v2646_v19 = vrot.slane %v2574_v4, 7  ;;  %v2577_v47 = vadd.f32 %v11229_v50, %v11699_v43  ;;  %4053 = vmatprep.mubr.bf16.mxu0 %v3775_v51 }
 0x2f5   : > { %v2286_v23 = vpop.f32.mrb[27].mxu1  ;;  %v11715_v35 = vmul.f32 %v9368_v32, %v11609_v38  ;;  %v6979_v25 = vmul.f32 -1.442695, %v11707_v62  ;;  %v11720_v53 = vadd.f32 %v11704_v5, %v7622_v11  ;;  %4054 = vmatmul.mubr.bf16.vlgmr.msra.gmra.mrb[0].mxu0 %v3774_v61  ;;  %v11728_v54 = vsel %vm701_vm0, 0.0, %v2649_v1  ;;  %v11730_v38 = vpop.permute.xlu1 %8533 }
 0x2f6   : > { %v6977_v15 = vmul.f32 -1.442695, %v11710_v10  ;;  %v11723_v49 = vsel %vm701_vm0, 0.0, %v2646_v19  ;;  %v2650_v8 = vrot.slane %v2577_v47, 7  ;;  %14572 = vst [vmem:[#allocation42_spill] sm:$0xff] %v11728_v54  ;;  %v11739_v11 = vadd.f32 %v11704_v5, %v2286_v23 }
 0x2f7   : > { %14570 = vst [vmem:[#allocation40_spill] sm:$0xff] %v11715_v35  ;;  %14571 = vst [vmem:[#allocation41_spill] sm:$0xff] %v11723_v49  ;;  %v2575_v34 = vadd.f32 %v11229_v50, %v11715_v35  ;;  %9369 = vpow2.f32 %v6979_v25  ;;  %v6980_v14 = vmul.f32 -1.442695, %v11720_v53  ;;  %v2990_v4 = vrot.slane %v11723_v49, 2 }
 0x2f8   : > { %v11734_v44 = vsel %vm701_vm0, %v2649_v1, %v2650_v8  ;;  %v2742_v59 = vsel %vm701_vm0, %v2650_v8, 0.0  ;;  %9371 = vpow2.f32 %v6977_v15  ;;  %v6978_v25 = vmul.f32 -1.442695, %v11739_v11 }
 0x2f9   : > { %14573 = vst [vmem:[#allocation43_spill] sm:$0xff] %v11734_v44  ;;  %v2647_v28 = vrot.slane %v2575_v34, 7  ;;  %v2998_v36 = vrot.slane %v2742_v59, 2  ;;  %9373 = vpow2.f32 %v6980_v14  ;;  %v8737_v1 = vpack.i.bf16 %v11734_v44, %v11728_v54  ;;  %v11755_v14 = vpop.permute.xlu1 %8538 }
 0x2fa   : > { %v2827_v61 = vrot.slane %v2742_v59, 1  ;;  %v2995_v8 = vrot.slane %v11728_v54, 2  ;;  %v2825_v23 = vrot.slane %v11734_v44, 1  ;;  %v2824_v34 = vrot.slane %v11728_v54, 1 }
 0x2fb   : > { %v11742_v51 = vsel %vm701_vm0, %v2646_v19, %v2647_v28  ;;  %v2741_v32 = vsel %vm701_vm0, %v2647_v28, 0.0  ;;  %8738 = vrot.lane.b32.xlu0 %v8737_v1, %s9713_s19  ;;  %8743 = vrot.lane.b32.xlu1 %v8737_v1, %s9714_s30  ;;  %v2996_v19 = vrot.slane %v11734_v44, 2  ;;  %9375 = vpow2.f32 %v6978_v25 }
 0x2fc   : > { %14574 = vst [vmem:[#allocation44_spill] sm:$0xff] %v11742_v51  ;;  %v2993_v47 = vrot.slane %v2741_v32, 2  ;;  %v2991_v15 = vrot.slane %v11742_v51, 2  ;;  %v8747_v22 = vpack.i.bf16 %v11742_v51, %v11723_v49  ;;  %v11764_v44 = vsel %vm867_vm2, %v2824_v34, %v2825_v23 }
 0x2fd   : > { %v2997_v43 = vsel %vm1044_vm1, %v2995_v8, %v2996_v19  ;;  %v2999_v1 = vsel %vm1044_vm1, %v2996_v19, %v2998_v36  ;;  %14575 = vst [vmem:[#allocation45_spill] sm:$0xff] %v11764_v44  ;;  %v11767_v54 = vsel %vm867_vm2, %v2825_v23, %v2827_v61  ;;  %v2822_v8 = vrot.slane %v2741_v32, 1  ;;  %v8549_v19 = vpop.permute.xlu1 %8548 }
 0x2fe   : > { %v2992_v59 = vsel %vm1044_vm1, %v2990_v4, %v2991_v15  ;;  %v2994_v28 = vsel %vm1044_vm1, %v2991_v15, %v2993_v47  ;;  %v3800_v21 = vpack.c.bf16 %v2999_v1, %v2997_v43  ;;  %14576 = vst [vmem:[#allocation46_spill] sm:$0xff] %v11767_v54  ;;  %v8757_v36 = vpack.i.bf16 %v11767_v54, %v11764_v44 }
 0x2ff   : > { %v3797_v35 = vpack.c.bf16 %v2994_v28, %v2992_v59  ;;  %8748 = vrot.lane.b32.xlu0 %v8747_v22, %s9713_s19  ;;  %8753 = vrot.lane.b32.xlu1 %v8747_v22, %s9714_s30  ;;  %v2820_v61 = vrot.slane %v11742_v51, 1  ;;  %v2819_v23 = vrot.slane %v11723_v49, 1  ;;  %v8515_v44 = vunpack.i.l.bf16 %v11650_v18 }
 0x301   : > { %7648 = vmatmul.mubr.msk.bf16.gmra.mrb[48].mxu1 %vm2040_vm13, %v3797_v35  ;;  %v9370_v4 = vpop.eup %9369  ;;  %v11783_v32 = vsel %vm867_vm2, %v2820_v61, %v2822_v8 }
 0x302   : > { %7651 = vmatprep.mubr.msk.bf16.mxu1 %vm2040_vm13, %v3800_v21  ;;  %v9372_v47 = vpop.eup %9371  ;;  %v2448_v25 = vadd.f32 1.0, %v9370_v4  ;;  %v8762_v21 = vpack.i.bf16 %v2999_v1, %v2997_v43  ;;  %v11780_v4 = vsel %vm867_vm2, %v2819_v23, %v2820_v61  ;;  %14578 = vst [vmem:[#allocation48_spill] sm:$0xff] %v11783_v32  ;;  %v8550_v1 = vunpack.i.l.bf16 %v8549_v19 }
 0x303   : > { %v9374_v15 = vpop.eup %9373  ;;  %v2446_v34 = vadd.f32 1.0, %v9372_v47  ;;  %8758 = vrot.lane.b32.xlu0 %v8757_v36, %s9714_s30  ;;  %8768 = vrot.lane.b32.xlu1 %v8757_v36, %s9711_s27  ;;  %14577 = vst [vmem:[#allocation47_spill] sm:$0xff] %v11780_v4 }
 0x304   : > { %9377 = vrcp.f32 %v2448_v25  ;;  %v2449_v35 = vadd.f32 1.0, %v9374_v15  ;;  %v8554_v25 = vpop.permute.xlu1 %8553  ;;  %v8777_v15 = vpack.i.bf16 %v11783_v32, %v11780_v4 }
 0x305   : > { %9379 = vrcp.f32 %v2446_v34  ;;  %v9376_v22 = vpop.eup %9375  ;;  %v8551_v34 = vunpack.i.h.bf16 %v8549_v19  ;;  %v8555_v61 = vunpack.i.l.bf16 %v8554_v25  ;;  %v8531_v19 = vunpack.i.h.bf16 %v11662_v37 }
 0x306   : > { %9381 = vrcp.f32 %v2449_v35  ;;  %v2447_v47 = vadd.f32 1.0, %v9376_v22  ;;  %v8782_v35 = vpack.i.bf16 %v2994_v28, %v2992_v59  ;;  %v8556_v22 = vunpack.i.h.bf16 %v8554_v25 }
 0x307   : > { %8763 = vrot.lane.b32.xlu0 %v8762_v21, %s9711_s27  ;;  %8773 = vrot.lane.b32.xlu1 %v8762_v21, %s9713_s19  ;;  %v8530_v59 = vunpack.i.l.bf16 %v11662_v37 }
 0x308   : > { %9383 = vrcp.f32 %v2447_v47 }
 0x30b   : > { %8778 = vrot.lane.b32.xlu0 %v8777_v15, %s9714_s30  ;;  %8788 = vrot.lane.b32.xlu1 %v8777_v15, %s9711_s27 }
 0x30d   : > { %v11790_v43 = vpop.permute.xlu0 %8558  ;;  %v11793_v36 = vpop.permute.xlu1 %8563 }
 0x30e   : > { %v9378_v8 = vpop.eup %9377 }
 0x30f   : > { %v9380_v23 = vpop.eup %9379  ;;  %v11796_v21 = vmul.f32 %v9378_v8, %v11707_v62  ;;  %8783 = vrot.lane.b32.xlu0 %v8782_v35, %s9711_s27  ;;  %v3583_v62 = vsel %vm2040_vm13, %v11279_v48, %v8550_v1  ;;  %8793 = vrot.lane.b32.xlu1 %v8782_v35, %s9713_s19 }
 0x310   : > { %v9382_v47 = vpop.eup %9381  ;;  %v11800_v54 = vmul.f32 %v9380_v23, %v11710_v10  ;;  %v3584_v10 = vsel %vm2040_vm13, %v11265_v31, %v8551_v34  ;;  %v3615_v48 = vsel %vm550_vm4, %v3583_v62, %v8555_v61 }
 0x311   : > { %14579 = vst [vmem:[#allocation49_spill] sm:$0xff] %v11796_v21  ;;  %v11803_v15 = vpop.permute.xlu0 %8568  ;;  %v11810_v28 = vmul.f32 %v9382_v47, %v11720_v53  ;;  %v2580_v8 = vadd.f32 %v11229_v50, %v11796_v21  ;;  %v11817_v23 = vpop.permute.xlu1 %8573  ;;  %v8536_v53 = vunpack.i.h.bf16 %v11730_v38  ;;  %v3616_v34 = vsel %vm550_vm4, %v3584_v10, %v8556_v22 }
 0x312   : > { %14580 = vst [vmem:[#allocation50_spill] sm:$0xff] %v11800_v54  ;;  %v7625_v49 = vpop.f32.mrb[28].mxu1  ;;  %v9384_v47 = vpop.eup %9383  ;;  %v8516_v21 = vunpack.i.h.bf16 %v11650_v18  ;;  %v2578_v55 = vadd.f32 %v11229_v50, %v11800_v54  ;;  %v11845_v22 = vsel %vm3645_vm15, %v3615_v48, %v8515_v44 }
 0x313   : > { %14581 = vst [vmem:[#allocation51_spill] sm:$0xff] %v11810_v28  ;;  %v2299_v25 = vpop.f32.mrb[29].mxu1  ;;  %v11820_v51 = vadd.f32 %v11704_v5, %v7625_v49  ;;  %v2581_v1 = vadd.f32 %v11229_v50, %v11810_v28  ;;  %v11838_v28 = vmul.f32 %v9384_v47, %v11739_v11  ;;  %v2655_v18 = vrot.slane %v2580_v8, 7 }
 0x314   : > { %v7626_v37 = vpop.f32.mrb[30].mxu1  ;;  %v11827_v35 = vadd.f32 %v11704_v5, %v2299_v25  ;;  %v11851_v49 = vsel %vm3645_vm15, %v3616_v34, %v8516_v21  ;;  %v11855_v11 = vsel %vm2040_vm13, %v11276_v7, %v8531_v19  ;;  %v3680_v47 = vsel %vm2040_vm13, %v11273_v6, %v8530_v59 }
 0x315   : > { %v2302_v31 = vpop.f32.mrb[31].mxu1  ;;  %v6983_v61 = vmul.f32 -1.442695, %v11820_v51  ;;  %v11835_v62 = vpop.permute.xlu0 %8578  ;;  %14582 = vst [vmem:[#allocation52_spill] sm:$0xff] %v11838_v28  ;;  %v11842_v20 = vadd.f32 %v11704_v5, %v7626_v37  ;;  %v11861_v37 = vsel %vm2040_vm13, %v11255_v27, %v8536_v53  ;;  %v2656_v44 = vrot.slane %v2581_v1, 7 }
 0x316   : > { %v6981_v25 = vmul.f32 -1.442695, %v11827_v35  ;;  %v11848_v10 = vadd.f32 %v11704_v5, %v2302_v31  ;;  %v2652_v48 = vrot.slane %v2578_v55, 7  ;;  %v2579_v31 = vadd.f32 %v11229_v50, %v11838_v28  ;;  %v11866_v21 = vpop.permute.xlu1 %8588 }
 0x317   : > { %9385 = vpow2.f32 %v6983_v61  ;;  %v8570_v6 = vunpack.i.l.bf16 %v11803_v15  ;;  %v6984_v19 = vmul.f32 -1.442695, %v11842_v20  ;;  %v11876_v59 = vsel %vm701_vm0, 0.0, %v2655_v18 }
 0x318   : > { %9387 = vpow2.f32 %v6981_v25  ;;  %14583 = vst [vmem:[#allocation53_spill] sm:$0xff] %v11876_v59  ;;  %v2653_v55 = vrot.slane %v2579_v31, 7  ;;  %v6982_v1 = vmul.f32 -1.442695, %v11848_v10  ;;  %v11881_v61 = vsel %vm701_vm0, %v2655_v18, %v2656_v44 }
 0x319   : > { %v11868_v34 = vpop.permute.xlu0 %8583  ;;  %v2744_v25 = vsel %vm701_vm0, %v2656_v44, 0.0  ;;  %9389 = vpow2.f32 %v6984_v19  ;;  %v11886_v7 = vsel %vm701_vm0, 0.0, %v2652_v48  ;;  %v2834_v28 = vrot.slane %v11876_v59, 1 }
 0x31a   : > { %v11889_v27 = vsel %vm701_vm0, %v2652_v48, %v2653_v55  ;;  %v11892_v31 = vsel %vm701_vm0, %v2653_v55, 0.0  ;;  %9391 = vpow2.f32 %v6982_v1  ;;  %v8571_v18 = vunpack.i.h.bf16 %v11803_v15  ;;  %v11899_v4 = vpop.permute.xlu1 %8593 }
 0x31b   : > { %v3712_v8 = vsel %vm550_vm4, %v3680_v47, %v8570_v6  ;;  %v3008_v19 = vrot.slane %v2744_v25, 2  ;;  %v3003_v54 = vrot.slane %v11892_v31, 2  ;;  %v8797_v48 = vpack.i.bf16 %v11881_v61, %v11876_v59 }
 0x31c   : > { %v3005_v55 = vrot.slane %v11876_v59, 2  ;;  %v3000_v32 = vrot.slane %v11886_v7, 2  ;;  %v3001_v15 = vrot.slane %v11889_v27, 2  ;;  %v2837_v44 = vrot.slane %v2744_v25, 1 }
 0x31d   : > { %v8599_v53 = vpop.permute.xlu0 %8598  ;;  %8798 = vrot.lane.b32.xlu0 %v8797_v48, %s9713_s19  ;;  %8803 = vrot.lane.b32.xlu1 %v8797_v48, %s9714_s30  ;;  %v8807_v6 = vpack.i.bf16 %v11889_v27, %v11886_v7  ;;  %v3006_v26 = vrot.slane %v11881_v61, 2  ;;  %v2835_v29 = vrot.slane %v11881_v61, 1 }
 0x31e   : > { %v8601_v47 = vunpack.i.h.bf16 %v8599_v53  ;;  %v11913_v1 = vsel %vm1044_vm1, %v3000_v32, %v3001_v15  ;;  %v11917_v25 = vsel %vm1044_vm1, %v3001_v15, %v3003_v54  ;;  %v8600_v16 = vunpack.i.l.bf16 %v8599_v53  ;;  %v11924_v42 = vpop.permute.xlu1 %8608 }
 0x31f   : > { %v3007_v24 = vsel %vm1044_vm1, %v3005_v55, %v3006_v26  ;;  %v3009_v48 = vsel %vm1044_vm1, %v3006_v26, %v3008_v19  ;;  %v8580_v32 = vunpack.i.l.bf16 %v11835_v62  ;;  %v3713_v53 = vsel %vm550_vm4, %v11855_v11, %v8571_v18 }
 0x320   : > { %v3806_v54 = vpack.c.bf16 %v3009_v48, %v3007_v24  ;;  %v8581_v11 = vunpack.i.h.bf16 %v11835_v62  ;;  %v8576_v62 = vunpack.i.h.bf16 %v11817_v23 }
 0x321   : > { %v9386_v58 = vpop.eup %9385  ;;  %v8604_v17 = vpop.permute.xlu0 %8603  ;;  %8808 = vrot.lane.b32.xlu0 %v8807_v6, %s9713_s19  ;;  %8813 = vrot.lane.b32.xlu1 %v8807_v6, %s9714_s30 }
 0x322   : > { %v2452_v59 = vadd.f32 1.0, %v9386_v58  ;;  %v9388_v57 = vpop.eup %9387  ;;  %v8606_v33 = vunpack.i.h.bf16 %v8604_v17  ;;  %v3803_v58 = vpack.c.bf16 %v11917_v25, %v11913_v1  ;;  %v8605_v26 = vunpack.i.l.bf16 %v8604_v17 }
 0x323   : > { %v2450_v63 = vadd.f32 1.0, %v9388_v57  ;;  %v9390_v19 = vpop.eup %9389  ;;  %v11932_v57 = vsel %vm867_vm2, %v2834_v28, %v2835_v29  ;;  %v3744_v28 = vsel %vm3645_vm15, %v3712_v8, %v8600_v16  ;;  %v2830_v8 = vrot.slane %v11889_v27, 1 }
 0x324   : > { %9393 = vrcp.f32 %v2452_v59  ;;  %v3683_v55 = vsel %vm2040_vm13, %v11458_v2, %v8606_v33  ;;  %7652 = vmatmul.mubr.msk.bf16.gmra.mrb[52].mxu1 %vm2040_vm13, %v3803_v58  ;;  %v11935_v59 = vsel %vm867_vm2, %v2835_v29, %v2837_v44  ;;  %v9392_v15 = vpop.eup %9391  ;;  %v2453_v6 = vadd.f32 1.0, %v9390_v19 }
 0x325   : > { %9395 = vrcp.f32 %v2450_v63  ;;  %7655 = vmatprep.mubr.msk.bf16.mxu1 %vm2040_vm13, %v3806_v54  ;;  %v3682_v2 = vsel %vm2040_vm13, %v11455_v9, %v8605_v26  ;;  %v8817_v63 = vpack.i.bf16 %v11935_v59, %v11932_v57  ;;  %v2832_v33 = vrot.slane %v11892_v31, 1 }
 0x326   : > { %v2451_v17 = vadd.f32 1.0, %v9392_v15  ;;  %v3745_v29 = vsel %vm3645_vm15, %v3713_v53, %v8601_v47  ;;  %9397 = vrcp.f32 %v2453_v6  ;;  %v14584_v9 = vunpack.i.l.bf16 %v11790_v43  ;;  %v8614_v47 = vpop.permute.xlu1 %8613 }
 0x327   : > { %8818 = vrot.lane.b32.xlu0 %v8817_v63, %s9714_s30  ;;  %8828 = vrot.lane.b32.xlu1 %v8817_v63, %s9711_s27  ;;  %v3778_v18 = vpack.c.bf16 %v3745_v29, %v3744_v28  ;;  %v14585_v31 = vunpack.i.h.bf16 %v11790_v43  ;;  %v8822_v54 = vpack.i.bf16 %v3009_v48, %v3007_v24  ;;  %v14586_v19 = vunpack.i.l.bf16 %v11730_v38 }
 0x328   : > { %v3714_v44 = vsel %vm550_vm4, %v3682_v2, %v14584_v9  ;;  %9399 = vrcp.f32 %v2451_v17  ;;  %v14587_v43 = vpack.c.bf16 %v11851_v49, %v11845_v22  ;;  %v11973_v6 = vsel %vm867_vm2, %v2830_v8, %v2832_v33 }
 0x329   : > { %v3715_v58 = vsel %vm550_vm4, %v3683_v55, %v14585_v31  ;;  %v3746_v16 = vsel %vm3645_vm15, %v3714_v44, %v8580_v32  ;;  %4061 = vmatprep.mubr.bf16.mxu0 %v3778_v18  ;;  %v3585_v53 = vsel %vm2040_vm13, %v11252_v56, %v14586_v19  ;;  %v14588_v32 = vrot.slane %v11886_v7, 1 }
 0x32a   : > { %v3747_v26 = vsel %vm3645_vm15, %v3715_v58, %v8581_v11  ;;  %4062 = vmatmul.mubr.bf16.gmra.mrb[4].mxu0 %v14587_v43  ;;  %v14589_v24 = vunpack.i.l.bf16 %v11755_v14  ;;  %v14590_v38 = vunpack.i.h.bf16 %v11755_v14  ;;  %v8611_v48 = vunpack.i.h.bf16 %v11924_v42 }
 0x32b   : > { %v3781_v55 = vpack.c.bf16 %v3747_v26, %v3746_v16  ;;  %v11970_v15 = vsel %vm867_vm2, %v14588_v32, %v2830_v8  ;;  %8823 = vrot.lane.b32.xlu0 %v8822_v54, %s9711_s27  ;;  %8833 = vrot.lane.b32.xlu1 %v8822_v54, %s9713_s19  ;;  %v8610_v2 = vunpack.i.l.bf16 %v11924_v42  ;;  %v8615_v63 = vunpack.i.l.bf16 %v8614_v47 }
 0x32c   : > { %v3617_v56 = vsel %vm550_vm4, %v3585_v53, %v14589_v24  ;;  %v3618_v49 = vsel %vm550_vm4, %v11861_v37, %v14590_v38  ;;  %v14591_v33 = vunpack.i.l.bf16 %v11817_v23  ;;  %v8837_v14 = vpack.i.bf16 %v11973_v6, %v11970_v15 }
 0x32d   : > { %4069 = vmatprep.mubr.bf16.mxu0 %v3781_v55  ;;  %v3651_v29 = vsel %vm3645_vm15, %v3618_v49, %v8576_v62  ;;  %v8616_v11 = vunpack.i.h.bf16 %v8614_v47  ;;  %v8566_v42 = vunpack.i.h.bf16 %v11793_v36  ;;  %v3588_v44 = vsel %vm2040_vm13, %v11411_v0, %v8611_v48 }
 0x32e   : > { %v9394_v22 = vpop.eup %9393  ;;  %v3650_v17 = vsel %vm3645_vm15, %v3617_v56, %v14591_v33  ;;  %v3587_v31 = vsel %vm2040_vm13, %v11394_v3, %v8610_v2  ;;  %v8842_v47 = vpack.i.bf16 %v11917_v25, %v11913_v1  ;;  %v8565_v1 = vunpack.i.l.bf16 %v11793_v36 }
 0x32f   : > { %v11990_v28 = vmul.f32 %v9394_v22, %v11820_v51  ;;  %v9396_v37 = vpop.eup %9395  ;;  %v11995_v18 = vpop.permute.xlu0 %8618  ;;  %8838 = vrot.lane.b32.xlu0 %v8837_v14, %s9714_s30  ;;  %8848 = vrot.lane.b32.xlu1 %v8837_v14, %s9711_s27  ;;  %v3780_v58 = vpack.c.bf16 %v3651_v29, %v3650_v17  ;;  %v3619_v26 = vsel %vm550_vm4, %v3587_v31, %v8615_v63  ;;  %v8585_v49 = vunpack.i.l.bf16 %v11868_v34 }
 0x330   : > { %v11999_v9 = vmul.f32 %v9396_v37, %v11827_v35  ;;  %v12003_v51 = vpop.permute.xlu1 %8623  ;;  %v9398_v35 = vpop.eup %9397  ;;  %v3620_v32 = vsel %vm550_vm4, %v3588_v44, %v8616_v11  ;;  %v12048_v2 = vsel %vm3645_vm15, %v3619_v26, %v8565_v1 }
 0x331   : > { %14592 = vst [vmem:[#allocation54_spill] sm:$0xff] %v11990_v28  ;;  %v2584_v62 = vadd.f32 %v11229_v50, %v11990_v28  ;;  %v12020_v3 = vmul.f32 %v9398_v35, %v11842_v20  ;;  %v12051_v63 = vsel %vm3645_vm15, %v3620_v32, %v8566_v42  ;;  %v3684_v31 = vsel %vm2040_vm13, %v11440_v45, %v8585_v49 }
 0x332   : > { %14593 = vst [vmem:[#allocation55_spill] sm:$0xff] %v11999_v9  ;;  %v7629_v23 = vpop.f32.mrb[32].mxu1  ;;  %v9400_v19 = vpop.eup %9399  ;;  %v2582_v0 = vadd.f32 %v11229_v50, %v11999_v9  ;;  %4070 = vmatmul.mubr.bf16.gmra.mrb[8].mxu0 %v3780_v58 }
 0x333   : > { %v12010_v16 = vadd.f32 %v11704_v5, %v7629_v23  ;;  %v2315_v8 = vpop.f32.mrb[33].mxu1  ;;  %14594 = vst [vmem:[#allocation56_spill] sm:$0xff] %v12020_v3  ;;  %v12022_v53 = vpop.permute.xlu0 %8628  ;;  %v12028_v25 = vmul.f32 %v9400_v19, %v11848_v10  ;;  %8843 = vrot.lane.b32.xlu0 %v8842_v47, %s9711_s27  ;;  %8853 = vrot.lane.b32.xlu1 %v8842_v47, %s9713_s19  ;;  %v8586_v10 = vunpack.i.h.bf16 %v11868_v34  ;;  %v2661_v22 = vrot.slane %v2584_v62, 7 }
 0x334   : > { %v7630_v54 = vpop.f32.mrb[34].mxu1  ;;  %v12032_v24 = vpop.permute.xlu1 %8633  ;;  %v12035_v20 = vadd.f32 %v11704_v5, %v2315_v8  ;;  %v2585_v38 = vadd.f32 %v11229_v50, %v12020_v3  ;;  %v2658_v37 = vrot.slane %v2582_v0, 7  ;;  %v8631_v26 = vunpack.i.h.bf16 %v12022_v53 }
 0x335   : > { %v6987_v43 = vmul.f32 -1.442695, %v12010_v16  ;;  %v2318_v55 = vpop.f32.mrb[35].mxu1  ;;  %14595 = vst [vmem:[#allocation57_spill] sm:$0xff] %v12028_v25  ;;  %v12038_v56 = vadd.f32 %v11704_v5, %v7630_v54  ;;  %v2583_v48 = vadd.f32 %v11229_v50, %v12028_v25  ;;  %v12063_v42 = vsel %vm2040_vm13, %v11443_v30, %v8586_v10 }
 0x336   : > { %v2662_v33 = vrot.slane %v2585_v38, 7  ;;  %v6985_v11 = vmul.f32 -1.442695, %v12035_v20  ;;  %v12071_v35 = vsel %vm701_vm0, 0.0, %v2661_v22  ;;  %v12086_v0 = vsel %vm701_vm0, 0.0, %v2658_v37 }
 0x337   : > { %9401 = vpow2.f32 %v6987_v43  ;;  %v12055_v29 = vpop.permute.xlu0 %8638  ;;  %v2659_v34 = vrot.slane %v2583_v48, 7  ;;  %v6988_v23 = vmul.f32 -1.442695, %v12038_v56  ;;  %14596 = vst [vmem:[#allocation58_spill] sm:$0xff] %v12071_v35  ;;  %v12092_v32 = vadd.f32 %v11704_v5, %v2318_v55 }
 0x338   : > { %v12059_v44 = vpop.permute.xlu1 %8648  ;;  %v12074_v62 = vsel %vm701_vm0, %v2661_v22, %v2662_v33  ;;  %v2746_v54 = vsel %vm701_vm0, %v2662_v33, 0.0  ;;  %9403 = vpow2.f32 %v6985_v11  ;;  %v2844_v1 = vrot.slane %v12071_v35, 1 }
 0x339   : > { %v12077_v47 = vsel %vm701_vm0, %v2659_v34, 0.0  ;;  %v12089_v43 = vsel %vm701_vm0, %v2658_v37, %v2659_v34  ;;  %9405 = vpow2.f32 %v6988_v23  ;;  %v3015_v38 = vrot.slane %v12071_v35, 2 }
 0x33a   : > { %v3013_v10 = vrot.slane %v12077_v47, 2  ;;  %v8857_v49 = vpack.i.bf16 %v12074_v62, %v12071_v35  ;;  %v3018_v22 = vrot.slane %v2746_v54, 2  ;;  %v8630_v48 = vunpack.i.l.bf16 %v12022_v53 }
 0x33b   : > { %v12083_v19 = vpop.permute.xlu0 %8643  ;;  %v6986_v33 = vmul.f32 -1.442695, %v12092_v32  ;;  %v2839_v34 = vrot.slane %v12086_v0, 1  ;;  %v3010_v5 = vrot.slane %v12086_v0, 2  ;;  %v3011_v23 = vrot.slane %v12089_v43, 2 }
 0x33c   : > { %v12101_v37 = vpop.permute.xlu1 %8653  ;;  %8858 = vrot.lane.b32.xlu0 %v8857_v49, %s9713_s19  ;;  %v2847_v14 = vrot.slane %v2746_v54, 1  ;;  %v8641_v58 = vunpack.i.h.bf16 %v12055_v29  ;;  %8863 = vrot.lane.b32.xlu1 %v8857_v49, %s9714_s30  ;;  %v3016_v53 = vrot.slane %v12074_v62, 2  ;;  %v8867_v55 = vpack.i.bf16 %v12089_v43, %v12086_v0 }
 0x33d   : > { %9407 = vpow2.f32 %v6986_v33  ;;  %v12112_v36 = vsel %vm1044_vm1, %v3010_v5, %v3011_v23  ;;  %v12115_v8 = vsel %vm1044_vm1, %v3011_v23, %v3013_v10  ;;  %v8640_v45 = vunpack.i.l.bf16 %v12055_v29 }
 0x33e   : > { %v3809_v54 = vpack.c.bf16 %v12115_v8, %v12112_v36  ;;  %v3017_v33 = vsel %vm1044_vm1, %v3015_v38, %v3016_v53  ;;  %v3019_v49 = vsel %vm1044_vm1, %v3016_v53, %v3018_v22  ;;  %v2845_v10 = vrot.slane %v12074_v62, 1 }
 0x33f   : > { %v8659_v11 = vpop.permute.xlu0 %8658  ;;  %v3812_v5 = vpack.c.bf16 %v3019_v49, %v3017_v33  ;;  %v2842_v29 = vrot.slane %v12077_v47, 1 }
 0x340   : > { %v8660_v25 = vunpack.i.l.bf16 %v8659_v11  ;;  %8868 = vrot.lane.b32.xlu0 %v8867_v55, %s9713_s19  ;;  %v8661_v23 = vunpack.i.h.bf16 %v8659_v11  ;;  %v12126_v3 = vpop.permute.xlu1 %8668  ;;  %7656 = vmatmul.mubr.msk.bf16.gmra.mrb[56].mxu1 %vm2040_vm13, %v3809_v54  ;;  %v12133_v53 = vsel %vm867_vm2, %v2844_v1, %v2845_v10  ;;  %v12136_v28 = vsel %vm867_vm2, %v2845_v10, %v2847_v14 }
 0x341   : > { %v9402_v17 = vpop.eup %9401  ;;  %8873 = vrot.lane.b32.xlu1 %v8867_v55, %s9714_s30  ;;  %7659 = vmatprep.mubr.msk.bf16.mxu1 %vm2040_vm13, %v3812_v5  ;;  %v8877_v47 = vpack.i.bf16 %v12136_v28, %v12133_v53  ;;  %v3717_v1 = vsel %vm550_vm4, %v12063_v42, %v8631_v26  ;;  %v14597_v5 = vunpack.i.l.bf16 %v11995_v18  ;;  %v14598_v42 = vunpack.i.h.bf16 %v11995_v18 }
 0x342   : > { %v2456_v30 = vadd.f32 1.0, %v9402_v17  ;;  %v9404_v22 = vpop.eup %9403 }
 0x343   : > { %v8664_v9 = vpop.permute.xlu0 %8663  ;;  %v9406_v11 = vpop.eup %9405  ;;  %v2454_v35 = vadd.f32 1.0, %v9404_v22 }
 0x344   : > { %9409 = vrcp.f32 %v2456_v30  ;;  %v8666_v17 = vunpack.i.h.bf16 %v8664_v9  ;;  %v8665_v38 = vunpack.i.l.bf16 %v8664_v9  ;;  %v3716_v30 = vsel %vm550_vm4, %v3684_v31, %v8630_v48  ;;  %8878 = vrot.lane.b32.xlu0 %v8877_v47, %s9714_s30  ;;  %v12158_v26 = vpop.permute.xlu1 %8673 }
 0x345   : > { %v2457_v54 = vadd.f32 1.0, %v9406_v11  ;;  %v3748_v14 = vsel %vm3645_vm15, %v3716_v30, %v8660_v25  ;;  %9411 = vrcp.f32 %v2454_v35  ;;  %v3749_v31 = vsel %vm3645_vm15, %v3717_v1, %v8661_v23  ;;  %8888 = vrot.lane.b32.xlu1 %v8877_v47, %s9711_s27 }
 0x346   : > { %v3687_v55 = vsel %vm2040_vm13, %v11554_v39, %v8666_v17  ;;  %v3686_v9 = vsel %vm2040_vm13, %v11551_v46, %v8665_v38  ;;  %v8882_v48 = vpack.i.bf16 %v3019_v49, %v3017_v33  ;;  %v2840_v39 = vrot.slane %v12089_v43, 1 }
 0x347   : > { %9413 = vrcp.f32 %v2457_v54  ;;  %v3784_v46 = vpack.c.bf16 %v3749_v31, %v3748_v14  ;;  %v3718_v10 = vsel %vm550_vm4, %v3686_v9, %v14597_v5  ;;  %v3719_v25 = vsel %vm550_vm4, %v3687_v55, %v14598_v42  ;;  %v9408_v35 = vpop.eup %9407 }
 0x348   : > { %v12161_v23 = vsel %vm867_vm2, %v2839_v34, %v2840_v39  ;;  %v12164_v33 = vsel %vm867_vm2, %v2840_v39, %v2842_v29  ;;  %v3750_v49 = vsel %vm3645_vm15, %v3718_v10, %v8640_v45  ;;  %v3751_v17 = vsel %vm3645_vm15, %v3719_v25, %v8641_v58  ;;  %8883 = vrot.lane.b32.xlu0 %v8882_v48, %s9711_s27 }
 0x349   : > { %v8635_v38 = vunpack.i.l.bf16 %v12032_v24  ;;  %v2455_v22 = vadd.f32 1.0, %v9408_v35  ;;  %4077 = vmatprep.mubr.bf16.mxu0 %v3784_v46  ;;  %v8902_v18 = vpack.i.bf16 %v12164_v33, %v12161_v23  ;;  %v3787_v30 = vpack.c.bf16 %v3751_v17, %v3750_v49 }
 0x34a   : > { %v14599_v11 = vpack.c.bf16 %v12051_v63, %v12048_v2  ;;  %v14600_v45 = vunpack.i.h.bf16 %v11866_v21  ;;  %v14601_v29 = vunpack.i.l.bf16 %v11866_v21  ;;  %v14602_v63 = vunpack.i.l.bf16 %v11899_v4 }
 0x34b   : > { %9415 = vrcp.f32 %v2455_v22  ;;  %8903 = vrot.lane.b32.xlu1 %v8902_v18, %s9711_s27  ;;  %v14603_v47 = vunpack.i.h.bf16 %v11899_v4  ;;  %v14605_v14 = vunpack.i.h.bf16 %v12032_v24  ;;  %v8671_v24 = vunpack.i.h.bf16 %v12126_v3 }
 0x34c   : > { %4078 = vmatmul.mubr.bf16.gmra.mrb[12].mxu0 %v14599_v11  ;;  %v3590_v58 = vsel %vm2040_vm13, %v11403_v52, %v14600_v45  ;;  %v3589_v55 = vsel %vm2040_vm13, %v11407_v13, %v14601_v29  ;;  %v8907_v13 = vpack.i.bf16 %v12115_v8, %v12112_v36  ;;  %8893 = vrot.lane.b32.xlu0 %v8902_v18, %s9714_s30  ;;  %v8670_v10 = vunpack.i.l.bf16 %v12126_v3 }
 0x34d   : > { %v12175_v34 = vpop.permute.xlu0 %8678  ;;  %4085 = vmatprep.mubr.bf16.mxu0 %v3787_v30  ;;  %v3621_v9 = vsel %vm550_vm4, %v3589_v55, %v14602_v63  ;;  %v3622_v54 = vsel %vm550_vm4, %v3590_v58, %v14603_v47  ;;  %v12192_v1 = vpop.permute.xlu1 %8683  ;;  %v8626_v35 = vunpack.i.h.bf16 %v12003_v51  ;;  %v8676_v49 = vunpack.i.h.bf16 %v12158_v26 }
 0x34e   : > { %v9410_v2 = vpop.eup %9409  ;;  %v3654_v21 = vsel %vm3645_vm15, %v3621_v9, %v8635_v38  ;;  %v3655_v31 = vsel %vm3645_vm15, %v3622_v54, %v14605_v14  ;;  %v8625_v3 = vunpack.i.l.bf16 %v12003_v51  ;;  %v8646_v22 = vunpack.i.h.bf16 %v12083_v19 }
 0x34f   : > { %v12195_v52 = vmul.f32 %v9410_v2, %v12010_v16  ;;  %8908 = vrot.lane.b32.xlu1 %v8907_v13, %s9713_s19  ;;  %v9412_v4 = vpop.eup %9411  ;;  %v3786_v46 = vpack.c.bf16 %v3655_v31, %v3654_v21  ;;  %v8651_v11 = vunpack.i.h.bf16 %v12059_v44  ;;  %v8650_v45 = vunpack.i.l.bf16 %v12059_v44 }
 0x350   : > { %v12210_v36 = vmul.f32 %v9412_v4, %v12035_v20  ;;  %8898 = vrot.lane.b32.xlu0 %v8907_v13, %s9711_s27  ;;  %v8645_v58 = vunpack.i.l.bf16 %v12083_v19  ;;  %v3592_v51 = vsel %vm2040_vm13, %v11515_v40, %v8671_v24  ;;  %v3689_v40 = vsel %vm2040_vm13, %v11538_v12, %v8646_v22 }
 0x351   : > { %14604 = vst [vmem:[#allocation59_spill] sm:$0xff] %v12195_v52  ;;  %v12204_v39 = vpop.permute.xlu0 %8688  ;;  %v2588_v16 = vadd.f32 %v11229_v50, %v12195_v52  ;;  %v9414_v5 = vpop.eup %9413  ;;  %v3624_v19 = vsel %vm550_vm4, %v3592_v51, %v8676_v49  ;;  %v8655_v54 = vunpack.i.l.bf16 %v12101_v37  ;;  %v8681_v4 = vunpack.i.h.bf16 %v12175_v34 }
 0x352   : > { %14606 = vst [vmem:[#allocation60_spill] sm:$0xff] %v12210_v36  ;;  %v12213_v8 = vmul.f32 %v9414_v5, %v12038_v56  ;;  %v12218_v42 = vpop.permute.xlu1 %8693  ;;  %v2586_v20 = vadd.f32 %v11229_v50, %v12210_v36  ;;  %v8675_v56 = vunpack.i.l.bf16 %v12158_v26  ;;  %v8690_v63 = vunpack.i.l.bf16 %v12204_v39 }
 0x353   : > { %8913 = vrot.lane.b32.xlu1 %v8882_v48, %s9713_s19  ;;  %v2667_v17 = vrot.slane %v2588_v16, 7  ;;  %v3591_v48 = vsel %vm2040_vm13, %v11505_v60, %v8670_v10  ;;  %v3688_v31 = vsel %vm2040_vm13, %v11535_v41, %v8645_v58  ;;  %v12270_v5 = vsel %vm3645_vm15, %v3624_v19, %v8626_v35 }
 0x354   : > { %14607 = vst [vmem:[#allocation61_spill] sm:$0xff] %v12213_v8  ;;  %4086 = vmatmul.mubr.bf16.gmra.mrb[16].mxu0 %v3786_v46  ;;  %v2589_v38 = vadd.f32 %v11229_v50, %v12213_v8  ;;  %v2664_v30 = vrot.slane %v2586_v20, 7  ;;  %v3623_v9 = vsel %vm550_vm4, %v3591_v48, %v8675_v56  ;;  %v8691_v20 = vunpack.i.h.bf16 %v12204_v39 }
 0x355   : > { %v12220_v25 = vpop.permute.xlu0 %8698  ;;  %v9416_v18 = vpop.eup %9415  ;;  %v2732_v47 = vsel %vm701_vm0, 0.0, %v2667_v17  ;;  %v12267_v46 = vsel %vm3645_vm15, %v3623_v9, %v8625_v3 }
 0x356   : > { %v2668_v29 = vrot.slane %v2589_v38, 7  ;;  %v12236_v26 = vmul.f32 %v9416_v18, %v12092_v32  ;;  %v12253_v60 = vpop.permute.xlu1 %8708  ;;  %v12256_v13 = vsel %vm701_vm0, 0.0, %v2664_v30  ;;  %v3256_v24 = vrot.slane %v2732_v47, 2 }
 0x357   : > { %v2849_v49 = vrot.slane %v12256_v13, 1  ;;  %v3020_v41 = vrot.slane %v12256_v13, 2 }
 0x358   : > { %14608 = vst [vmem:[#allocation62_spill] sm:$0xff] %v12236_v26  ;;  %v2669_v32 = vsel %vm701_vm0, %v2667_v17, %v2668_v29  ;;  %v2748_v21 = vsel %vm701_vm0, %v2668_v29, 0.0  ;;  %v2587_v14 = vadd.f32 %v11229_v50, %v12236_v26  ;;  %v3720_v50 = vsel %vm550_vm4, %v3688_v31, %v8690_v63 }
 0x359   : > { %v12242_v55 = vpop.permute.xlu0 %8703  ;;  %v12264_v16 = vpack.i.bf16 %v2669_v32, %v2732_v47  ;;  %v3259_v56 = vrot.slane %v2748_v21, 2  ;;  %v3257_v17 = vrot.slane %v2669_v32, 2  ;;  %v3222_v3 = vrot.slane %v2748_v21, 1 }
 0x35a   : > { %v2665_v10 = vrot.slane %v2587_v14, 7  ;;  %v12282_v58 = vpop.permute.xlu1 %8713  ;;  %v3220_v19 = vrot.slane %v2669_v32, 1 }
 0x35b   : > { %8918 = vrot.lane.b32.xlu0 %v12264_v16, %s9713_s19  ;;  %v12288_v9 = vsel %vm1044_vm1, %v3256_v24, %v3257_v17  ;;  %v3721_v24 = vsel %vm550_vm4, %v3689_v40, %v8691_v20  ;;  %v8680_v20 = vunpack.i.l.bf16 %v12175_v34 }
 0x35c   : > { %v12279_v38 = vsel %vm701_vm0, %v2664_v30, %v2665_v10  ;;  %v2747_v35 = vsel %vm701_vm0, %v2665_v10, 0.0  ;;  %v12292_v30 = vsel %vm1044_vm1, %v3257_v17, %v3259_v56  ;;  %v3219_v10 = vrot.slane %v2732_v47, 1 }
 0x35d   : > { %v8719_v12 = vpop.permute.xlu0 %8718  ;;  %v2852_v18 = vrot.slane %v2747_v35, 1  ;;  %v3023_v39 = vrot.slane %v2747_v35, 2  ;;  %v8927_v29 = vpack.i.bf16 %v12279_v38, %v12256_v13  ;;  %v3021_v63 = vrot.slane %v12279_v38, 2 }
 0x35e   : > { %v8721_v22 = vunpack.i.h.bf16 %v8719_v12  ;;  %v8720_v51 = vunpack.i.l.bf16 %v8719_v12  ;;  %v2850_v21 = vrot.slane %v12279_v38, 1  ;;  %v3818_v47 = vpack.c.bf16 %v12292_v30, %v12288_v9 }
 0x35f   : > { %8928 = vrot.lane.b32.xlu1 %v8927_v29, %s9714_s30  ;;  %v3022_v35 = vsel %vm1044_vm1, %v3020_v41, %v3021_v63  ;;  %v3024_v12 = vsel %vm1044_vm1, %v3021_v63, %v3023_v39  ;;  %8923 = vrot.lane.b32.xlu0 %v8927_v29, %s9713_s19  ;;  %v14609_v39 = vld [vmem:[#allocation30_spill] sm:$0xff]  ;;  %v8701_v63 = vunpack.i.h.bf16 %v12220_v25 }
 0x360   : > { %v3815_v2 = vpack.c.bf16 %v3024_v12, %v3022_v35  ;;  %v12300_v32 = vsel %vm867_vm2, %v2849_v49, %v2850_v21  ;;  %v12303_v56 = vsel %vm867_vm2, %v2850_v21, %v2852_v18  ;;  %v3752_v17 = vsel %vm3645_vm15, %v3720_v50, %v8720_v51  ;;  %v8729_v49 = vpop.permute.xlu1 %8728 }
 0x361   : > { %v8724_v48 = vpop.permute.xlu0 %8723  ;;  %v8962_v41 = vpack.i.bf16 %v12303_v56, %v12300_v32  ;;  %v12317_v18 = vsel %vm867_vm2, %v3219_v10, %v3220_v19  ;;  %v12320_v50 = vsel %vm867_vm2, %v3220_v19, %v3222_v3  ;;  %v3753_v51 = vsel %vm3645_vm15, %v3721_v24, %v8721_v22 }
 0x362   : > { %v8726_v14 = vunpack.i.h.bf16 %v8724_v48  ;;  %v8725_v31 = vunpack.i.l.bf16 %v8724_v48  ;;  %v14610_v48 = vld [vmem:[#allocation23_spill] sm:$0xff]  ;;  %7660 = vmatmul.mubr.msk.bf16.gmra.mrb[60].mxu1 %vm2040_vm13, %v3815_v2  ;;  %v8700_v21 = vunpack.i.l.bf16 %v12220_v25  ;;  %v8932_v34 = vpack.i.bf16 %v12320_v50, %v12317_v18 }
 0x363   : > { %7663 = vmatprep.mubr.msk.bf16.mxu1 %vm2040_vm13, %v3818_v47  ;;  %8963 = vrot.lane.b32.xlu1 %v8962_v41, %s9711_s27  ;;  %v3790_v2 = vpack.c.bf16 %v3753_v51, %v3752_v17  ;;  %v3789_v3 = vpack.c.bf16 %v12270_v5, %v12267_v46  ;;  %v8967_v25 = vpack.i.bf16 %v3024_v12, %v3022_v35  ;;  %v14611_v47 = vld [vmem:[#allocation17_spill] sm:$0xff]  ;;  %v14613_v12 = vunpack.i.h.bf16 %v12101_v37 }
 0x364   : > { %v3691_v29 = vsel %vm2040_vm13, %v14609_v39, %v8726_v14  ;;  %v3690_v40 = vsel %vm2040_vm13, %v14610_v48, %v8725_v31  ;;  %v8696_v14 = vunpack.i.h.bf16 %v12218_v42  ;;  %v8695_v31 = vunpack.i.l.bf16 %v12218_v42  ;;  %8933 = vrot.lane.b32.xlu0 %v8932_v34, %s9714_s30  ;;  %v8734_v5 = vpop.permute.xlu1 %8733 }
 0x365   : > { %v3722_v19 = vsel %vm550_vm4, %v3690_v40, %v8680_v20  ;;  %v3723_v22 = vsel %vm550_vm4, %v3691_v29, %v8681_v4  ;;  %4093 = vmatprep.mubr.bf16.mxu0 %v3790_v2  ;;  %v3594_v46 = vsel %vm2040_vm13, %v14611_v47, %v8651_v11  ;;  %v14612_v4 = vld [vmem:[#allocation18_spill] sm:$0xff]  ;;  %v14615_v20 = vld [vmem:[#allocation8_spill] sm:$0xff] }
 0x366   : > { %v3754_v10 = vsel %vm3645_vm15, %v3722_v19, %v8700_v21  ;;  %v3755_v24 = vsel %vm3645_vm15, %v3723_v22, %v8701_v63  ;;  %4094 = vmatmul.mubr.bf16.gmra.mrb[20].mxu0 %v3789_v3  ;;  %v3593_v42 = vsel %vm2040_vm13, %v14612_v4, %v8650_v45  ;;  %v3626_v39 = vsel %vm550_vm4, %v3594_v46, %v14613_v12  ;;  %v14620_v47 = vld [vmem:[#allocation36_spill] sm:$0xff] }
 0x367   : > { %v3793_v17 = vpack.c.bf16 %v3755_v24, %v3754_v10  ;;  %8968 = vrot.lane.b32.xlu1 %v8967_v25, %s9713_s19  ;;  %v3625_v35 = vsel %vm550_vm4, %v3593_v42, %v8655_v54  ;;  %v3659_v44 = vsel %vm3645_vm15, %v3626_v39, %v8696_v14  ;;  %v8731_v14 = vunpack.i.h.bf16 %v8729_v49  ;;  %v14619_v24 = vld [vmem:[#allocation34_spill] sm:$0xff] }
 0x368   : > { %8938 = vrot.lane.b32.xlu0 %v8962_v41, %s9714_s30  ;;  %v3658_v11 = vsel %vm3645_vm15, %v3625_v35, %v8695_v31  ;;  %v14614_v41 = vld [vmem:[#allocation7_spill] sm:$0xff]  ;;  %v8730_v3 = vunpack.i.l.bf16 %v8729_v49  ;;  %v8736_v19 = vunpack.i.h.bf16 %v8734_v5  ;;  %v8735_v22 = vunpack.i.l.bf16 %v8734_v5  ;;  %v14617_v31 = vld [vmem:[#allocation33_spill] sm:$0xff] }
 0x369   : > { %4101 = vmatprep.mubr.bf16.mxu0 %v3793_v17  ;;  %v3792_v48 = vpack.c.bf16 %v3659_v44, %v3658_v11  ;;  %v12371_v51 = vpack.c.bf16 %v14615_v20, %v14614_v41  ;;  %v8706_v10 = vunpack.i.h.bf16 %v12242_v55  ;;  %v3596_v17 = vsel %vm2040_vm13, %v14619_v24, %v8731_v14  ;;  %v14621_v11 = vld [vmem:[#allocation24_spill] sm:$0xff] }
 0x36a   : > { %v3595_v49 = vsel %vm2040_vm13, %v14620_v47, %v8730_v3  ;;  %v3628_v35 = vsel %vm550_vm4, %v3596_v17, %v8736_v19  ;;  %v8685_v12 = vunpack.i.l.bf16 %v12192_v1  ;;  %v8711_v24 = vunpack.i.h.bf16 %v12253_v60 }
 0x36b   : > { %8973 = vrot.lane.b32.xlu1 %v12264_v16, %s9714_s30  ;;  %14616 = vst [vmem:[#allocation30_spill] sm:$0xff] %v12371_v51  ;;  %v8947_v16 = vpack.i.bf16 %v12292_v30, %v12288_v9  ;;  %7664 = vmatmul.mubr.msk.bf16.gmra.mrb[64].mxu1 %vm2040_vm13, %v12371_v51  ;;  %v8705_v9 = vunpack.i.l.bf16 %v12242_v55  ;;  %v14618_v30 = vld [vmem:[#allocation10_spill] sm:$0xff]  ;;  %v3627_v5 = vsel %vm550_vm4, %v3595_v49, %v8735_v22  ;;  %v8686_v55 = vunpack.i.h.bf16 %v12192_v1 }
 0x36c   : > { %8943 = vrot.lane.b32.xlu0 %v8967_v25, %s9711_s27  ;;  %v3693_v44 = vsel %vm2040_vm13, %v14621_v11, %v8706_v10  ;;  %v3660_v22 = vsel %vm3645_vm15, %v3627_v5, %v8685_v12  ;;  %v8710_v10 = vunpack.i.l.bf16 %v12253_v60 }
 0x36d   : > { %v12356_v29 = vpop.permute.xlu0 %8738  ;;  %v12362_v40 = vpop.permute.xlu1 %8743 }
 0x36e   : > { %4102 = vmatmul.mubr.bf16.gmra.mrb[24].mxu0 %v3792_v48  ;;  %v14622_v48 = vld [vmem:[#allocation35_spill] sm:$0xff] }
 0x36f   : > { %8983 = vrot.lane.b32.xlu1 %v14618_v30, %s9713_s19 }
 0x370   : > { %8948 = vrot.lane.b32.xlu0 %v8947_v16, %s9711_s27 }
 0x371   : > { %v12360_v45 = vpop.f32.mrb[36].mxu1  ;;  %v8749_v63 = vpop.permute.xlu0 %8748 }
 0x372   : > { %v12364_v54 = vpop.f32.mrb[37].mxu1  ;;  %v12380_v34 = vpop.permute.xlu1 %8753  ;;  %v8751_v46 = vunpack.i.h.bf16 %v8749_v63  ;;  %v8750_v4 = vunpack.i.l.bf16 %v8749_v63  ;;  %v3692_v63 = vsel %vm2040_vm13, %v14622_v48, %v8705_v9  ;;  %v8716_v9 = vunpack.i.h.bf16 %v12282_v58  ;;  %v14623_v48 = vld [vmem:[#allocation48_spill] sm:$0xff] }
 0x373   : > { %v12367_v37 = vpop.f32.mrb[38].mxu1  ;;  %v8755_v11 = vunpack.i.l.bf16 %v12380_v34 }
 0x374   : > { %v12373_v21 = vpop.f32.mrb[39].mxu1  ;;  %8953 = vrot.lane.b32.xlu0 %v14617_v31, %s9713_s19  ;;  %v3724_v3 = vsel %vm550_vm4, %v3692_v63, %v8750_v4  ;;  %v3725_v19 = vsel %vm550_vm4, %v3693_v44, %v8751_v46  ;;  %v3661_v31 = vsel %vm3645_vm15, %v3628_v35, %v8686_v55  ;;  %v8715_v46 = vunpack.i.l.bf16 %v12282_v58 }
 0x375   : > { %v8759_v2 = vpop.permute.xlu0 %8758  ;;  %v3795_v12 = vpack.c.bf16 %v3661_v31, %v3660_v22  ;;  %v8741_v35 = vunpack.i.h.bf16 %v12356_v29  ;;  %v8740_v55 = vunpack.i.l.bf16 %v12356_v29 }
 0x376   : > { %v12394_v42 = vpop.permute.xlu1 %8768  ;;  %v8761_v60 = vunpack.i.h.bf16 %v8759_v2  ;;  %v8760_v44 = vunpack.i.l.bf16 %v8759_v2 }
 0x377   : > { %v8771_v36 = vunpack.i.h.bf16 %v12394_v42 }
 0x378   : > { %8958 = vrot.lane.b32.xlu0 %v14618_v30, %s9714_s30 }
 0x379   : > { %v12384_v25 = vpop.permute.xlu0 %8763 }
 0x37a   : > { %v12415_v17 = vpop.permute.xlu1 %8773 }
 0x37d   : > { %v8779_v39 = vpop.permute.xlu0 %8778 }
 0x37e   : > { %v8781_v16 = vunpack.i.h.bf16 %v8779_v39  ;;  %v8780_v14 = vunpack.i.l.bf16 %v8779_v39  ;;  %v8756_v39 = vunpack.i.h.bf16 %v12380_v34 }
 0x380   : > { %v3756_v30 = vsel %vm3645_vm15, %v3724_v3, %v8780_v14  ;;  %v3757_v1 = vsel %vm3645_vm15, %v3725_v19, %v8781_v16  ;;  %v14624_v16 = vld [vmem:[#allocation47_spill] sm:$0xff]  ;;  %v14625_v14 = vld [vmem:[#allocation37_spill] sm:$0xff] }
 0x381   : > { %v8784_v47 = vpop.permute.xlu0 %8783  ;;  %v3796_v49 = vpack.c.bf16 %v3757_v1, %v3756_v30  ;;  %v3598_v3 = vsel %vm2040_vm13, %v14625_v14, %v8711_v24  ;;  %v14626_v19 = vld [vmem:[#allocation9_spill] sm:$0xff] }
 0x382   : > { %v8786_v4 = vunpack.i.h.bf16 %v8784_v47  ;;  %v8785_v5 = vunpack.i.l.bf16 %v8784_v47  ;;  %v3597_v29 = vsel %vm2040_vm13, %v14626_v19, %v8710_v10  ;;  %v3630_v1 = vsel %vm550_vm4, %v3598_v3, %v8716_v9  ;;  %v8789_v47 = vpop.permute.xlu1 %8788 }
 0x383   : > { %4109 = vmatprep.mubr.bf16.mxu0 %v3796_v49  ;;  %v3629_v30 = vsel %vm550_vm4, %v3597_v29, %v8715_v46  ;;  %v3663_v24 = vsel %vm3645_vm15, %v3630_v1, %v8756_v39  ;;  %v8791_v39 = vunpack.i.h.bf16 %v8789_v47  ;;  %v8766_v19 = vunpack.i.h.bf16 %v12384_v25 }
 0x384   : > { %v3695_v63 = vsel %vm2040_vm13, %v14623_v48, %v8786_v4  ;;  %v3694_v58 = vsel %vm2040_vm13, %v14624_v16, %v8785_v5  ;;  %4110 = vmatmul.mubr.bf16.gmra.mrb[28].mxu0 %v3795_v12  ;;  %v3662_v4 = vsel %vm3645_vm15, %v3629_v30, %v8755_v11  ;;  %v8765_v29 = vunpack.i.l.bf16 %v12384_v25  ;;  %v14629_v25 = vld [vmem:[#allocation46_spill] sm:$0xff] }
 0x385   : > { %v3726_v22 = vsel %vm550_vm4, %v3694_v58, %v8740_v55  ;;  %v3727_v34 = vsel %vm550_vm4, %v3695_v63, %v8741_v35  ;;  %v3798_v10 = vpack.c.bf16 %v3663_v24, %v3662_v4  ;;  %v8790_v63 = vunpack.i.l.bf16 %v8789_v47 }
 0x386   : > { %v3758_v31 = vsel %vm3645_vm15, %v3726_v22, %v8760_v44  ;;  %v3759_v2 = vsel %vm3645_vm15, %v3727_v34, %v8761_v60  ;;  %v8794_v5 = vpop.permute.xlu1 %8793  ;;  %v14627_v22 = vld [vmem:[#allocation44_spill] sm:$0xff]  ;;  %v8746_v4 = vunpack.i.h.bf16 %v12362_v40  ;;  %v8745_v24 = vunpack.i.l.bf16 %v12362_v40 }
 0x387   : > { %v3799_v49 = vpack.c.bf16 %v3759_v2, %v3758_v31  ;;  %v8796_v58 = vunpack.i.h.bf16 %v8794_v5  ;;  %v8795_v14 = vunpack.i.l.bf16 %v8794_v5  ;;  %v3600_v34 = vsel %vm2040_vm13, %v14627_v22, %v8791_v39  ;;  %v14628_v31 = vld [vmem:[#allocation41_spill] sm:$0xff] }
 0x388   : > { %v3599_v2 = vsel %vm2040_vm13, %v14628_v31, %v8790_v63  ;;  %v3697_v26 = vsel %vm2040_vm13, %v14629_v25, %v8766_v19  ;;  %v14630_v39 = vld [vmem:[#allocation45_spill] sm:$0xff]  ;;  %v8770_v19 = vunpack.i.l.bf16 %v12394_v42 }
 0x389   : > { %4117 = vmatprep.mubr.bf16.mxu0 %v3799_v49  ;;  %v3631_v47 = vsel %vm550_vm4, %v3599_v2, %v8795_v14  ;;  %v3632_v49 = vsel %vm550_vm4, %v3600_v34, %v8796_v58  ;;  %v3696_v22 = vsel %vm2040_vm13, %v14630_v39, %v8765_v29  ;;  %v8776_v29 = vunpack.i.h.bf16 %v12415_v17 }
 0x38a   : > { %v3664_v58 = vsel %vm3645_vm15, %v3631_v47, %v8745_v24  ;;  %v3665_v34 = vsel %vm3645_vm15, %v3632_v49, %v8746_v4 }
 0x38c   : > { %4118 = vmatmul.mubr.bf16.gmra.mrb[32].mxu0 %v3798_v10 }
 0x38f   : > { %v8799_v12 = vpop.permute.xlu0 %8798  ;;  %v12438_v35 = vpop.permute.xlu1 %8803 }
 0x390   : > { %v8801_v47 = vunpack.i.h.bf16 %v8799_v12  ;;  %v8800_v24 = vunpack.i.l.bf16 %v8799_v12 }
 0x393   : > { %v12440_v55 = vpop.f32.mrb[40].mxu1  ;;  %v8809_v46 = vpop.permute.xlu0 %8808 }
 0x394   : > { %v12442_v60 = vpop.f32.mrb[41].mxu1  ;;  %v12444_v44 = vpop.permute.xlu1 %8813  ;;  %v8811_v30 = vunpack.i.h.bf16 %v8809_v46  ;;  %v8810_v1 = vunpack.i.l.bf16 %v8809_v46 }
 0x395   : > { %v12446_v9 = vpop.f32.mrb[42].mxu1  ;;  %v8816_v49 = vunpack.i.h.bf16 %v12444_v44  ;;  %v8815_v4 = vunpack.i.l.bf16 %v12444_v44 }
 0x396   : > { %v12448_v48 = vpop.f32.mrb[43].mxu1  ;;  %v3728_v46 = vsel %vm550_vm4, %v3696_v22, %v8810_v1  ;;  %v3729_v14 = vsel %vm550_vm4, %v3697_v26, %v8811_v30  ;;  %v8775_v1 = vunpack.i.l.bf16 %v12415_v17  ;;  %v3801_v30 = vpack.c.bf16 %v3665_v34, %v3664_v58  ;;  %v14631_v17 = vld [vmem:[#allocation43_spill] sm:$0xff]  ;;  %v14632_v58 = vld [vmem:[#allocation42_spill] sm:$0xff] }
 0x397   : > { %v3601_v12 = vsel %vm2040_vm13, %v14632_v58, %v8770_v19 }
 0x399   : > { %v8819_v11 = vpop.permute.xlu0 %8818  ;;  %v12450_v16 = vpop.permute.xlu1 %8828 }
 0x39d   : > { %v12452_v3 = vpop.permute.xlu0 %8823  ;;  %v12464_v10 = vpop.permute.xlu1 %8833 }
 0x39e   : > { %v8826_v58 = vunpack.i.h.bf16 %v12452_v3 }
 0x3a1   : > { %v8839_v5 = vpop.permute.xlu0 %8838  ;;  %v8849_v22 = vpop.permute.xlu1 %8848 }
 0x3a2   : > { %v8841_v63 = vunpack.i.h.bf16 %v8839_v5  ;;  %v8840_v31 = vunpack.i.l.bf16 %v8839_v5 }
 0x3a4   : > { %v3760_v40 = vsel %vm3645_vm15, %v3728_v46, %v8840_v31  ;;  %v3761_v2 = vsel %vm3645_vm15, %v3729_v14, %v8841_v63  ;;  %v8821_v63 = vunpack.i.h.bf16 %v8819_v11  ;;  %v8820_v31 = vunpack.i.l.bf16 %v8819_v11 }
 0x3a5   : > { %v8844_v25 = vpop.permute.xlu0 %8843  ;;  %v3802_v5 = vpack.c.bf16 %v3761_v2, %v3760_v40  ;;  %v3602_v14 = vsel %vm2040_vm13, %v14631_v17, %v8771_v36  ;;  %v3633_v40 = vsel %vm550_vm4, %v3601_v12, %v8775_v1  ;;  %v8825_v12 = vunpack.i.l.bf16 %v12452_v3 }
 0x3a6   : > { %v8846_v39 = vunpack.i.h.bf16 %v8844_v25  ;;  %v8845_v26 = vunpack.i.l.bf16 %v8844_v25  ;;  %v3634_v11 = vsel %vm550_vm4, %v3602_v14, %v8776_v29  ;;  %v3666_v25 = vsel %vm3645_vm15, %v3633_v40, %v8815_v4 }
 0x3a7   : > { %4125 = vmatprep.mubr.bf16.mxu0 %v3802_v5  ;;  %v3667_v36 = vsel %vm3645_vm15, %v3634_v11, %v8816_v49  ;;  %v8854_v5 = vpop.permute.xlu1 %8853  ;;  %v3701_v3 = vsel %vm2040_vm13, %v11935_v59, %v8826_v58  ;;  %v8831_v59 = vunpack.i.h.bf16 %v12450_v16  ;;  %v14633_v58 = vld [vmem:[#allocation53_spill] sm:$0xff] }
 0x3a8   : > { %v3699_v42 = vsel %vm2040_vm13, %v11973_v6, %v8846_v39  ;;  %v3698_v46 = vsel %vm2040_vm13, %v11970_v15, %v8845_v26  ;;  %4126 = vmatmul.mubr.bf16.gmra.mrb[36].mxu0 %v3801_v30  ;;  %v3804_v19 = vpack.c.bf16 %v3667_v36, %v3666_v25  ;;  %v8830_v25 = vunpack.i.l.bf16 %v12450_v16 }
 0x3a9   : > { %v3730_v34 = vsel %vm550_vm4, %v3698_v46, %v8800_v24  ;;  %v3731_v44 = vsel %vm550_vm4, %v3699_v42, %v8801_v47  ;;  %v8856_v42 = vunpack.i.h.bf16 %v8854_v5  ;;  %v8855_v46 = vunpack.i.l.bf16 %v8854_v5 }
 0x3aa   : > { %v3762_v6 = vsel %vm3645_vm15, %v3730_v34, %v8820_v31  ;;  %v3763_v2 = vsel %vm3645_vm15, %v3731_v44, %v8821_v63  ;;  %v8851_v63 = vunpack.i.h.bf16 %v8849_v22  ;;  %v8850_v31 = vunpack.i.l.bf16 %v8849_v22 }
 0x3ab   : > { %v3805_v15 = vpack.c.bf16 %v3763_v2, %v3762_v6  ;;  %v8806_v2 = vunpack.i.h.bf16 %v12438_v35 }
 0x3ac   : > { %v3604_v34 = vsel %vm2040_vm13, %v11889_v27, %v8851_v63  ;;  %v3603_v44 = vsel %vm2040_vm13, %v11886_v7, %v8850_v31  ;;  %v3700_v27 = vsel %vm2040_vm13, %v11932_v57, %v8825_v12  ;;  %v3605_v57 = vsel %vm2040_vm13, %v14633_v58, %v8830_v25 }
 0x3ad   : > { %4133 = vmatprep.mubr.bf16.mxu0 %v3805_v15  ;;  %v3635_v22 = vsel %vm550_vm4, %v3603_v44, %v8855_v46  ;;  %v3636_v6 = vsel %vm550_vm4, %v3604_v34, %v8856_v42  ;;  %v8805_v15 = vunpack.i.l.bf16 %v12438_v35  ;;  %v8835_v12 = vunpack.i.l.bf16 %v12464_v10 }
 0x3ae   : > { %v12498_v39 = vpop.permute.xlu0 %8858  ;;  %v12500_v26 = vpop.permute.xlu1 %8863  ;;  %v3669_v35 = vsel %vm3645_vm15, %v3636_v6, %v8806_v2 }
 0x3af   : > { %v3668_v31 = vsel %vm3645_vm15, %v3635_v22, %v8805_v15  ;;  %v8861_v6 = vunpack.i.h.bf16 %v12498_v39  ;;  %v8860_v2 = vunpack.i.l.bf16 %v12498_v39  ;;  %v3637_v39 = vsel %vm550_vm4, %v3605_v57, %v8835_v12 }
 0x3b0   : > { %4134 = vmatmul.mubr.bf16.gmra.mrb[40].mxu0 %v3804_v19  ;;  %v3807_v22 = vpack.c.bf16 %v3669_v35, %v3668_v31 }
 0x3b2   : > { %v8869_v30 = vpop.permute.xlu0 %8868 }
 0x3b3   : > { %v12502_v1 = vpop.f32.mrb[44].mxu1  ;;  %v12510_v4 = vpop.permute.xlu1 %8873  ;;  %v8871_v40 = vunpack.i.h.bf16 %v8869_v30  ;;  %v8870_v11 = vunpack.i.l.bf16 %v8869_v30 }
 0x3b4   : > { %v12504_v29 = vpop.f32.mrb[45].mxu1  ;;  %v8876_v15 = vunpack.i.h.bf16 %v12510_v4  ;;  %v8875_v16 = vunpack.i.l.bf16 %v12510_v4 }
 0x3b5   : > { %v12506_v47 = vpop.f32.mrb[46].mxu1  ;;  %v3732_v19 = vsel %vm550_vm4, %v3700_v27, %v8870_v11  ;;  %v3733_v30 = vsel %vm550_vm4, %v3701_v3, %v8871_v40  ;;  %v8836_v40 = vunpack.i.h.bf16 %v12464_v10 }
 0x3b6   : > { %v12508_v24 = vpop.f32.mrb[47].mxu1  ;;  %v8879_v49 = vpop.permute.xlu0 %8878  ;;  %v3670_v57 = vsel %vm3645_vm15, %v3637_v39, %v8875_v16 }
 0x3b7   : > { %v12512_v17 = vpop.permute.xlu1 %8888  ;;  %v8881_v25 = vunpack.i.h.bf16 %v8879_v49  ;;  %v8880_v27 = vunpack.i.l.bf16 %v8879_v49  ;;  %v12560_v49 = vld [vmem:[%s14319_s9] ss:$0 sm:$0xff] }
 0x3ba   : > { %v12514_v14 = vpop.permute.xlu0 %8883 }
 0x3bb   : > { %v8886_v39 = vunpack.i.h.bf16 %v12514_v14 }
 0x3bd   : > { %v12533_v63 = vpop.permute.xlu1 %8903 }
 0x3be   : > { %v8894_v36 = vpop.permute.xlu0 %8893 }
 0x3bf   : > { %v8896_v7 = vunpack.i.h.bf16 %v8894_v36  ;;  %v8895_v5 = vunpack.i.l.bf16 %v8894_v36 }
 0x3c1   : > { %v3764_v42 = vsel %vm3645_vm15, %v3732_v19, %v8895_v5  ;;  %v3765_v46 = vsel %vm3645_vm15, %v3733_v30, %v8896_v7  ;;  %v3606_v19 = vsel %vm2040_vm13, %v11881_v61, %v8831_v59  ;;  %v8909_v30 = vpop.permute.xlu1 %8908 }
 0x3c2   : > { %v8899_v34 = vpop.permute.xlu0 %8898  ;;  %v3808_v44 = vpack.c.bf16 %v3765_v46, %v3764_v42 }
 0x3c3   : > { %v8901_v11 = vunpack.i.h.bf16 %v8899_v34  ;;  %v8900_v36 = vunpack.i.l.bf16 %v8899_v34 }
 0x3c4   : > { %4141 = vmatprep.mubr.bf16.mxu0 %v3808_v44 }
 0x3c5   : > { %v3703_v7 = vsel %vm2040_vm13, %v12164_v33, %v8901_v11  ;;  %v3702_v10 = vsel %vm2040_vm13, %v12161_v23, %v8900_v36  ;;  %4142 = vmatmul.mubr.bf16.gmra.mrb[44].mxu0 %v3807_v22  ;;  %v3638_v23 = vsel %vm550_vm4, %v3606_v19, %v8836_v40  ;;  %v12572_v36 = vpop.permute.xlu1 %8913  ;;  %v8911_v19 = vunpack.i.h.bf16 %v8909_v30 }
 0x3c6   : > { %v3734_v4 = vsel %vm550_vm4, %v3702_v10, %v8860_v2  ;;  %v3735_v31 = vsel %vm550_vm4, %v3703_v7, %v8861_v6  ;;  %v3671_v12 = vsel %vm3645_vm15, %v3638_v23, %v8876_v15  ;;  %v8905_v7 = vunpack.i.l.bf16 %v12533_v63 }
 0x3c7   : > { %v3766_v35 = vsel %vm3645_vm15, %v3734_v4, %v8880_v27  ;;  %v3767_v42 = vsel %vm3645_vm15, %v3735_v31, %v8881_v25  ;;  %v3810_v40 = vpack.c.bf16 %v3671_v12, %v3670_v57  ;;  %v8906_v10 = vunpack.i.h.bf16 %v12533_v63 }
 0x3c8   : > { %v7205_v3 = vpop.f32.mrb[0].mxu0  ;;  %v3811_v59 = vpack.c.bf16 %v3767_v42, %v3766_v35  ;;  %v3607_v23 = vsel %vm2040_vm13, %v12086_v0, %v8905_v7  ;;  %v8865_v42 = vunpack.i.l.bf16 %v12500_v26  ;;  %v8890_v0 = vunpack.i.l.bf16 %v12512_v17 }
 0x3c9   : > { %v7206_v5 = vpop.f32.mrb[1].mxu0 }
 0x3ca   : > { %v7208_v33 = vpop.f32.mrb[2].mxu0  ;;  %v7207_v61 = vadd.f32 %v7206_v5, %v7205_v3  ;;  %4149 = vmatprep.mubr.bf16.mxu0 %v3811_v59  ;;  %v8910_v5 = vunpack.i.l.bf16 %v8909_v30  ;;  %v8891_v59 = vunpack.i.h.bf16 %v12512_v17 }
 0x3cb   : > { %v7209_v46 = vpop.f32.mrb[3].mxu0 }
 0x3cc   : > { %v7210_v58 = vadd.f32 %v7209_v46, %v7208_v33  ;;  %v4056_v34 = vadd.f32 %v7207_v61, %v12560_v49  ;;  %v8885_v33 = vunpack.i.l.bf16 %v12514_v14  ;;  %v3608_v61 = vsel %vm2040_vm13, %v12089_v43, %v8906_v10 }
 0x3cd   : > { %v12577_v6 = vpop.permute.xlu0 %8918  ;;  %4150 = vmatmul.mubr.bf16.gmra.mrb[48].mxu0 %v3810_v40  ;;  %v3639_v63 = vsel %vm550_vm4, %v3607_v23, %v8910_v5  ;;  %v8866_v14 = vunpack.i.h.bf16 %v12500_v26  ;;  %v3610_v17 = vsel %vm2040_vm13, %v12074_v62, %v8891_v59 }
 0x3ce   : > { %v4059_v44 = vadd.f32 %v7210_v58, %v12560_v49  ;;  %v12570_v11 = vadd.f32 %v12364_v54, %v4056_v34  ;;  %v3640_v58 = vsel %vm550_vm4, %v3608_v61, %v8911_v19  ;;  %v3705_v34 = vsel %vm2040_vm13, %v12136_v28, %v8886_v39  ;;  %v14634_v19 = vld [vmem:[#allocation58_spill] sm:$0xff] }
 0x3cf   : > { %v3704_v43 = vsel %vm2040_vm13, %v12133_v53, %v8885_v33  ;;  %v3673_v26 = vsel %vm3645_vm15, %v3640_v58, %v8866_v14  ;;  %v3609_v53 = vsel %vm2040_vm13, %v14634_v19, %v8890_v0  ;;  %v8916_v39 = vunpack.i.h.bf16 %v12572_v36 }
 0x3d0   : > { %v12575_v22 = vadd.f32 %v12373_v21, %v4059_v44  ;;  %v7024_v2 = vmul.f32 -1.442695, %v12570_v11  ;;  %v8915_v33 = vunpack.i.l.bf16 %v12572_v36  ;;  %v8921_v62 = vunpack.i.h.bf16 %v12577_v6 }
 0x3d1   : > { %v12583_v3 = vpop.permute.xlu1 %8928  ;;  %v8924_v25 = vpop.permute.xlu0 %8923 }
 0x3d2   : > { %v7025_v15 = vmul.f32 -1.442695, %v12575_v22  ;;  %9417 = vpow2.f32 %v7024_v2  ;;  %v8926_v46 = vunpack.i.h.bf16 %v8924_v25  ;;  %v8925_v12 = vunpack.i.l.bf16 %v8924_v25 }
 0x3d3   : > { %v8931_v59 = vunpack.i.h.bf16 %v12583_v3  ;;  %v8930_v58 = vunpack.i.l.bf16 %v12583_v3  ;;  %v3641_v0 = vsel %vm550_vm4, %v3609_v53, %v8915_v33 }
 0x3d4   : > { %v12581_v16 = vpop.f32.mrb[48].mxu1  ;;  %9419 = vpow2.f32 %v7025_v15  ;;  %v3672_v15 = vsel %vm3645_vm15, %v3639_v63, %v8865_v42  ;;  %v3737_v7 = vsel %vm550_vm4, %v3705_v34, %v8926_v46  ;;  %v3736_v28 = vsel %vm550_vm4, %v3704_v43, %v8925_v12 }
 0x3d5   : > { %v12585_v54 = vpop.f32.mrb[49].mxu1  ;;  %v12594_v4 = vpop.permute.xlu1 %8963  ;;  %v3813_v46 = vpack.c.bf16 %v3673_v26, %v3672_v15  ;;  %v3642_v34 = vsel %vm550_vm4, %v3610_v17, %v8916_v39 }
 0x3d6   : > { %v12587_v27 = vpop.f32.mrb[50].mxu1  ;;  %v8934_v31 = vpop.permute.xlu0 %8933  ;;  %v8965_v43 = vunpack.i.l.bf16 %v12594_v4 }
 0x3d7   : > { %v12589_v21 = vpop.f32.mrb[51].mxu1  ;;  %v8935_v12 = vunpack.i.l.bf16 %v8934_v31 }
 0x3d9   : > { %v8969_v25 = vpop.permute.xlu1 %8968 }
 0x3da   : > { %v8939_v40 = vpop.permute.xlu0 %8938  ;;  %v8971_v17 = vunpack.i.h.bf16 %v8969_v25 }
 0x3db   : > { %v8941_v2 = vunpack.i.h.bf16 %v8939_v40  ;;  %v8940_v10 = vunpack.i.l.bf16 %v8939_v40 }
 0x3dc   : > { %v9418_v35 = vpop.eup %9417 }
 0x3dd   : > { %v4439_v57 = vadd.f32 1.0, %v9418_v35  ;;  %v3769_v5 = vsel %vm3645_vm15, %v3737_v7, %v8941_v2  ;;  %v3768_v35 = vsel %vm3645_vm15, %v3736_v28, %v8940_v10  ;;  %v8970_v2 = vunpack.i.l.bf16 %v8969_v25 }
 0x3de   : > { %v9420_v30 = vpop.eup %9419  ;;  %v8944_v23 = vpop.permute.xlu0 %8943  ;;  %v3814_v63 = vpack.c.bf16 %v3769_v5, %v3768_v35  ;;  %v3674_v7 = vsel %vm3645_vm15, %v3641_v0, %v8930_v58  ;;  %v3675_v10 = vsel %vm3645_vm15, %v3642_v34, %v8931_v59 }
 0x3df   : > { %v4440_v44 = vadd.f32 1.0, %v9420_v30  ;;  %9421 = vrcp.f32 %v4439_v57  ;;  %v8946_v42 = vunpack.i.h.bf16 %v8944_v23  ;;  %v8945_v61 = vunpack.i.l.bf16 %v8944_v23 }
 0x3e0   : > { %v8920_v30 = vunpack.i.l.bf16 %v12577_v6  ;;  %v8936_v57 = vunpack.i.h.bf16 %v8934_v31  ;;  %4157 = vmatprep.mubr.bf16.mxu0 %v3814_v63  ;;  %v8966_v31 = vunpack.i.h.bf16 %v12594_v4 }
 0x3e1   : > { %9423 = vrcp.f32 %v4440_v44  ;;  %v3707_v36 = vsel %vm2040_vm13, %v12303_v56, %v8946_v42  ;;  %v3706_v14 = vsel %vm2040_vm13, %v12300_v32, %v8945_v61  ;;  %v8974_v44 = vpop.permute.xlu1 %8973  ;;  %4158 = vmatmul.mubr.bf16.gmra.mrb[52].mxu0 %v3813_v46  ;;  %v3611_v42 = vsel %vm2040_vm13, %v12256_v13, %v8965_v43 }
 0x3e2   : > { %v8949_v6 = vpop.permute.xlu0 %8948  ;;  %v3738_v40 = vsel %vm550_vm4, %v3706_v14, %v8920_v30  ;;  %v3739_v3 = vsel %vm550_vm4, %v3707_v36, %v8921_v62  ;;  %v8975_v28 = vunpack.i.l.bf16 %v8974_v44  ;;  %v8976_v53 = vunpack.i.h.bf16 %v8974_v44 }
 0x3e3   : > { %v3770_v56 = vsel %vm3645_vm15, %v3738_v40, %v8935_v12  ;;  %v3771_v32 = vsel %vm3645_vm15, %v3739_v3, %v8936_v57  ;;  %v8951_v39 = vunpack.i.h.bf16 %v8949_v6  ;;  %v8950_v33 = vunpack.i.l.bf16 %v8949_v6 }
 0x3e4   : > { %v3817_v15 = vpack.c.bf16 %v3771_v32, %v3770_v56  ;;  %v3612_v35 = vsel %vm2040_vm13, %v12279_v38, %v8966_v31  ;;  %v3816_v61 = vpack.c.bf16 %v3675_v10, %v3674_v7  ;;  %v3643_v25 = vsel %vm550_vm4, %v3611_v42, %v8970_v2 }
 0x3e5   : > { %v3644_v30 = vsel %vm550_vm4, %v3612_v35, %v8971_v17  ;;  %v3676_v59 = vsel %vm3645_vm15, %v3643_v25, %v8975_v28  ;;  %v3709_v38 = vsel %vm2040_vm13, %v12320_v50, %v8951_v39  ;;  %v3708_v13 = vsel %vm2040_vm13, %v12317_v18, %v8950_v33 }
 0x3e6   : > { %v8954_v4 = vpop.permute.xlu0 %8953  ;;  %4165 = vmatprep.mubr.bf16.mxu0 %v3817_v15  ;;  %v3677_v57 = vsel %vm3645_vm15, %v3644_v30, %v8976_v53 }
 0x3e7   : > { %v8956_v46 = vunpack.i.h.bf16 %v8954_v4  ;;  %v8955_v62 = vunpack.i.l.bf16 %v8954_v4  ;;  %v3819_v2 = vpack.c.bf16 %v3677_v57, %v3676_v59  ;;  %v9247_v59 = vld [vmem:[%s14320_s10 + $0x40] sm:$0xff]  }
 0x3e8   : > { %7319 = vmatprep.subr.bf16.mxu1 %v9247_v59 }
 0x3e9   : > { %v9422_v26 = vpop.eup %9421  ;;  %4166 = vmatmul.mubr.bf16.gmra.mrb[56].mxu0 %v3816_v61  ;;  %v3740_v44 = vsel %vm550_vm4, %v3708_v13, %v8955_v62  ;;  %v3741_v50 = vsel %vm550_vm4, %v3709_v38, %v8956_v46  ;;  %v9249_v38 = vld [vmem:[%s14320_s10 + $0x48] sm:$0xff]  }
 0x3ea   : > { %v4535_v19 = vmul.f32 %v9422_v26, %v12570_v11 }
 0x3eb   : > { %v9424_v5 = vpop.eup %9423 }
 0x3ec   : > { %v4536_v23 = vmul.f32 %v9424_v5, %v12575_v22  ;;  %v4599_v63 = vrot.slane %v4535_v19, 7  ;;  %v8959_v22 = vpop.permute.xlu0 %8958 }
 0x3ed   : > { %v8961_v36 = vunpack.i.h.bf16 %v8959_v22  ;;  %v8960_v14 = vunpack.i.l.bf16 %v8959_v22 }
 0x3ee   : > { %v4600_v11 = vrot.slane %v4536_v23, 7  ;;  %v12651_v58 = vsel %vm701_vm0, 0.0, %v4599_v63 }
 0x3ef   : > { %v3772_v6 = vsel %vm3645_vm15, %v3740_v44, %v8960_v14  ;;  %v3773_v40 = vsel %vm3645_vm15, %v3741_v50, %v8961_v36  ;;  %v4757_v3 = vrot.slane %v12651_v58, 1 }
 0x3f0   : > { %v12659_v12 = vsel %vm701_vm0, %v4600_v11, 0.0  ;;  %v12662_v0 = vsel %vm701_vm0, %v4599_v63, %v4600_v11  ;;  %v3820_v43 = vpack.c.bf16 %v3773_v40, %v3772_v6 }
 0x3f1   : > { %v4760_v34 = vrot.slane %v12659_v12, 1  ;;  %v8977_v18 = vpack.i.bf16 %v12662_v0, %v12651_v58  ;;  %v4758_v31 = vrot.slane %v12662_v0, 1 }
 0x3f2   : > { %4173 = vmatprep.mubr.bf16.mxu0 %v3820_v43 }
 0x3f3   : > { %8978 = vrot.lane.b32.xlu0 %v8977_v18, %s9713_s19  ;;  %v12675_v56 = vsel %vm867_vm2, %v4757_v3, %v4758_v31  ;;  %v12678_v32 = vsel %vm867_vm2, %v4758_v31, %v4760_v34  ;;  %4174 = vmatmul.mubr.bf16.gmra.mrb[60].mxu0 %v3819_v2 }
 0x3f4   : > { %14635 = vst [vmem:[#allocation23_spill] sm:$0xff] %v12675_v56  ;;  %14636 = vst [vmem:[#allocation17_spill] sm:$0xff] %v12678_v32  ;;  %v8992_v15 = vpack.i.bf16 %v12678_v32, %v12675_v56 }
 0x3f6   : > { %8993 = vrot.lane.b32.xlu1 %v8992_v15, %s9713_s19 }
 0x3f7   : > { %v12683_v7 = vpop.f32.mrb[52].mxu1 }
 0x3f8   : > { %v12685_v10 = vpop.f32.mrb[53].mxu1 }
 0x3f9   : > { %v12687_v26 = vpop.f32.mrb[54].mxu1 }
 0x3fa   : > { %v12689_v17 = vpop.f32.mrb[55].mxu1 }
 0x3fd   : > { %v7211_v28 = vpop.f32.mrb[4].mxu0 }
 0x3fe   : > { %v7212_v5 = vpop.f32.mrb[5].mxu0 }
 0x3ff   : > { %v7213_v19 = vadd.f32 %v7212_v5, %v7211_v28  ;;  %v7214_v53 = vpop.f32.mrb[6].mxu0 }
 0x400   : > { %v7215_v39 = vpop.f32.mrb[7].mxu0 }
 0x401   : > { %v4064_v33 = vadd.f32 %v7213_v19, %v12560_v49  ;;  %v7216_v4 = vadd.f32 %v7215_v39, %v7214_v53 }
 0x403   : > { %v4225_v23 = vadd.f32 %v12360_v45, %v4064_v33  ;;  %v4067_v35 = vadd.f32 %v7216_v4, %v12560_v49  ;;  %v9248_v45 = vld [vmem:[%s14320_s10] sm:$0xff]  }
 0x404   : > { %7320 = vmatpush3.bf16.msra.mxu1 %v9248_v45  ;;  %v9252_v45 = vld [vmem:[%s14320_s10 + $0x10] sm:$0xff]  }
 0x405   : > { %v7026_v42 = vmul.f32 -1.442695, %v4225_v23  ;;  %v4228_v61 = vadd.f32 %v12367_v37, %v4067_v35  ;;  %v7217_v63 = vpop.f32.mrb[8].mxu0  ;;  %7321 = vmatprep.subr.bf16.mxu1 %v9249_v38 }
 0x406   : > { %v7218_v25 = vpop.f32.mrb[9].mxu0 }
 0x407   : > { %9425 = vpow2.f32 %v7026_v42  ;;  %v7027_v46 = vmul.f32 -1.442695, %v4228_v61  ;;  %v7219_v62 = vadd.f32 %v7218_v25, %v7217_v63  ;;  %v7220_v11 = vpop.f32.mrb[10].mxu0 }
 0x408   : > { %v7221_v30 = vpop.f32.mrb[11].mxu0 }
 0x409   : > { %9427 = vpow2.f32 %v7027_v46  ;;  %v4072_v37 = vadd.f32 %v7219_v62, %v12560_v49  ;;  %v7222_v13 = vadd.f32 %v7221_v30, %v7220_v11  ;;  %v9250_v62 = vld [vmem:[%s14320_s10 + $0x8] sm:$0xff]  }
 0x40a   : > { %7322 = vmatpush3.bf16.msra.mxu1 %v9250_v62  ;;  %v9255_v62 = vld [vmem:[%s14320_s10 + $0x60] sm:$0xff]  }
 0x40b   : > { %v4233_v22 = vadd.f32 %v12442_v60, %v4072_v37  ;;  %v4075_v57 = vadd.f32 %v7222_v13, %v12560_v49 }
 0x40d   : > { %v7028_v36 = vmul.f32 -1.442695, %v4233_v22  ;;  %v4236_v14 = vadd.f32 %v12448_v48, %v4075_v57 }
 0x40f   : > { %9429 = vpow2.f32 %v7028_v36  ;;  %v7029_v34 = vmul.f32 -1.442695, %v4236_v14 }
 0x411   : > { %v9426_v44 = vpop.eup %9425  ;;  %9431 = vpow2.f32 %v7029_v34 }
 0x412   : > { %v4441_v50 = vadd.f32 1.0, %v9426_v44 }
 0x413   : > { %v9428_v18 = vpop.eup %9427  ;;  %v12708_v40 = vpop.f32.mrb[56].mxu1 }
 0x414   : > { %9433 = vrcp.f32 %v4441_v50  ;;  %v4442_v6 = vadd.f32 1.0, %v9428_v18  ;;  %v12710_v3 = vpop.f32.mrb[57].mxu1 }
 0x415   : > { %v12712_v60 = vpop.f32.mrb[58].mxu1 }
 0x416   : > { %9435 = vrcp.f32 %v4442_v6  ;;  %v12714_v43 = vpop.f32.mrb[59].mxu1 }
 0x419   : > { %v9430_v31 = vpop.eup %9429 }
 0x41a   : > { %v4443_v2 = vadd.f32 1.0, %v9430_v31 }
 0x41b   : > { %v9432_v48 = vpop.eup %9431 }
 0x41c   : > { %9437 = vrcp.f32 %v4443_v2  ;;  %v4444_v15 = vadd.f32 1.0, %v9432_v48 }
 0x41e   : > { %v9434_v28 = vpop.eup %9433  ;;  %9439 = vrcp.f32 %v4444_v15 }
 0x41f   : > { %v7223_v5 = vpop.f32.mrb[12].mxu0  ;;  %v4537_v19 = vmul.f32 %v9434_v28, %v4225_v23 }
 0x420   : > { %v7224_v53 = vpop.f32.mrb[13].mxu0  ;;  %v9436_v39 = vpop.eup %9435 }
 0x421   : > { %v7225_v33 = vadd.f32 %v7224_v53, %v7223_v5  ;;  %v7226_v4 = vpop.f32.mrb[14].mxu0  ;;  %v4602_v35 = vrot.slane %v4537_v19, 7  ;;  %v4538_v42 = vmul.f32 %v9436_v39, %v4228_v61  ;;  %v9251_v61 = vld [vmem:[%s14320_s10 + $0x50] sm:$0xff]  }
 0x422   : > { %v7227_v63 = vpop.f32.mrb[15].mxu0  ;;  %7323 = vmatprep.subr.bf16.mxu1 %v9251_v61 }
 0x423   : > { %v4080_v25 = vadd.f32 %v7225_v33, %v12560_v49  ;;  %v7228_v46 = vadd.f32 %v7227_v63, %v7226_v4  ;;  %v4603_v11 = vrot.slane %v4538_v42, 7  ;;  %v12721_v30 = vsel %vm701_vm0, 0.0, %v4602_v35  ;;  %7324 = vmatpush3.bf16.msra.mxu1 %v9252_v45 }
 0x424   : > { %v4762_v31 = vrot.slane %v12721_v30, 1 }
 0x425   : > { %v12724_v23 = vadd.f32 %v12440_v55, %v4080_v25  ;;  %v4083_v59 = vadd.f32 %v7228_v46, %v12560_v49  ;;  %v12734_v38 = vsel %vm701_vm0, %v4603_v11, 0.0  ;;  %v12737_v37 = vsel %vm701_vm0, %v4602_v35, %v4603_v11  ;;  %v9253_v55 = vld [vmem:[%s14320_s10 + $0x58] sm:$0xff]  }
 0x426   : > { %v9438_v13 = vpop.eup %9437  ;;  %v4765_v57 = vrot.slane %v12734_v38, 1  ;;  %v8987_v6 = vpack.i.bf16 %v12737_v37, %v12721_v30  ;;  %v4763_v2 = vrot.slane %v12737_v37, 1  ;;  %7325 = vmatprep.subr.bf16.mxu1 %v9253_v55 }
 0x427   : > { %v7030_v36 = vmul.f32 -1.442695, %v12724_v23  ;;  %v12745_v34 = vadd.f32 %v12446_v9, %v4083_v59  ;;  %v7229_v44 = vpop.f32.mrb[16].mxu0  ;;  %v4539_v50 = vmul.f32 %v9438_v13, %v4233_v22  ;;  %v9257_v13 = vld [vmem:[%s14320_s10 + $0x68] sm:$0xff]  }
 0x428   : > { %v7230_v18 = vpop.f32.mrb[17].mxu0  ;;  %v9440_v48 = vpop.eup %9439  ;;  %8988 = vrot.lane.b32.xlu0 %v8987_v6, %s9713_s19  ;;  %v12754_v22 = vsel %vm867_vm2, %v4762_v31, %v4763_v2  ;;  %v12757_v39 = vsel %vm867_vm2, %v4763_v2, %v4765_v57  ;;  %v9258_v6 = vld [vmem:[%s14320_s10 + $0x28] sm:$0xff]  }
 0x429   : > { %9441 = vpow2.f32 %v7030_v36  ;;  %v7031_v15 = vmul.f32 -1.442695, %v12745_v34  ;;  %v7231_v28 = vadd.f32 %v7230_v18, %v7229_v44  ;;  %v7232_v5 = vpop.f32.mrb[18].mxu0  ;;  %v4605_v9 = vrot.slane %v4539_v50, 7  ;;  %14637 = vst [vmem:[#allocation18_spill] sm:$0xff] %v12754_v22  ;;  %14638 = vst [vmem:[#allocation7_spill] sm:$0xff] %v12757_v39 }
 0x42a   : > { %v4540_v19 = vmul.f32 %v9440_v48, %v4236_v14  ;;  %v7233_v53 = vpop.f32.mrb[19].mxu0  ;;  %v9002_v35 = vpack.i.bf16 %v12757_v39, %v12754_v22  ;;  %v9254_v14 = vld [vmem:[%s14320_s10 + $0x18] sm:$0xff]   ;;  %v9259_v48 = vld [vmem:[%s14320_s10 + $0x70] sm:$0xff]  }
 0x42b   : > { %9443 = vpow2.f32 %v7031_v15  ;;  %v4088_v33 = vadd.f32 %v7231_v28, %v12560_v49  ;;  %v7234_v4 = vadd.f32 %v7233_v53, %v7232_v5  ;;  %v12766_v63 = vsel %vm701_vm0, 0.0, %v4605_v9  ;;  %7326 = vmatpush3.bf16.msra.mxu1 %v9254_v14 }
 0x42c   : > { %v4606_v42 = vrot.slane %v4540_v19, 7  ;;  %9003 = vrot.lane.b32.xlu1 %v9002_v35, %s9713_s19  ;;  %7327 = vmatprep.subr.bf16.mxu1 %v9255_v62  ;;  %v4767_v36 = vrot.slane %v12766_v63, 1  ;;  %v9261_v19 = vld [vmem:[%s14320_s10 + $0x78] sm:$0xff]  }
 0x42d   : > { %v12769_v25 = vadd.f32 %v12504_v29, %v4088_v33  ;;  %v4091_v46 = vadd.f32 %v7234_v4, %v12560_v49  ;;  %v9256_v29 = vld [vmem:[%s14320_s10 + $0x20] sm:$0xff]   ;;  %v9262_v4 = vld [vmem:[%s14320_s10 + $0x38] sm:$0xff]  }
 0x42e   : > { %v12777_v11 = vsel %vm701_vm0, %v4606_v42, 0.0  ;;  %v12780_v59 = vsel %vm701_vm0, %v4605_v9, %v4606_v42  ;;  %v9260_v9 = vld [vmem:[%s14320_s10 + $0x30] sm:$0xff]  }
 0x42f   : > { %v4770_v61 = vrot.slane %v12777_v11, 1  ;;  %v7032_v45 = vmul.f32 -1.442695, %v12769_v25  ;;  %v12788_v55 = vadd.f32 %v12508_v24, %v4091_v46  ;;  %v8997_v57 = vpack.i.bf16 %v12780_v59, %v12766_v63  ;;  %7328 = vmatpush3.bf16.msra.mxu1 %v9256_v29 }
 0x430   : > { %v4768_v44 = vrot.slane %v12780_v59, 1  ;;  %7329 = vmatprep.subr.bf16.mxu1 %v9257_v13 }
 0x431   : > { %9445 = vpow2.f32 %v7032_v45  ;;  %v7033_v50 = vmul.f32 -1.442695, %v12788_v55  ;;  %8998 = vrot.lane.b32.xlu0 %v8997_v57, %s9713_s19 }
 0x432   : > { %v12800_v24 = vsel %vm867_vm2, %v4767_v36, %v4768_v44  ;;  %v12803_v18 = vsel %vm867_vm2, %v4768_v44, %v4770_v61 }
 0x433   : > { %14639 = vst [vmem:[#allocation8_spill] sm:$0xff] %v12800_v24  ;;  %14640 = vst [vmem:[#allocation33_spill] sm:$0xff] %v12803_v18  ;;  %v9442_v31 = vpop.eup %9441  ;;  %9447 = vpow2.f32 %v7033_v50  ;;  %v9012_v2 = vpack.i.bf16 %v12803_v18, %v12800_v24  ;;  %7330 = vmatpush3.bf16.msra.mxu1 %v9258_v6  ;;  %v4933_v18 = vrot.slane %v12721_v30, 2 }
 0x434   : > { %v4445_v15 = vadd.f32 1.0, %v9442_v31  ;;  %7331 = vmatprep.subr.bf16.mxu1 %v9259_v48 }
 0x435   : > { %v9444_v28 = vpop.eup %9443  ;;  %9013 = vrot.lane.b32.xlu1 %v9012_v2, %s9713_s19  ;;  %v12820_v53 = vpop.f32.mrb[60].mxu1 }
 0x436   : > { %9449 = vrcp.f32 %v4445_v15  ;;  %v4446_v5 = vadd.f32 1.0, %v9444_v28  ;;  %v12822_v33 = vpop.f32.mrb[61].mxu1 }
 0x437   : > { %7332 = vmatpush3.bf16.msra.mxu1 %v9260_v9  ;;  %v12827_v42 = vpop.f32.mrb[62].mxu1 }
 0x438   : > { %9451 = vrcp.f32 %v4446_v5  ;;  %7333 = vmatprep.subr.bf16.mxu1 %v9261_v19  ;;  %v12829_v46 = vpop.f32.mrb[63].mxu1 }
 0x439   : > { %v7235_v29 = vpop.f32.mrb[20].mxu0 }
 0x43a   : > { %v7236_v45 = vpop.f32.mrb[21].mxu0 }
 0x43b   : > { %v9446_v35 = vpop.eup %9445  ;;  %7334 = vmatpush3.bf16.msra.mxu1 %v9262_v4  ;;  %v7237_v13 = vadd.f32 %v7236_v45, %v7235_v29  ;;  %v7238_v57 = vpop.f32.mrb[22].mxu0 }
 0x43c   : > { %v4447_v14 = vadd.f32 1.0, %v9446_v35  ;;  %v7239_v44 = vpop.f32.mrb[23].mxu0 }
 0x43d   : > { %v9448_v62 = vpop.eup %9447  ;;  %v4096_v6 = vadd.f32 %v7237_v13, %v12560_v49  ;;  %v7240_v31 = vadd.f32 %v7239_v44, %v7238_v57 }
 0x43e   : > { %9453 = vrcp.f32 %v4447_v14  ;;  %v4448_v61 = vadd.f32 1.0, %v9448_v62  ;;  %v12915_v52 = vpop.f32.mrb[64].mxu1 }
 0x43f   : > { %v12835_v28 = vadd.f32 %v12502_v1, %v4096_v6  ;;  %v4099_v5 = vadd.f32 %v7240_v31, %v12560_v49 }
 0x440   : > { %v9450_v36 = vpop.eup %9449  ;;  %9455 = vrcp.f32 %v4448_v61 }
 0x441   : > { %v4541_v50 = vmul.f32 %v9450_v36, %v12724_v23  ;;  %v7034_v19 = vmul.f32 -1.442695, %v12835_v28  ;;  %v12840_v4 = vadd.f32 %v12506_v47, %v4099_v5  ;;  %v7241_v35 = vpop.f32.mrb[24].mxu0 }
 0x442   : > { %v9452_v2 = vpop.eup %9451  ;;  %v7242_v14 = vpop.f32.mrb[25].mxu0 }
 0x443   : > { %v4608_v48 = vrot.slane %v4541_v50, 7  ;;  %v4542_v15 = vmul.f32 %v9452_v2, %v12745_v34  ;;  %9457 = vpow2.f32 %v7034_v19  ;;  %v7035_v1 = vmul.f32 -1.442695, %v12840_v4  ;;  %v7244_v29 = vpop.f32.mrb[26].mxu0 }
 0x444   : > { %v7243_v34 = vadd.f32 %v7242_v14, %v7241_v35  ;;  %v7245_v13 = vpop.f32.mrb[27].mxu0 }
 0x445   : > { %v4609_v9 = vrot.slane %v4542_v15, 7  ;;  %v12843_v23 = vsel %vm701_vm0, 0.0, %v4608_v48  ;;  %9459 = vpow2.f32 %v7035_v1  ;;  %v7246_v44 = vadd.f32 %v7245_v13, %v7244_v29 }
 0x446   : > { %v4104_v36 = vadd.f32 %v7243_v34, %v12560_v49  ;;  %v4772_v31 = vrot.slane %v12843_v23, 1 }
 0x447   : > { %v12846_v62 = vsel %vm701_vm0, %v4609_v9, 0.0  ;;  %v12851_v47 = vsel %vm701_vm0, %v4608_v48, %v4609_v9 }
 0x448   : > { %v9454_v61 = vpop.eup %9453  ;;  %v4775_v45 = vrot.slane %v12846_v62, 1  ;;  %v9007_v6 = vpack.i.bf16 %v12851_v47, %v12843_v23  ;;  %v4773_v2 = vrot.slane %v12851_v47, 1  ;;  %v12861_v48 = vadd.f32 %v12585_v54, %v4104_v36 }
 0x449   : > { %v4543_v57 = vmul.f32 %v9454_v61, %v12769_v25  ;;  %v4107_v25 = vadd.f32 %v7246_v44, %v12560_v49 }
 0x44a   : > { %v9456_v50 = vpop.eup %9455  ;;  %9008 = vrot.lane.b32.xlu0 %v9007_v6, %s9713_s19  ;;  %v12866_v9 = vsel %vm867_vm2, %v4772_v31, %v4773_v2  ;;  %v12869_v19 = vsel %vm867_vm2, %v4773_v2, %v4775_v45  ;;  %v7036_v1 = vmul.f32 -1.442695, %v12861_v48 }
 0x44b   : > { %v4611_v15 = vrot.slane %v4543_v57, 7  ;;  %v4544_v5 = vmul.f32 %v9456_v50, %v12788_v55  ;;  %14641 = vst [vmem:[#allocation10_spill] sm:$0xff] %v12866_v9  ;;  %14642 = vst [vmem:[#allocation34_spill] sm:$0xff] %v12869_v19  ;;  %v12876_v55 = vadd.f32 %v12589_v21, %v4107_v25  ;;  %v9022_v54 = vpack.i.bf16 %v12869_v19, %v12866_v9 }
 0x44c   : > { %9461 = vpow2.f32 %v7036_v1 }
 0x44d   : > { %v12872_v35 = vsel %vm701_vm0, 0.0, %v4611_v15  ;;  %v4612_v14 = vrot.slane %v4544_v5, 7  ;;  %v7037_v29 = vmul.f32 -1.442695, %v12876_v55  ;;  %9023 = vrot.lane.b32.xlu1 %v9022_v54, %s9713_s19  ;;  %v9458_v36 = vpop.eup %9457 }
 0x44e   : > { %v4777_v13 = vrot.slane %v12872_v35, 1  ;;  %v4449_v44 = vadd.f32 1.0, %v9458_v36 }
 0x44f   : > { %v12881_v34 = vsel %vm701_vm0, %v4612_v14, 0.0  ;;  %v12885_v61 = vsel %vm701_vm0, %v4611_v15, %v4612_v14  ;;  %9463 = vpow2.f32 %v7037_v29  ;;  %v9460_v31 = vpop.eup %9459 }
 0x450   : > { %v4780_v45 = vrot.slane %v12881_v34, 1  ;;  %v9017_v21 = vpack.i.bf16 %v12885_v61, %v12872_v35  ;;  %v4778_v57 = vrot.slane %v12885_v61, 1  ;;  %9465 = vrcp.f32 %v4449_v44 }
 0x451   : > { %v4450_v15 = vadd.f32 1.0, %v9460_v31 }
 0x452   : > { %9018 = vrot.lane.b32.xlu0 %v9017_v21, %s9713_s19  ;;  %v12895_v50 = vsel %vm867_vm2, %v4777_v13, %v4778_v57  ;;  %v12898_v6 = vsel %vm867_vm2, %v4778_v57, %v4780_v45 }
 0x453   : > { %14643 = vst [vmem:[#allocation36_spill] sm:$0xff] %v12895_v50  ;;  %14644 = vst [vmem:[#allocation24_spill] sm:$0xff] %v12898_v6  ;;  %v9032_v2 = vpack.i.bf16 %v12898_v6, %v12895_v50  ;;  %9467 = vrcp.f32 %v4450_v15 }
 0x455   : > { %9033 = vrot.lane.b32.xlu1 %v9032_v2, %s9713_s19 }
 0x456   : > { %v9462_v25 = vpop.eup %9461 }
 0x457   : > { %v7247_v5 = vpop.f32.mrb[28].mxu0  ;;  %v4451_v1 = vadd.f32 1.0, %v9462_v25 }
 0x458   : > { %v7248_v14 = vpop.f32.mrb[29].mxu0 }
 0x459   : > { %v7249_v54 = vadd.f32 %v7248_v14, %v7247_v5  ;;  %v7250_v29 = vpop.f32.mrb[30].mxu0  ;;  %v9464_v21 = vpop.eup %9463  ;;  %9469 = vrcp.f32 %v4451_v1 }
 0x45a   : > { %v7251_v13 = vpop.f32.mrb[31].mxu0  ;;  %v4452_v45 = vadd.f32 1.0, %v9464_v21  ;;  %v9466_v8 = vpop.eup %9465 }
 0x45b   : > { %v4112_v57 = vadd.f32 %v7249_v54, %v12560_v49  ;;  %v7252_v36 = vadd.f32 %v7251_v13, %v7250_v29  ;;  %v4545_v2 = vmul.f32 %v9466_v8, %v12835_v28  ;;  %v8984_v1 = vpop.permute.xlu1 %8983 }
 0x45c   : > { %9471 = vrcp.f32 %v4452_v45  ;;  %v8986_v13 = vunpack.i.h.bf16 %v8984_v1 }
 0x45d   : > { %v12905_v44 = vadd.f32 %v12581_v16, %v4112_v57  ;;  %v4115_v31 = vadd.f32 %v7252_v36, %v12560_v49  ;;  %v9468_v15 = vpop.eup %9467  ;;  %v4614_v21 = vrot.slane %v4545_v2, 7  ;;  %v8985_v36 = vunpack.i.l.bf16 %v8984_v1 }
 0x45e   : > { %v4546_v54 = vmul.f32 %v9468_v15, %v12840_v4  ;;  %v12921_v4 = vpop.f32.mrb[65].mxu1 }
 0x45f   : > { %v7038_v5 = vmul.f32 -1.442695, %v12905_v44  ;;  %v12911_v25 = vadd.f32 %v12587_v27, %v4115_v31  ;;  %v7253_v14 = vpop.f32.mrb[32].mxu0  ;;  %v12918_v27 = vsel %vm701_vm0, 0.0, %v4614_v21 }
 0x460   : > { %v7254_v29 = vpop.f32.mrb[33].mxu0  ;;  %v4615_v8 = vrot.slane %v4546_v54, 7 }
 0x461   : > { %9473 = vpow2.f32 %v7038_v5  ;;  %v7039_v16 = vmul.f32 -1.442695, %v12911_v25  ;;  %v7255_v45 = vadd.f32 %v7254_v29, %v7253_v14  ;;  %v7256_v57 = vpop.f32.mrb[34].mxu0  ;;  %v14645_v14 = vld [vmem:[#allocation5_spill] sm:$0xff] }
 0x462   : > { %v7257_v28 = vpop.f32.mrb[35].mxu0  ;;  %v12924_v15 = vsel %vm701_vm0, %v4615_v8, 0.0  ;;  %v12927_v5 = vsel %vm701_vm0, %v4614_v21, %v4615_v8  ;;  %v5278_v1 = vsel %vm550_vm4, %v14645_v14, %v8986_v13  ;;  %v4782_v8 = vrot.slane %v12918_v27, 1 }
 0x463   : > { %9475 = vpow2.f32 %v7039_v16  ;;  %v4120_v31 = vadd.f32 %v7255_v45, %v12560_v49  ;;  %v7258_v2 = vadd.f32 %v7257_v28, %v7256_v57  ;;  %v9470_v29 = vpop.eup %9469  ;;  %v4785_v51 = vrot.slane %v12924_v15, 1  ;;  %v14646_v57 = vld [vmem:[#allocation6_spill] sm:$0xff] }
 0x464   : > { %v5277_v28 = vsel %vm550_vm4, %v14646_v57, %v8985_v36  ;;  %v4547_v6 = vmul.f32 %v9470_v29, %v12861_v48  ;;  %v9027_v21 = vpack.i.bf16 %v12927_v5, %v12918_v27  ;;  %v4783_v13 = vrot.slane %v12927_v5, 1 }
 0x465   : > { %v8979_v54 = vpop.permute.xlu0 %8978  ;;  %v12933_v16 = vadd.f32 %v12685_v10, %v4120_v31  ;;  %v4123_v45 = vadd.f32 %v7258_v2, %v12560_v49 }
 0x466   : > { %v9472_v14 = vpop.eup %9471  ;;  %v8981_v31 = vunpack.i.h.bf16 %v8979_v54  ;;  %v8980_v49 = vunpack.i.l.bf16 %v8979_v54  ;;  %v4617_v2 = vrot.slane %v4547_v6, 7  ;;  %9028 = vrot.lane.b32.xlu0 %v9027_v21, %s9713_s19  ;;  %v12950_v48 = vsel %vm867_vm2, %v4782_v8, %v4783_v13 }
 0x467   : > { %v7040_v50 = vmul.f32 -1.442695, %v12933_v16  ;;  %v12945_v10 = vadd.f32 %v12689_v17, %v4123_v45  ;;  %v4548_v36 = vmul.f32 %v9472_v14, %v12876_v55  ;;  %14647 = vst [vmem:[#allocation35_spill] sm:$0xff] %v12950_v48  ;;  %v12953_v29 = vsel %vm867_vm2, %v4783_v13, %v4785_v51  ;;  %v12958_v45 = vpop.f32.mrb[66].mxu1  ;;  %v9263_v13 = vld [vmem:[%s14320_s10 + $0xc0] sm:$0xff]  }
 0x468   : > { %14648 = vst [vmem:[#allocation48_spill] sm:$0xff] %v12953_v29  ;;  %v9042_v17 = vpack.i.bf16 %v12953_v29, %v12950_v48  ;;  %v12961_v6 = vsel %vm701_vm0, 0.0, %v4617_v2  ;;  %v5309_v54 = vsel %vm550_vm4, %v14614_v41, %v8980_v49  ;;  %v12965_v21 = vpop.f32.mrb[67].mxu1  ;;  %v12967_v51 = vpack.c.bf16 %v5278_v1, %v5277_v28  ;;  %7431 = vmatprep.subr.bf16.mxu0 %v9263_v13  ;;  %v9266_v13 = vld [vmem:[%s14320_s10 + $0x88] sm:$0xff]  }
 0x469   : > { %9477 = vpow2.f32 %v7040_v50  ;;  %v7041_v57 = vmul.f32 -1.442695, %v12945_v10  ;;  %v4618_v55 = vrot.slane %v4548_v36, 7  ;;  %v5310_v50 = vsel %vm550_vm4, %v14615_v20, %v8981_v31 }
 0x46a   : > { %14649 = vst [vmem:[#allocation47_spill] sm:$0xff] %v12967_v51  ;;  %9043 = vrot.lane.b32.xlu1 %v9042_v17, %s9713_s19  ;;  %v5376_v49 = vpack.c.bf16 %v5310_v50, %v5309_v54  ;;  %v4787_v20 = vrot.slane %v12961_v6, 1  ;;  %v9265_v50 = vld [vmem:[%s14320_s10 + $0xc8] sm:$0xff]  }
 0x46b   : > { %v9474_v8 = vpop.eup %9473  ;;  %9479 = vpow2.f32 %v7041_v57  ;;  %v12976_v14 = vsel %vm701_vm0, %v4618_v55, 0.0  ;;  %v12979_v41 = vsel %vm701_vm0, %v4617_v2, %v4618_v55 }
 0x46c   : > { %v4453_v36 = vadd.f32 1.0, %v9474_v8  ;;  %v4790_v1 = vrot.slane %v12976_v14, 1  ;;  %v9037_v28 = vpack.i.bf16 %v12979_v41, %v12961_v6  ;;  %v4788_v31 = vrot.slane %v12979_v41, 1  ;;  %5813 = vmatprep.mubr.bf16.mxu1 %v5376_v49  ;;  %v9264_v8 = vld [vmem:[%s14320_s10 + $0x80] sm:$0xff]   ;;  %v9267_v49 = vld [vmem:[%s14320_s10 + $0xd0] sm:$0xff]  }
 0x46d   : > { %v9476_v57 = vpop.eup %9475  ;;  %5814 = vmatmul.mubr.bf16.vlgmr.msra.gmra.mrb[68].mxu1 %v12967_v51  ;;  %7432 = vmatpush3.bf16.msra.mxu0 %v9264_v8 }
 0x46e   : > { %9481 = vrcp.f32 %v4453_v36  ;;  %v4454_v17 = vadd.f32 1.0, %v9476_v57  ;;  %9038 = vrot.lane.b32.xlu0 %v9037_v28, %s9713_s19  ;;  %v12988_v2 = vsel %vm867_vm2, %v4787_v20, %v4788_v31  ;;  %v12991_v55 = vsel %vm867_vm2, %v4788_v31, %v4790_v1  ;;  %7433 = vmatprep.subr.bf16.mxu0 %v9265_v50  ;;  %v9272_v1 = vld [vmem:[%s14320_s10 + $0x100] sm:$0xff]   ;;  %v9268_v31 = vld [vmem:[%s14320_s10 + $0x90] sm:$0xff]  }
 0x46f   : > { %14650 = vst [vmem:[#allocation37_spill] sm:$0xff] %v12988_v2  ;;  %14651 = vst [vmem:[#allocation9_spill] sm:$0xff] %v12991_v55  ;;  %v9052_v54 = vpack.i.bf16 %v12991_v55, %v12988_v2  ;;  %7667 = vmatprep.subr.bf16.mxu1 %v9272_v1 }
 0x470   : > { %9483 = vrcp.f32 %v4454_v17  ;;  %v9269_v17 = vld [vmem:[%s14320_s10 + $0xd8] sm:$0xff]   ;;  %7668 = vmatpush3.bf16.msra.mxu1 %v9272_v1  ;;  %v4931_v1 = vrot.slane %v12659_v12, 2  ;;  %v13041_v12 = vld [vmem:[%s14319_s9] ss:$0 sm:$0xff] }
 0x471   : > { %9053 = vrot.lane.b32.xlu1 %v9052_v54, %s9713_s19  ;;  %7434 = vmatpush3.bf16.msra.mxu0 %v9266_v13  ;;  %v9270_v13 = vld [vmem:[%s14320_s10 + $0x98] sm:$0xff]  }
 0x472   : > { %7435 = vmatprep.subr.bf16.mxu0 %v9267_v49  ;;  %v9271_v49 = vld [vmem:[%s14320_s10 + $0xe0] sm:$0xff]  }
 0x473   : > { %v9478_v36 = vpop.eup %9477 }
 0x474   : > { %v4455_v57 = vadd.f32 1.0, %v9478_v36 }
 0x475   : > { %v9480_v28 = vpop.eup %9479  ;;  %7436 = vmatpush3.bf16.msra.mxu0 %v9268_v31 }
 0x476   : > { %9485 = vrcp.f32 %v4455_v57  ;;  %v4456_v20 = vadd.f32 1.0, %v9480_v28  ;;  %7437 = vmatprep.subr.bf16.mxu0 %v9269_v17  ;;  %v9273_v17 = vld [vmem:[%s14320_s10 + $0xa0] sm:$0xff]  }
 0x478   : > { %v9482_v54 = vpop.eup %9481  ;;  %9487 = vrcp.f32 %v4456_v20 }
 0x479   : > { %v4549_v8 = vmul.f32 %v9482_v54, %v12905_v44  ;;  %v4929_v44 = vrot.slane %v12662_v0, 2  ;;  %7438 = vmatpush3.bf16.msra.mxu0 %v9270_v13  ;;  %v9274_v13 = vld [vmem:[%s14320_s10 + $0xe8] sm:$0xff]  }
 0x47a   : > { %v9484_v50 = vpop.eup %9483  ;;  %7439 = vmatprep.subr.bf16.mxu0 %v9271_v49 }
 0x47b   : > { %v4620_v36 = vrot.slane %v4549_v8, 7  ;;  %v4550_v57 = vmul.f32 %v9484_v50, %v12911_v25  ;;  %v7259_v28 = vpop.f32.mrb[36].mxu0  ;;  %v4928_v25 = vrot.slane %v12651_v58, 2  ;;  %v13056_v19 = vsel %vm1044_vm1, %v4929_v44, %v4931_v1  ;;  %v9275_v1 = vld [vmem:[%s14320_s10 + $0xa8] sm:$0xff]  }
 0x47c   : > { %v7260_v20 = vpop.f32.mrb[37].mxu0 }
 0x47d   : > { %v4621_v54 = vrot.slane %v4550_v57, 7  ;;  %v7261_v31 = vadd.f32 %v7260_v20, %v7259_v28  ;;  %v7262_v51 = vpop.f32.mrb[38].mxu0  ;;  %v13029_v55 = vsel %vm701_vm0, 0.0, %v4620_v36  ;;  %v13053_v48 = vsel %vm1044_vm1, %v4928_v25, %v4929_v44  ;;  %7440 = vmatpush3.bf16.msra.mxu0 %v9273_v17 }
 0x47e   : > { %v7263_v8 = vpop.f32.mrb[39].mxu0  ;;  %v4792_v25 = vrot.slane %v13029_v55, 1  ;;  %7441 = vmatprep.subr.bf16.mxu0 %v9274_v13  ;;  %v4936_v17 = vrot.slane %v12734_v38, 2 }
 0x47f   : > { %v13036_v50 = vsel %vm701_vm0, %v4621_v54, 0.0  ;;  %v4128_v57 = vadd.f32 %v13041_v12, %v7261_v31  ;;  %v7264_v28 = vadd.f32 %v7263_v8, %v7262_v51  ;;  %v13045_v20 = vsel %vm701_vm0, %v4620_v36, %v4621_v54 }
 0x480   : > { %v9486_v2 = vpop.eup %9485  ;;  %v9047_v29 = vpack.i.bf16 %v13045_v20, %v13029_v55  ;;  %v4793_v51 = vrot.slane %v13045_v20, 1  ;;  %v4795_v36 = vrot.slane %v13036_v50, 1 }
 0x481   : > { %v4551_v49 = vmul.f32 %v9486_v2, %v12933_v16  ;;  %v13062_v54 = vadd.f32 %v12683_v7, %v4128_v57  ;;  %v4131_v31 = vadd.f32 %v13041_v12, %v7264_v28  ;;  %v9057_v28 = vpack.i.bf16 %v13056_v19, %v13053_v48  ;;  %7442 = vmatpush3.bf16.msra.mxu0 %v9275_v1 }
 0x482   : > { %v9488_v8 = vpop.eup %9487  ;;  %9048 = vrot.lane.b32.xlu0 %v9047_v29, %s9713_s19  ;;  %v9276_v29 = vld [vmem:[%s14320_s10 + $0xf0] sm:$0xff]  }
 0x483   : > { %v4623_v44 = vrot.slane %v4551_v49, 7  ;;  %v4552_v9 = vmul.f32 %v9488_v8, %v12945_v10  ;;  %v7042_v16 = vmul.f32 -1.442695, %v13062_v54  ;;  %v13073_v7 = vadd.f32 %v12687_v26, %v4131_v31  ;;  %v7265_v2 = vpop.f32.mrb[40].mxu0  ;;  %7443 = vmatprep.subr.bf16.mxu0 %v9276_v29 }
 0x484   : > { %v7266_v57 = vpop.f32.mrb[41].mxu0  ;;  %v13082_v49 = vsel %vm867_vm2, %v4792_v25, %v4793_v51  ;;  %v4934_v10 = vrot.slane %v12737_v37, 2  ;;  %v13087_v31 = vsel %vm867_vm2, %v4793_v51, %v4795_v36  ;;  %v9277_v51 = vld [vmem:[%s14320_s10 + $0xb0] sm:$0xff]  }
 0x485   : > { %14652 = vst [vmem:[#allocation44_spill] sm:$0xff] %v13082_v49  ;;  %v4624_v8 = vrot.slane %v4552_v9, 7  ;;  %9489 = vpow2.f32 %v7042_v16  ;;  %v7043_v26 = vmul.f32 -1.442695, %v13073_v7  ;;  %v7268_v13 = vpop.f32.mrb[42].mxu0  ;;  %14653 = vst [vmem:[#allocation41_spill] sm:$0xff] %v13087_v31  ;;  %v7267_v24 = vadd.f32 %v7266_v57, %v7265_v2  ;;  %7444 = vmatpush3.bf16.msra.mxu0 %v9277_v51 }
 0x486   : > { %v13091_v38 = vsel %vm701_vm0, 0.0, %v4623_v44  ;;  %v7269_v39 = vpop.f32.mrb[43].mxu0  ;;  %9058 = vrot.lane.b32.xlu0 %v9057_v28, %s9713_s19  ;;  %v9067_v2 = vpack.i.bf16 %v13087_v31, %v13082_v49  ;;  %v13109_v57 = vsel %vm1044_vm1, %v4933_v18, %v4934_v10  ;;  %v13120_v28 = vsel %vm1044_vm1, %v4934_v10, %v4936_v17  ;;  %v9279_v17 = vld [vmem:[%s14320_s10 + $0xb8] sm:$0xff]  }
 0x487   : > { %14654 = vst [vmem:[#allocation46_spill] sm:$0xff] %v13091_v38  ;;  %v13095_v25 = vsel %vm701_vm0, %v4624_v8, 0.0  ;;  %9491 = vpow2.f32 %v7043_v26  ;;  %v7270_v9 = vadd.f32 %v7269_v39, %v7268_v13  ;;  %v13098_v16 = vsel %vm701_vm0, %v4623_v44, %v4624_v8  ;;  %v9278_v39 = vld [vmem:[%s14320_s10 + $0xf8] sm:$0xff]   ;;  %v9280_v44 = vld [vmem:[%s14320_s10 + $0x108] sm:$0xff]  }
 0x488   : > { %14655 = vst [vmem:[#allocation45_spill] sm:$0xff] %v13098_v16  ;;  %v4136_v36 = vadd.f32 %v13041_v12, %v7267_v24  ;;  %v9062_v1 = vpack.i.bf16 %v13098_v16, %v13091_v38  ;;  %v4800_v29 = vrot.slane %v13095_v25, 1  ;;  %v4798_v8 = vrot.slane %v13098_v16, 1  ;;  %7445 = vmatprep.subr.bf16.mxu0 %v9278_v39  ;;  %7669 = vmatprep.subr.bf16.mxu1 %v9280_v44 }
 0x489   : > { %v4139_v24 = vadd.f32 %v13041_v12, %v7270_v9  ;;  %v4797_v13 = vrot.slane %v13091_v38, 1  ;;  %7670 = vmatpush3.bf16.msra.mxu1 %v9280_v44  ;;  %7446 = vmatpush3.bf16.msra.mxu0 %v9279_v17  ;;  %v4938_v17 = vrot.slane %v12766_v63, 2 }
 0x48a   : > { %v13124_v18 = vadd.f32 %v12710_v3, %v4136_v36  ;;  %9068 = vrot.lane.b32.xlu0 %v9067_v2, %s9713_s19  ;;  %9063 = vrot.lane.b32.xlu1 %v9062_v1, %s9713_s19  ;;  %v9072_v3 = vpack.i.bf16 %v13120_v28, %v13109_v57 }
 0x48b   : > { %v13129_v26 = vadd.f32 %v12714_v43, %v4139_v24  ;;  %v13140_v36 = vsel %vm867_vm2, %v4797_v13, %v4798_v8  ;;  %v13143_v43 = vsel %vm867_vm2, %v4798_v8, %v4800_v29  ;;  %v8994_v13 = vpop.permute.xlu1 %8993 }
 0x48c   : > { %v7044_v10 = vmul.f32 -1.442695, %v13124_v18  ;;  %14656 = vst [vmem:[#allocation43_spill] sm:$0xff] %v13140_v36  ;;  %14657 = vst [vmem:[#allocation42_spill] sm:$0xff] %v13143_v43  ;;  %v9082_v1 = vpack.i.bf16 %v13143_v43, %v13140_v36  ;;  %v8995_v31 = vunpack.i.l.bf16 %v8994_v13 }
 0x48d   : > { %v7045_v9 = vmul.f32 -1.442695, %v13129_v26 }
 0x48e   : > { %9493 = vpow2.f32 %v7044_v10  ;;  %9073 = vrot.lane.b32.xlu1 %v9072_v3, %s9713_s19  ;;  %v4939_v10 = vrot.slane %v12780_v59, 2  ;;  %v8996_v3 = vunpack.i.h.bf16 %v8994_v13 }
 0x48f   : > { %v9490_v51 = vpop.eup %9489  ;;  %9495 = vpow2.f32 %v7045_v9 }
 0x490   : > { %v4457_v2 = vadd.f32 1.0, %v9490_v51  ;;  %v4941_v51 = vrot.slane %v12777_v11, 2  ;;  %v13154_v32 = vsel %vm1044_vm1, %v4938_v17, %v4939_v10 }
 0x491   : > { %v9492_v39 = vpop.eup %9491 }
 0x492   : > { %9497 = vrcp.f32 %v4457_v2  ;;  %v4458_v24 = vadd.f32 1.0, %v9492_v39  ;;  %9083 = vrot.lane.b32.xlu1 %v9082_v1, %s9713_s19 }
 0x494   : > { %9499 = vrcp.f32 %v4458_v24 }
 0x498   : > { %v9494_v29 = vpop.eup %9493  ;;  %v7271_v2 = vpop.f32.mrb[44].mxu0 }
 0x499   : > { %v9496_v8 = vpop.eup %9495  ;;  %v4459_v44 = vadd.f32 1.0, %v9494_v29  ;;  %v7272_v36 = vpop.f32.mrb[45].mxu0 }
 0x49a   : > { %v4460_v9 = vadd.f32 1.0, %v9496_v8  ;;  %v8989_v43 = vpop.permute.xlu0 %8988  ;;  %v7273_v29 = vadd.f32 %v7272_v36, %v7271_v2  ;;  %v7274_v22 = vpop.f32.mrb[46].mxu0  ;;  %v13166_v2 = vsel %vm1044_vm1, %v4939_v10, %v4941_v51 }
 0x49b   : > { %9501 = vrcp.f32 %v4459_v44  ;;  %v8991_v1 = vunpack.i.h.bf16 %v8989_v43  ;;  %v8990_v24 = vunpack.i.l.bf16 %v8989_v43  ;;  %v7275_v56 = vpop.f32.mrb[47].mxu0  ;;  %v5279_v43 = vsel %vm550_vm4, %v12651_v58, %v8995_v31 }
 0x49c   : > { %v9498_v39 = vpop.eup %9497  ;;  %9503 = vrcp.f32 %v4460_v9  ;;  %v4144_v38 = vadd.f32 %v13041_v12, %v7273_v29 }
 0x49d   : > { %v4553_v49 = vmul.f32 %v9498_v39, %v13062_v54  ;;  %v5311_v11 = vsel %vm550_vm4, %v13053_v48, %v8990_v24  ;;  %v5312_v44 = vsel %vm550_vm4, %v13056_v19, %v8991_v1  ;;  %v5280_v54 = vsel %vm550_vm4, %v12662_v0, %v8996_v3 }
 0x49e   : > { %v9500_v13 = vpop.eup %9499  ;;  %v9004_v8 = vpop.permute.xlu1 %9003  ;;  %v7276_v48 = vadd.f32 %v7275_v56, %v7274_v22  ;;  %v5381_v24 = vpack.c.bf16 %v5312_v44, %v5311_v11  ;;  %v5380_v19 = vpack.c.bf16 %v5280_v54, %v5279_v43 }
 0x49f   : > { %v4554_v36 = vmul.f32 %v9500_v13, %v13073_v7  ;;  %v9006_v9 = vunpack.i.h.bf16 %v9004_v8  ;;  %v9005_v17 = vunpack.i.l.bf16 %v9004_v8  ;;  %v4626_v39 = vrot.slane %v4553_v49, 7 }
 0x4a0   : > { %v13174_v7 = vadd.f32 %v12708_v40, %v4144_v38  ;;  %v4147_v31 = vadd.f32 %v13041_v12, %v7276_v48  ;;  %5821 = vmatprep.mubr.bf16.mxu1 %v5381_v24  ;;  %v7277_v22 = vpop.f32.mrb[48].mxu0 }
 0x4a1   : > { %v4627_v16 = vrot.slane %v4554_v36, 7  ;;  %v5281_v58 = vsel %vm550_vm4, %v12721_v30, %v9005_v17  ;;  %v5282_v0 = vsel %vm550_vm4, %v12737_v37, %v9006_v9  ;;  %5822 = vmatmul.mubr.bf16.gmra.mrb[72].mxu1 %v5380_v19  ;;  %v9087_v30 = vpack.i.bf16 %v13166_v2, %v13154_v32  ;;  %v7278_v1 = vpop.f32.mrb[49].mxu0 }
 0x4a2   : > { %v5378_v10 = vpack.c.bf16 %v5282_v0, %v5281_v58  ;;  %v13186_v37 = vsel %vm701_vm0, 0.0, %v4626_v39  ;;  %v7046_v38 = vmul.f32 -1.442695, %v13174_v7  ;;  %v13191_v51 = vadd.f32 %v12712_v60, %v4147_v31  ;;  %v7280_v11 = vpop.f32.mrb[50].mxu0 }
 0x4a3   : > { %v13178_v49 = vsel %vm701_vm0, %v4627_v16, 0.0  ;;  %v8999_v56 = vpop.permute.xlu0 %8998  ;;  %v13181_v3 = vsel %vm701_vm0, %v4626_v39, %v4627_v16  ;;  %v7279_v16 = vadd.f32 %v7278_v1, %v7277_v22  ;;  %v7281_v9 = vpop.f32.mrb[51].mxu0  ;;  %v4946_v17 = vrot.slane %v12846_v62, 2 }
 0x4a4   : > { %v4805_v40 = vrot.slane %v13178_v49, 1  ;;  %5974 = vmatprep.mubr.bf16.mxu0 %v5378_v10  ;;  %v9001_v13 = vunpack.i.h.bf16 %v8999_v56  ;;  %v9000_v8 = vunpack.i.l.bf16 %v8999_v56  ;;  %v9077_v44 = vpack.i.bf16 %v13181_v3, %v13186_v37 }
 0x4a5   : > { %v9502_v29 = vpop.eup %9501  ;;  %9505 = vpow2.f32 %v7046_v38  ;;  %v7047_v36 = vmul.f32 -1.442695, %v13191_v51  ;;  %v4803_v60 = vrot.slane %v13181_v3, 1  ;;  %v4152_v48 = vadd.f32 %v13041_v12, %v7279_v16 }
 0x4a6   : > { %v9504_v43 = vpop.eup %9503  ;;  %v4555_v54 = vmul.f32 %v9502_v29, %v13124_v18  ;;  %9078 = vrot.lane.b32.xlu0 %v9077_v44, %s9713_s19  ;;  %v4802_v24 = vrot.slane %v13186_v37, 1  ;;  %v7282_v58 = vadd.f32 %v7281_v9, %v7280_v11  ;;  %v5313_v18 = vsel %vm550_vm4, %v13109_v57, %v9000_v8 }
 0x4a7   : > { %v4556_v39 = vmul.f32 %v9504_v43, %v13129_v26  ;;  %9507 = vpow2.f32 %v7047_v36  ;;  %v13206_v31 = vadd.f32 %v12822_v33, %v4152_v48  ;;  %v5314_v62 = vsel %vm550_vm4, %v13120_v28, %v9001_v13 }
 0x4a8   : > { %v4629_v19 = vrot.slane %v4555_v54, 7  ;;  %v4944_v26 = vrot.slane %v12851_v47, 2  ;;  %v4155_v56 = vadd.f32 %v13041_v12, %v7282_v58  ;;  %v5385_v22 = vpack.c.bf16 %v5314_v62, %v5313_v18  ;;  %v9014_v62 = vpop.permute.xlu1 %9013 }
 0x4a9   : > { %v4630_v0 = vrot.slane %v4556_v39, 7  ;;  %v13213_v38 = vsel %vm867_vm2, %v4802_v24, %v4803_v60  ;;  %v13216_v1 = vsel %vm867_vm2, %v4803_v60, %v4805_v40  ;;  %v4943_v29 = vrot.slane %v12843_v23, 2  ;;  %v9281_v40 = vld [vmem:[%s14320_s10 + $0x110] sm:$0xff]  }
 0x4aa   : > { %14658 = vst [vmem:[#allocation53_spill] sm:$0xff] %v13213_v38  ;;  %14659 = vst [vmem:[#allocation58_spill] sm:$0xff] %v13216_v1  ;;  %v7048_v33 = vmul.f32 -1.442695, %v13206_v31  ;;  %9088 = vrot.lane.b32.xlu0 %v9087_v30, %s9713_s19  ;;  %v13225_v13 = vsel %vm701_vm0, 0.0, %v4629_v19  ;;  %v13228_v16 = vadd.f32 %v12829_v46, %v4155_v56  ;;  %5829 = vmatprep.mubr.bf16.mxu1 %v5385_v22  ;;  %v4949_v22 = vrot.slane %v12885_v61, 2 }
 0x4ab   : > { %v13220_v8 = vsel %vm701_vm0, %v4630_v0, 0.0  ;;  %v13231_v11 = vsel %vm701_vm0, %v4629_v19, %v4630_v0  ;;  %5830 = vmatmul.mubr.bf16.gmra.mrb[76].mxu1 %v5378_v10  ;;  %v9097_v44 = vpack.i.bf16 %v13216_v1, %v13213_v38  ;;  %v13241_v43 = vsel %vm1044_vm1, %v4943_v29, %v4944_v26  ;;  %7671 = vmatprep.subr.bf16.mxu1 %v9281_v40 }
 0x4ac   : > { %9509 = vpow2.f32 %v7048_v33  ;;  %v9092_v30 = vpack.i.bf16 %v13231_v11, %v13225_v13  ;;  %14660 = vst [vmem:[#allocation5_spill] sm:$0xff] %v13241_v43  ;;  %v4810_v46 = vrot.slane %v13220_v8, 1  ;;  %v7049_v54 = vmul.f32 -1.442695, %v13228_v16  ;;  %7672 = vmatpush3.bf16.msra.mxu1 %v9281_v40 }
 0x4ad   : > { %v13246_v36 = vsel %vm1044_vm1, %v4944_v26, %v4946_v17  ;;  %v4808_v9 = vrot.slane %v13231_v11, 1  ;;  %v4807_v60 = vrot.slane %v13225_v13, 1  ;;  %v4948_v33 = vrot.slane %v12872_v35, 2 }
 0x4ae   : > { %14661 = vst [vmem:[#allocation6_spill] sm:$0xff] %v13246_v36  ;;  %9098 = vrot.lane.b32.xlu0 %v9097_v44, %s9713_s19  ;;  %9093 = vrot.lane.b32.xlu1 %v9092_v30, %s9713_s19  ;;  %9511 = vpow2.f32 %v7049_v54  ;;  %v9102_v48 = vpack.i.bf16 %v13246_v36, %v13241_v43  ;;  %v4951_v40 = vrot.slane %v12881_v34, 2  ;;  %v9016_v30 = vunpack.i.h.bf16 %v9014_v62 }
 0x4af   : > { %v9506_v10 = vpop.eup %9505  ;;  %v13255_v17 = vsel %vm867_vm2, %v4807_v60, %v4808_v9  ;;  %v13258_v19 = vsel %vm867_vm2, %v4808_v9, %v4810_v46  ;;  %v9015_v46 = vunpack.i.l.bf16 %v9014_v62 }
 0x4b0   : > { %v4461_v39 = vadd.f32 1.0, %v9506_v10  ;;  %14662 = vst [vmem:[#allocation63_spill] sm:$0xff] %v13255_v17  ;;  %14663 = vst [vmem:[#allocation64_spill] sm:$0xff] %v13258_v19  ;;  %v9112_v18 = vpack.i.bf16 %v13258_v19, %v13255_v17  ;;  %v13273_v19 = vsel %vm1044_vm1, %v4949_v22, %v4951_v40 }
 0x4b1   : > { %v9508_v24 = vpop.eup %9507  ;;  %14665 = vst [vmem:[#allocation66_spill] sm:$0xff] %v13273_v19 }
 0x4b2   : > { %9513 = vrcp.f32 %v4461_v39  ;;  %v4462_v58 = vadd.f32 1.0, %v9508_v24  ;;  %9103 = vrot.lane.b32.xlu1 %v9102_v48, %s9713_s19 }
 0x4b4   : > { %9515 = vrcp.f32 %v4462_v58  ;;  %v7283_v56 = vpop.f32.mrb[52].mxu0 }
 0x4b5   : > { %v7284_v44 = vpop.f32.mrb[53].mxu0 }
 0x4b6   : > { %v9510_v0 = vpop.eup %9509  ;;  %9113 = vrot.lane.b32.xlu1 %v9112_v18, %s9713_s19  ;;  %v7285_v9 = vadd.f32 %v7284_v44, %v7283_v56  ;;  %v7286_v10 = vpop.f32.mrb[54].mxu0  ;;  %v13269_v18 = vsel %vm1044_vm1, %v4948_v33, %v4949_v22  ;;  %v5283_v44 = vsel %vm550_vm4, %v12766_v63, %v9015_v46  ;;  %v5284_v33 = vsel %vm550_vm4, %v12780_v59, %v9016_v30 }
 0x4b7   : > { %v4463_v26 = vadd.f32 1.0, %v9510_v0  ;;  %v7287_v60 = vpop.f32.mrb[55].mxu0  ;;  %14664 = vst [vmem:[#allocation65_spill] sm:$0xff] %v13269_v18 }
 0x4b8   : > { %v9512_v29 = vpop.eup %9511  ;;  %v4160_v48 = vadd.f32 %v13041_v12, %v7285_v9  ;;  %v7288_v58 = vadd.f32 %v7287_v60, %v7286_v10 }
 0x4b9   : > { %9517 = vrcp.f32 %v4463_v26  ;;  %v4464_v54 = vadd.f32 1.0, %v9512_v29 }
 0x4ba   : > { %v13276_v56 = vadd.f32 %v12820_v53, %v4160_v48  ;;  %v4163_v29 = vadd.f32 %v13041_v12, %v7288_v58 }
 0x4bb   : > { %9519 = vrcp.f32 %v4464_v54 }
 0x4bc   : > { %v9514_v39 = vpop.eup %9513  ;;  %v9009_v24 = vpop.permute.xlu0 %9008  ;;  %v7050_v53 = vmul.f32 -1.442695, %v13276_v56  ;;  %v13290_v40 = vadd.f32 %v12827_v42, %v4163_v29  ;;  %v4954_v42 = vrot.slane %v12927_v5, 2 }
 0x4bd   : > { %v4557_v0 = vmul.f32 %v9514_v39, %v13174_v7  ;;  %v9011_v34 = vunpack.i.h.bf16 %v9009_v24  ;;  %v9010_v26 = vunpack.i.l.bf16 %v9009_v24  ;;  %v7289_v60 = vpop.f32.mrb[56].mxu0  ;;  %v13292_v39 = vpack.c.bf16 %v5284_v33, %v5283_v44 }
 0x4be   : > { %v9516_v62 = vpop.eup %9515  ;;  %v7290_v59 = vpop.f32.mrb[57].mxu0  ;;  %9521 = vpow2.f32 %v7050_v53  ;;  %v7051_v30 = vmul.f32 -1.442695, %v13290_v40 }
 0x4bf   : > { %v4632_v54 = vrot.slane %v4557_v0, 7  ;;  %v4558_v7 = vmul.f32 %v9516_v62, %v13191_v51  ;;  %v5315_v9 = vsel %vm550_vm4, %v13154_v32, %v9010_v26  ;;  %v5316_v22 = vsel %vm550_vm4, %v13166_v2, %v9011_v34  ;;  %v9024_v46 = vpop.permute.xlu1 %9023  ;;  %v7292_v58 = vpop.f32.mrb[58].mxu0 }
 0x4c0   : > { %v5389_v10 = vpack.c.bf16 %v5316_v22, %v5315_v9  ;;  %v9117_v51 = vpack.i.bf16 %v13273_v19, %v13269_v18  ;;  %v7291_v48 = vadd.f32 %v7290_v59, %v7289_v60  ;;  %v7293_v29 = vpop.f32.mrb[59].mxu0  ;;  %9523 = vpow2.f32 %v7051_v30 }
 0x4c1   : > { %v4633_v63 = vrot.slane %v4558_v7, 7  ;;  %v13299_v34 = vsel %vm701_vm0, 0.0, %v4632_v54  ;;  %v9026_v7 = vunpack.i.h.bf16 %v9024_v46  ;;  %v9025_v9 = vunpack.i.l.bf16 %v9024_v46 }
 0x4c2   : > { %5837 = vmatprep.mubr.bf16.mxu1 %v5389_v10  ;;  %v4168_v22 = vadd.f32 %v13041_v12, %v7291_v48  ;;  %v7294_v53 = vadd.f32 %v7293_v29, %v7292_v58 }
 0x4c3   : > { %v9518_v0 = vpop.eup %9517  ;;  %5838 = vmatmul.mubr.bf16.gmra.mrb[80].mxu1 %v13292_v39  ;;  %v13303_v44 = vsel %vm701_vm0, %v4632_v54, %v4633_v63  ;;  %v4956_v54 = vrot.slane %v12924_v15, 2  ;;  %v13314_v17 = vsel %vm701_vm0, %v4633_v63, 0.0  ;;  %v5285_v15 = vsel %vm550_vm4, %v12843_v23, %v9025_v9 }
 0x4c4   : > { %v9019_v24 = vpop.permute.xlu0 %9018  ;;  %v4559_v33 = vmul.f32 %v9518_v0, %v13206_v31  ;;  %v9107_v10 = vpack.i.bf16 %v13303_v44, %v13299_v34  ;;  %v13320_v30 = vadd.f32 %v12921_v4, %v4168_v22  ;;  %v4171_v48 = vadd.f32 %v13041_v12, %v7294_v53 }
 0x4c5   : > { %v9021_v26 = vunpack.i.h.bf16 %v9019_v24  ;;  %v9020_v62 = vunpack.i.l.bf16 %v9019_v24  ;;  %v9520_v59 = vpop.eup %9519  ;;  %v4953_v24 = vrot.slane %v12918_v27, 2  ;;  %v5286_v63 = vsel %vm550_vm4, %v12851_v47, %v9026_v7 }
 0x4c6   : > { %v4560_v46 = vmul.f32 %v9520_v59, %v13228_v16  ;;  %9108 = vrot.lane.b32.xlu0 %v9107_v10, %s9713_s19  ;;  %v4635_v0 = vrot.slane %v4559_v33, 7  ;;  %v4815_v16 = vrot.slane %v13314_v17, 1  ;;  %v7052_v29 = vmul.f32 -1.442695, %v13320_v30 }
 0x4c7   : > { %v5317_v60 = vsel %vm550_vm4, %v13241_v43, %v9020_v62  ;;  %v5318_v31 = vsel %vm550_vm4, %v13246_v36, %v9021_v26  ;;  %v7295_v62 = vpop.f32.mrb[60].mxu0  ;;  %v13329_v26 = vsel %vm1044_vm1, %v4953_v24, %v4954_v42  ;;  %v13334_v22 = vadd.f32 %v12965_v21, %v4171_v48 }
 0x4c8   : > { %v5393_v58 = vpack.c.bf16 %v5318_v31, %v5317_v60  ;;  %14666 = vst [vmem:[#allocation67_spill] sm:$0xff] %v13329_v26  ;;  %v4636_v4 = vrot.slane %v4560_v46, 7  ;;  %v7296_v33 = vpop.f32.mrb[61].mxu0  ;;  %v13336_v53 = vpack.c.bf16 %v5286_v63, %v5285_v15  ;;  %v4813_v9 = vrot.slane %v13303_v44, 1  ;;  %v9522_v24 = vpop.eup %9521 }
 0x4c9   : > { %v7297_v10 = vadd.f32 %v7296_v33, %v7295_v62  ;;  %v7298_v23 = vpop.f32.mrb[62].mxu0  ;;  %v13340_v47 = vsel %vm1044_vm1, %v4954_v42, %v4956_v54  ;;  %9525 = vpow2.f32 %v7052_v29  ;;  %v7053_v7 = vmul.f32 -1.442695, %v13334_v22 }
 0x4ca   : > { %5845 = vmatprep.mubr.bf16.mxu1 %v5393_v58  ;;  %14667 = vst [vmem:[#allocation68_spill] sm:$0xff] %v13340_v47  ;;  %v7299_v60 = vpop.f32.mrb[63].mxu0  ;;  %9118 = vrot.lane.b32.xlu0 %v9117_v51, %s9713_s19  ;;  %v4812_v21 = vrot.slane %v13299_v34, 1  ;;  %v13346_v59 = vsel %vm701_vm0, %v4635_v0, %v4636_v4  ;;  %v13349_v31 = vsel %vm701_vm0, 0.0, %v4635_v0  ;;  %v13352_v46 = vsel %vm701_vm0, %v4636_v4, 0.0  ;;  %v9282_v0 = vld [vmem:[%s14320_s10 + $0x118] sm:$0xff]   ;;  %v9524_v62 = vpop.eup %9523 }
 0x4cb   : > { %5846 = vmatmul.mubr.bf16.gmra.mrb[84].mxu1 %v13336_v53  ;;  %v4176_v42 = vadd.f32 %v13041_v12, %v7297_v10  ;;  %v7300_v54 = vadd.f32 %v7299_v60, %v7298_v23  ;;  %v4465_v48 = vadd.f32 1.0, %v9522_v24  ;;  %9527 = vpow2.f32 %v7053_v7  ;;  %7673 = vmatprep.subr.bf16.mxu1 %v9282_v0 }
 0x4cc   : > { %v13357_v51 = vsel %vm867_vm2, %v4812_v21, %v4813_v9  ;;  %v13360_v58 = vsel %vm867_vm2, %v4813_v9, %v4815_v16  ;;  %v9122_v29 = vpack.i.bf16 %v13346_v59, %v13349_v31  ;;  %v4820_v33 = vrot.slane %v13352_v46, 1  ;;  %7674 = vmatpush3.bf16.msra.mxu1 %v9282_v0  ;;  %v9034_v21 = vpop.permute.xlu1 %9033 }
 0x4cd   : > { %14668 = vst [vmem:[#allocation69_spill] sm:$0xff] %v13357_v51  ;;  %14669 = vst [vmem:[#allocation70_spill] sm:$0xff] %v13360_v58  ;;  %v13366_v15 = vadd.f32 %v12915_v52, %v4176_v42  ;;  %v4179_v63 = vadd.f32 %v13041_v12, %v7300_v54  ;;  %v9127_v4 = vpack.i.bf16 %v13360_v58, %v13357_v51  ;;  %9529 = vrcp.f32 %v4465_v48 }
 0x4ce   : > { %v4466_v16 = vadd.f32 1.0, %v9524_v62  ;;  %v4818_v10 = vrot.slane %v13346_v59, 1  ;;  %9123 = vrot.lane.b32.xlu1 %v9122_v29, %s9713_s19  ;;  %v4817_v12 = vrot.slane %v13349_v31, 1  ;;  %v9132_v7 = vpack.i.bf16 %v13340_v47, %v13329_v26 }
 0x4cf   : > { %v7054_v23 = vmul.f32 -1.442695, %v13366_v15  ;;  %v13377_v52 = vadd.f32 %v12958_v45, %v4179_v63  ;;  %9128 = vrot.lane.b32.xlu0 %v9127_v4, %s9713_s19  ;;  %v9036_v0 = vunpack.i.h.bf16 %v9034_v21  ;;  %v9035_v62 = vunpack.i.l.bf16 %v9034_v21 }
 0x4d0   : > { %9531 = vrcp.f32 %v4466_v16  ;;  %v13386_v60 = vsel %vm867_vm2, %v4817_v12, %v4818_v10  ;;  %v13389_v45 = vsel %vm867_vm2, %v4818_v10, %v4820_v33  ;;  %v4959_v4 = vrot.slane %v12979_v41, 2 }
 0x4d1   : > { %9533 = vpow2.f32 %v7054_v23  ;;  %v7055_v9 = vmul.f32 -1.442695, %v13377_v52  ;;  %14670 = vst [vmem:[#allocation71_spill] sm:$0xff] %v13386_v60  ;;  %14671 = vst [vmem:[#allocation72_spill] sm:$0xff] %v13389_v45  ;;  %v9142_v54 = vpack.i.bf16 %v13389_v45, %v13386_v60  ;;  %v4958_v33 = vrot.slane %v12961_v6, 2 }
 0x4d2   : > { %9133 = vrot.lane.b32.xlu1 %v9132_v7, %s9713_s19  ;;  %v4961_v16 = vrot.slane %v12976_v14, 2  ;;  %v5287_v21 = vsel %vm550_vm4, %v12872_v35, %v9035_v62  ;;  %v4989_v1 = vrot.slane %v13346_v59, 2 }
 0x4d3   : > { %9535 = vpow2.f32 %v7055_v9  ;;  %v9526_v24 = vpop.eup %9525 }
 0x4d4   : > { %v4467_v42 = vadd.f32 1.0, %v9526_v24  ;;  %v5288_v24 = vsel %vm550_vm4, %v12885_v61, %v9036_v0  ;;  %v13412_v35 = vsel %vm1044_vm1, %v4959_v4, %v4961_v16 }
 0x4d5   : > { %v9528_v48 = vpop.eup %9527  ;;  %14672 = vst [vmem:[#allocation73_spill] sm:$0xff] %v13412_v35 }
 0x4d6   : > { %9537 = vrcp.f32 %v4467_v42  ;;  %v4468_v63 = vadd.f32 1.0, %v9528_v48  ;;  %9143 = vrot.lane.b32.xlu1 %v9142_v54, %s9713_s19 }
 0x4d7   : > { %v9530_v29 = vpop.eup %9529 }
 0x4d8   : > { %v9029_v10 = vpop.permute.xlu0 %9028  ;;  %v4561_v23 = vmul.f32 %v9530_v29, %v13276_v56  ;;  %9539 = vrcp.f32 %v4468_v63  ;;  %v13409_v63 = vsel %vm1044_vm1, %v4958_v33, %v4959_v4 }
 0x4d9   : > { %v9031_v12 = vunpack.i.h.bf16 %v9029_v10  ;;  %v9030_v9 = vunpack.i.l.bf16 %v9029_v10 }
 0x4da   : > { %v9532_v7 = vpop.eup %9531  ;;  %v4638_v29 = vrot.slane %v4561_v23, 7 }
 0x4db   : > { %v9534_v42 = vpop.eup %9533  ;;  %v4562_v54 = vmul.f32 %v9532_v7, %v13290_v40  ;;  %v5319_v14 = vsel %vm550_vm4, %v13269_v18, %v9030_v9  ;;  %v5320_v56 = vsel %vm550_vm4, %v13273_v19, %v9031_v12  ;;  %v13414_v7 = vpack.c.bf16 %v5288_v24, %v5287_v21 }
 0x4dc   : > { %v9044_v48 = vpop.permute.xlu1 %9043  ;;  %v4469_v10 = vadd.f32 1.0, %v9534_v42  ;;  %v5397_v45 = vpack.c.bf16 %v5320_v56, %v5319_v14  ;;  %v13424_v4 = vsel %vm701_vm0, 0.0, %v4638_v29  ;;  %v9147_v21 = vpack.i.bf16 %v13412_v35, %v13409_v63 }
 0x4dd   : > { %v9536_v61 = vpop.eup %9535  ;;  %v4639_v0 = vrot.slane %v4562_v54, 7  ;;  %v9046_v62 = vunpack.i.h.bf16 %v9044_v48  ;;  %v9045_v40 = vunpack.i.l.bf16 %v9044_v48 }
 0x4de   : > { %9541 = vrcp.f32 %v4469_v10  ;;  %v4470_v9 = vadd.f32 1.0, %v9536_v61  ;;  %5853 = vmatprep.mubr.bf16.mxu1 %v5397_v45 }
 0x4df   : > { %v13417_v12 = vsel %vm701_vm0, %v4639_v0, 0.0  ;;  %5854 = vmatmul.mubr.bf16.gmra.mrb[88].mxu1 %v13414_v7  ;;  %v13421_v23 = vsel %vm701_vm0, %v4638_v29, %v4639_v0  ;;  %v5289_v54 = vsel %vm550_vm4, %v12918_v27, %v9045_v40  ;;  %v5290_v48 = vsel %vm550_vm4, %v12927_v5, %v9046_v62 }
 0x4e0   : > { %v9039_v33 = vpop.permute.xlu0 %9038  ;;  %9543 = vrcp.f32 %v4470_v9  ;;  %v9538_v24 = vpop.eup %9537  ;;  %v9137_v45 = vpack.i.bf16 %v13421_v23, %v13424_v4  ;;  %v4825_v14 = vrot.slane %v13417_v12, 1  ;;  %v4823_v10 = vrot.slane %v13421_v23, 1 }
 0x4e1   : > { %v9041_v16 = vunpack.i.h.bf16 %v9039_v33  ;;  %v9040_v42 = vunpack.i.l.bf16 %v9039_v33  ;;  %v4563_v56 = vmul.f32 %v9538_v24, %v13320_v30  ;;  %v4963_v0 = vrot.slane %v13029_v55, 2 }
 0x4e2   : > { %v9540_v61 = vpop.eup %9539  ;;  %v4966_v9 = vrot.slane %v13036_v50, 2  ;;  %9138 = vrot.lane.b32.xlu0 %v9137_v45, %s9713_s19  ;;  %v4964_v5 = vrot.slane %v13045_v20, 2  ;;  %v4971_v62 = vrot.slane %v13095_v25, 2  ;;  %v4822_v33 = vrot.slane %v13424_v4, 1  ;;  %v14673_v50 = vld [vmem:[#allocation45_spill] sm:$0xff] }
 0x4e3   : > { %v5322_v29 = vsel %vm550_vm4, %v13340_v47, %v9041_v16  ;;  %v5321_v27 = vsel %vm550_vm4, %v13329_v26, %v9040_v42  ;;  %v4564_v30 = vmul.f32 %v9540_v61, %v13334_v22  ;;  %v4976_v16 = vrot.slane %v13178_v49, 2  ;;  %v14676_v22 = vld [vmem:[#allocation46_spill] sm:$0xff] }
 0x4e4   : > { %v5401_v40 = vpack.c.bf16 %v5322_v29, %v5321_v27  ;;  %v4641_v24 = vrot.slane %v4563_v56, 7  ;;  %v13449_v60 = vpack.c.bf16 %v5290_v48, %v5289_v54  ;;  %v4969_v58 = vrot.slane %v14673_v50, 2 }
 0x4e5   : > { %v4642_v45 = vrot.slane %v4564_v30, 7  ;;  %v13453_v42 = vsel %vm867_vm2, %v4822_v33, %v4823_v10  ;;  %v13456_v51 = vsel %vm867_vm2, %v4823_v10, %v4825_v14  ;;  %v4974_v25 = vrot.slane %v13181_v3, 2 }
 0x4e6   : > { %5861 = vmatprep.mubr.bf16.mxu1 %v5401_v40  ;;  %14674 = vst [vmem:[#allocation45_spill] sm:$0xff] %v13453_v42  ;;  %14675 = vst [vmem:[#allocation74_spill] sm:$0xff] %v13456_v51  ;;  %v4968_v29 = vrot.slane %v14676_v22, 2  ;;  %9148 = vrot.lane.b32.xlu0 %v9147_v21, %s9713_s19  ;;  %v13463_v49 = vsel %vm1044_vm1, %v4963_v0, %v4964_v5  ;;  %v4973_v48 = vrot.slane %v13186_v37, 2  ;;  %v13476_v61 = vsel %vm701_vm0, 0.0, %v4641_v24 }
 0x4e7   : > { %5862 = vmatmul.mubr.bf16.gmra.mrb[92].mxu1 %v13449_v60  ;;  %v13467_v56 = vsel %vm701_vm0, %v4641_v24, %v4642_v45  ;;  %v13470_v14 = vsel %vm701_vm0, %v4642_v45, 0.0  ;;  %v13473_v10 = vsel %vm1044_vm1, %v4964_v5, %v4966_v9  ;;  %v9157_v21 = vpack.i.bf16 %v13456_v51, %v13453_v42  ;;  %v9054_v51 = vpop.permute.xlu1 %9053 }
 0x4e8   : > { %v9542_v54 = vpop.eup %9541  ;;  %v13481_v0 = vsel %vm1044_vm1, %v4968_v29, %v4969_v58  ;;  %v13484_v27 = vsel %vm1044_vm1, %v4969_v58, %v4971_v62  ;;  %v9152_v33 = vpack.i.bf16 %v13467_v56, %v13476_v61  ;;  %v13490_v9 = vsel %vm1044_vm1, %v4973_v48, %v4974_v25 }
 0x4e9   : > { %v4565_v40 = vmul.f32 %v9542_v54, %v13366_v15  ;;  %v13493_v5 = vsel %vm1044_vm1, %v4974_v25, %v4976_v16  ;;  %v4828_v24 = vrot.slane %v13467_v56, 1  ;;  %v4830_v45 = vrot.slane %v13470_v14, 1 }
 0x4ea   : > { %v9544_v30 = vpop.eup %9543  ;;  %9158 = vrot.lane.b32.xlu0 %v9157_v21, %s9713_s19  ;;  %v9162_v58 = vpack.i.bf16 %v13473_v10, %v13463_v49  ;;  %v4978_v15 = vrot.slane %v13225_v13, 2  ;;  %v4981_v62 = vrot.slane %v13220_v8, 2  ;;  %9153 = vrot.lane.b32.xlu1 %v9152_v33, %s9713_s19  ;;  %v9177_v16 = vpack.i.bf16 %v13484_v27, %v13481_v0 }
 0x4eb   : > { %v4566_v29 = vmul.f32 %v9544_v30, %v13377_v52  ;;  %v4644_v54 = vrot.slane %v4565_v40, 7  ;;  %v4827_v25 = vrot.slane %v13476_v61, 1  ;;  %v9182_v52 = vpack.i.bf16 %v13493_v5, %v13490_v9 }
 0x4ec   : > { %v4979_v21 = vrot.slane %v13231_v11, 2  ;;  %v4983_v30 = vrot.slane %v13299_v34, 2  ;;  %v4986_v42 = vrot.slane %v13314_v17, 2  ;;  %v4984_v40 = vrot.slane %v13303_v44, 2 }
 0x4ed   : > { %v4645_v48 = vrot.slane %v4566_v29, 7  ;;  %v13513_v8 = vsel %vm701_vm0, 0.0, %v4644_v54  ;;  %v13523_v47 = vsel %vm867_vm2, %v4827_v25, %v4828_v24  ;;  %v13526_v26 = vsel %vm867_vm2, %v4828_v24, %v4830_v45 }
 0x4ee   : > { %14677 = vst [vmem:[#allocation46_spill] sm:$0xff] %v13523_v47  ;;  %14678 = vst [vmem:[#allocation75_spill] sm:$0xff] %v13526_v26  ;;  %v9056_v17 = vunpack.i.h.bf16 %v9054_v51  ;;  %v9055_v18 = vunpack.i.l.bf16 %v9054_v51  ;;  %9163 = vrot.lane.b32.xlu1 %v9162_v58, %s9713_s19  ;;  %v13533_v43 = vsel %vm1044_vm1, %v4978_v15, %v4979_v21  ;;  %v5168_v25 = vrot.slane %v13513_v8, 2 }
 0x4ef   : > { %v13517_v33 = vsel %vm701_vm0, %v4645_v48, 0.0  ;;  %v13520_v29 = vsel %vm701_vm0, %v4644_v54, %v4645_v48  ;;  %v13536_v54 = vsel %vm1044_vm1, %v4979_v21, %v4981_v62  ;;  %v4991_v45 = vrot.slane %v13352_v46, 2 }
 0x4f0   : > { %v5171_v19 = vrot.slane %v13517_v33, 2  ;;  %v9167_v36 = vpack.i.bf16 %v13520_v29, %v13513_v8  ;;  %v5169_v24 = vrot.slane %v13520_v29, 2  ;;  %v9172_v51 = vpack.i.bf16 %v13526_v26, %v13523_v47 }
 0x4f1   : > { %v13545_v48 = vsel %vm1044_vm1, %v4983_v30, %v4984_v40  ;;  %v13548_v15 = vsel %vm1044_vm1, %v4984_v40, %v4986_v42  ;;  %v4996_v46 = vrot.slane %v13417_v12, 2  ;;  %v5292_v30 = vsel %vm550_vm4, %v12979_v41, %v9056_v17 }
 0x4f2   : > { %9168 = vrot.lane.b32.xlu0 %v9167_v36, %s9713_s19  ;;  %v13552_v38 = vsel %vm1044_vm1, %v5168_v25, %v5169_v24  ;;  %9173 = vrot.lane.b32.xlu1 %v9172_v51, %s9713_s19  ;;  %v5291_v36 = vsel %vm550_vm4, %v12961_v6, %v9055_v18  ;;  %v13561_v42 = vsel %vm1044_vm1, %v5169_v24, %v5171_v19  ;;  %v4994_v40 = vrot.slane %v13421_v23, 2 }
 0x4f3   : > { %v4988_v51 = vrot.slane %v13349_v31, 2  ;;  %v9187_v6 = vpack.i.bf16 %v13536_v54, %v13533_v43  ;;  %v9192_v41 = vpack.i.bf16 %v13548_v15, %v13545_v48  ;;  %v4993_v17 = vrot.slane %v13424_v4, 2 }
 0x4f4   : > { %v9049_v58 = vpop.permute.xlu0 %9048  ;;  %v5134_v12 = vrot.slane %v13517_v33, 1  ;;  %v13585_v26 = vsel %vm1044_vm1, %v4989_v1, %v4991_v45  ;;  %v5132_v47 = vrot.slane %v13520_v29, 1  ;;  %v5001_v33 = vrot.slane %v13470_v14, 2 }
 0x4f5   : > { %v9051_v62 = vunpack.i.h.bf16 %v9049_v58  ;;  %v9050_v21 = vunpack.i.l.bf16 %v9049_v58 }
 0x4f6   : > { %9178 = vrot.lane.b32.xlu0 %v9177_v16, %s9713_s19  ;;  %9183 = vrot.lane.b32.xlu1 %v9182_v52, %s9713_s19  ;;  %v13582_v16 = vsel %vm1044_vm1, %v4988_v51, %v4989_v1  ;;  %v13596_v52 = vsel %vm1044_vm1, %v4994_v40, %v4996_v46  ;;  %v4999_v1 = vrot.slane %v13467_v56, 2  ;;  %v4998_v46 = vrot.slane %v13476_v61, 2 }
 0x4f7   : > { %v5323_v58 = vsel %vm550_vm4, %v13409_v63, %v9050_v21  ;;  %v5324_v25 = vsel %vm550_vm4, %v13412_v35, %v9051_v62  ;;  %v13577_v62 = vpack.c.bf16 %v5292_v30, %v5291_v36  ;;  %v14680_v35 = vld [vmem:[#allocation17_spill] sm:$0xff]  ;;  %v13593_v30 = vsel %vm1044_vm1, %v4993_v17, %v4994_v40 }
 0x4f8   : > { %v9059_v19 = vpop.permute.xlu0 %9058  ;;  %v5405_v18 = vpack.c.bf16 %v5324_v25, %v5323_v58  ;;  %v14679_v58 = vld [vmem:[#allocation23_spill] sm:$0xff]  ;;  %v9197_v40 = vpack.i.bf16 %v13585_v26, %v13582_v16 }
 0x4f9   : > { %v9061_v24 = vunpack.i.h.bf16 %v9059_v19  ;;  %v9060_v21 = vunpack.i.l.bf16 %v9059_v19 }
 0x4fa   : > { %5869 = vmatprep.mubr.bf16.mxu1 %v5405_v18  ;;  %9188 = vrot.lane.b32.xlu0 %v9187_v6, %s9713_s19  ;;  %v5131_v18 = vrot.slane %v13513_v8, 1  ;;  %v13611_v6 = vsel %vm867_vm2, %v5132_v47, %v5134_v12 }
 0x4fb   : > { %v5341_v25 = vsel %vm550_vm4, %v14679_v58, %v9060_v21  ;;  %v5342_v36 = vsel %vm550_vm4, %v14680_v35, %v9061_v24  ;;  %5870 = vmatmul.mubr.bf16.gmra.mrb[96].mxu1 %v13577_v62  ;;  %9193 = vrot.lane.b32.xlu1 %v9192_v41, %s9713_s19 }
 0x4fc   : > { %v5377_v45 = vpack.c.bf16 %v5342_v36, %v5341_v25  ;;  %v9069_v51 = vpop.permute.xlu0 %9068  ;;  %v9064_v19 = vpop.permute.xlu1 %9063  ;;  %v13608_v14 = vsel %vm867_vm2, %v5131_v18, %v5132_v47  ;;  %v9202_v47 = vpack.i.bf16 %v13596_v52, %v13593_v30 }
 0x4fd   : > { %v9071_v35 = vunpack.i.h.bf16 %v9069_v51  ;;  %v9070_v24 = vunpack.i.l.bf16 %v9069_v51  ;;  %v9066_v17 = vunpack.i.h.bf16 %v9064_v19  ;;  %v9065_v21 = vunpack.i.l.bf16 %v9064_v19 }
 0x4fe   : > { %5975 = vmatmul.mubr.bf16.vlgmr.msra.gmra.mrb[64].mxu0 %v5377_v45  ;;  %9198 = vrot.lane.b32.xlu0 %v9197_v40, %s9713_s19  ;;  %v13628_v51 = vsel %vm1044_vm1, %v4998_v46, %v4999_v1  ;;  %v13631_v19 = vsel %vm1044_vm1, %v4999_v1, %v5001_v33  ;;  %v9217_v46 = vpack.i.bf16 %v13561_v42, %v13552_v38 }
 0x4ff   : > { %5982 = vmatprep.mubr.bf16.mxu0 %v13292_v39  ;;  %v5325_v58 = vsel %vm550_vm4, %v13463_v49, %v9065_v21  ;;  %v5326_v25 = vsel %vm550_vm4, %v13473_v10, %v9066_v17  ;;  %v5293_v41 = vsel %vm550_vm4, %v13029_v55, %v9070_v24  ;;  %v5294_v36 = vsel %vm550_vm4, %v13045_v20, %v9071_v35  ;;  %v14681_v35 = vld [vmem:[#allocation18_spill] sm:$0xff]  ;;  %v14682_v17 = vld [vmem:[#allocation7_spill] sm:$0xff] }
 0x500   : > { %v9074_v12 = vpop.permute.xlu1 %9073  ;;  %v5409_v45 = vpack.c.bf16 %v5326_v25, %v5325_v58  ;;  %v13625_v39 = vpack.c.bf16 %v5294_v36, %v5293_v41  ;;  %9203 = vrot.lane.b32.xlu1 %v9202_v47, %s9713_s19  ;;  %v9207_v20 = vpack.i.bf16 %v13611_v6, %v13608_v14  ;;  %v9212_v1 = vpack.i.bf16 %v13631_v19, %v13628_v51 }
 0x501   : > { %v9076_v18 = vunpack.i.h.bf16 %v9074_v12  ;;  %v9075_v55 = vunpack.i.l.bf16 %v9074_v12 }
 0x502   : > { %5877 = vmatprep.mubr.bf16.mxu1 %v5409_v45  ;;  %9208 = vrot.lane.b32.xlu0 %v9207_v20, %s9713_s19 }
 0x503   : > { %5878 = vmatmul.mubr.bf16.gmra.mrb[100].mxu1 %v13625_v39  ;;  %v5343_v24 = vsel %vm550_vm4, %v14681_v35, %v9075_v55  ;;  %v5344_v21 = vsel %vm550_vm4, %v14682_v17, %v9076_v18 }
 0x504   : > { %v5382_v33 = vpack.c.bf16 %v5344_v21, %v5343_v24  ;;  %9213 = vrot.lane.b32.xlu1 %v9212_v1, %s9713_s19  ;;  %v9084_v40 = vpop.permute.xlu1 %9083  ;;  %v14683_v21 = vld [vmem:[#allocation8_spill] sm:$0xff]  ;;  %v14684_v1 = vld [vmem:[#allocation33_spill] sm:$0xff] }
 0x505   : > { %v9086_v58 = vunpack.i.h.bf16 %v9084_v40  ;;  %v9085_v25 = vunpack.i.l.bf16 %v9084_v40 }
 0x506   : > { %5983 = vmatmul.mubr.bf16.gmra.mrb[68].mxu0 %v5382_v33  ;;  %9218 = vrot.lane.b32.xlu0 %v9217_v46, %s9713_s19 }
 0x507   : > { %5990 = vmatprep.mubr.bf16.mxu0 %v13336_v53  ;;  %v5295_v12 = vsel %vm550_vm4, %v14676_v22, %v9085_v25  ;;  %v5296_v45 = vsel %vm550_vm4, %v14673_v50, %v9086_v58 }
 0x508   : > { %v13657_v17 = vpack.c.bf16 %v5296_v45, %v5295_v12 }
 0x518   : > { %v9079_v41 = vpop.permute.xlu0 %9078 }
 0x519   : > { %v9081_v36 = vunpack.i.h.bf16 %v9079_v41  ;;  %v9080_v47 = vunpack.i.l.bf16 %v9079_v41 }
 0x51b   : > { %v5327_v18 = vsel %vm550_vm4, %v13481_v0, %v9080_v47  ;;  %v5328_v53 = vsel %vm550_vm4, %v13484_v27, %v9081_v36 }
 0x51c   : > { %v9089_v55 = vpop.permute.xlu0 %9088  ;;  %v5413_v20 = vpack.c.bf16 %v5328_v53, %v5327_v18 }
 0x51d   : > { %v9091_v35 = vunpack.i.h.bf16 %v9089_v55  ;;  %v9090_v24 = vunpack.i.l.bf16 %v9089_v55 }
 0x51e   : > { %5885 = vmatprep.mubr.bf16.mxu1 %v5413_v20 }
 0x51f   : > { %5886 = vmatmul.mubr.bf16.gmra.mrb[104].mxu1 %v13657_v17  ;;  %v5345_v22 = vsel %vm550_vm4, %v14683_v21, %v9090_v24  ;;  %v5346_v50 = vsel %vm550_vm4, %v14684_v1, %v9091_v35 }
 0x520   : > { %v9099_v33 = vpop.permute.xlu0 %9098  ;;  %v9094_v46 = vpop.permute.xlu1 %9093  ;;  %v5386_v40 = vpack.c.bf16 %v5346_v50, %v5345_v22  ;;  %v14686_v22 = vld [vmem:[#allocation34_spill] sm:$0xff] }
 0x521   : > { %v9101_v58 = vunpack.i.h.bf16 %v9099_v33  ;;  %v9100_v25 = vunpack.i.l.bf16 %v9099_v33  ;;  %v9096_v41 = vunpack.i.h.bf16 %v9094_v46  ;;  %v9095_v36 = vunpack.i.l.bf16 %v9094_v46 }
 0x522   : > { %5991 = vmatmul.mubr.bf16.gmra.mrb[72].mxu0 %v5386_v40 }
 0x523   : > { %5998 = vmatprep.mubr.bf16.mxu0 %v13414_v7  ;;  %v5329_v47 = vsel %vm550_vm4, %v13490_v9, %v9095_v36  ;;  %v5330_v12 = vsel %vm550_vm4, %v13493_v5, %v9096_v41  ;;  %v5297_v45 = vsel %vm550_vm4, %v13186_v37, %v9100_v25  ;;  %v5298_v18 = vsel %vm550_vm4, %v13181_v3, %v9101_v58  ;;  %v14685_v7 = vld [vmem:[#allocation10_spill] sm:$0xff] }
 0x524   : > { %v9104_v53 = vpop.permute.xlu1 %9103  ;;  %v5417_v55 = vpack.c.bf16 %v5330_v12, %v5329_v47  ;;  %v13673_v20 = vpack.c.bf16 %v5298_v18, %v5297_v45 }
 0x525   : > { %v9106_v35 = vunpack.i.h.bf16 %v9104_v53  ;;  %v9105_v24 = vunpack.i.l.bf16 %v9104_v53 }
 0x526   : > { %5893 = vmatprep.mubr.bf16.mxu1 %v5417_v55  ;;  %v14687_v55 = vld [vmem:[#allocation36_spill] sm:$0xff] }
 0x527   : > { %5894 = vmatmul.mubr.bf16.gmra.mrb[108].mxu1 %v13673_v20  ;;  %v5347_v21 = vsel %vm550_vm4, %v14685_v7, %v9105_v24  ;;  %v5348_v1 = vsel %vm550_vm4, %v14686_v22, %v9106_v35  ;;  %v14688_v35 = vld [vmem:[#allocation24_spill] sm:$0xff] }
 0x528   : > { %v5390_v50 = vpack.c.bf16 %v5348_v1, %v5347_v21  ;;  %v9114_v3 = vpop.permute.xlu1 %9113 }
 0x529   : > { %v9116_v37 = vunpack.i.h.bf16 %v9114_v3  ;;  %v9115_v33 = vunpack.i.l.bf16 %v9114_v3 }
 0x52a   : > { %5999 = vmatmul.mubr.bf16.gmra.mrb[76].mxu0 %v5390_v50 }
 0x52b   : > { %6006 = vmatprep.mubr.bf16.mxu0 %v13449_v60  ;;  %v5299_v25 = vsel %vm550_vm4, %v13225_v13, %v9115_v33  ;;  %v5300_v41 = vsel %vm550_vm4, %v13231_v11, %v9116_v37 }
 0x52c   : > { %v13689_v53 = vpack.c.bf16 %v5300_v41, %v5299_v25 }
 0x538   : > { %v9109_v46 = vpop.permute.xlu0 %9108 }
 0x539   : > { %v9111_v40 = vunpack.i.h.bf16 %v9109_v46  ;;  %v9110_v58 = vunpack.i.l.bf16 %v9109_v46 }
 0x53b   : > { %v5331_v36 = vsel %vm550_vm4, %v13533_v43, %v9110_v58  ;;  %v5332_v47 = vsel %vm550_vm4, %v13536_v54, %v9111_v40 }
 0x53c   : > { %v9119_v12 = vpop.permute.xlu0 %9118  ;;  %v5421_v60 = vpack.c.bf16 %v5332_v47, %v5331_v36 }
 0x53d   : > { %v9121_v45 = vunpack.i.h.bf16 %v9119_v12  ;;  %v9120_v18 = vunpack.i.l.bf16 %v9119_v12 }
 0x53e   : > { %5901 = vmatprep.mubr.bf16.mxu1 %v5421_v60 }
 0x53f   : > { %5902 = vmatmul.mubr.bf16.gmra.mrb[112].mxu1 %v13689_v53  ;;  %v5349_v13 = vsel %vm550_vm4, %v14687_v55, %v9120_v18  ;;  %v5350_v11 = vsel %vm550_vm4, %v14688_v35, %v9121_v45 }
 0x540   : > { %v5394_v24 = vpack.c.bf16 %v5350_v11, %v5349_v13  ;;  %v7335_v7 = vpop.f32.mrb[68].mxu1  ;;  %v9124_v22 = vpop.permute.xlu1 %9123  ;;  %v14689_v13 = vld [vmem:[#allocation35_spill] sm:$0xff]  ;;  %v14690_v11 = vld [vmem:[#allocation48_spill] sm:$0xff] }
 0x541   : > { %v9129_v21 = vpop.permute.xlu0 %9128  ;;  %v9126_v3 = vunpack.i.h.bf16 %v9124_v22  ;;  %v9125_v37 = vunpack.i.l.bf16 %v9124_v22  ;;  %v7336_v33 = vpop.f32.mrb[69].mxu1 }
 0x542   : > { %v9131_v1 = vunpack.i.h.bf16 %v9129_v21  ;;  %v9130_v50 = vunpack.i.l.bf16 %v9129_v21  ;;  %6007 = vmatmul.mubr.bf16.gmra.mrb[80].mxu0 %v5394_v24  ;;  %v13697_v46 = vadd.f32 %v7336_v33, %v7335_v7  ;;  %v7338_v40 = vpop.f32.mrb[70].mxu1 }
 0x543   : > { %6014 = vmatprep.mubr.bf16.mxu0 %v13577_v62  ;;  %v5333_v58 = vsel %vm550_vm4, %v13545_v48, %v9125_v37  ;;  %v5334_v25 = vsel %vm550_vm4, %v13548_v15, %v9126_v3  ;;  %v7339_v47 = vpop.f32.mrb[71].mxu1 }
 0x544   : > { %v5301_v41 = vsel %vm550_vm4, %v13299_v34, %v9130_v50  ;;  %v5302_v36 = vsel %vm550_vm4, %v13303_v44, %v9131_v1  ;;  %v9134_v12 = vpop.permute.xlu1 %9133  ;;  %v5425_v60 = vpack.c.bf16 %v5334_v25, %v5333_v58  ;;  %v13709_v62 = vadd.f32 %v7339_v47, %v7338_v40 }
 0x545   : > { %v13707_v45 = vpack.c.bf16 %v5302_v36, %v5301_v41  ;;  %v9136_v18 = vunpack.i.h.bf16 %v9134_v12  ;;  %v9135_v55 = vunpack.i.l.bf16 %v9134_v12  ;;  %v14692_v12 = vld [vmem:[#allocation9_spill] sm:$0xff] }
 0x546   : > { %5909 = vmatprep.mubr.bf16.mxu1 %v5425_v60 }
 0x547   : > { %5910 = vmatmul.mubr.bf16.gmra.mrb[116].mxu1 %v13707_v45  ;;  %v5351_v35 = vsel %vm550_vm4, %v14689_v13, %v9135_v55  ;;  %v5352_v34 = vsel %vm550_vm4, %v14690_v11, %v9136_v18 }
 0x548   : > { %v5398_v24 = vpack.c.bf16 %v5352_v34, %v5351_v35  ;;  %v9144_v44 = vpop.permute.xlu1 %9143 }
 0x549   : > { %v9146_v7 = vunpack.i.h.bf16 %v9144_v44  ;;  %v9145_v21 = vunpack.i.l.bf16 %v9144_v44 }
 0x54a   : > { %6015 = vmatmul.mubr.bf16.gmra.mrb[84].mxu0 %v5398_v24 }
 0x54b   : > { %6022 = vmatprep.mubr.bf16.mxu0 %v13625_v39  ;;  %v5303_v3 = vsel %vm550_vm4, %v13349_v31, %v9145_v21  ;;  %v5304_v37 = vsel %vm550_vm4, %v13346_v59, %v9146_v7  ;;  %v9283_v31 = vld [vmem:[%s14322_s12] sm:$0xff]  }
 0x54c   : > { %v13725_v36 = vpack.c.bf16 %v5304_v37, %v5303_v3  ;;  %v14691_v59 = vld [vmem:[#allocation37_spill] sm:$0xff]  ;;  %7707 = vmatprep.subr.bf16.mxu0 %v9283_v31 }
 0x54d   : > { %7708 = vmatpush3.bf16.msra.mxu0 %v9283_v31 }
 0x554   : > { %v9139_v22 = vpop.permute.xlu0 %9138 }
 0x555   : > { %v9141_v1 = vunpack.i.h.bf16 %v9139_v22  ;;  %v9140_v50 = vunpack.i.l.bf16 %v9139_v22 }
 0x557   : > { %v5335_v33 = vsel %vm550_vm4, %v13582_v16, %v9140_v50  ;;  %v5336_v40 = vsel %vm550_vm4, %v13585_v26, %v9141_v1 }
 0x558   : > { %v9149_v58 = vpop.permute.xlu0 %9148  ;;  %v5429_v39 = vpack.c.bf16 %v5336_v40, %v5335_v33 }
 0x559   : > { %v9151_v25 = vunpack.i.h.bf16 %v9149_v58  ;;  %v9150_v41 = vunpack.i.l.bf16 %v9149_v58  ;;  %v14693_v58 = vld [vmem:[#allocation44_spill] sm:$0xff] }
 0x55a   : > { %5917 = vmatprep.mubr.bf16.mxu1 %v5429_v39  ;;  %v14694_v39 = vld [vmem:[#allocation41_spill] sm:$0xff] }
 0x55b   : > { %5918 = vmatmul.mubr.bf16.gmra.mrb[120].mxu1 %v13725_v36  ;;  %v5353_v47 = vsel %vm550_vm4, %v14691_v59, %v9150_v41  ;;  %v5354_v60 = vsel %vm550_vm4, %v14692_v12, %v9151_v25 }
 0x55c   : > { %v9159_v18 = vpop.permute.xlu0 %9158  ;;  %v5402_v55 = vpack.c.bf16 %v5354_v60, %v5353_v47  ;;  %v9154_v11 = vpop.permute.xlu1 %9153 }
 0x55d   : > { %v9161_v13 = vunpack.i.h.bf16 %v9159_v18  ;;  %v9160_v35 = vunpack.i.l.bf16 %v9159_v18  ;;  %v9156_v34 = vunpack.i.h.bf16 %v9154_v11  ;;  %v9155_v24 = vunpack.i.l.bf16 %v9154_v11 }
 0x55e   : > { %6023 = vmatmul.mubr.bf16.gmra.mrb[88].mxu0 %v5402_v55 }
 0x55f   : > { %6030 = vmatprep.mubr.bf16.mxu0 %v13657_v17  ;;  %v5305_v44 = vsel %vm550_vm4, %v13424_v4, %v9160_v35  ;;  %v5306_v7 = vsel %vm550_vm4, %v13421_v23, %v9161_v13  ;;  %v5337_v21 = vsel %vm550_vm4, %v13593_v30, %v9155_v24  ;;  %v5338_v22 = vsel %vm550_vm4, %v13596_v52, %v9156_v34 }
 0x560   : > { %v13744_v1 = vpack.c.bf16 %v5306_v7, %v5305_v44  ;;  %v9164_v50 = vpop.permute.xlu1 %9163  ;;  %v5433_v3 = vpack.c.bf16 %v5338_v22, %v5337_v21  ;;  %v14695_v44 = vld [vmem:[#allocation43_spill] sm:$0xff]  ;;  %v14696_v21 = vld [vmem:[#allocation42_spill] sm:$0xff] }
 0x561   : > { %v9166_v37 = vunpack.i.h.bf16 %v9164_v50  ;;  %v9165_v33 = vunpack.i.l.bf16 %v9164_v50 }
 0x562   : > { %5925 = vmatprep.mubr.bf16.mxu1 %v5433_v3 }
 0x563   : > { %5926 = vmatmul.mubr.bf16.gmra.mrb[124].mxu1 %v13744_v1  ;;  %v5355_v23 = vsel %vm550_vm4, %v14693_v58, %v9165_v33  ;;  %v5356_v25 = vsel %vm550_vm4, %v14694_v39, %v9166_v37  ;;  %v5384_v37 = vpack.c.bf16 %v13166_v2, %v13154_v32  ;;  %v14697_v33 = vld [vmem:[#allocation53_spill] sm:$0xff] }
 0x564   : > { %v9169_v17 = vpop.permute.xlu0 %9168  ;;  %v9174_v41 = vpop.permute.xlu1 %9173  ;;  %v5406_v31 = vpack.c.bf16 %v5356_v25, %v5355_v23  ;;  %v14699_v58 = vld [vmem:[#allocation5_spill] sm:$0xff]  ;;  %v14700_v23 = vld [vmem:[#allocation6_spill] sm:$0xff] }
 0x565   : > { %v9171_v4 = vunpack.i.h.bf16 %v9169_v17  ;;  %v9170_v40 = vunpack.i.l.bf16 %v9169_v17  ;;  %v9176_v59 = vunpack.i.h.bf16 %v9174_v41  ;;  %v9175_v47 = vunpack.i.l.bf16 %v9174_v41 }
 0x566   : > { %6031 = vmatmul.mubr.bf16.gmra.mrb[92].mxu0 %v5406_v31  ;;  %v5388_v39 = vpack.c.bf16 %v14700_v23, %v14699_v58 }
 0x567   : > { %v5339_v12 = vsel %vm550_vm4, %v13628_v51, %v9170_v40  ;;  %v5340_v60 = vsel %vm550_vm4, %v13631_v19, %v9171_v4  ;;  %6038 = vmatprep.mubr.bf16.mxu0 %v13673_v20  ;;  %v5307_v11 = vsel %vm550_vm4, %v13476_v61, %v9175_v47  ;;  %v5308_v34 = vsel %vm550_vm4, %v13467_v56, %v9176_v59  ;;  %v14698_v4 = vld [vmem:[#allocation58_spill] sm:$0xff] }
 0x568   : > { %v9179_v18 = vpop.permute.xlu0 %9178  ;;  %v5437_v55 = vpack.c.bf16 %v5340_v60, %v5339_v12  ;;  %v13760_v24 = vpack.c.bf16 %v5308_v34, %v5307_v11  ;;  %v9184_v50 = vpop.permute.xlu1 %9183  ;;  %v5379_v20 = vpack.c.bf16 %v13120_v28, %v13109_v57  ;;  %v14701_v12 = vld [vmem:[#allocation65_spill] sm:$0xff]  ;;  %v14702_v60 = vld [vmem:[#allocation66_spill] sm:$0xff] }
 0x569   : > { %v9181_v13 = vunpack.i.h.bf16 %v9179_v18  ;;  %v9180_v35 = vunpack.i.l.bf16 %v9179_v18  ;;  %v9186_v61 = vunpack.i.h.bf16 %v9184_v50  ;;  %v9185_v56 = vunpack.i.l.bf16 %v9184_v50 }
 0x56a   : > { %5933 = vmatprep.mubr.bf16.mxu1 %v5437_v55  ;;  %v5392_v18 = vpack.c.bf16 %v14702_v60, %v14701_v12  ;;  %v14703_v55 = vld [vmem:[#allocation63_spill] sm:$0xff] }
 0x56b   : > { %v5357_v7 = vsel %vm550_vm4, %v14695_v44, %v9180_v35  ;;  %v5358_v22 = vsel %vm550_vm4, %v14696_v21, %v9181_v13  ;;  %5934 = vmatmul.mubr.bf16.gmra.mrb[128].mxu1 %v13760_v24  ;;  %v5359_v17 = vsel %vm550_vm4, %v14697_v33, %v9185_v56  ;;  %v5360_v40 = vsel %vm550_vm4, %v14698_v4, %v9186_v61  ;;  %v14704_v35 = vld [vmem:[#allocation64_spill] sm:$0xff]  ;;  %v14705_v44 = vld [vmem:[#allocation67_spill] sm:$0xff] }
 0x56c   : > { %v5410_v3 = vpack.c.bf16 %v5358_v22, %v5357_v7  ;;  %7675 = vmatprep.mubr.msk.bf16.mxu1 %vm550_vm4, %v5379_v20  ;;  %v9189_v57 = vpop.permute.xlu0 %9188  ;;  %v5414_v32 = vpack.c.bf16 %v5360_v40, %v5359_v17  ;;  %v14706_v7 = vld [vmem:[#allocation68_spill] sm:$0xff]  ;;  %v14707_v17 = vld [vmem:[#allocation73_spill] sm:$0xff] }
 0x56d   : > { %v9191_v2 = vunpack.i.h.bf16 %v9189_v57  ;;  %v9190_v31 = vunpack.i.l.bf16 %v9189_v57  ;;  %v9194_v34 = vpop.permute.xlu1 %9193  ;;  %v5396_v21 = vpack.c.bf16 %v14706_v7, %v14705_v44  ;;  %v5400_v4 = vpack.c.bf16 %v14707_v17, %v13409_v63  ;;  %v14708_v40 = vld [vmem:[#allocation69_spill] sm:$0xff] }
 0x56e   : > { %6039 = vmatmul.mubr.bf16.gmra.mrb[96].mxu0 %v5410_v3  ;;  %v9195_v20 = vunpack.i.l.bf16 %v9194_v34  ;;  %v5408_v63 = vpack.c.bf16 %v13484_v27, %v13481_v0  ;;  %v5416_v27 = vpack.c.bf16 %v13536_v54, %v13533_v43 }
 0x56f   : > { %6046 = vmatprep.mubr.bf16.mxu0 %v13689_v53  ;;  %v5361_v13 = vsel %vm550_vm4, %v14703_v55, %v9190_v31  ;;  %v5362_v11 = vsel %vm550_vm4, %v14704_v35, %v9191_v2  ;;  %v14711_v31 = vld [vmem:[#allocation72_spill] sm:$0xff] }
 0x570   : > { %v5418_v50 = vpack.c.bf16 %v5362_v11, %v5361_v13  ;;  %v5363_v57 = vsel %vm550_vm4, %v14708_v40, %v9195_v20  ;;  %v9199_v23 = vpop.permute.xlu0 %9198  ;;  %v14712_v13 = vld [vmem:[#allocation45_spill] sm:$0xff] }
 0x573   : > { %7676 = vmatmul.mubr.msk.bf16.vlgmr.msra.gmra.mrb[132].mxu1 %vm550_vm4, %v5384_v37 }
 0x574   : > { %v7341_v28 = vpop.f32.mrb[72].mxu1  ;;  %7679 = vmatprep.mubr.msk.bf16.mxu1 %vm550_vm4, %v5388_v39  ;;  %v5404_v39 = vpack.c.bf16 %v13473_v10, %v13463_v49  ;;  %v9204_v49 = vpop.permute.xlu1 %9203  ;;  %v5412_v10 = vpack.c.bf16 %v13493_v5, %v13490_v9  ;;  %v14713_v9 = vld [vmem:[#allocation74_spill] sm:$0xff] }
 0x575   : > { %v7342_v25 = vpop.f32.mrb[73].mxu1  ;;  %v9209_v12 = vpop.permute.xlu0 %9208 }
 0x576   : > { %v13780_v41 = vadd.f32 %v7342_v25, %v7341_v28  ;;  %v7344_v53 = vpop.f32.mrb[74].mxu1  ;;  %6047 = vmatmul.mubr.bf16.gmra.mrb[100].mxu0 %v5414_v32  ;;  %v14709_v28 = vld [vmem:[#allocation70_spill] sm:$0xff]  ;;  %v9201_v25 = vunpack.i.h.bf16 %v9199_v23  ;;  %v14710_v32 = vld [vmem:[#allocation71_spill] sm:$0xff]  ;;  %v9211_v55 = vunpack.i.h.bf16 %v9209_v12  ;;  %v9210_v0 = vunpack.i.l.bf16 %v9209_v12 }
 0x577   : > { %v7345_v59 = vpop.f32.mrb[75].mxu1  ;;  %6054 = vmatprep.mubr.bf16.mxu0 %v13707_v45  ;;  %v9196_v45 = vunpack.i.h.bf16 %v9194_v34  ;;  %v5420_v34 = vpack.c.bf16 %v13548_v15, %v13545_v48 }
 0x578   : > { %v13783_v47 = vadd.f32 %v7345_v59, %v7344_v53  ;;  %v9200_v53 = vunpack.i.l.bf16 %v9199_v23  ;;  %v5366_v59 = vsel %vm550_vm4, %v14711_v31, %v9201_v25  ;;  %v9214_v11 = vpop.permute.xlu1 %9213  ;;  %v5373_v44 = vsel %vm550_vm4, %v13513_v8, %v9210_v0  ;;  %v14718_v31 = vld [vmem:[#allocation30_spill] sm:$0xff] }
 0x579   : > { %v5364_v58 = vsel %vm550_vm4, %v14709_v28, %v9196_v45  ;;  %v5374_v7 = vsel %vm550_vm4, %v13520_v29, %v9211_v55  ;;  %v5424_v8 = vpack.c.bf16 %v13585_v26, %v13582_v16  ;;  %v14714_v29 = vld [vmem:[#allocation46_spill] sm:$0xff]  ;;  %v9219_v17 = vpop.permute.xlu0 %9218 }
 0x57a   : > { %v5365_v2 = vsel %vm550_vm4, %v14710_v32, %v9200_v53  ;;  %v5435_v20 = vpack.c.bf16 %v5374_v7, %v5373_v44  ;;  %v9221_v28 = vunpack.i.h.bf16 %v9219_v17  ;;  %v14717_v32 = vpack.c.bf16 %v13561_v42, %v13552_v38 }
 0x57b   : > { %7680 = vmatmul.mubr.msk.bf16.gmra.mrb[136].mxu1 %vm550_vm4, %v5392_v18  ;;  %v5426_v60 = vpack.c.bf16 %v5366_v59, %v5365_v2  ;;  %v9205_v18 = vunpack.i.l.bf16 %v9204_v49 }
 0x57c   : > { %7683 = vmatprep.mubr.msk.bf16.mxu1 %vm550_vm4, %v5396_v21  ;;  %v9216_v21 = vunpack.i.h.bf16 %v9214_v11 }
 0x57d   : > { %v5367_v35 = vsel %vm550_vm4, %v14712_v13, %v9205_v18 }
 0x57e   : > { %v7347_v22 = vpop.f32.mrb[76].mxu1  ;;  %6055 = vmatmul.mubr.bf16.gmra.mrb[104].mxu0 %v5418_v50 }
 0x57f   : > { %v7348_v3 = vpop.f32.mrb[77].mxu1  ;;  %6062 = vmatprep.mubr.bf16.mxu0 %v13725_v36  ;;  %v5422_v36 = vpack.c.bf16 %v5364_v58, %v5363_v57  ;;  %v9220_v58 = vunpack.i.l.bf16 %v9219_v17 }
 0x580   : > { %v13796_v61 = vadd.f32 %v7348_v3, %v7347_v22  ;;  %v7350_v56 = vpop.f32.mrb[78].mxu1  ;;  %v9215_v22 = vunpack.i.l.bf16 %v9214_v11 }
 0x581   : > { %v7351_v37 = vpop.f32.mrb[79].mxu1  ;;  %v5371_v53 = vsel %vm550_vm4, %v13608_v14, %v9220_v58 }
 0x582   : > { %v13799_v33 = vadd.f32 %v7351_v37, %v7350_v56  ;;  %v5369_v3 = vsel %vm550_vm4, %v14714_v29, %v9215_v22  ;;  %v14715_v56 = vld [vmem:[#allocation75_spill] sm:$0xff] }
 0x583   : > { %7684 = vmatmul.mubr.msk.bf16.gmra.mrb[140].mxu1 %vm550_vm4, %v5400_v4  ;;  %v5370_v37 = vsel %vm550_vm4, %v14715_v56, %v9216_v21  ;;  %v5428_v4 = vpack.c.bf16 %v13596_v52, %v13593_v30  ;;  %v9284_v30 = vld [vmem:[%s14322_s12 + $0x8] sm:$0xff]   ;;  %v5432_v52 = vpack.c.bf16 %v13631_v19, %v13628_v51 }
 0x584   : > { %7687 = vmatprep.mubr.msk.bf16.mxu1 %vm550_vm4, %v5404_v39  ;;  %v5434_v57 = vpack.c.bf16 %v5370_v37, %v5369_v3  ;;  %7709 = vmatprep.subr.bf16.mxu0 %v9284_v30 }
 0x585   : > { %7710 = vmatpush3.bf16.msra.mxu0 %v9284_v30 }
 0x586   : > { %6063 = vmatmul.mubr.bf16.gmra.mrb[108].mxu0 %v5422_v36  ;;  %v14716_v36 = vld [vmem:[#allocation47_spill] sm:$0xff] }
 0x587   : > { %6070 = vmatprep.mubr.bf16.mxu0 %v13744_v1  ;;  %v9206_v1 = vunpack.i.h.bf16 %v9204_v49 }
 0x589   : > { %v5368_v5 = vsel %vm550_vm4, %v14713_v9, %v9206_v1  ;;  %v13885_v9 = vld [vmem:[%s14321_s11] ss:$0 sm:$0xff] }
 0x58a   : > { %v5430_v54 = vpack.c.bf16 %v5368_v5, %v5367_v35  ;;  %v5824_v37 = vadd.f32 %v13780_v41, %v13885_v9 }
 0x58b   : > { %7688 = vmatmul.mubr.msk.bf16.gmra.mrb[144].mxu1 %vm550_vm4, %v5408_v63  ;;  %v5372_v63 = vsel %vm550_vm4, %v13611_v6, %v9221_v28 }
 0x58c   : > { %7691 = vmatprep.mubr.msk.bf16.mxu1 %vm550_vm4, %v5412_v10  ;;  %v5438_v2 = vpack.c.bf16 %v5372_v63, %v5371_v53  ;;  %v5832_v63 = vadd.f32 %v13796_v61, %v13885_v9 }
 0x58e   : > { %6071 = vmatmul.mubr.bf16.gmra.mrb[112].mxu0 %v5426_v60 }
 0x58f   : > { %6078 = vmatprep.mubr.bf16.mxu0 %v13760_v24 }
 0x593   : > { %7692 = vmatmul.mubr.msk.bf16.gmra.mrb[148].mxu1 %vm550_vm4, %v5416_v27 }
 0x594   : > { %7695 = vmatprep.mubr.msk.bf16.mxu1 %vm550_vm4, %v5420_v34  ;;  %v5816_v34 = vadd.f32 %v13697_v46, %v13885_v9 }
 0x596   : > { %v7353_v24 = vpop.f32.mrb[80].mxu1  ;;  %6079 = vmatmul.mubr.bf16.gmra.mrb[116].mxu0 %v5430_v54 }
 0x597   : > { %v7354_v43 = vpop.f32.mrb[81].mxu1  ;;  %6086 = vmatprep.mubr.bf16.mxu0 %v5435_v20 }
 0x598   : > { %v13837_v50 = vadd.f32 %v7354_v43, %v7353_v24  ;;  %v7356_v45 = vpop.f32.mrb[82].mxu1  ;;  %v5819_v43 = vadd.f32 %v13709_v62, %v13885_v9 }
 0x599   : > { %v7357_v48 = vpop.f32.mrb[83].mxu1 }
 0x59a   : > { %v13839_v15 = vadd.f32 %v7357_v48, %v7356_v45 }
 0x59b   : > { %7696 = vmatmul.mubr.msk.bf16.gmra.mrb[152].mxu1 %vm550_vm4, %v5424_v8 }
 0x59c   : > { %7699 = vmatprep.mubr.msk.bf16.mxu1 %vm550_vm4, %v5428_v4 }
 0x59e   : > { %v7359_v40 = vpop.f32.mrb[84].mxu1  ;;  %6087 = vmatmul.mubr.bf16.gmra.mrb[120].mxu0 %v5434_v57 }
 0x59f   : > { %v7360_v23 = vpop.f32.mrb[85].mxu1  ;;  %6094 = vmatprep.mubr.bf16.mxu0 %v14716_v36 }
 0x5a0   : > { %v13851_v26 = vadd.f32 %v7360_v23, %v7359_v40  ;;  %v7362_v16 = vpop.f32.mrb[86].mxu1  ;;  %v5827_v40 = vadd.f32 %v13783_v47, %v13885_v9 }
 0x5a1   : > { %v7363_v39 = vpop.f32.mrb[87].mxu1 }
 0x5a2   : > { %v13854_v25 = vadd.f32 %v7363_v39, %v7362_v16 }
 0x5a3   : > { %7700 = vmatmul.mubr.msk.bf16.gmra.mrb[156].mxu1 %vm550_vm4, %v5432_v52 }
 0x5a4   : > { %7703 = vmatprep.mubr.msk.bf16.mxu1 %vm550_vm4, %v14717_v32 }
 0x5a6   : > { %6095 = vmatmul.mubr.bf16.gmra.mrb[124].mxu0 %v5438_v2 }
 0x5ab   : > { %7704 = vmatmul.mubr.msk.bf16.gmra.mrb[160].mxu1 %vm550_vm4, %v14718_v31  ;;  %v5835_v31 = vadd.f32 %v13799_v33, %v13885_v9 }
 0x5b2   : > { %v7365_v51 = vpop.f32.mrb[88].mxu1 }
 0x5b3   : > { %v7366_v19 = vpop.f32.mrb[89].mxu1 }
 0x5b4   : > { %v13872_v14 = vadd.f32 %v7366_v19, %v7365_v51  ;;  %v7368_v59 = vpop.f32.mrb[90].mxu1 }
 0x5b5   : > { %v7369_v6 = vpop.f32.mrb[91].mxu1 }
 0x5b6   : > { %v13874_v49 = vadd.f32 %v7369_v6, %v7368_v59 }
 0x5ba   : > { %v7371_v10 = vpop.f32.mrb[92].mxu1 }
 0x5bb   : > { %v7372_v12 = vpop.f32.mrb[93].mxu1 }
 0x5bc   : > { %v13876_v60 = vadd.f32 %v7372_v12, %v7371_v10  ;;  %v7374_v38 = vpop.f32.mrb[94].mxu1 }
 0x5bd   : > { %v7375_v42 = vpop.f32.mrb[95].mxu1 }
 0x5be   : > { %v13878_v1 = vadd.f32 %v7375_v42, %v7374_v38 }
 0x5ce   : > { %v7377_v18 = vpop.f32.mrb[96].mxu1 }
 0x5cf   : > { %v7378_v55 = vpop.f32.mrb[97].mxu1 }
 0x5d0   : > { %v13880_v0 = vadd.f32 %v7378_v55, %v7377_v18  ;;  %v7380_v27 = vpop.f32.mrb[98].mxu1 }
 0x5d1   : > { %v7381_v13 = vpop.f32.mrb[99].mxu1  ;;  %v7447_v35 = vpop.f32.mrb[64].mxu0 }
 0x5d2   : > { %v13887_v5 = vadd.f32 %v7381_v13, %v7380_v27  ;;  %v7448_v11 = vpop.f32.mrb[65].mxu0  ;;  %v5840_v27 = vadd.f32 %v13837_v50, %v13885_v9 }
 0x5d3   : > { %v7449_v44 = vadd.f32 %v7448_v11, %v7447_v35  ;;  %v7450_v7 = vpop.f32.mrb[66].mxu0  ;;  %v5843_v11 = vadd.f32 %v13839_v15, %v13885_v9 }
 0x5d4   : > { %v7451_v24 = vpop.f32.mrb[67].mxu0 }
 0x5d5   : > { %v7452_v54 = vadd.f32 %v7451_v24, %v7450_v7  ;;  %v13893_v21 = vadd.f32 %v7449_v44, %v5816_v34 }
 0x5d6   : > { %v7383_v22 = vpop.f32.mrb[100].mxu1 }
 0x5d7   : > { %v7384_v45 = vpop.f32.mrb[101].mxu1  ;;  %v13895_v20 = vadd.f32 %v7452_v54, %v5819_v43 }
 0x5d8   : > { %v13897_v48 = vadd.f32 %v7384_v45, %v7383_v22  ;;  %v7386_v8 = vpop.f32.mrb[102].mxu1 }
 0x5d9   : > { %v7387_v29 = vpop.f32.mrb[103].mxu1  ;;  %v7453_v3 = vpop.f32.mrb[68].mxu0 }
 0x5da   : > { %v13899_v56 = vadd.f32 %v7387_v29, %v7386_v8  ;;  %v7454_v46 = vpop.f32.mrb[69].mxu0 }
 0x5db   : > { %v7455_v17 = vadd.f32 %v7454_v46, %v7453_v3  ;;  %v7456_v62 = vpop.f32.mrb[70].mxu0  ;;  %v5848_v3 = vadd.f32 %v13851_v26, %v13885_v9 }
 0x5dc   : > { %v7457_v4 = vpop.f32.mrb[71].mxu0 }
 0x5dd   : > { %v7458_v57 = vadd.f32 %v7457_v4, %v7456_v62  ;;  %v13905_v28 = vadd.f32 %v7455_v17, %v5824_v37  ;;  %v5851_v17 = vadd.f32 %v13854_v25, %v13885_v9 }
 0x5df   : > { %v13907_v58 = vadd.f32 %v7458_v57, %v5827_v40 }
 0x5f2   : > { %v7389_v23 = vpop.f32.mrb[104].mxu1 }
 0x5f3   : > { %v7390_v16 = vpop.f32.mrb[105].mxu1 }
 0x5f4   : > { %v13909_v39 = vadd.f32 %v7390_v16, %v7389_v23  ;;  %v7392_v36 = vpop.f32.mrb[106].mxu1 }
 0x5f5   : > { %v7393_v30 = vpop.f32.mrb[107].mxu1  ;;  %v7459_v52 = vpop.f32.mrb[72].mxu0 }
 0x5f6   : > { %v13911_v53 = vadd.f32 %v7393_v30, %v7392_v36  ;;  %v7460_v41 = vpop.f32.mrb[73].mxu0 }
 0x5f7   : > { %v7461_v32 = vadd.f32 %v7460_v41, %v7459_v52  ;;  %v7462_v47 = vpop.f32.mrb[74].mxu0 }
 0x5f8   : > { %v7463_v2 = vpop.f32.mrb[75].mxu0 }
 0x5f9   : > { %v7464_v51 = vadd.f32 %v7463_v2, %v7462_v47  ;;  %v13917_v19 = vadd.f32 %v7461_v32, %v5832_v63  ;;  %v5856_v63 = vadd.f32 %v13872_v14, %v13885_v9  ;;  %v5859_v2 = vadd.f32 %v13874_v49, %v13885_v9 }
 0x5fa   : > { %v7395_v59 = vpop.f32.mrb[108].mxu1 }
 0x5fb   : > { %v7396_v6 = vpop.f32.mrb[109].mxu1  ;;  %v13919_v10 = vadd.f32 %v7464_v51, %v5835_v31 }
 0x5fc   : > { %v13921_v12 = vadd.f32 %v7396_v6, %v7395_v59  ;;  %v7398_v38 = vpop.f32.mrb[110].mxu1 }
 0x5fd   : > { %v7399_v42 = vpop.f32.mrb[111].mxu1  ;;  %v7465_v18 = vpop.f32.mrb[76].mxu0 }
 0x5fe   : > { %v13923_v55 = vadd.f32 %v7399_v42, %v7398_v38  ;;  %v7466_v61 = vpop.f32.mrb[77].mxu0 }
 0x5ff   : > { %v7467_v13 = vadd.f32 %v7466_v61, %v7465_v18  ;;  %v7468_v33 = vpop.f32.mrb[78].mxu0 }
 0x600   : > { %v7469_v35 = vpop.f32.mrb[79].mxu0 }
 0x601   : > { %v7470_v34 = vadd.f32 %v7469_v35, %v7468_v33  ;;  %v13929_v44 = vadd.f32 %v7467_v13, %v5840_v27  ;;  %v5864_v33 = vadd.f32 %v13876_v60, %v13885_v9 }
 0x603   : > { %v13931_v7 = vadd.f32 %v7470_v34, %v5843_v11  ;;  %v5867_v34 = vadd.f32 %v13878_v1, %v13885_v9 }
 0x612   : > { %v7401_v24 = vpop.f32.mrb[112].mxu1 }
 0x613   : > { %v7402_v43 = vpop.f32.mrb[113].mxu1 }
 0x614   : > { %v13933_v54 = vadd.f32 %v7402_v43, %v7401_v24  ;;  %v7404_v22 = vpop.f32.mrb[114].mxu1 }
 0x615   : > { %v7405_v45 = vpop.f32.mrb[115].mxu1  ;;  %v7471_v8 = vpop.f32.mrb[80].mxu0 }
 0x616   : > { %v13935_v29 = vadd.f32 %v7405_v45, %v7404_v22  ;;  %v7472_v50 = vpop.f32.mrb[81].mxu0 }
 0x617   : > { %v7473_v46 = vadd.f32 %v7472_v50, %v7471_v8  ;;  %v7474_v15 = vpop.f32.mrb[82].mxu0 }
 0x618   : > { %v7475_v37 = vpop.f32.mrb[83].mxu0 }
 0x619   : > { %v7476_v62 = vadd.f32 %v7475_v37, %v7474_v15  ;;  %v13941_v4 = vadd.f32 %v7473_v46, %v5848_v3 }
 0x61a   : > { %v7407_v40 = vpop.f32.mrb[116].mxu1 }
 0x61b   : > { %v13943_v57 = vadd.f32 %v7476_v62, %v5851_v17  ;;  %v7408_v23 = vpop.f32.mrb[117].mxu1  ;;  %v5872_v17 = vadd.f32 %v13880_v0, %v13885_v9 }
 0x61c   : > { %v13945_v16 = vadd.f32 %v7408_v23, %v7407_v40  ;;  %v7410_v36 = vpop.f32.mrb[118].mxu1  ;;  %v5875_v23 = vadd.f32 %v13887_v5, %v13885_v9 }
 0x61d   : > { %v7411_v30 = vpop.f32.mrb[119].mxu1  ;;  %v7477_v52 = vpop.f32.mrb[84].mxu0 }
 0x61e   : > { %v13947_v41 = vadd.f32 %v7411_v30, %v7410_v36  ;;  %v7478_v26 = vpop.f32.mrb[85].mxu0 }
 0x61f   : > { %v7479_v32 = vadd.f32 %v7478_v26, %v7477_v52  ;;  %v7480_v25 = vpop.f32.mrb[86].mxu0 }
 0x620   : > { %v7481_v47 = vpop.f32.mrb[87].mxu0 }
 0x621   : > { %v7482_v31 = vadd.f32 %v7481_v47, %v7480_v25  ;;  %v13953_v51 = vadd.f32 %v7479_v32, %v5856_v63 }
 0x623   : > { %v13955_v59 = vadd.f32 %v7482_v31, %v5859_v2 }
 0x62e   : > { %v7413_v6 = vpop.f32.mrb[120].mxu1 }
 0x62f   : > { %v7414_v38 = vpop.f32.mrb[121].mxu1 }
 0x630   : > { %v13957_v42 = vadd.f32 %v7414_v38, %v7413_v6  ;;  %v7416_v18 = vpop.f32.mrb[122].mxu1  ;;  %v5880_v6 = vadd.f32 %v13897_v48, %v13885_v9 }
 0x631   : > { %v7417_v61 = vpop.f32.mrb[123].mxu1  ;;  %v7483_v27 = vpop.f32.mrb[88].mxu0 }
 0x632   : > { %v13959_v13 = vadd.f32 %v7417_v61, %v7416_v18  ;;  %v7484_v14 = vpop.f32.mrb[89].mxu0  ;;  %v5883_v61 = vadd.f32 %v13899_v56, %v13885_v9 }
 0x633   : > { %v7485_v35 = vadd.f32 %v7484_v14, %v7483_v27  ;;  %v7486_v49 = vpop.f32.mrb[90].mxu0 }
 0x634   : > { %v7487_v11 = vpop.f32.mrb[91].mxu0 }
 0x635   : > { %v7488_v24 = vadd.f32 %v7487_v11, %v7486_v49  ;;  %v13965_v43 = vadd.f32 %v7485_v35, %v5864_v33 }
 0x636   : > { %v7419_v22 = vpop.f32.mrb[124].mxu1 }
 0x637   : > { %v13967_v45 = vadd.f32 %v7488_v24, %v5867_v34  ;;  %v7420_v8 = vpop.f32.mrb[125].mxu1 }
 0x638   : > { %v13969_v50 = vadd.f32 %v7420_v8, %v7419_v22  ;;  %v7422_v3 = vpop.f32.mrb[126].mxu1 }
 0x639   : > { %v7423_v46 = vpop.f32.mrb[127].mxu1  ;;  %v7489_v15 = vpop.f32.mrb[92].mxu0 }
 0x63a   : > { %v13971_v37 = vadd.f32 %v7423_v46, %v7422_v3  ;;  %v7490_v60 = vpop.f32.mrb[93].mxu0 }
 0x63b   : > { %v7491_v62 = vadd.f32 %v7490_v60, %v7489_v15  ;;  %v7492_v1 = vpop.f32.mrb[94].mxu0  ;;  %v5888_v15 = vadd.f32 %v13909_v39, %v13885_v9 }
 0x63c   : > { %v7493_v40 = vpop.f32.mrb[95].mxu0 }
 0x63d   : > { %v7494_v36 = vadd.f32 %v7493_v40, %v7492_v1  ;;  %v13977_v30 = vadd.f32 %v7491_v62, %v5872_v17  ;;  %v5891_v1 = vadd.f32 %v13911_v53, %v13885_v9 }
 0x63e   : > { %v7425_v52 = vpop.f32.mrb[128].mxu1 }
 0x63f   : > { %v7426_v26 = vpop.f32.mrb[129].mxu1  ;;  %v13979_v63 = vadd.f32 %v7494_v36, %v5875_v23 }
 0x640   : > { %v13981_v32 = vadd.f32 %v7426_v26, %v7425_v52  ;;  %v7428_v25 = vpop.f32.mrb[130].mxu1 }
 0x641   : > { %v7429_v47 = vpop.f32.mrb[131].mxu1  ;;  %v7495_v2 = vpop.f32.mrb[96].mxu0 }
 0x642   : > { %v13983_v31 = vadd.f32 %v7429_v47, %v7428_v25  ;;  %v7496_v0 = vpop.f32.mrb[97].mxu0 }
 0x643   : > { %v7497_v38 = vadd.f32 %v7496_v0, %v7495_v2  ;;  %v7498_v5 = vpop.f32.mrb[98].mxu0 }
 0x644   : > { %v7499_v18 = vpop.f32.mrb[99].mxu0 }
 0x645   : > { %v7500_v27 = vadd.f32 %v7499_v18, %v7498_v5  ;;  %v13989_v14 = vadd.f32 %v7497_v38, %v5880_v6  ;;  %v5896_v5 = vadd.f32 %v13921_v12, %v13885_v9 }
 0x646   : > { %v7677_v33 = vpop.f32.mrb[132].mxu1 }
 0x647   : > { %v13992_v35 = vadd.f32 %v7677_v33, %v13905_v28  ;;  %v6137_v49 = vpop.f32.mrb[133].mxu1  ;;  %v13994_v11 = vadd.f32 %v7500_v27, %v5883_v61 }
 0x648   : > { %v13997_v34 = vadd.f32 %v6137_v49, %v13893_v21  ;;  %v7678_v48 = vpop.f32.mrb[134].mxu1  ;;  %v5899_v49 = vadd.f32 %v13923_v55, %v13885_v9 }
 0x649   : > { %v7111_v24 = vmul.f32 -1.442695, %v13992_v35  ;;  %v14001_v22 = vadd.f32 %v7678_v48, %v13907_v58  ;;  %v7501_v56 = vpop.f32.mrb[100].mxu0  ;;  %v6140_v8 = vpop.f32.mrb[135].mxu1 }
 0x64a   : > { %v7109_v3 = vmul.f32 -1.442695, %v13997_v34  ;;  %v14005_v46 = vadd.f32 %v6140_v8, %v13895_v20  ;;  %v7502_v28 = vpop.f32.mrb[101].mxu0 }
 0x64b   : > { %9545 = vpow2.f32 %v7111_v24  ;;  %v7112_v21 = vmul.f32 -1.442695, %v14001_v22  ;;  %v7503_v60 = vadd.f32 %v7502_v28, %v7501_v56  ;;  %v7504_v17 = vpop.f32.mrb[102].mxu0 }
 0x64c   : > { %9547 = vpow2.f32 %v7109_v3  ;;  %v7110_v58 = vmul.f32 -1.442695, %v14005_v46  ;;  %v7505_v62 = vpop.f32.mrb[103].mxu0 }
 0x64d   : > { %9549 = vpow2.f32 %v7112_v21  ;;  %v7506_v40 = vadd.f32 %v7505_v62, %v7504_v17  ;;  %v14013_v20 = vadd.f32 %v7503_v60, %v5888_v15 }
 0x64e   : > { %9551 = vpow2.f32 %v7110_v58  ;;  %v7681_v23 = vpop.f32.mrb[136].mxu1 }
 0x64f   : > { %v14016_v39 = vadd.f32 %v7681_v23, %v13929_v44  ;;  %v6153_v36 = vpop.f32.mrb[137].mxu1  ;;  %v14018_v52 = vadd.f32 %v7506_v40, %v5891_v1 }
 0x650   : > { %v14021_v26 = vadd.f32 %v6153_v36, %v13917_v19  ;;  %v7682_v25 = vpop.f32.mrb[138].mxu1 }
 0x651   : > { %v7115_v47 = vmul.f32 -1.442695, %v14016_v39  ;;  %v14025_v53 = vadd.f32 %v7682_v25, %v13931_v7  ;;  %v7507_v2 = vpop.f32.mrb[104].mxu0  ;;  %v6156_v0 = vpop.f32.mrb[139].mxu1 }
 0x652   : > { %v7113_v6 = vmul.f32 -1.442695, %v14021_v26  ;;  %v14029_v38 = vadd.f32 %v6156_v0, %v13919_v10  ;;  %v7508_v44 = vpop.f32.mrb[105].mxu0 }
 0x653   : > { %9553 = vpow2.f32 %v7115_v47  ;;  %v7116_v19 = vmul.f32 -1.442695, %v14025_v53  ;;  %v7509_v18 = vadd.f32 %v7508_v44, %v7507_v2  ;;  %v7510_v61 = vpop.f32.mrb[106].mxu0  ;;  %v5912_v44 = vadd.f32 %v13945_v16, %v13885_v9 }
 0x654   : > { %9555 = vpow2.f32 %v7113_v6  ;;  %v7114_v7 = vmul.f32 -1.442695, %v14029_v38  ;;  %v7511_v27 = vpop.f32.mrb[107].mxu0  ;;  %v14075_v16 = vadd.f32 %v13959_v13, %v13885_v9 }
 0x655   : > { %v9546_v33 = vpop.eup %9545  ;;  %9557 = vpow2.f32 %v7116_v19  ;;  %v7512_v10 = vadd.f32 %v7511_v27, %v7510_v61  ;;  %v14037_v48 = vadd.f32 %v7509_v18, %v5896_v5  ;;  %v14065_v18 = vadd.f32 %v13947_v41, %v13885_v9 }
 0x656   : > { %v9548_v24 = vpop.eup %9547  ;;  %v6362_v56 = vadd.f32 1.0, %v9546_v33  ;;  %9559 = vpow2.f32 %v7114_v7  ;;  %v7685_v12 = vpop.f32.mrb[140].mxu1 }
 0x657   : > { %v9550_v8 = vpop.eup %9549  ;;  %v6360_v3 = vadd.f32 1.0, %v9548_v24  ;;  %v14040_v28 = vadd.f32 %v7685_v12, %v13953_v51  ;;  %v6169_v15 = vpop.f32.mrb[141].mxu1  ;;  %v14042_v21 = vadd.f32 %v7512_v10, %v5899_v49 }
 0x658   : > { %v9552_v60 = vpop.eup %9551  ;;  %9561 = vrcp.f32 %v6362_v56  ;;  %v6363_v17 = vadd.f32 1.0, %v9550_v8  ;;  %v14045_v55 = vadd.f32 %v6169_v15, %v13941_v4  ;;  %v7686_v58 = vpop.f32.mrb[142].mxu1  ;;  %v5904_v4 = vadd.f32 %v13933_v54, %v13885_v9 }
 0x659   : > { %9563 = vrcp.f32 %v6360_v3  ;;  %v6361_v62 = vadd.f32 1.0, %v9552_v60  ;;  %v7119_v1 = vmul.f32 -1.442695, %v14040_v28  ;;  %v14049_v40 = vadd.f32 %v7686_v58, %v13955_v59  ;;  %v7513_v23 = vpop.f32.mrb[108].mxu0  ;;  %v6172_v51 = vpop.f32.mrb[143].mxu1 }
 0x65a   : > { %9565 = vrcp.f32 %v6363_v17  ;;  %v7117_v36 = vmul.f32 -1.442695, %v14045_v55  ;;  %v14053_v25 = vadd.f32 %v6172_v51, %v13943_v57  ;;  %v7514_v47 = vpop.f32.mrb[109].mxu0  ;;  %v5907_v59 = vadd.f32 %v13935_v29, %v13885_v9 }
 0x65b   : > { %9567 = vrcp.f32 %v6361_v62  ;;  %v7120_v2 = vmul.f32 -1.442695, %v14049_v40  ;;  %v7515_v0 = vadd.f32 %v7514_v47, %v7513_v23  ;;  %v7516_v6 = vpop.f32.mrb[110].mxu0  ;;  %v14071_v29 = vadd.f32 %v13957_v42, %v13885_v9 }
 0x65c   : > { %9569 = vpow2.f32 %v7119_v1  ;;  %v7118_v5 = vmul.f32 -1.442695, %v14053_v25  ;;  %v7517_v57 = vpop.f32.mrb[111].mxu0  ;;  %v14084_v42 = vadd.f32 %v13969_v50, %v13885_v9  ;;  %v14095_v50 = vadd.f32 %v13971_v37, %v13885_v9 }
 0x65d   : > { %v9554_v19 = vpop.eup %9553  ;;  %9571 = vpow2.f32 %v7117_v36  ;;  %v7518_v54 = vadd.f32 %v7517_v57, %v7516_v6  ;;  %v14067_v61 = vadd.f32 %v7515_v0, %v5904_v4  ;;  %v14105_v37 = vadd.f32 %v13981_v32, %v13885_v9 }
 0x65e   : > { %v9556_v7 = vpop.eup %9555  ;;  %v6366_v27 = vadd.f32 1.0, %v9554_v19  ;;  %9573 = vpow2.f32 %v7120_v2  ;;  %v7689_v33 = vpop.f32.mrb[144].mxu1 }
 0x65f   : > { %v9558_v49 = vpop.eup %9557  ;;  %v6364_v10 = vadd.f32 1.0, %v9556_v7  ;;  %9575 = vpow2.f32 %v7118_v5  ;;  %v14078_v41 = vadd.f32 %v7689_v33, %v13977_v30  ;;  %v6185_v24 = vpop.f32.mrb[145].mxu1  ;;  %v14080_v56 = vadd.f32 %v7518_v54, %v5907_v59  ;;  %v14719_v5 = vld [vmem:[#allocation12_spill] sm:$0xff]  ;;  %v14720_v7 = vld [vmem:[#allocation11_spill] sm:$0xff] }
 0x660   : > { %v9560_v12 = vpop.eup %9559  ;;  %9577 = vrcp.f32 %v6366_v27  ;;  %v6367_v13 = vadd.f32 1.0, %v9558_v49  ;;  %v14087_v8 = vadd.f32 %v6185_v24, %v13965_v43  ;;  %v7690_v3 = vpop.f32.mrb[146].mxu1 }
 0x661   : > { %9579 = vrcp.f32 %v6364_v10  ;;  %v6365_v15 = vadd.f32 1.0, %v9560_v12  ;;  %v7123_v60 = vmul.f32 -1.442695, %v14078_v41  ;;  %v14091_v30 = vadd.f32 %v7690_v3, %v13979_v63  ;;  %v7519_v17 = vpop.f32.mrb[112].mxu0  ;;  %v6188_v58 = vpop.f32.mrb[147].mxu1  ;;  %v14721_v10 = vld [vmem:[#allocation25_spill] sm:$0xff] }
 0x662   : > { %v9562_v62 = vpop.eup %9561  ;;  %9581 = vrcp.f32 %v6367_v13  ;;  %v7121_v1 = vmul.f32 -1.442695, %v14087_v8  ;;  %v14099_v43 = vadd.f32 %v6188_v58, %v13967_v45  ;;  %v7520_v23 = vpop.f32.mrb[113].mxu0 }
 0x663   : > { %v9564_v51 = vpop.eup %9563  ;;  %v6458_v36 = vmul.f32 %v9562_v62, %v13992_v35  ;;  %9583 = vrcp.f32 %v6365_v15  ;;  %v7124_v63 = vmul.f32 -1.442695, %v14091_v30  ;;  %v7521_v47 = vadd.f32 %v7520_v23, %v7519_v17  ;;  %v7522_v4 = vpop.f32.mrb[114].mxu0  ;;  %v14722_v15 = vld [vmem:[#allocation26_spill] sm:$0xff] }
 0x664   : > { %v9566_v2 = vpop.eup %9565  ;;  %v6456_v0 = vmul.f32 %v9564_v51, %v13997_v34  ;;  %9585 = vpow2.f32 %v7123_v60  ;;  %v7122_v45 = vmul.f32 -1.442695, %v14099_v43  ;;  %v7523_v6 = vpop.f32.mrb[115].mxu0 }
 0x665   : > { %v9568_v59 = vpop.eup %9567  ;;  %v6490_v57 = vadd.f32 %v6458_v36, %v14719_v5  ;;  %v6459_v35 = vmul.f32 %v9566_v2, %v14001_v22  ;;  %9587 = vpow2.f32 %v7121_v1  ;;  %v7524_v19 = vadd.f32 %v7523_v6, %v7522_v4 }
 0x666   : > { %v9570_v54 = vpop.eup %9569  ;;  %v6488_v27 = vadd.f32 %v6456_v0, %v14720_v7  ;;  %v6457_v33 = vmul.f32 %v9568_v59, %v14005_v46  ;;  %9589 = vpow2.f32 %v7124_v63  ;;  %v7693_v32 = vpop.f32.mrb[148].mxu1  ;;  %v14113_v49 = vadd.f32 %v7521_v47, %v5912_v44  ;;  %v14723_v7 = vld [vmem:[#allocation14_spill] sm:$0xff] }
 0x667   : > { %v9572_v34 = vpop.eup %9571  ;;  %v6491_v24 = vadd.f32 %v6459_v35, %v14721_v10  ;;  %v6370_v12 = vadd.f32 1.0, %v9570_v54  ;;  %9591 = vpow2.f32 %v7122_v45  ;;  %v14117_v13 = vadd.f32 %v7693_v32, %v14013_v20  ;;  %v6201_v22 = vpop.f32.mrb[149].mxu1 }
 0x668   : > { %v9574_v3 = vpop.eup %9573  ;;  %v6489_v60 = vadd.f32 %v6457_v33, %v14722_v15  ;;  %v6368_v17 = vadd.f32 1.0, %v9572_v34  ;;  %v14121_v58 = vadd.f32 %v6201_v22, %v13989_v14  ;;  %v7694_v46 = vpop.f32.mrb[150].mxu1  ;;  %v14124_v44 = vadd.f32 %v7524_v19, %v14065_v18 }
 0x669   : > { %v9576_v62 = vpop.eup %9575  ;;  %v6521_v1 = vpack.c.bf16 %v6491_v24, %v6490_v57  ;;  %9593 = vrcp.f32 %v6370_v12  ;;  %v6371_v23 = vadd.f32 1.0, %v9574_v3  ;;  %v7127_v51 = vmul.f32 -1.442695, %v14117_v13  ;;  %v7525_v20 = vpop.f32.mrb[116].mxu0  ;;  %v14725_v24 = vld [vmem:[#allocation16_spill] sm:$0xff] }
 0x66a   : > { %v6204_v36 = vpop.f32.mrb[151].mxu1  ;;  %v9578_v63 = vpop.eup %9577  ;;  %v6520_v47 = vpack.c.bf16 %v6489_v60, %v6488_v27  ;;  %9595 = vrcp.f32 %v6368_v17  ;;  %v6369_v4 = vadd.f32 1.0, %v9576_v62  ;;  %v7125_v2 = vmul.f32 -1.442695, %v14121_v58  ;;  %v14726_v60 = vld [vmem:[#allocation15_spill] sm:$0xff] }
 0x66b   : > { %v7526_v14 = vpop.f32.mrb[117].mxu0  ;;  %v9580_v0 = vpop.eup %9579  ;;  %v6462_v45 = vmul.f32 %v9578_v63, %v14016_v39  ;;  %9597 = vrcp.f32 %v6371_v23  ;;  %v14130_v18 = vadd.f32 %v7694_v46, %v14018_v52  ;;  %v14133_v6 = vadd.f32 %v6204_v36, %v13994_v11 }
 0x66c   : > { %v7528_v59 = vpop.f32.mrb[118].mxu0  ;;  %v9582_v5 = vpop.eup %9581  ;;  %v14137_v57 = vadd.f32 %v13983_v31, %v13885_v9  ;;  %v6460_v35 = vmul.f32 %v9580_v0, %v14021_v26  ;;  %9599 = vrcp.f32 %v6369_v4  ;;  %v7527_v19 = vadd.f32 %v7526_v14, %v7525_v20  ;;  %7711 = vmatprep.mubr.msk.bf16.mxu0 %vm2040_vm13, %v6520_v47  ;;  %v14724_v9 = vld [vmem:[#allocation13_spill] sm:$0xff] }
 0x66d   : > { %v7529_v54 = vpop.f32.mrb[119].mxu0  ;;  %v9584_v39 = vpop.eup %9583  ;;  %v6494_v52 = vadd.f32 %v6462_v45, %v14723_v7  ;;  %v6463_v27 = vmul.f32 %v9582_v5, %v14025_v53  ;;  %9601 = vpow2.f32 %v7127_v51  ;;  %v7128_v11 = vmul.f32 -1.442695, %v14130_v18  ;;  %7712 = vmatmul.mubr.msk.bf16.vlgmr.msra.gmra.mrb[128].mxu0 %vm2040_vm13, %v6521_v1 }
 0x66e   : > { %v9586_v33 = vpop.eup %9585  ;;  %v6492_v31 = vadd.f32 %v6460_v35, %v14724_v9  ;;  %v6461_v26 = vmul.f32 %v9584_v39, %v14029_v38  ;;  %9603 = vpow2.f32 %v7125_v2  ;;  %v7126_v32 = vmul.f32 -1.442695, %v14133_v6  ;;  %v7697_v34 = vpop.f32.mrb[152].mxu1 }
 0x66f   : > { %v9588_v10 = vpop.eup %9587  ;;  %v6495_v12 = vadd.f32 %v6463_v27, %v14725_v24  ;;  %v6374_v22 = vadd.f32 1.0, %v9586_v33  ;;  %9605 = vpow2.f32 %v7128_v11  ;;  %v7530_v53 = vadd.f32 %v7529_v54, %v7528_v59  ;;  %v6217_v3 = vpop.f32.mrb[153].mxu1 }
 0x670   : > { %v9590_v15 = vpop.eup %9589  ;;  %v6493_v17 = vadd.f32 %v6461_v26, %v14726_v60  ;;  %v6372_v46 = vadd.f32 1.0, %v9588_v10  ;;  %9607 = vpow2.f32 %v7126_v32  ;;  %v14151_v62 = vadd.f32 %v7697_v34, %v14067_v61  ;;  %v7698_v38 = vpop.f32.mrb[154].mxu1 }
 0x671   : > { %v9592_v1 = vpop.eup %9591  ;;  %v6523_v23 = vpack.c.bf16 %v6495_v12, %v6494_v52  ;;  %9609 = vrcp.f32 %v6374_v22  ;;  %v6375_v51 = vadd.f32 1.0, %v9590_v15  ;;  %v14154_v20 = vadd.f32 %v6217_v3, %v14037_v48  ;;  %v7531_v36 = vpop.f32.mrb[120].mxu0  ;;  %v14729_v12 = vld [vmem:[#allocation21_spill] sm:$0xff] }
 0x672   : > { %v6220_v63 = vpop.f32.mrb[155].mxu1  ;;  %v6522_v47 = vpack.c.bf16 %v6493_v17, %v6492_v31  ;;  %9611 = vrcp.f32 %v6372_v46  ;;  %v6373_v4 = vadd.f32 1.0, %v9592_v1  ;;  %v7131_v2 = vmul.f32 -1.442695, %v14151_v62  ;;  %v7532_v14 = vpop.f32.mrb[121].mxu0  ;;  %v14730_v17 = vld [vmem:[#allocation22_spill] sm:$0xff] }
 0x673   : > { %v9594_v0 = vpop.eup %9593  ;;  %9613 = vrcp.f32 %v6375_v51  ;;  %v7129_v61 = vmul.f32 -1.442695, %v14154_v20  ;;  %v14159_v45 = vadd.f32 %v7698_v38, %v14080_v56  ;;  %v14162_v59 = vadd.f32 %v6220_v63, %v14042_v21  ;;  %v7534_v48 = vpop.f32.mrb[122].mxu0 }
 0x674   : > { %v9596_v5 = vpop.eup %9595  ;;  %v6466_v35 = vmul.f32 %v9594_v0, %v14040_v28  ;;  %9615 = vrcp.f32 %v6373_v4  ;;  %v14165_v54 = vadd.f32 %v7532_v14, %v7531_v36  ;;  %v7535_v39 = vpop.f32.mrb[123].mxu0  ;;  %7715 = vmatprep.mubr.msk.bf16.mxu0 %vm2040_vm13, %v6522_v47  ;;  %v6081_v7 = vadd.f32 %v7527_v19, %v14071_v29  ;;  %v14727_v28 = vld [vmem:[#allocation20_spill] sm:$0xff]  ;;  %v14728_v19 = vld [vmem:[#allocation19_spill] sm:$0xff] }
 0x675   : > { %v9598_v52 = vpop.eup %9597  ;;  %v6464_v27 = vmul.f32 %v9596_v5, %v14045_v55  ;;  %9617 = vpow2.f32 %v7131_v2  ;;  %v7132_v56 = vmul.f32 -1.442695, %v14159_v45  ;;  %v7130_v21 = vmul.f32 -1.442695, %v14162_v59  ;;  %7716 = vmatmul.mubr.msk.bf16.gmra.mrb[132].mxu0 %vm2040_vm13, %v6523_v23 }
 0x676   : > { %v9600_v11 = vpop.eup %9599  ;;  %v6498_v33 = vadd.f32 %v6466_v35, %v14727_v28  ;;  %v6467_v9 = vmul.f32 %v9598_v52, %v14049_v40  ;;  %9619 = vpow2.f32 %v7129_v61  ;;  %v14175_v31 = vadd.f32 %v7535_v39, %v7534_v48  ;;  %v7701_v26 = vpop.f32.mrb[156].mxu1 }
 0x677   : > { %v9602_v29 = vpop.eup %9601  ;;  %v6496_v32 = vadd.f32 %v6464_v27, %v14728_v19  ;;  %v6465_v55 = vmul.f32 %v9600_v11, %v14053_v25  ;;  %9621 = vpow2.f32 %v7132_v56  ;;  %v14179_v34 = vadd.f32 %v7701_v26, %v6081_v7  ;;  %v6233_v10 = vpop.f32.mrb[157].mxu1  ;;  %v14731_v11 = vld [vmem:[#allocation31_spill] sm:$0xff]  ;;  %v14732_v26 = vld [vmem:[#allocation32_spill] sm:$0xff] }
 0x678   : > { %v9604_v24 = vpop.eup %9603  ;;  %v6499_v22 = vadd.f32 %v6467_v9, %v14729_v12  ;;  %v6378_v3 = vadd.f32 1.0, %v9602_v29  ;;  %9623 = vpow2.f32 %v7130_v21  ;;  %v14183_v40 = vadd.f32 %v6233_v10, %v14113_v49  ;;  %v7702_v15 = vpop.f32.mrb[158].mxu1  ;;  %v14733_v10 = vld [vmem:[#allocation28_spill] sm:$0xff] }
 0x679   : > { %v9606_v60 = vpop.eup %9605  ;;  %v6497_v46 = vadd.f32 %v6465_v55, %v14730_v17  ;;  %v6376_v38 = vadd.f32 1.0, %v9604_v24  ;;  %v7135_v1 = vmul.f32 -1.442695, %v14179_v34  ;;  %v6084_v25 = vadd.f32 %v7530_v53, %v14075_v16  ;;  %v7537_v23 = vpop.f32.mrb[124].mxu0 }
 0x67a   : > { %v6236_v51 = vpop.f32.mrb[159].mxu1  ;;  %v9608_v36 = vpop.eup %9607  ;;  %v6525_v63 = vpack.c.bf16 %v6499_v22, %v6498_v33  ;;  %9625 = vrcp.f32 %v6378_v3  ;;  %v6379_v47 = vadd.f32 1.0, %v9606_v60  ;;  %v7133_v4 = vmul.f32 -1.442695, %v14183_v40 }
 0x67b   : > { %v7538_v2 = vpop.f32.mrb[125].mxu0  ;;  %v9610_v49 = vpop.eup %9609  ;;  %v6524_v14 = vpack.c.bf16 %v6497_v46, %v6496_v32  ;;  %9627 = vrcp.f32 %v6376_v38  ;;  %v6377_v0 = vadd.f32 1.0, %v9608_v36  ;;  %v14189_v61 = vadd.f32 %v7702_v15, %v6084_v25  ;;  %v14734_v15 = vld [vmem:[#allocation29_spill] sm:$0xff] }
 0x67c   : > { %v7540_v48 = vpop.f32.mrb[126].mxu0  ;;  %v9612_v5 = vpop.eup %9611  ;;  %v6470_v35 = vmul.f32 %v9610_v49, %v14078_v41  ;;  %9629 = vrcp.f32 %v6379_v47  ;;  %v14193_v16 = vadd.f32 %v6236_v51, %v14124_v44  ;;  %v7539_v53 = vadd.f32 %v7538_v2, %v7537_v23 }
 0x67d   : > { %v7541_v39 = vpop.f32.mrb[127].mxu0  ;;  %v9614_v7 = vpop.eup %9613  ;;  %v6468_v52 = vmul.f32 %v9612_v5, %v14087_v8  ;;  %9631 = vrcp.f32 %v6377_v0  ;;  %v7136_v27 = vmul.f32 -1.442695, %v14189_v61  ;;  %7719 = vmatprep.mubr.msk.bf16.mxu0 %vm2040_vm13, %v6524_v14  ;;  %v6092_v47 = vadd.f32 %v14175_v31, %v14095_v50 }
 0x67e   : > { %v7542_v56 = vadd.f32 %v7541_v39, %v7540_v48  ;;  %v9616_v21 = vpop.eup %9615  ;;  %v6502_v28 = vadd.f32 %v6470_v35, %v14731_v11  ;;  %v6471_v41 = vmul.f32 %v9614_v7, %v14091_v30  ;;  %9633 = vpow2.f32 %v7135_v1  ;;  %7720 = vmatmul.mubr.msk.bf16.gmra.mrb[136].mxu0 %vm2040_vm13, %v6525_v63  ;;  %v7705_v33 = vpop.f32.mrb[160].mxu1  ;;  %v14738_v11 = vld [vmem:[#allocation40_spill] sm:$0xff] }
 0x67f   : > { %v7134_v44 = vmul.f32 -1.442695, %v14193_v16  ;;  %v9618_v9 = vpop.eup %9617  ;;  %v6500_v8 = vadd.f32 %v6468_v52, %v14732_v26  ;;  %v6469_v29 = vmul.f32 %v9616_v21, %v14099_v43  ;;  %9635 = vpow2.f32 %v7133_v4  ;;  %v6249_v32 = vpop.f32.mrb[161].mxu1 }
 0x680   : > { %v6097_v19 = vadd.f32 %v7539_v53, %v14105_v37  ;;  %v9620_v55 = vpop.eup %9619  ;;  %v6503_v24 = vadd.f32 %v6471_v41, %v14733_v10  ;;  %v6382_v12 = vadd.f32 1.0, %v9618_v9  ;;  %9637 = vpow2.f32 %v7136_v27  ;;  %v7706_v22 = vpop.f32.mrb[162].mxu1  ;;  %v14735_v53 = vld [vmem:[#allocation27_spill] sm:$0xff] }
 0x681   : > { %v6089_v30 = vadd.f32 %v14165_v54, %v14084_v42  ;;  %v9622_v3 = vpop.eup %9621  ;;  %v6501_v60 = vadd.f32 %v6469_v29, %v14734_v15  ;;  %v6380_v17 = vadd.f32 1.0, %v9620_v55  ;;  %9639 = vpow2.f32 %v7134_v44  ;;  %v6252_v43 = vpop.f32.mrb[163].mxu1 }
 0x682   : > { %v14209_v46 = vadd.f32 %v7705_v33, %v6097_v19  ;;  %v9624_v38 = vpop.eup %9623  ;;  %v6527_v37 = vpack.c.bf16 %v6503_v24, %v6502_v28  ;;  %9641 = vrcp.f32 %v6382_v12  ;;  %v6383_v1 = vadd.f32 1.0, %v9622_v3  ;;  %v14739_v3 = vld [vmem:[#allocation49_spill] sm:$0xff] }
 0x683   : > { %v14211_v25 = vadd.f32 %v6249_v32, %v6089_v30  ;;  %v6526_v23 = vpack.c.bf16 %v6501_v60, %v6500_v8  ;;  %9643 = vrcp.f32 %v6380_v17  ;;  %v6381_v51 = vadd.f32 1.0, %v9624_v38  ;;  %v14742_v38 = vld [vmem:[#allocation52_spill] sm:$0xff] }
 0x684   : > { %v7139_v42 = vmul.f32 -1.442695, %v14209_v46  ;;  %v9626_v54 = vpop.eup %9625  ;;  %9645 = vrcp.f32 %v6383_v1  ;;  %v6100_v63 = vadd.f32 %v7542_v56, %v14137_v57  ;;  %v14223_v48 = vadd.f32 %v6252_v43, %v6092_v47  ;;  %v14737_v56 = vld [vmem:[#allocation38_spill] sm:$0xff] }
 0x685   : > { %v7137_v36 = vmul.f32 -1.442695, %v14211_v25  ;;  %v9628_v4 = vpop.eup %9627  ;;  %v6474_v2 = vmul.f32 %v9626_v54, %v14117_v13  ;;  %9647 = vrcp.f32 %v6381_v51  ;;  %7723 = vmatprep.mubr.msk.bf16.mxu0 %vm2040_vm13, %v6526_v23  ;;  %v14741_v43 = vld [vmem:[#allocation50_spill] sm:$0xff] }
 0x686   : > { %v9630_v49 = vpop.eup %9629  ;;  %v6472_v14 = vmul.f32 %v9628_v4, %v14121_v58  ;;  %9649 = vpow2.f32 %v7139_v42  ;;  %v14221_v0 = vadd.f32 %v7706_v22, %v6100_v63  ;;  %7724 = vmatmul.mubr.msk.bf16.gmra.mrb[140].mxu0 %vm2040_vm13, %v6527_v37  ;;  %v14736_v58 = vld [vmem:[#allocation39_spill] sm:$0xff] }
 0x687   : > { %v9632_v57 = vpop.eup %9631  ;;  %v6475_v5 = vmul.f32 %v9630_v49, %v14130_v18  ;;  %9651 = vpow2.f32 %v7137_v36  ;;  %v6506_v39 = vadd.f32 %v6474_v2, %v14735_v53  ;;  %v14746_v53 = vld [vmem:[#allocation57_spill] sm:$0xff] }
 0x688   : > { %v9634_v50 = vpop.eup %9633  ;;  %v6473_v13 = vmul.f32 %v9632_v57, %v14133_v6  ;;  %v7140_v31 = vmul.f32 -1.442695, %v14221_v0  ;;  %v6504_v21 = vadd.f32 %v6472_v14, %v14737_v56  ;;  %v7138_v6 = vmul.f32 -1.442695, %v14223_v48  ;;  %v14743_v57 = vld [vmem:[#allocation54_spill] sm:$0xff]  ;;  %v14747_v56 = vld [vmem:[#allocation59_spill] sm:$0xff] }
 0x689   : > { %v9636_v35 = vpop.eup %9635  ;;  %v6507_v7 = vadd.f32 %v6475_v5, %v14736_v58  ;;  %v6386_v52 = vadd.f32 1.0, %v9634_v50  ;;  %v14744_v50 = vld [vmem:[#allocation56_spill] sm:$0xff] }
 0x68a   : > { %v9638_v27 = vpop.eup %9637  ;;  %v6505_v28 = vadd.f32 %v6473_v13, %v14738_v11  ;;  %v6384_v41 = vadd.f32 1.0, %v9636_v35  ;;  %9653 = vpow2.f32 %v7140_v31  ;;  %v14745_v31 = vld [vmem:[#allocation55_spill] sm:$0xff]  ;;  %v14748_v11 = vld [vmem:[#allocation61_spill] sm:$0xff] }
 0x68b   : > { %v9640_v18 = vpop.eup %9639  ;;  %v6529_v44 = vpack.c.bf16 %v6507_v7, %v6506_v39  ;;  %9655 = vrcp.f32 %v6386_v52  ;;  %v6387_v33 = vadd.f32 1.0, %v9638_v27 }
 0x68c   : > { %v9642_v9 = vpop.eup %9641  ;;  %v6528_v26 = vpack.c.bf16 %v6505_v28, %v6504_v21  ;;  %9657 = vrcp.f32 %v6384_v41  ;;  %v6385_v8 = vadd.f32 1.0, %v9640_v18 }
 0x68d   : > { %v9644_v29 = vpop.eup %9643  ;;  %v6478_v19 = vmul.f32 %v9642_v9, %v14151_v62  ;;  %9659 = vrcp.f32 %v6387_v33  ;;  %v14740_v62 = vld [vmem:[#allocation51_spill] sm:$0xff] }
 0x68e   : > { %v9646_v32 = vpop.eup %9645  ;;  %v6476_v55 = vmul.f32 %v9644_v29, %v14154_v20  ;;  %9661 = vrcp.f32 %v6385_v8  ;;  %7727 = vmatprep.mubr.msk.bf16.mxu0 %vm2040_vm13, %v6528_v26  ;;  %v14750_v26 = vld [vmem:[#allocation62_spill] sm:$0xff] }
 0x68f   : > { %v9648_v10 = vpop.eup %9647  ;;  %v6479_v24 = vmul.f32 %v9646_v32, %v14159_v45  ;;  %9663 = vpow2.f32 %v7138_v6  ;;  %7728 = vmatmul.mubr.msk.bf16.gmra.mrb[144].mxu0 %vm2040_vm13, %v6529_v44  ;;  %v6510_v15 = vadd.f32 %v6478_v19, %v14739_v3  ;;  %v14749_v6 = vld [vmem:[#allocation60_spill] sm:$0xff] }
 0x690   : > { %v9650_v12 = vpop.eup %9649  ;;  %v6477_v30 = vmul.f32 %v9648_v10, %v14162_v59  ;;  %v6508_v20 = vadd.f32 %v6476_v55, %v14741_v43 }
 0x691   : > { %v9652_v22 = vpop.eup %9651  ;;  %v6511_v60 = vadd.f32 %v6479_v24, %v14740_v62  ;;  %v6390_v17 = vadd.f32 1.0, %v9650_v12 }
 0x692   : > { %v6509_v37 = vadd.f32 %v6477_v30, %v14742_v38  ;;  %v6388_v51 = vadd.f32 1.0, %v9652_v22 }
 0x693   : > { %v6531_v1 = vpack.c.bf16 %v6511_v60, %v6510_v15  ;;  %9665 = vrcp.f32 %v6390_v17 }
 0x694   : > { %v9654_v23 = vpop.eup %9653  ;;  %v6530_v45 = vpack.c.bf16 %v6509_v37, %v6508_v20 }
 0x695   : > { %v9656_v42 = vpop.eup %9655  ;;  %v6391_v54 = vadd.f32 1.0, %v9654_v23 }
 0x696   : > { %v9658_v36 = vpop.eup %9657  ;;  %v6482_v59 = vmul.f32 %v9656_v42, %v14179_v34  ;;  %7731 = vmatprep.mubr.msk.bf16.mxu0 %vm2040_vm13, %v6530_v45 }
 0x697   : > { %v9660_v63 = vpop.eup %9659  ;;  %v6480_v47 = vmul.f32 %v9658_v36, %v14183_v40  ;;  %9667 = vrcp.f32 %v6391_v54  ;;  %7732 = vmatmul.mubr.msk.bf16.gmra.mrb[148].mxu0 %vm2040_vm13, %v6531_v1 }
 0x698   : > { %v9662_v4 = vpop.eup %9661  ;;  %v6483_v2 = vmul.f32 %v9660_v63, %v14189_v61  ;;  %9669 = vrcp.f32 %v6388_v51  ;;  %v6514_v5 = vadd.f32 %v6482_v59, %v14743_v57 }
 0x699   : > { %v9664_v49 = vpop.eup %9663  ;;  %v6481_v14 = vmul.f32 %v9662_v4, %v14193_v16  ;;  %v6512_v35 = vadd.f32 %v6480_v47, %v14745_v31 }
 0x69a   : > { %v6515_v13 = vadd.f32 %v6483_v2, %v14744_v50  ;;  %v6389_v34 = vadd.f32 1.0, %v9664_v49 }
 0x69b   : > { %v6513_v39 = vadd.f32 %v6481_v14, %v14746_v53 }
 0x69c   : > { %v6533_v40 = vpack.c.bf16 %v6515_v13, %v6514_v5  ;;  %9671 = vrcp.f32 %v6389_v34 }
 0x69d   : > { %v9666_v58 = vpop.eup %9665  ;;  %v6532_v7 = vpack.c.bf16 %v6513_v39, %v6512_v35 }
 0x69e   : > { %v6486_v61 = vmul.f32 %v9666_v58, %v14209_v46 }
 0x69f   : > { %7735 = vmatprep.mubr.msk.bf16.mxu0 %vm2040_vm13, %v6532_v7 }
 0x6a0   : > { %7736 = vmatmul.mubr.msk.bf16.gmra.mrb[152].mxu0 %vm2040_vm13, %v6533_v40  ;;  %v6518_v21 = vadd.f32 %v6486_v61, %v14747_v56 }
 0x6a1   : > { %v9668_v16 = vpop.eup %9667 }
 0x6a2   : > { %v9670_v52 = vpop.eup %9669  ;;  %v6487_v27 = vmul.f32 %v9668_v16, %v14221_v0  ;;  %v14269_v0 = vld [vmem:[%s14323_s13] ss:$0 sm:$0xff] }
 0x6a3   : > { %v6484_v41 = vmul.f32 %v9670_v52, %v14211_v25 }
 0x6a4   : > { %v6519_v28 = vadd.f32 %v6487_v27, %v14748_v11 }
 0x6a5   : > { %v6516_v9 = vadd.f32 %v6484_v41, %v14749_v6 }
 0x6a6   : > { %v9672_v18 = vpop.eup %9671  ;;  %v6535_v44 = vpack.c.bf16 %v6519_v28, %v6518_v21 }
 0x6a7   : > { %v6485_v33 = vmul.f32 %v9672_v18, %v14223_v48 }
 0x6a9   : > { %v6517_v46 = vadd.f32 %v6485_v33, %v14750_v26 }
 0x6ab   : > { %v6534_v8 = vpack.c.bf16 %v6517_v46, %v6516_v9 }
 0x6ad   : > { %7739 = vmatprep.mubr.msk.bf16.mxu0 %vm2040_vm13, %v6534_v8 }
 0x6ae   : > { %7740 = vmatmul.mubr.msk.bf16.gmra.mrb[156].mxu0 %vm2040_vm13, %v6535_v44 }
 0x740   : > { %v7713_v29 = vpop.f32.mrb[128].mxu0 }
 0x741   : > { %v6641_v25 = vpop.f32.mrb[129].mxu0  ;;  %v6650_v12 = vadd.f32 %v7713_v29, %v14269_v0 }
 0x742   : > { %v6642_v19 = vadd.f32 %v14269_v0, %v6641_v25  ;;  %v7714_v32 = vpop.f32.mrb[130].mxu0 }
 0x743   : > { %v6644_v48 = vpop.f32.mrb[131].mxu0  ;;  %v6653_v3 = vadd.f32 %v7714_v32, %v14269_v0 }
 0x744   : > { %6768 = vxpose.xlu1.b32.start [1/16] (narrow) %v6642_v19, 8  ;;  %v6645_v55 = vadd.f32 %v14269_v0, %v6644_v48 }
 0x748   : > { %v7717_v10 = vpop.f32.mrb[132].mxu0  ;;  %6769 = vxpose.xlu1.b32.cont [2/16] (narrow) %v6645_v55, 8 }
 0x749   : > { %v6657_v24 = vpop.f32.mrb[133].mxu0  ;;  %v6666_v37 = vadd.f32 %v7717_v10, %v14269_v0 }
 0x74a   : > { %v7718_v30 = vpop.f32.mrb[134].mxu0  ;;  %v6658_v62 = vadd.f32 %v14269_v0, %v6657_v24 }
 0x74b   : > { %v6660_v22 = vpop.f32.mrb[135].mxu0  ;;  %v6669_v51 = vadd.f32 %v7718_v30, %v14269_v0 }
 0x74c   : > { %6770 = vxpose.xlu1.b32.cont [3/16] (narrow) %v6650_v12, 8  ;;  %v6661_v20 = vadd.f32 %v14269_v0, %v6660_v22 }
 0x750   : > { %6771 = vxpose.xlu1.b32.cont [4/16] (narrow) %v6653_v3, 8 }
 0x751   : > { %v7721_v15 = vpop.f32.mrb[136].mxu0 }
 0x752   : > { %v6673_v60 = vpop.f32.mrb[137].mxu0  ;;  %v6682_v49 = vadd.f32 %v7721_v15, %v14269_v0 }
 0x753   : > { %v7722_v17 = vpop.f32.mrb[138].mxu0  ;;  %v6674_v42 = vadd.f32 %v14269_v0, %v6673_v60 }
 0x754   : > { %v6676_v43 = vpop.f32.mrb[139].mxu0  ;;  %6772 = vxpose.xlu1.b32.cont [5/16] (narrow) %v6658_v62, 8  ;;  %v6685_v34 = vadd.f32 %v7722_v17, %v14269_v0 }
 0x755   : > { %v6677_v4 = vadd.f32 %v14269_v0, %v6676_v43 }
 0x758   : > { %6773 = vxpose.xlu1.b32.cont [6/16] (narrow) %v6661_v20, 8 }
 0x759   : > { %v7725_v38 = vpop.f32.mrb[140].mxu0 }
 0x75a   : > { %v6689_v1 = vpop.f32.mrb[141].mxu0  ;;  %v6698_v52 = vadd.f32 %v7725_v38, %v14269_v0 }
 0x75b   : > { %v7726_v23 = vpop.f32.mrb[142].mxu0  ;;  %v6690_v35 = vadd.f32 %v14269_v0, %v6689_v1 }
 0x75c   : > { %v6692_v45 = vpop.f32.mrb[143].mxu0  ;;  %6774 = vxpose.xlu1.b32.cont [7/16] (narrow) %v6666_v37, 8  ;;  %v6701_v56 = vadd.f32 %v7726_v23, %v14269_v0 }
 0x75d   : > { %v6693_v7 = vadd.f32 %v14269_v0, %v6692_v45 }
 0x760   : > { %6775 = vxpose.xlu1.b32.cont [8/16] (narrow) %v6669_v51, 8 }
 0x762   : > { %v7729_v54 = vpop.f32.mrb[144].mxu0 }
 0x763   : > { %v6705_v36 = vpop.f32.mrb[145].mxu0  ;;  %v6714_v5 = vadd.f32 %v7729_v54, %v14269_v0 }
 0x764   : > { %v6706_v59 = vadd.f32 %v14269_v0, %v6705_v36  ;;  %v7730_v63 = vpop.f32.mrb[146].mxu0  ;;  %6776 = vxpose.xlu1.b32.cont [9/16] (narrow) %v6674_v42, 8 }
 0x765   : > { %v6708_v47 = vpop.f32.mrb[147].mxu0  ;;  %v6717_v31 = vadd.f32 %v7730_v63, %v14269_v0 }
 0x766   : > { %6800 = vxpose.xlu0.b32.start [1/16] (narrow) %v6706_v59, 8  ;;  %v6709_v2 = vadd.f32 %v14269_v0, %v6708_v47 }
 0x768   : > { %6777 = vxpose.xlu1.b32.cont [10/16] (narrow) %v6677_v4, 8 }
 0x76a   : > { %v7733_v14 = vpop.f32.mrb[148].mxu0  ;;  %6801 = vxpose.xlu0.b32.cont [2/16] (narrow) %v6709_v2, 8 }
 0x76b   : > { %v6721_v57 = vpop.f32.mrb[149].mxu0  ;;  %v6730_v27 = vadd.f32 %v7733_v14, %v14269_v0 }
 0x76c   : > { %v7734_v50 = vpop.f32.mrb[150].mxu0  ;;  %6778 = vxpose.xlu1.b32.cont [11/16] (narrow) %v6682_v49, 8  ;;  %v6722_v39 = vadd.f32 %v14269_v0, %v6721_v57 }
 0x76d   : > { %v6724_v13 = vpop.f32.mrb[151].mxu0  ;;  %v6733_v21 = vadd.f32 %v7734_v50, %v14269_v0 }
 0x76e   : > { %6802 = vxpose.xlu0.b32.cont [3/16] (narrow) %v6714_v5, 8  ;;  %v6725_v16 = vadd.f32 %v14269_v0, %v6724_v13 }
 0x770   : > { %6779 = vxpose.xlu1.b32.cont [12/16] (narrow) %v6685_v34, 8 }
 0x772   : > { %6803 = vxpose.xlu0.b32.cont [4/16] (narrow) %v6717_v31, 8 }
 0x773   : > { %v7737_v53 = vpop.f32.mrb[152].mxu0 }
 0x774   : > { %v6737_v40 = vpop.f32.mrb[153].mxu0  ;;  %6780 = vxpose.xlu1.b32.cont [13/16] (narrow) %v6690_v35, 8  ;;  %v6746_v6 = vadd.f32 %v7737_v53, %v14269_v0 }
 0x775   : > { %v7738_v58 = vpop.f32.mrb[154].mxu0  ;;  %v6738_v18 = vadd.f32 %v14269_v0, %v6737_v40 }
 0x776   : > { %v6740_v61 = vpop.f32.mrb[155].mxu0  ;;  %6804 = vxpose.xlu0.b32.cont [5/16] (narrow) %v6722_v39, 8  ;;  %v6749_v9 = vadd.f32 %v7738_v58, %v14269_v0 }
 0x777   : > { %v6741_v33 = vadd.f32 %v14269_v0, %v6740_v61 }
 0x778   : > { %6781 = vxpose.xlu1.b32.cont [14/16] (narrow) %v6693_v7, 8 }
 0x77a   : > { %6805 = vxpose.xlu0.b32.cont [6/16] (narrow) %v6725_v16, 8 }
 0x77c   : > { %6782 = vxpose.xlu1.b32.cont [15/16] (narrow) %v6698_v52, 8 }
 0x77e   : > { %6806 = vxpose.xlu0.b32.cont [7/16] (narrow) %v6730_v27, 8 }
 0x780   : > { %6783 = vxpose.xlu1.b32.end [16/16] (narrow) %v6701_v56, 8 }
 0x781   : > { %v7741_v11 = vpop.f32.mrb[156].mxu0 }
 0x782   : > { %v6753_v28 = vpop.f32.mrb[157].mxu0  ;;  %6807 = vxpose.xlu0.b32.cont [8/16] (narrow) %v6733_v21, 8  ;;  %v6762_v8 = vadd.f32 %v7741_v11, %v14269_v0 }
 0x783   : > { %v7742_v41 = vpop.f32.mrb[158].mxu0  ;;  %v6754_v26 = vadd.f32 %v14269_v0, %v6753_v28 }
 0x784   : > { %v6756_v44 = vpop.f32.mrb[159].mxu0  ;;  %v6765_v29 = vadd.f32 %v7742_v41, %v14269_v0 }
 0x785   : > { %v6757_v46 = vadd.f32 %v14269_v0, %v6756_v44 }
 0x786   : > { %6808 = vxpose.xlu0.b32.cont [9/16] (narrow) %v6738_v18, 8 }
 0x78a   : > { %6809 = vxpose.xlu0.b32.cont [10/16] (narrow) %v6741_v33, 8 }
 0x78e   : > { %6810 = vxpose.xlu0.b32.cont [11/16] (narrow) %v6746_v6, 8 }
 0x792   : > { %6811 = vxpose.xlu0.b32.cont [12/16] (narrow) %v6749_v9, 8 }
 0x796   : > { %6812 = vxpose.xlu0.b32.cont [13/16] (narrow) %v6754_v26, 8 }
 0x79a   : > { %6813 = vxpose.xlu0.b32.cont [14/16] (narrow) %v6757_v46, 8 }
 0x79e   : > { %6814 = vxpose.xlu0.b32.cont [15/16] (narrow) %v6762_v8, 8 }
 0x7a2   : > { %6815 = vxpose.xlu0.b32.end [16/16] (narrow) %v6765_v29, 8 }
 0x7c4   : > { %v6784_v25 = vpop.trf.xlu1 }
 0x7e6   : > { %v6816_v19 = vpop.trf.xlu0 }
 0x7e7   : > { %v6834_v32 = vcombine.low %v6784_v25, %v6816_v19 }
 0x7e9   : > { %6836 = vst [vmem:[%s501_s23] sm:$0xff] %v6834_v32 }
 0x7ea PF: > { %s25_s29 = sadd.s32 1, %s9700_s29  }
 0x7eb   : > { %p22_p1 = scmp.ge.s32.totalorder %s25_s29, 4  }
 0x7ed   :  { %24 = sbr.rel (!%p22_p1) target bundleno = 1 (0x1), region = 115 }
 0x7f4   :  { %6858 = vsyncpa [#allocation3], 1 }
 0x7f5   :  { %6860 = vsyncpa [#allocation3 + $0x1], 1 }

</bundles_post_ra>
